<compile_context>
chip_gen: v7x
topology: tpu7x:2x2x1
jax: 0.10.0
libtpu: 0.0.40
codegen_flags: <defaults>
</compile_context>

<pallas_src>
import functools

import jax
import jax.numpy as jnp
from jax import lax
from jax.experimental import pallas as pl
from jax.experimental.pallas import tpu as pltpu

V_TH = 1.0       # IF neuron threshold
BN_EPS = 1e-5

_VMEM = lambda: pl.BlockSpec(memory_space=pltpu.MemorySpace.VMEM)


# ------------------------------ tiling helpers ------------------------------

def _round_up(x, m):
    return (x + m - 1) // m * m


def _tiles(M, K, N):
    """MXU/VMEM-friendly tile sizes + padded dims for a (M,K)x(K,N) matmul."""
    tm = min(256, _round_up(M, 8))
    Mp = _round_up(M, tm)
    Kp = _round_up(K, 128)
    tk = next(c for c in (512, 384, 256, 128) if Kp % c == 0)
    Np = _round_up(N, 128)
    tn = next(c for c in (512, 256, 128) if Np % c == 0)
    return tm, Mp, tk, Kp, tn, Np


# ----------------------------- Pallas kernels ------------------------------

def _conv_if_kernel(*refs, has_res):
    """(tm,tn) output tile of: im2col-conv matmul (K-accumulated) + BN bias
    (+ residual) + IF membrane update + spike + hard reset."""
    if has_res:
        p_ref, w_ref, b_ref, res_ref, v_ref, spk_ref, vout_ref, acc_ref = refs
    else:
        p_ref, w_ref, b_ref, v_ref, spk_ref, vout_ref, acc_ref = refs
        res_ref = None
    k = pl.program_id(2)

    @pl.when(k == 0)
    def _():
        acc_ref[...] = jnp.zeros_like(acc_ref)

    acc_ref[...] += jnp.dot(p_ref[...], w_ref[...],
                            preferred_element_type=jnp.float32)

    @pl.when(k == pl.num_programs(2) - 1)
    def _():
        y = acc_ref[...] + b_ref[...]
        if has_res:
            y = y + res_ref[...]
        v = v_ref[...] + y                        # IF: integrate
        spk = (v >= V_TH).astype(jnp.float32)     # fire
        spk_ref[...] = spk.astype(spk_ref.dtype)
        vout_ref[...] = v * (1.0 - spk)           # hard reset to 0


def _conv_bias_kernel(p_ref, w_ref, b_ref, out_ref, acc_ref):
    """(tm,tn) output tile of: 1x1 downsample conv matmul + folded-BN bias."""
    k = pl.program_id(2)

    @pl.when(k == 0)
    def _():
        acc_ref[...] = jnp.zeros_like(acc_ref)

    acc_ref[...] += jnp.dot(p_ref[...], w_ref[...],
                            preferred_element_type=jnp.float32)

    @pl.when(k == pl.num_programs(2) - 1)
    def _():
        out_ref[...] = acc_ref[...] + b_ref[...]


def _pool_fc_kernel(x_ref, w_ref, b_ref, out_ref, *, inv_hw):
    """Adaptive avg-pool to (1,1) + flatten + linear (lane-dense padded output)."""
    pooled = jnp.sum(x_ref[...].astype(jnp.float32), axis=1) * inv_hw
    out_ref[...] = jnp.dot(pooled, w_ref[...],
                           preferred_element_type=jnp.float32) + b_ref[...]


# ------------------------------ kernel wrappers -----------------------------

def conv_if(patches, w, bias, residual, v):
    """Fused conv (im2col matmul) + folded BN + optional residual + IF update."""
    M, K = patches.shape
    N = w.shape[1]
    tm, Mp, tk, Kp, tn, Np = _tiles(M, K, N)

    p = jnp.pad(patches, ((0, Mp - M), (0, Kp - K)))
    wp = jnp.pad(w, ((0, Kp - K), (0, Np - N)))
    bp = jnp.pad(bias.reshape(1, -1), ((0, 0), (0, Np - N)))
    vp = jnp.pad(v, ((0, Mp - M), (0, Np - N)))

    has_res = residual is not None
    args = [p, wp, bp]
    in_specs = [pl.BlockSpec((tm, tk), lambda i, j, k: (i, k)),
                pl.BlockSpec((tk, tn), lambda i, j, k: (k, j)),
                pl.BlockSpec((1, tn), lambda i, j, k: (0, j))]
    if has_res:
        args.append(jnp.pad(residual, ((0, Mp - M), (0, Np - N))))
        in_specs.append(pl.BlockSpec((tm, tn), lambda i, j, k: (i, j)))
    args.append(vp)
    in_specs.append(pl.BlockSpec((tm, tn), lambda i, j, k: (i, j)))

    spk, vout = pl.pallas_call(
        functools.partial(_conv_if_kernel, has_res=has_res),
        out_shape=(jax.ShapeDtypeStruct((Mp, Np), jnp.bfloat16),
                   jax.ShapeDtypeStruct((Mp, Np), jnp.float32)),
        grid_spec=pltpu.PrefetchScalarGridSpec(
            num_scalar_prefetch=0,
            grid=(Mp // tm, Np // tn, Kp // tk),
            in_specs=in_specs,
            out_specs=(pl.BlockSpec((tm, tn), lambda i, j, k: (i, j)),
                       pl.BlockSpec((tm, tn), lambda i, j, k: (i, j))),
            scratch_shapes=[pltpu.VMEM((tm, tn), jnp.float32)]),
        compiler_params=pltpu.CompilerParams(
            dimension_semantics=("parallel", "parallel", "arbitrary")),
    )(*args)
    return spk[:M, :N], vout[:M, :N]


def conv_bias(x2d, w, bias):
    """Tiled matmul + bias (1x1 downsample conv with folded BN), f32 output."""
    M, K = x2d.shape
    N = w.shape[1]
    tm, Mp, tk, Kp, tn, Np = _tiles(M, K, N)
    p = jnp.pad(x2d, ((0, Mp - M), (0, Kp - K)))
    wp = jnp.pad(w, ((0, Kp - K), (0, Np - N)))
    bp = jnp.pad(bias.reshape(1, -1), ((0, 0), (0, Np - N)))
    out = pl.pallas_call(
        _conv_bias_kernel,
        out_shape=jax.ShapeDtypeStruct((Mp, Np), jnp.float32),
        grid_spec=pltpu.PrefetchScalarGridSpec(
            num_scalar_prefetch=0,
            grid=(Mp // tm, Np // tn, Kp // tk),
            in_specs=[pl.BlockSpec((tm, tk), lambda i, j, k: (i, k)),
                      pl.BlockSpec((tk, tn), lambda i, j, k: (k, j)),
                      pl.BlockSpec((1, tn), lambda i, j, k: (0, j))],
            out_specs=pl.BlockSpec((tm, tn), lambda i, j, k: (i, j)),
            scratch_shapes=[pltpu.VMEM((tm, tn), jnp.float32)]),
        compiler_params=pltpu.CompilerParams(
            dimension_semantics=("parallel", "parallel", "arbitrary")),
    )(p, wp, bp)
    return out[:M, :N]


def pool_fc(x_nhwc, w_pad, b_pad, num_classes):
    """avgpool(1,1) + flatten + FC. Weight/bias already padded to 128 lanes."""
    N, H, W, C = x_nhwc.shape
    x = x_nhwc.reshape(N, H * W, C)
    out = pl.pallas_call(
        functools.partial(_pool_fc_kernel, inv_hw=1.0 / (H * W)),
        out_shape=jax.ShapeDtypeStruct((N, w_pad.shape[1]), jnp.float32),
        in_specs=[_VMEM(), _VMEM(), _VMEM()],
        out_specs=_VMEM(),
    )(x, w_pad, b_pad)
    return out[:, :num_classes]


# ------------------------------- glue (JAX) ---------------------------------

def im2col_3x3(x, stride):
    """x: NHWC (any dtype), 3x3 conv, pad=1. Returns ((M, 9*C), (N, Ho, Wo))."""
    N, H, W, C = x.shape
    xp = jnp.pad(x, ((0, 0), (1, 1), (1, 1), (0, 0)))
    Ho = (H - 1) // stride + 1
    Wo = (W - 1) // stride + 1
    cols = []
    for ki in range(3):
        for kj in range(3):
            cols.append(xp[:, ki:ki + stride * Ho:stride,
                           kj:kj + stride * Wo:stride, :])
    patches = jnp.stack(cols, axis=3)                 # (N, Ho, Wo, 9, C)
    return patches.reshape(N * Ho * Wo, 9 * C), (N, Ho, Wo)


def conv3x3_w_to_mat(w):   # (Cout, Cin, 3, 3) -> (9*Cin, Cout), matches im2col order
    cout, cin = w.shape[0], w.shape[1]
    return jnp.transpose(w, (2, 3, 1, 0)).reshape(9 * cin, cout)


def conv1x1_w_to_mat(w):   # (Cout, Cin, 1, 1) -> (Cin, Cout)
    return w.reshape(w.shape[0], w.shape[1]).T


# --------------------------- parameter construction -------------------------

def _kaiming_conv(key, cout, cin, k):
    fan_out = cout * k * k
    std = (2.0 / fan_out) ** 0.5
    return jax.random.normal(key, (cout, cin, k, k), jnp.float32) * std


def _fold_bn(w_mat, c, to_bf16):
    # BN at deterministic init: gamma=1, beta=0, running_mean=0, running_var=1.
    gamma = jnp.ones((c,), jnp.float32)
    beta = jnp.zeros((c,), jnp.float32)
    mean = jnp.zeros((c,), jnp.float32)
    var = jnp.ones((c,), jnp.float32)
    scale = gamma / jnp.sqrt(var + BN_EPS)
    shift = beta - mean * scale
    w_f = w_mat * scale[None, :]             # fold scale into weights (host side)
    if to_bf16:
        w_f = w_f.astype(jnp.bfloat16)
    return w_f, shift


def build_model(key, layers=(1, 1, 1), inplanes=64, num_classes=10):
    keys = iter(jax.random.split(key, 64))
    arrays = {}
    cfg = {'inplanes': inplanes, 'num_classes': num_classes, 'blocks': []}

    # stem: conv1 (3->inplanes), f32 (input image is f32, K tiny)
    w = _kaiming_conv(next(keys), inplanes, 3, 3)
    sw, sb = _fold_bn(conv3x3_w_to_mat(w), inplanes, to_bf16=False)
    arrays['stem'] = {'w': sw, 'b': sb}

    in_c = inplanes
    for li, (planes, nblocks, stride) in enumerate(
            zip((128, 256, 512), layers, (1, 2, 2))):
        for bi in range(nblocks):
            s = stride if bi == 0 else 1
            name = 'layer%d.%d' % (li + 1, bi)
            blk = {}
            w1 = _kaiming_conv(next(keys), planes, in_c, 3)
            blk['w1'], blk['b1'] = _fold_bn(conv3x3_w_to_mat(w1), planes, True)
            w2 = _kaiming_conv(next(keys), planes, planes, 3)
            blk['w2'], blk['b2'] = _fold_bn(conv3x3_w_to_mat(w2), planes, True)
            has_down = (s != 1 or in_c != planes)
            if has_down:
                dw = _kaiming_conv(next(keys), planes, in_c, 1)
                blk['dw'], blk['db'] = _fold_bn(conv1x1_w_to_mat(dw), planes, True)
            arrays[name] = blk
            cfg['blocks'].append({'name': name, 'stride': s, 'cin': in_c,
                                  'cout': planes, 'has_down': has_down})
            in_c = planes

    bound = 1.0 / (in_c ** 0.5)
    fc_w = jax.random.uniform(next(keys), (num_classes, in_c), jnp.float32,
                              -bound, bound)
    fc_b = jax.random.uniform(next(keys), (num_classes,), jnp.float32,
                              -bound, bound)
    ncp = _round_up(num_classes, 128)          # lane-dense FC output
    arrays['fc'] = {'w': jnp.pad(fc_w.T, ((0, 0), (0, ncp - num_classes))),
                    'b': jnp.pad(fc_b.reshape(1, -1),
                                 ((0, 0), (0, ncp - num_classes)))}
    return cfg, arrays


# ------------------------------ forward pass --------------------------------

def _init_states(cfg, N, H, W):
    states = {'sn_stem': jnp.zeros((N * H * W, cfg['inplanes']), jnp.float32)}
    hh, ww = H, W
    for bc in cfg['blocks']:
        s = bc['stride']
        hh = (hh - 1) // s + 1
        ww = (ww - 1) // s + 1
        M = N * hh * ww
        states[bc['name'] + '.sn1'] = jnp.zeros((M, bc['cout']), jnp.float32)
        states[bc['name'] + '.sn2'] = jnp.zeros((M, bc['cout']), jnp.float32)
    return states


def _basic_block(bc, arrs, x, states):
    N, H, W, Cin = x.shape
    s = bc['stride']
    cout = bc['cout']

    # downsample path (identity), output f32
    if bc['has_down']:
        xi = x[:, ::s, ::s, :]
        Ni, Hi, Wi, _ = xi.shape
        iden = conv_bias(xi.reshape(Ni * Hi * Wi, Cin), arrs['dw'], arrs['db'])
    else:
        iden = x.reshape(N * H * W, Cin).astype(jnp.float32)

    # conv1 -> bn1 -> sn1   (no residual -> no zeros DMA)
    patches, (N, Ho, Wo) = im2col_3x3(x, s)
    spk1, v1 = conv_if(patches, arrs['w1'], arrs['b1'], None,
                       states[bc['name'] + '.sn1'])
    states[bc['name'] + '.sn1'] = v1

    # conv2 -> bn2 -> (+identity) -> sn2
    h1 = spk1.reshape(N, Ho, Wo, cout)
    patches2, _ = im2col_3x3(h1, 1)
    spk2, v2 = conv_if(patches2, arrs['w2'], arrs['b2'], iden,
                       states[bc['name'] + '.sn2'])
    states[bc['name'] + '.sn2'] = v2

    return spk2.reshape(N, Ho, Wo, cout), states


def _forward_one(cfg, arrays, stem_patches, nhw, states):
    states = dict(states)
    N, H, W = nhw
    # stem: conv1 -> bn1 -> sn1
    spk, v = conv_if(stem_patches, arrays['stem']['w'], arrays['stem']['b'],
                     None, states['sn_stem'])
    states['sn_stem'] = v
    h = spk.reshape(N, H, W, cfg['inplanes'])

    for bc in cfg['blocks']:
        h, states = _basic_block(bc, arrays[bc['name']], h, states)

    logits = pool_fc(h, arrays['fc']['w'], arrays['fc']['b'], cfg['num_classes'])
    return logits, states


def make_forward(cfg, T):
    """Returns jitted fn: (arrays, x_nchw) -> (T, N, num_classes)."""
    def run(arrays, x_nchw):
        x = jnp.transpose(x_nchw, (0, 2, 3, 1)).astype(jnp.float32)  # NCHW->NHWC
        N, H, W, _ = x.shape
        stem_patches, _ = im2col_3x3(x, 1)     # hoisted: same input every timestep
        states0 = _init_states(cfg, N, H, W)

        def step(states, _):
            logits, states = _forward_one(cfg, arrays, stem_patches,
                                          (N, H, W), states)
            return states, logits

        _, outs = lax.scan(step, states0, xs=None, length=T)
        return outs

    return jax.jit(run)


# ----------------------------------- main -----------------------------------

if __name__ == "__main__":
    key = jax.random.PRNGKey(0)
    kp, kx = jax.random.split(key)

    T = 2
    num_classes = 10
    cfg, arrays = build_model(kp, layers=(1, 1, 1), inplanes=64,
                              num_classes=num_classes)

    # small CIFAR-like input: batch=2, channels=3, spatial=16
    x = jax.random.normal(kx, (2, 3, 16, 16), jnp.float32)

    forward = make_forward(cfg, T)
    out = forward(arrays, x)
    out = jax.block_until_ready(out)
    assert out.shape == (T, 2, num_classes), out.shape
    assert jnp.all(jnp.isfinite(out))
    print("KERNEL_OK")
</pallas_src>

<mosaic_0001>
module attributes {stable_mosaic.version = 11 : i64} {
  func.func @_conv_if_kernel(%arg0: i32, %arg1: i32, %arg2: i32, %arg3: memref<256x128xf32, #tpu.memory_space<vmem>>, %arg4: memref<128x128xf32, #tpu.memory_space<vmem>>, %arg5: memref<1x128xf32, #tpu.memory_space<vmem>>, %arg6: memref<256x128xf32, #tpu.memory_space<vmem>>, %arg7: memref<256x128xbf16, #tpu.memory_space<vmem>>, %arg8: memref<256x128xf32, #tpu.memory_space<vmem>>, %arg9: memref<256x128xf32, #tpu.memory_space<vmem>>) attributes {dimension_semantics = [#tpu.dimension_semantics<parallel>, #tpu.dimension_semantics<parallel>, #tpu.dimension_semantics<arbitrary>], iteration_bounds = array<i64: 2, 1, 1>, scalar_prefetch = 0 : i64, scratch_operands = 1 : i64, tpu.core_type = #tpu.core_type<tc>, window_params = [{transform_indices = @transform_0, window_bounds = array<i64: 256, 128>}, {transform_indices = @transform_1, window_bounds = array<i64: 128, 128>}, {transform_indices = @transform_2, window_bounds = array<i64: 1, 128>}, {transform_indices = @transform_3, window_bounds = array<i64: 256, 128>}, {transform_indices = @transform_4, window_bounds = array<i64: 256, 128>}, {transform_indices = @transform_5, window_bounds = array<i64: 256, 128>}]} {
    %c0_i32 = arith.constant 0 : i32
    %0 = arith.cmpi eq, %arg2, %c0_i32 : i32
    %1 = arith.extui %0 : i1 to i32
    %c0_i32_0 = arith.constant 0 : i32
    %2 = arith.cmpi ne, %1, %c0_i32_0 : i32
    scf.if %2 {
      %cst_10 = arith.constant 0.000000e+00 : f32
      %12 = vector.broadcast %cst_10 : f32 to vector<256x128xf32>
      %c0_11 = arith.constant 0 : index
      %c0_12 = arith.constant 0 : index
      %13 = vector.load %arg9[%c0_11, %c0_12] : memref<256x128xf32, #tpu.memory_space<vmem>>, vector<256x128xf32>
      tpu.vector_store %arg9[%c0_11, %c0_12], %12 {strides = array<i32>} : memref<256x128xf32, #tpu.memory_space<vmem>>, vector<256x128xf32>,
    } else {
    }
    %c0 = arith.constant 0 : index
    %c0_1 = arith.constant 0 : index
    %3 = vector.load %arg9[%c0, %c0_1] : memref<256x128xf32, #tpu.memory_space<vmem>>, vector<256x128xf32>
    %c0_2 = arith.constant 0 : index
    %c0_3 = arith.constant 0 : index
    %4 = vector.load %arg3[%c0_2, %c0_3] : memref<256x128xf32, #tpu.memory_space<vmem>>, vector<256x128xf32>
    %c0_4 = arith.constant 0 : index
    %c0_5 = arith.constant 0 : index
    %5 = vector.load %arg4[%c0_4, %c0_5] : memref<128x128xf32, #tpu.memory_space<vmem>>, vector<128x128xf32>
    %cst = arith.constant dense<0.000000e+00> : vector<256x128xf32>
    %6 = tpu.matmul %4, %5, %cst {dimension_numbers = #tpu.dot_dimension_numbers<[1], [0], [0], [1], [0, 0, 1, 1], [], []>} : vector<256x128xf32>, vector<128x128xf32>, vector<256x128xf32> -> vector<256x128xf32>
    %7 = arith.addf %3, %6 : vector<256x128xf32>
    %c0_6 = arith.constant 0 : index
    %c0_7 = arith.constant 0 : index
    %8 = vector.load %arg9[%c0_6, %c0_7] : memref<256x128xf32, #tpu.memory_space<vmem>>, vector<256x128xf32>
    tpu.vector_store %arg9[%c0_6, %c0_7], %7 {strides = array<i32>} : memref<256x128xf32, #tpu.memory_space<vmem>>, vector<256x128xf32>,
    %c0_i32_8 = arith.constant 0 : i32
    %9 = arith.cmpi eq, %arg2, %c0_i32_8 : i32
    %10 = arith.extui %9 : i1 to i32
    %c0_i32_9 = arith.constant 0 : i32
    %11 = arith.cmpi ne, %10, %c0_i32_9 : i32
    scf.if %11 {
      %c0_10 = arith.constant 0 : index
      %c0_11 = arith.constant 0 : index
      %12 = vector.load %arg9[%c0_10, %c0_11] : memref<256x128xf32, #tpu.memory_space<vmem>>, vector<256x128xf32>
      %c0_12 = arith.constant 0 : index
      %c0_13 = arith.constant 0 : index
      %13 = vector.load %arg5[%c0_12, %c0_13] : memref<1x128xf32, #tpu.memory_space<vmem>>, vector<1x128xf32>
      %14 = vector.broadcast %13 : vector<1x128xf32> to vector<256x128xf32>
      %15 = arith.addf %12, %14 : vector<256x128xf32>
      %c0_14 = arith.constant 0 : index
      %c0_15 = arith.constant 0 : index
      %16 = vector.load %arg6[%c0_14, %c0_15] : memref<256x128xf32, #tpu.memory_space<vmem>>, vector<256x128xf32>
      %17 = arith.addf %16, %15 : vector<256x128xf32>
      %cst_16 = arith.constant 1.000000e+00 : f32
      %18 = vector.broadcast %cst_16 : f32 to vector<256x128xf32>
      %19 = arith.cmpf oge, %17, %18 : vector<256x128xf32>
      %20 = arith.extui %19 : vector<256x128xi1> to vector<256x128xi32>
      %21 = arith.sitofp %20 : vector<256x128xi32> to vector<256x128xf32>
      %22 = arith.truncf %21 : vector<256x128xf32> to vector<256x128xbf16>
      %c0_17 = arith.constant 0 : index
      %c0_18 = arith.constant 0 : index
      %23 = vector.load %arg7[%c0_17, %c0_18] : memref<256x128xbf16, #tpu.memory_space<vmem>>, vector<256x128xbf16>
      tpu.vector_store %arg7[%c0_17, %c0_18], %22 {strides = array<i32>} : memref<256x128xbf16, #tpu.memory_space<vmem>>, vector<256x128xbf16>,
      %cst_19 = arith.constant 1.000000e+00 : f32
      %24 = vector.broadcast %cst_19 : f32 to vector<256x128xf32>
      %25 = arith.subf %24, %21 : vector<256x128xf32>
      %26 = arith.mulf %17, %25 : vector<256x128xf32>
      %c0_20 = arith.constant 0 : index
      %c0_21 = arith.constant 0 : index
      %27 = vector.load %arg8[%c0_20, %c0_21] : memref<256x128xf32, #tpu.memory_space<vmem>>, vector<256x128xf32>
      tpu.vector_store %arg8[%c0_20, %c0_21], %26 {strides = array<i32>} : memref<256x128xf32, #tpu.memory_space<vmem>>, vector<256x128xf32>,
    } else {
    }
    return
  }
  func.func @transform_0(%arg0: i32, %arg1: i32, %arg2: i32) -> (i32, i32) {
    %c0_i32 = arith.constant 0 : i32
    return %arg0, %arg2 : i32, i32
  }
  func.func @transform_1(%arg0: i32, %arg1: i32, %arg2: i32) -> (i32, i32) {
    %c0_i32 = arith.constant 0 : i32
    return %arg2, %arg1 : i32, i32
  }
  func.func @transform_2(%arg0: i32, %arg1: i32, %arg2: i32) -> (i32, i32) {
    %c0_i32 = arith.constant 0 : i32
    %c0_i32_0 = arith.constant 0 : i32
    return %c0_i32, %arg1 : i32, i32
  }
  func.func @transform_3(%arg0: i32, %arg1: i32, %arg2: i32) -> (i32, i32) {
    %c0_i32 = arith.constant 0 : i32
    return %arg0, %arg1 : i32, i32
  }
  func.func @transform_4(%arg0: i32, %arg1: i32, %arg2: i32) -> (i32, i32) {
    %c0_i32 = arith.constant 0 : i32
    return %arg0, %arg1 : i32, i32
  }
  func.func @transform_5(%arg0: i32, %arg1: i32, %arg2: i32) -> (i32, i32) {
    %c0_i32 = arith.constant 0 : i32
    return %arg0, %arg1 : i32, i32
  }
}

module attributes {stable_mosaic.version = 11 : i64} {
  func.func @_conv_if_kernel(%arg0: i32, %arg1: i32, %arg2: i32, %arg3: memref<256x128xbf16, #tpu.memory_space<vmem>>, %arg4: memref<128x128xbf16, #tpu.memory_space<vmem>>, %arg5: memref<1x128xf32, #tpu.memory_space<vmem>>, %arg6: memref<256x128xf32, #tpu.memory_space<vmem>>, %arg7: memref<256x128xbf16, #tpu.memory_space<vmem>>, %arg8: memref<256x128xf32, #tpu.memory_space<vmem>>, %arg9: memref<256x128xf32, #tpu.memory_space<vmem>>) attributes {dimension_semantics = [#tpu.dimension_semantics<parallel>, #tpu.dimension_semantics<parallel>, #tpu.dimension_semantics<arbitrary>], iteration_bounds = array<i64: 2, 1, 5>, scalar_prefetch = 0 : i64, scratch_operands = 1 : i64, tpu.core_type = #tpu.core_type<tc>, window_params = [{transform_indices = @transform_0, window_bounds = array<i64: 256, 128>}, {transform_indices = @transform_1, window_bounds = array<i64: 128, 128>}, {transform_indices = @transform_2, window_bounds = array<i64: 1, 128>}, {transform_indices = @transform_3, window_bounds = array<i64: 256, 128>}, {transform_indices = @transform_4, window_bounds = array<i64: 256, 128>}, {transform_indices = @transform_5, window_bounds = array<i64: 256, 128>}]} {
    %c0_i32 = arith.constant 0 : i32
    %0 = arith.cmpi eq, %arg2, %c0_i32 : i32
    %1 = arith.extui %0 : i1 to i32
    %c0_i32_0 = arith.constant 0 : i32
    %2 = arith.cmpi ne, %1, %c0_i32_0 : i32
    scf.if %2 {
      %cst_9 = arith.constant 0.000000e+00 : f32
      %12 = vector.broadcast %cst_9 : f32 to vector<256x128xf32>
      %c0_10 = arith.constant 0 : index
      %c0_11 = arith.constant 0 : index
      %13 = vector.load %arg9[%c0_10, %c0_11] : memref<256x128xf32, #tpu.memory_space<vmem>>, vector<256x128xf32>
      tpu.vector_store %arg9[%c0_10, %c0_11], %12 {strides = array<i32>} : memref<256x128xf32, #tpu.memory_space<vmem>>, vector<256x128xf32>,
    } else {
    }
    %c0 = arith.constant 0 : index
    %c0_1 = arith.constant 0 : index
    %3 = vector.load %arg9[%c0, %c0_1] : memref<256x128xf32, #tpu.memory_space<vmem>>, vector<256x128xf32>
    %c0_2 = arith.constant 0 : index
    %c0_3 = arith.constant 0 : index
    %4 = vector.load %arg3[%c0_2, %c0_3] : memref<256x128xbf16, #tpu.memory_space<vmem>>, vector<256x128xbf16>
    %c0_4 = arith.constant 0 : index
    %c0_5 = arith.constant 0 : index
    %5 = vector.load %arg4[%c0_4, %c0_5] : memref<128x128xbf16, #tpu.memory_space<vmem>>, vector<128x128xbf16>
    %cst = arith.constant dense<0.000000e+00> : vector<256x128xf32>
    %6 = tpu.matmul %4, %5, %cst {dimension_numbers = #tpu.dot_dimension_numbers<[1], [0], [0], [1], [0, 0, 1, 1], [], []>} : vector<256x128xbf16>, vector<128x128xbf16>, vector<256x128xf32> -> vector<256x128xf32>
    %7 = arith.addf %3, %6 : vector<256x128xf32>
    %c0_6 = arith.constant 0 : index
    %c0_7 = arith.constant 0 : index
    %8 = vector.load %arg9[%c0_6, %c0_7] : memref<256x128xf32, #tpu.memory_space<vmem>>, vector<256x128xf32>
    tpu.vector_store %arg9[%c0_6, %c0_7], %7 {strides = array<i32>} : memref<256x128xf32, #tpu.memory_space<vmem>>, vector<256x128xf32>,
    %c4_i32 = arith.constant 4 : i32
    %9 = arith.cmpi eq, %arg2, %c4_i32 : i32
    %10 = arith.extui %9 : i1 to i32
    %c0_i32_8 = arith.constant 0 : i32
    %11 = arith.cmpi ne, %10, %c0_i32_8 : i32
    scf.if %11 {
      %c0_9 = arith.constant 0 : index
      %c0_10 = arith.constant 0 : index
      %12 = vector.load %arg9[%c0_9, %c0_10] : memref<256x128xf32, #tpu.memory_space<vmem>>, vector<256x128xf32>
      %c0_11 = arith.constant 0 : index
      %c0_12 = arith.constant 0 : index
      %13 = vector.load %arg5[%c0_11, %c0_12] : memref<1x128xf32, #tpu.memory_space<vmem>>, vector<1x128xf32>
      %14 = vector.broadcast %13 : vector<1x128xf32> to vector<256x128xf32>
      %15 = arith.addf %12, %14 : vector<256x128xf32>
      %c0_13 = arith.constant 0 : index
      %c0_14 = arith.constant 0 : index
      %16 = vector.load %arg6[%c0_13, %c0_14] : memref<256x128xf32, #tpu.memory_space<vmem>>, vector<256x128xf32>
      %17 = arith.addf %16, %15 : vector<256x128xf32>
      %cst_15 = arith.constant 1.000000e+00 : f32
      %18 = vector.broadcast %cst_15 : f32 to vector<256x128xf32>
      %19 = arith.cmpf oge, %17, %18 : vector<256x128xf32>
      %20 = arith.extui %19 : vector<256x128xi1> to vector<256x128xi32>
      %21 = arith.sitofp %20 : vector<256x128xi32> to vector<256x128xf32>
      %22 = arith.truncf %21 : vector<256x128xf32> to vector<256x128xbf16>
      %c0_16 = arith.constant 0 : index
      %c0_17 = arith.constant 0 : index
      %23 = vector.load %arg7[%c0_16, %c0_17] : memref<256x128xbf16, #tpu.memory_space<vmem>>, vector<256x128xbf16>
      tpu.vector_store %arg7[%c0_16, %c0_17], %22 {strides = array<i32>} : memref<256x128xbf16, #tpu.memory_space<vmem>>, vector<256x128xbf16>,
      %cst_18 = arith.constant 1.000000e+00 : f32
      %24 = vector.broadcast %cst_18 : f32 to vector<256x128xf32>
      %25 = arith.subf %24, %21 : vector<256x128xf32>
      %26 = arith.mulf %17, %25 : vector<256x128xf32>
      %c0_19 = arith.constant 0 : index
      %c0_20 = arith.constant 0 : index
      %27 = vector.load %arg8[%c0_19, %c0_20] : memref<256x128xf32, #tpu.memory_space<vmem>>, vector<256x128xf32>
      tpu.vector_store %arg8[%c0_19, %c0_20], %26 {strides = array<i32>} : memref<256x128xf32, #tpu.memory_space<vmem>>, vector<256x128xf32>,
    } else {
    }
    return
  }
  func.func @transform_0(%arg0: i32, %arg1: i32, %arg2: i32) -> (i32, i32) {
    %c0_i32 = arith.constant 0 : i32
    return %arg0, %arg2 : i32, i32
  }
  func.func @transform_1(%arg0: i32, %arg1: i32, %arg2: i32) -> (i32, i32) {
    %c0_i32 = arith.constant 0 : i32
    return %arg2, %arg1 : i32, i32
  }
  func.func @transform_2(%arg0: i32, %arg1: i32, %arg2: i32) -> (i32, i32) {
    %c0_i32 = arith.constant 0 : i32
    %c0_i32_0 = arith.constant 0 : i32
    return %c0_i32, %arg1 : i32, i32
  }
  func.func @transform_3(%arg0: i32, %arg1: i32, %arg2: i32) -> (i32, i32) {
    %c0_i32 = arith.constant 0 : i32
    return %arg0, %arg1 : i32, i32
  }
  func.func @transform_4(%arg0: i32, %arg1: i32, %arg2: i32) -> (i32, i32) {
    %c0_i32 = arith.constant 0 : i32
    return %arg0, %arg1 : i32, i32
  }
  func.func @transform_5(%arg0: i32, %arg1: i32, %arg2: i32) -> (i32, i32) {
    %c0_i32 = arith.constant 0 : i32
    return %arg0, %arg1 : i32, i32
  }
}

module attributes {stable_mosaic.version = 11 : i64} {
  func.func @_conv_bias_kernel(%arg0: i32, %arg1: i32, %arg2: i32, %arg3: memref<256x128xbf16, #tpu.memory_space<vmem>>, %arg4: memref<128x128xbf16, #tpu.memory_space<vmem>>, %arg5: memref<1x128xf32, #tpu.memory_space<vmem>>, %arg6: memref<256x128xf32, #tpu.memory_space<vmem>>, %arg7: memref<256x128xf32, #tpu.memory_space<vmem>>) attributes {dimension_semantics = [#tpu.dimension_semantics<parallel>, #tpu.dimension_semantics<parallel>, #tpu.dimension_semantics<arbitrary>], iteration_bounds = array<i64: 2, 1, 1>, scalar_prefetch = 0 : i64, scratch_operands = 1 : i64, tpu.core_type = #tpu.core_type<tc>, window_params = [{transform_indices = @transform_0, window_bounds = array<i64: 256, 128>}, {transform_indices = @transform_1, window_bounds = array<i64: 128, 128>}, {transform_indices = @transform_2, window_bounds = array<i64: 1, 128>}, {transform_indices = @transform_3, window_bounds = array<i64: 256, 128>}]} {
    %c0_i32 = arith.constant 0 : i32
    %0 = arith.cmpi eq, %arg2, %c0_i32 : i32
    %1 = arith.extui %0 : i1 to i32
    %c0_i32_0 = arith.constant 0 : i32
    %2 = arith.cmpi ne, %1, %c0_i32_0 : i32
    scf.if %2 {
      %cst_10 = arith.constant 0.000000e+00 : f32
      %12 = vector.broadcast %cst_10 : f32 to vector<256x128xf32>
      %c0_11 = arith.constant 0 : index
      %c0_12 = arith.constant 0 : index
      %13 = vector.load %arg7[%c0_11, %c0_12] : memref<256x128xf32, #tpu.memory_space<vmem>>, vector<256x128xf32>
      tpu.vector_store %arg7[%c0_11, %c0_12], %12 {strides = array<i32>} : memref<256x128xf32, #tpu.memory_space<vmem>>, vector<256x128xf32>,
    } else {
    }
    %c0 = arith.constant 0 : index
    %c0_1 = arith.constant 0 : index
    %3 = vector.load %arg7[%c0, %c0_1] : memref<256x128xf32, #tpu.memory_space<vmem>>, vector<256x128xf32>
    %c0_2 = arith.constant 0 : index
    %c0_3 = arith.constant 0 : index
    %4 = vector.load %arg3[%c0_2, %c0_3] : memref<256x128xbf16, #tpu.memory_space<vmem>>, vector<256x128xbf16>
    %c0_4 = arith.constant 0 : index
    %c0_5 = arith.constant 0 : index
    %5 = vector.load %arg4[%c0_4, %c0_5] : memref<128x128xbf16, #tpu.memory_space<vmem>>, vector<128x128xbf16>
    %cst = arith.constant dense<0.000000e+00> : vector<256x128xf32>
    %6 = tpu.matmul %4, %5, %cst {dimension_numbers = #tpu.dot_dimension_numbers<[1], [0], [0], [1], [0, 0, 1, 1], [], []>} : vector<256x128xbf16>, vector<128x128xbf16>, vector<256x128xf32> -> vector<256x128xf32>
    %7 = arith.addf %3, %6 : vector<256x128xf32>
    %c0_6 = arith.constant 0 : index
    %c0_7 = arith.constant 0 : index
    %8 = vector.load %arg7[%c0_6, %c0_7] : memref<256x128xf32, #tpu.memory_space<vmem>>, vector<256x128xf32>
    tpu.vector_store %arg7[%c0_6, %c0_7], %7 {strides = array<i32>} : memref<256x128xf32, #tpu.memory_space<vmem>>, vector<256x128xf32>,
    %c0_i32_8 = arith.constant 0 : i32
    %9 = arith.cmpi eq, %arg2, %c0_i32_8 : i32
    %10 = arith.extui %9 : i1 to i32
    %c0_i32_9 = arith.constant 0 : i32
    %11 = arith.cmpi ne, %10, %c0_i32_9 : i32
    scf.if %11 {
      %c0_10 = arith.constant 0 : index
      %c0_11 = arith.constant 0 : index
      %12 = vector.load %arg7[%c0_10, %c0_11] : memref<256x128xf32, #tpu.memory_space<vmem>>, vector<256x128xf32>
      %c0_12 = arith.constant 0 : index
      %c0_13 = arith.constant 0 : index
      %13 = vector.load %arg5[%c0_12, %c0_13] : memref<1x128xf32, #tpu.memory_space<vmem>>, vector<1x128xf32>
      %14 = vector.broadcast %13 : vector<1x128xf32> to vector<256x128xf32>
      %15 = arith.addf %12, %14 : vector<256x128xf32>
      %c0_14 = arith.constant 0 : index
      %c0_15 = arith.constant 0 : index
      %16 = vector.load %arg6[%c0_14, %c0_15] : memref<256x128xf32, #tpu.memory_space<vmem>>, vector<256x128xf32>
      tpu.vector_store %arg6[%c0_14, %c0_15], %15 {strides = array<i32>} : memref<256x128xf32, #tpu.memory_space<vmem>>, vector<256x128xf32>,
    } else {
    }
    return
  }
  func.func @transform_0(%arg0: i32, %arg1: i32, %arg2: i32) -> (i32, i32) {
    %c0_i32 = arith.constant 0 : i32
    return %arg0, %arg2 : i32, i32
  }
  func.func @transform_1(%arg0: i32, %arg1: i32, %arg2: i32) -> (i32, i32) {
    %c0_i32 = arith.constant 0 : i32
    return %arg2, %arg1 : i32, i32
  }
  func.func @transform_2(%arg0: i32, %arg1: i32, %arg2: i32) -> (i32, i32) {
    %c0_i32 = arith.constant 0 : i32
    %c0_i32_0 = arith.constant 0 : i32
    return %c0_i32, %arg1 : i32, i32
  }
  func.func @transform_3(%arg0: i32, %arg1: i32, %arg2: i32) -> (i32, i32) {
    %c0_i32 = arith.constant 0 : i32
    return %arg0, %arg1 : i32, i32
  }
}

module attributes {stable_mosaic.version = 11 : i64} {
  func.func @_conv_if_kernel(%arg0: i32, %arg1: i32, %arg2: i32, %arg3: memref<256x384xbf16, #tpu.memory_space<vmem>>, %arg4: memref<384x128xbf16, #tpu.memory_space<vmem>>, %arg5: memref<1x128xf32, #tpu.memory_space<vmem>>, %arg6: memref<256x128xf32, #tpu.memory_space<vmem>>, %arg7: memref<256x128xf32, #tpu.memory_space<vmem>>, %arg8: memref<256x128xbf16, #tpu.memory_space<vmem>>, %arg9: memref<256x128xf32, #tpu.memory_space<vmem>>, %arg10: memref<256x128xf32, #tpu.memory_space<vmem>>) attributes {dimension_semantics = [#tpu.dimension_semantics<parallel>, #tpu.dimension_semantics<parallel>, #tpu.dimension_semantics<arbitrary>], iteration_bounds = array<i64: 2, 1, 3>, scalar_prefetch = 0 : i64, scratch_operands = 1 : i64, tpu.core_type = #tpu.core_type<tc>, window_params = [{transform_indices = @transform_0, window_bounds = array<i64: 256, 384>}, {transform_indices = @transform_1, window_bounds = array<i64: 384, 128>}, {transform_indices = @transform_2, window_bounds = array<i64: 1, 128>}, {transform_indices = @transform_3, window_bounds = array<i64: 256, 128>}, {transform_indices = @transform_4, window_bounds = array<i64: 256, 128>}, {transform_indices = @transform_5, window_bounds = array<i64: 256, 128>}, {transform_indices = @transform_6, window_bounds = array<i64: 256, 128>}]} {
    %c0_i32 = arith.constant 0 : i32
    %0 = arith.cmpi eq, %arg2, %c0_i32 : i32
    %1 = arith.extui %0 : i1 to i32
    %c0_i32_0 = arith.constant 0 : i32
    %2 = arith.cmpi ne, %1, %c0_i32_0 : i32
    scf.if %2 {
      %cst_9 = arith.constant 0.000000e+00 : f32
      %12 = vector.broadcast %cst_9 : f32 to vector<256x128xf32>
      %c0_10 = arith.constant 0 : index
      %c0_11 = arith.constant 0 : index
      %13 = vector.load %arg10[%c0_10, %c0_11] : memref<256x128xf32, #tpu.memory_space<vmem>>, vector<256x128xf32>
      tpu.vector_store %arg10[%c0_10, %c0_11], %12 {strides = array<i32>} : memref<256x128xf32, #tpu.memory_space<vmem>>, vector<256x128xf32>,
    } else {
    }
    %c0 = arith.constant 0 : index
    %c0_1 = arith.constant 0 : index
    %3 = vector.load %arg10[%c0, %c0_1] : memref<256x128xf32, #tpu.memory_space<vmem>>, vector<256x128xf32>
    %c0_2 = arith.constant 0 : index
    %c0_3 = arith.constant 0 : index
    %4 = vector.load %arg3[%c0_2, %c0_3] : memref<256x384xbf16, #tpu.memory_space<vmem>>, vector<256x384xbf16>
    %c0_4 = arith.constant 0 : index
    %c0_5 = arith.constant 0 : index
    %5 = vector.load %arg4[%c0_4, %c0_5] : memref<384x128xbf16, #tpu.memory_space<vmem>>, vector<384x128xbf16>
    %cst = arith.constant dense<0.000000e+00> : vector<256x128xf32>
    %6 = tpu.matmul %4, %5, %cst {dimension_numbers = #tpu.dot_dimension_numbers<[1], [0], [0], [1], [0, 0, 1, 1], [], []>} : vector<256x384xbf16>, vector<384x128xbf16>, vector<256x128xf32> -> vector<256x128xf32>
    %7 = arith.addf %3, %6 : vector<256x128xf32>
    %c0_6 = arith.constant 0 : index
    %c0_7 = arith.constant 0 : index
    %8 = vector.load %arg10[%c0_6, %c0_7] : memref<256x128xf32, #tpu.memory_space<vmem>>, vector<256x128xf32>
    tpu.vector_store %arg10[%c0_6, %c0_7], %7 {strides = array<i32>} : memref<256x128xf32, #tpu.memory_space<vmem>>, vector<256x128xf32>,
    %c2_i32 = arith.constant 2 : i32
    %9 = arith.cmpi eq, %arg2, %c2_i32 : i32
    %10 = arith.extui %9 : i1 to i32
    %c0_i32_8 = arith.constant 0 : i32
    %11 = arith.cmpi ne, %10, %c0_i32_8 : i32
    scf.if %11 {
      %c0_9 = arith.constant 0 : index
      %c0_10 = arith.constant 0 : index
      %12 = vector.load %arg10[%c0_9, %c0_10] : memref<256x128xf32, #tpu.memory_space<vmem>>, vector<256x128xf32>
      %c0_11 = arith.constant 0 : index
      %c0_12 = arith.constant 0 : index
      %13 = vector.load %arg5[%c0_11, %c0_12] : memref<1x128xf32, #tpu.memory_space<vmem>>, vector<1x128xf32>
      %14 = vector.broadcast %13 : vector<1x128xf32> to vector<256x128xf32>
      %15 = arith.addf %12, %14 : vector<256x128xf32>
      %c0_13 = arith.constant 0 : index
      %c0_14 = arith.constant 0 : index
      %16 = vector.load %arg6[%c0_13, %c0_14] : memref<256x128xf32, #tpu.memory_space<vmem>>, vector<256x128xf32>
      %17 = arith.addf %15, %16 : vector<256x128xf32>
      %c0_15 = arith.constant 0 : index
      %c0_16 = arith.constant 0 : index
      %18 = vector.load %arg7[%c0_15, %c0_16] : memref<256x128xf32, #tpu.memory_space<vmem>>, vector<256x128xf32>
      %19 = arith.addf %18, %17 : vector<256x128xf32>
      %cst_17 = arith.constant 1.000000e+00 : f32
      %20 = vector.broadcast %cst_17 : f32 to vector<256x128xf32>
      %21 = arith.cmpf oge, %19, %20 : vector<256x128xf32>
      %22 = arith.extui %21 : vector<256x128xi1> to vector<256x128xi32>
      %23 = arith.sitofp %22 : vector<256x128xi32> to vector<256x128xf32>
      %24 = arith.truncf %23 : vector<256x128xf32> to vector<256x128xbf16>
      %c0_18 = arith.constant 0 : index
      %c0_19 = arith.constant 0 : index
      %25 = vector.load %arg8[%c0_18, %c0_19] : memref<256x128xbf16, #tpu.memory_space<vmem>>, vector<256x128xbf16>
      tpu.vector_store %arg8[%c0_18, %c0_19], %24 {strides = array<i32>} : memref<256x128xbf16, #tpu.memory_space<vmem>>, vector<256x128xbf16>,
      %cst_20 = arith.constant 1.000000e+00 : f32
      %26 = vector.broadcast %cst_20 : f32 to vector<256x128xf32>
      %27 = arith.subf %26, %23 : vector<256x128xf32>
      %28 = arith.mulf %19, %27 : vector<256x128xf32>
      %c0_21 = arith.constant 0 : index
      %c0_22 = arith.constant 0 : index
      %29 = vector.load %arg9[%c0_21, %c0_22] : memref<256x128xf32, #tpu.memory_space<vmem>>, vector<256x128xf32>
      tpu.vector_store %arg9[%c0_21, %c0_22], %28 {strides = array<i32>} : memref<256x128xf32, #tpu.memory_space<vmem>>, vector<256x128xf32>,
    } else {
    }
    return
  }
  func.func @transform_0(%arg0: i32, %arg1: i32, %arg2: i32) -> (i32, i32) {
    %c0_i32 = arith.constant 0 : i32
    return %arg0, %arg2 : i32, i32
  }
  func.func @transform_1(%arg0: i32, %arg1: i32, %arg2: i32) -> (i32, i32) {
    %c0_i32 = arith.constant 0 : i32
    return %arg2, %arg1 : i32, i32
  }
  func.func @transform_2(%arg0: i32, %arg1: i32, %arg2: i32) -> (i32, i32) {
    %c0_i32 = arith.constant 0 : i32
    %c0_i32_0 = arith.constant 0 : i32
    return %c0_i32, %arg1 : i32, i32
  }
  func.func @transform_3(%arg0: i32, %arg1: i32, %arg2: i32) -> (i32, i32) {
    %c0_i32 = arith.constant 0 : i32
    return %arg0, %arg1 : i32, i32
  }
  func.func @transform_4(%arg0: i32, %arg1: i32, %arg2: i32) -> (i32, i32) {
    %c0_i32 = arith.constant 0 : i32
    return %arg0, %arg1 : i32, i32
  }
  func.func @transform_5(%arg0: i32, %arg1: i32, %arg2: i32) -> (i32, i32) {
    %c0_i32 = arith.constant 0 : i32
    return %arg0, %arg1 : i32, i32
  }
  func.func @transform_6(%arg0: i32, %arg1: i32, %arg2: i32) -> (i32, i32) {
    %c0_i32 = arith.constant 0 : i32
    return %arg0, %arg1 : i32, i32
  }
}

module attributes {stable_mosaic.version = 11 : i64} {
  func.func @_conv_if_kernel(%arg0: i32, %arg1: i32, %arg2: i32, %arg3: memref<128x384xbf16, #tpu.memory_space<vmem>>, %arg4: memref<384x256xbf16, #tpu.memory_space<vmem>>, %arg5: memref<1x256xf32, #tpu.memory_space<vmem>>, %arg6: memref<128x256xf32, #tpu.memory_space<vmem>>, %arg7: memref<128x256xbf16, #tpu.memory_space<vmem>>, %arg8: memref<128x256xf32, #tpu.memory_space<vmem>>, %arg9: memref<128x256xf32, #tpu.memory_space<vmem>>) attributes {dimension_semantics = [#tpu.dimension_semantics<parallel>, #tpu.dimension_semantics<parallel>, #tpu.dimension_semantics<arbitrary>], iteration_bounds = array<i64: 1, 1, 3>, scalar_prefetch = 0 : i64, scratch_operands = 1 : i64, tpu.core_type = #tpu.core_type<tc>, window_params = [{transform_indices = @transform_0, window_bounds = array<i64: 128, 384>}, {transform_indices = @transform_1, window_bounds = array<i64: 384, 256>}, {transform_indices = @transform_2, window_bounds = array<i64: 1, 256>}, {transform_indices = @transform_3, window_bounds = array<i64: 128, 256>}, {transform_indices = @transform_4, window_bounds = array<i64: 128, 256>}, {transform_indices = @transform_5, window_bounds = array<i64: 128, 256>}]} {
    %c0_i32 = arith.constant 0 : i32
    %0 = arith.cmpi eq, %arg2, %c0_i32 : i32
    %1 = arith.extui %0 : i1 to i32
    %c0_i32_0 = arith.constant 0 : i32
    %2 = arith.cmpi ne, %1, %c0_i32_0 : i32
    scf.if %2 {
      %cst_9 = arith.constant 0.000000e+00 : f32
      %12 = vector.broadcast %cst_9 : f32 to vector<128x256xf32>
      %c0_10 = arith.constant 0 : index
      %c0_11 = arith.constant 0 : index
      %13 = vector.load %arg9[%c0_10, %c0_11] : memref<128x256xf32, #tpu.memory_space<vmem>>, vector<128x256xf32>
      tpu.vector_store %arg9[%c0_10, %c0_11], %12 {strides = array<i32>} : memref<128x256xf32, #tpu.memory_space<vmem>>, vector<128x256xf32>,
    } else {
    }
    %c0 = arith.constant 0 : index
    %c0_1 = arith.constant 0 : index
    %3 = vector.load %arg9[%c0, %c0_1] : memref<128x256xf32, #tpu.memory_space<vmem>>, vector<128x256xf32>
    %c0_2 = arith.constant 0 : index
    %c0_3 = arith.constant 0 : index
    %4 = vector.load %arg3[%c0_2, %c0_3] : memref<128x384xbf16, #tpu.memory_space<vmem>>, vector<128x384xbf16>
    %c0_4 = arith.constant 0 : index
    %c0_5 = arith.constant 0 : index
    %5 = vector.load %arg4[%c0_4, %c0_5] : memref<384x256xbf16, #tpu.memory_space<vmem>>, vector<384x256xbf16>
    %cst = arith.constant dense<0.000000e+00> : vector<128x256xf32>
    %6 = tpu.matmul %4, %5, %cst {dimension_numbers = #tpu.dot_dimension_numbers<[1], [0], [0], [1], [0, 0, 1, 1], [], []>} : vector<128x384xbf16>, vector<384x256xbf16>, vector<128x256xf32> -> vector<128x256xf32>
    %7 = arith.addf %3, %6 : vector<128x256xf32>
    %c0_6 = arith.constant 0 : index
    %c0_7 = arith.constant 0 : index
    %8 = vector.load %arg9[%c0_6, %c0_7] : memref<128x256xf32, #tpu.memory_space<vmem>>, vector<128x256xf32>
    tpu.vector_store %arg9[%c0_6, %c0_7], %7 {strides = array<i32>} : memref<128x256xf32, #tpu.memory_space<vmem>>, vector<128x256xf32>,
    %c2_i32 = arith.constant 2 : i32
    %9 = arith.cmpi eq, %arg2, %c2_i32 : i32
    %10 = arith.extui %9 : i1 to i32
    %c0_i32_8 = arith.constant 0 : i32
    %11 = arith.cmpi ne, %10, %c0_i32_8 : i32
    scf.if %11 {
      %c0_9 = arith.constant 0 : index
      %c0_10 = arith.constant 0 : index
      %12 = vector.load %arg9[%c0_9, %c0_10] : memref<128x256xf32, #tpu.memory_space<vmem>>, vector<128x256xf32>
      %c0_11 = arith.constant 0 : index
      %c0_12 = arith.constant 0 : index
      %13 = vector.load %arg5[%c0_11, %c0_12] : memref<1x256xf32, #tpu.memory_space<vmem>>, vector<1x256xf32>
      %14 = vector.broadcast %13 : vector<1x256xf32> to vector<128x256xf32>
      %15 = arith.addf %12, %14 : vector<128x256xf32>
      %c0_13 = arith.constant 0 : index
      %c0_14 = arith.constant 0 : index
      %16 = vector.load %arg6[%c0_13, %c0_14] : memref<128x256xf32, #tpu.memory_space<vmem>>, vector<128x256xf32>
      %17 = arith.addf %16, %15 : vector<128x256xf32>
      %cst_15 = arith.constant 1.000000e+00 : f32
      %18 = vector.broadcast %cst_15 : f32 to vector<128x256xf32>
      %19 = arith.cmpf oge, %17, %18 : vector<128x256xf32>
      %20 = arith.extui %19 : vector<128x256xi1> to vector<128x256xi32>
      %21 = arith.sitofp %20 : vector<128x256xi32> to vector<128x256xf32>
      %22 = arith.truncf %21 : vector<128x256xf32> to vector<128x256xbf16>
      %c0_16 = arith.constant 0 : index
      %c0_17 = arith.constant 0 : index
      %23 = vector.load %arg7[%c0_16, %c0_17] : memref<128x256xbf16, #tpu.memory_space<vmem>>, vector<128x256xbf16>
      tpu.vector_store %arg7[%c0_16, %c0_17], %22 {strides = array<i32>} : memref<128x256xbf16, #tpu.memory_space<vmem>>, vector<128x256xbf16>,
      %cst_18 = arith.constant 1.000000e+00 : f32
      %24 = vector.broadcast %cst_18 : f32 to vector<128x256xf32>
      %25 = arith.subf %24, %21 : vector<128x256xf32>
      %26 = arith.mulf %17, %25 : vector<128x256xf32>
      %c0_19 = arith.constant 0 : index
      %c0_20 = arith.constant 0 : index
      %27 = vector.load %arg8[%c0_19, %c0_20] : memref<128x256xf32, #tpu.memory_space<vmem>>, vector<128x256xf32>
      tpu.vector_store %arg8[%c0_19, %c0_20], %26 {strides = array<i32>} : memref<128x256xf32, #tpu.memory_space<vmem>>, vector<128x256xf32>,
    } else {
    }
    return
  }
  func.func @transform_0(%arg0: i32, %arg1: i32, %arg2: i32) -> (i32, i32) {
    %c0_i32 = arith.constant 0 : i32
    return %arg0, %arg2 : i32, i32
  }
  func.func @transform_1(%arg0: i32, %arg1: i32, %arg2: i32) -> (i32, i32) {
    %c0_i32 = arith.constant 0 : i32
    return %arg2, %arg1 : i32, i32
  }
  func.func @transform_2(%arg0: i32, %arg1: i32, %arg2: i32) -> (i32, i32) {
    %c0_i32 = arith.constant 0 : i32
    %c0_i32_0 = arith.constant 0 : i32
    return %c0_i32, %arg1 : i32, i32
  }
  func.func @transform_3(%arg0: i32, %arg1: i32, %arg2: i32) -> (i32, i32) {
    %c0_i32 = arith.constant 0 : i32
    return %arg0, %arg1 : i32, i32
  }
  func.func @transform_4(%arg0: i32, %arg1: i32, %arg2: i32) -> (i32, i32) {
    %c0_i32 = arith.constant 0 : i32
    return %arg0, %arg1 : i32, i32
  }
  func.func @transform_5(%arg0: i32, %arg1: i32, %arg2: i32) -> (i32, i32) {
    %c0_i32 = arith.constant 0 : i32
    return %arg0, %arg1 : i32, i32
  }
}

module attributes {stable_mosaic.version = 11 : i64} {
  func.func @_conv_bias_kernel(%arg0: i32, %arg1: i32, %arg2: i32, %arg3: memref<128x128xbf16, #tpu.memory_space<vmem>>, %arg4: memref<128x256xbf16, #tpu.memory_space<vmem>>, %arg5: memref<1x256xf32, #tpu.memory_space<vmem>>, %arg6: memref<128x256xf32, #tpu.memory_space<vmem>>, %arg7: memref<128x256xf32, #tpu.memory_space<vmem>>) attributes {dimension_semantics = [#tpu.dimension_semantics<parallel>, #tpu.dimension_semantics<parallel>, #tpu.dimension_semantics<arbitrary>], iteration_bounds = array<i64: 1, 1, 1>, scalar_prefetch = 0 : i64, scratch_operands = 1 : i64, tpu.core_type = #tpu.core_type<tc>, window_params = [{transform_indices = @transform_0, window_bounds = array<i64: 128, 128>}, {transform_indices = @transform_1, window_bounds = array<i64: 128, 256>}, {transform_indices = @transform_2, window_bounds = array<i64: 1, 256>}, {transform_indices = @transform_3, window_bounds = array<i64: 128, 256>}]} {
    %c0_i32 = arith.constant 0 : i32
    %0 = arith.cmpi eq, %arg2, %c0_i32 : i32
    %1 = arith.extui %0 : i1 to i32
    %c0_i32_0 = arith.constant 0 : i32
    %2 = arith.cmpi ne, %1, %c0_i32_0 : i32
    scf.if %2 {
      %cst_10 = arith.constant 0.000000e+00 : f32
      %12 = vector.broadcast %cst_10 : f32 to vector<128x256xf32>
      %c0_11 = arith.constant 0 : index
      %c0_12 = arith.constant 0 : index
      %13 = vector.load %arg7[%c0_11, %c0_12] : memref<128x256xf32, #tpu.memory_space<vmem>>, vector<128x256xf32>
      tpu.vector_store %arg7[%c0_11, %c0_12], %12 {strides = array<i32>} : memref<128x256xf32, #tpu.memory_space<vmem>>, vector<128x256xf32>,
    } else {
    }
    %c0 = arith.constant 0 : index
    %c0_1 = arith.constant 0 : index
    %3 = vector.load %arg7[%c0, %c0_1] : memref<128x256xf32, #tpu.memory_space<vmem>>, vector<128x256xf32>
    %c0_2 = arith.constant 0 : index
    %c0_3 = arith.constant 0 : index
    %4 = vector.load %arg3[%c0_2, %c0_3] : memref<128x128xbf16, #tpu.memory_space<vmem>>, vector<128x128xbf16>
    %c0_4 = arith.constant 0 : index
    %c0_5 = arith.constant 0 : index
    %5 = vector.load %arg4[%c0_4, %c0_5] : memref<128x256xbf16, #tpu.memory_space<vmem>>, vector<128x256xbf16>
    %cst = arith.constant dense<0.000000e+00> : vector<128x256xf32>
    %6 = tpu.matmul %4, %5, %cst {dimension_numbers = #tpu.dot_dimension_numbers<[1], [0], [0], [1], [0, 0, 1, 1], [], []>} : vector<128x128xbf16>, vector<128x256xbf16>, vector<128x256xf32> -> vector<128x256xf32>
    %7 = arith.addf %3, %6 : vector<128x256xf32>
    %c0_6 = arith.constant 0 : index
    %c0_7 = arith.constant 0 : index
    %8 = vector.load %arg7[%c0_6, %c0_7] : memref<128x256xf32, #tpu.memory_space<vmem>>, vector<128x256xf32>
    tpu.vector_store %arg7[%c0_6, %c0_7], %7 {strides = array<i32>} : memref<128x256xf32, #tpu.memory_space<vmem>>, vector<128x256xf32>,
    %c0_i32_8 = arith.constant 0 : i32
    %9 = arith.cmpi eq, %arg2, %c0_i32_8 : i32
    %10 = arith.extui %9 : i1 to i32
    %c0_i32_9 = arith.constant 0 : i32
    %11 = arith.cmpi ne, %10, %c0_i32_9 : i32
    scf.if %11 {
      %c0_10 = arith.constant 0 : index
      %c0_11 = arith.constant 0 : index
      %12 = vector.load %arg7[%c0_10, %c0_11] : memref<128x256xf32, #tpu.memory_space<vmem>>, vector<128x256xf32>
      %c0_12 = arith.constant 0 : index
      %c0_13 = arith.constant 0 : index
      %13 = vector.load %arg5[%c0_12, %c0_13] : memref<1x256xf32, #tpu.memory_space<vmem>>, vector<1x256xf32>
      %14 = vector.broadcast %13 : vector<1x256xf32> to vector<128x256xf32>
      %15 = arith.addf %12, %14 : vector<128x256xf32>
      %c0_14 = arith.constant 0 : index
      %c0_15 = arith.constant 0 : index
      %16 = vector.load %arg6[%c0_14, %c0_15] : memref<128x256xf32, #tpu.memory_space<vmem>>, vector<128x256xf32>
      tpu.vector_store %arg6[%c0_14, %c0_15], %15 {strides = array<i32>} : memref<128x256xf32, #tpu.memory_space<vmem>>, vector<128x256xf32>,
    } else {
    }
    return
  }
  func.func @transform_0(%arg0: i32, %arg1: i32, %arg2: i32) -> (i32, i32) {
    %c0_i32 = arith.constant 0 : i32
    return %arg0, %arg2 : i32, i32
  }
  func.func @transform_1(%arg0: i32, %arg1: i32, %arg2: i32) -> (i32, i32) {
    %c0_i32 = arith.constant 0 : i32
    return %arg2, %arg1 : i32, i32
  }
  func.func @transform_2(%arg0: i32, %arg1: i32, %arg2: i32) -> (i32, i32) {
    %c0_i32 = arith.constant 0 : i32
    %c0_i32_0 = arith.constant 0 : i32
    return %c0_i32, %arg1 : i32, i32
  }
  func.func @transform_3(%arg0: i32, %arg1: i32, %arg2: i32) -> (i32, i32) {
    %c0_i32 = arith.constant 0 : i32
    return %arg0, %arg1 : i32, i32
  }
}

module attributes {stable_mosaic.version = 11 : i64} {
  func.func @_conv_if_kernel(%arg0: i32, %arg1: i32, %arg2: i32, %arg3: memref<128x384xbf16, #tpu.memory_space<vmem>>, %arg4: memref<384x256xbf16, #tpu.memory_space<vmem>>, %arg5: memref<1x256xf32, #tpu.memory_space<vmem>>, %arg6: memref<128x256xf32, #tpu.memory_space<vmem>>, %arg7: memref<128x256xf32, #tpu.memory_space<vmem>>, %arg8: memref<128x256xbf16, #tpu.memory_space<vmem>>, %arg9: memref<128x256xf32, #tpu.memory_space<vmem>>, %arg10: memref<128x256xf32, #tpu.memory_space<vmem>>) attributes {dimension_semantics = [#tpu.dimension_semantics<parallel>, #tpu.dimension_semantics<parallel>, #tpu.dimension_semantics<arbitrary>], iteration_bounds = array<i64: 1, 1, 6>, scalar_prefetch = 0 : i64, scratch_operands = 1 : i64, tpu.core_type = #tpu.core_type<tc>, window_params = [{transform_indices = @transform_0, window_bounds = array<i64: 128, 384>}, {transform_indices = @transform_1, window_bounds = array<i64: 384, 256>}, {transform_indices = @transform_2, window_bounds = array<i64: 1, 256>}, {transform_indices = @transform_3, window_bounds = array<i64: 128, 256>}, {transform_indices = @transform_4, window_bounds = array<i64: 128, 256>}, {transform_indices = @transform_5, window_bounds = array<i64: 128, 256>}, {transform_indices = @transform_6, window_bounds = array<i64: 128, 256>}]} {
    %c0_i32 = arith.constant 0 : i32
    %0 = arith.cmpi eq, %arg2, %c0_i32 : i32
    %1 = arith.extui %0 : i1 to i32
    %c0_i32_0 = arith.constant 0 : i32
    %2 = arith.cmpi ne, %1, %c0_i32_0 : i32
    scf.if %2 {
      %cst_9 = arith.constant 0.000000e+00 : f32
      %12 = vector.broadcast %cst_9 : f32 to vector<128x256xf32>
      %c0_10 = arith.constant 0 : index
      %c0_11 = arith.constant 0 : index
      %13 = vector.load %arg10[%c0_10, %c0_11] : memref<128x256xf32, #tpu.memory_space<vmem>>, vector<128x256xf32>
      tpu.vector_store %arg10[%c0_10, %c0_11], %12 {strides = array<i32>} : memref<128x256xf32, #tpu.memory_space<vmem>>, vector<128x256xf32>,
    } else {
    }
    %c0 = arith.constant 0 : index
    %c0_1 = arith.constant 0 : index
    %3 = vector.load %arg10[%c0, %c0_1] : memref<128x256xf32, #tpu.memory_space<vmem>>, vector<128x256xf32>
    %c0_2 = arith.constant 0 : index
    %c0_3 = arith.constant 0 : index
    %4 = vector.load %arg3[%c0_2, %c0_3] : memref<128x384xbf16, #tpu.memory_space<vmem>>, vector<128x384xbf16>
    %c0_4 = arith.constant 0 : index
    %c0_5 = arith.constant 0 : index
    %5 = vector.load %arg4[%c0_4, %c0_5] : memref<384x256xbf16, #tpu.memory_space<vmem>>, vector<384x256xbf16>
    %cst = arith.constant dense<0.000000e+00> : vector<128x256xf32>
    %6 = tpu.matmul %4, %5, %cst {dimension_numbers = #tpu.dot_dimension_numbers<[1], [0], [0], [1], [0, 0, 1, 1], [], []>} : vector<128x384xbf16>, vector<384x256xbf16>, vector<128x256xf32> -> vector<128x256xf32>
    %7 = arith.addf %3, %6 : vector<128x256xf32>
    %c0_6 = arith.constant 0 : index
    %c0_7 = arith.constant 0 : index
    %8 = vector.load %arg10[%c0_6, %c0_7] : memref<128x256xf32, #tpu.memory_space<vmem>>, vector<128x256xf32>
    tpu.vector_store %arg10[%c0_6, %c0_7], %7 {strides = array<i32>} : memref<128x256xf32, #tpu.memory_space<vmem>>, vector<128x256xf32>,
    %c5_i32 = arith.constant 5 : i32
    %9 = arith.cmpi eq, %arg2, %c5_i32 : i32
    %10 = arith.extui %9 : i1 to i32
    %c0_i32_8 = arith.constant 0 : i32
    %11 = arith.cmpi ne, %10, %c0_i32_8 : i32
    scf.if %11 {
      %c0_9 = arith.constant 0 : index
      %c0_10 = arith.constant 0 : index
      %12 = vector.load %arg10[%c0_9, %c0_10] : memref<128x256xf32, #tpu.memory_space<vmem>>, vector<128x256xf32>
      %c0_11 = arith.constant 0 : index
      %c0_12 = arith.constant 0 : index
      %13 = vector.load %arg5[%c0_11, %c0_12] : memref<1x256xf32, #tpu.memory_space<vmem>>, vector<1x256xf32>
      %14 = vector.broadcast %13 : vector<1x256xf32> to vector<128x256xf32>
      %15 = arith.addf %12, %14 : vector<128x256xf32>
      %c0_13 = arith.constant 0 : index
      %c0_14 = arith.constant 0 : index
      %16 = vector.load %arg6[%c0_13, %c0_14] : memref<128x256xf32, #tpu.memory_space<vmem>>, vector<128x256xf32>
      %17 = arith.addf %15, %16 : vector<128x256xf32>
      %c0_15 = arith.constant 0 : index
      %c0_16 = arith.constant 0 : index
      %18 = vector.load %arg7[%c0_15, %c0_16] : memref<128x256xf32, #tpu.memory_space<vmem>>, vector<128x256xf32>
      %19 = arith.addf %18, %17 : vector<128x256xf32>
      %cst_17 = arith.constant 1.000000e+00 : f32
      %20 = vector.broadcast %cst_17 : f32 to vector<128x256xf32>
      %21 = arith.cmpf oge, %19, %20 : vector<128x256xf32>
      %22 = arith.extui %21 : vector<128x256xi1> to vector<128x256xi32>
      %23 = arith.sitofp %22 : vector<128x256xi32> to vector<128x256xf32>
      %24 = arith.truncf %23 : vector<128x256xf32> to vector<128x256xbf16>
      %c0_18 = arith.constant 0 : index
      %c0_19 = arith.constant 0 : index
      %25 = vector.load %arg8[%c0_18, %c0_19] : memref<128x256xbf16, #tpu.memory_space<vmem>>, vector<128x256xbf16>
      tpu.vector_store %arg8[%c0_18, %c0_19], %24 {strides = array<i32>} : memref<128x256xbf16, #tpu.memory_space<vmem>>, vector<128x256xbf16>,
      %cst_20 = arith.constant 1.000000e+00 : f32
      %26 = vector.broadcast %cst_20 : f32 to vector<128x256xf32>
      %27 = arith.subf %26, %23 : vector<128x256xf32>
      %28 = arith.mulf %19, %27 : vector<128x256xf32>
      %c0_21 = arith.constant 0 : index
      %c0_22 = arith.constant 0 : index
      %29 = vector.load %arg9[%c0_21, %c0_22] : memref<128x256xf32, #tpu.memory_space<vmem>>, vector<128x256xf32>
      tpu.vector_store %arg9[%c0_21, %c0_22], %28 {strides = array<i32>} : memref<128x256xf32, #tpu.memory_space<vmem>>, vector<128x256xf32>,
    } else {
    }
    return
  }
  func.func @transform_0(%arg0: i32, %arg1: i32, %arg2: i32) -> (i32, i32) {
    %c0_i32 = arith.constant 0 : i32
    return %arg0, %arg2 : i32, i32
  }
  func.func @transform_1(%arg0: i32, %arg1: i32, %arg2: i32) -> (i32, i32) {
    %c0_i32 = arith.constant 0 : i32
    return %arg2, %arg1 : i32, i32
  }
  func.func @transform_2(%arg0: i32, %arg1: i32, %arg2: i32) -> (i32, i32) {
    %c0_i32 = arith.constant 0 : i32
    %c0_i32_0 = arith.constant 0 : i32
    return %c0_i32, %arg1 : i32, i32
  }
  func.func @transform_3(%arg0: i32, %arg1: i32, %arg2: i32) -> (i32, i32) {
    %c0_i32 = arith.constant 0 : i32
    return %arg0, %arg1 : i32, i32
  }
  func.func @transform_4(%arg0: i32, %arg1: i32, %arg2: i32) -> (i32, i32) {
    %c0_i32 = arith.constant 0 : i32
    return %arg0, %arg1 : i32, i32
  }
  func.func @transform_5(%arg0: i32, %arg1: i32, %arg2: i32) -> (i32, i32) {
    %c0_i32 = arith.constant 0 : i32
    return %arg0, %arg1 : i32, i32
  }
  func.func @transform_6(%arg0: i32, %arg1: i32, %arg2: i32) -> (i32, i32) {
    %c0_i32 = arith.constant 0 : i32
    return %arg0, %arg1 : i32, i32
  }
}

module attributes {stable_mosaic.version = 11 : i64} {
  func.func @_conv_if_kernel(%arg0: i32, %arg1: i32, %arg2: i32, %arg3: memref<32x384xbf16, #tpu.memory_space<vmem>>, %arg4: memref<384x512xbf16, #tpu.memory_space<vmem>>, %arg5: memref<1x512xf32, #tpu.memory_space<vmem>>, %arg6: memref<32x512xf32, #tpu.memory_space<vmem>>, %arg7: memref<32x512xbf16, #tpu.memory_space<vmem>>, %arg8: memref<32x512xf32, #tpu.memory_space<vmem>>, %arg9: memref<32x512xf32, #tpu.memory_space<vmem>>) attributes {dimension_semantics = [#tpu.dimension_semantics<parallel>, #tpu.dimension_semantics<parallel>, #tpu.dimension_semantics<arbitrary>], iteration_bounds = array<i64: 1, 1, 6>, scalar_prefetch = 0 : i64, scratch_operands = 1 : i64, tpu.core_type = #tpu.core_type<tc>, window_params = [{transform_indices = @transform_0, window_bounds = array<i64: 32, 384>}, {transform_indices = @transform_1, window_bounds = array<i64: 384, 512>}, {transform_indices = @transform_2, window_bounds = array<i64: 1, 512>}, {transform_indices = @transform_3, window_bounds = array<i64: 32, 512>}, {transform_indices = @transform_4, window_bounds = array<i64: 32, 512>}, {transform_indices = @transform_5, window_bounds = array<i64: 32, 512>}]} {
    %c0_i32 = arith.constant 0 : i32
    %0 = arith.cmpi eq, %arg2, %c0_i32 : i32
    %1 = arith.extui %0 : i1 to i32
    %c0_i32_0 = arith.constant 0 : i32
    %2 = arith.cmpi ne, %1, %c0_i32_0 : i32
    scf.if %2 {
      %cst_9 = arith.constant 0.000000e+00 : f32
      %12 = vector.broadcast %cst_9 : f32 to vector<32x512xf32>
      %c0_10 = arith.constant 0 : index
      %c0_11 = arith.constant 0 : index
      %13 = vector.load %arg9[%c0_10, %c0_11] : memref<32x512xf32, #tpu.memory_space<vmem>>, vector<32x512xf32>
      tpu.vector_store %arg9[%c0_10, %c0_11], %12 {strides = array<i32>} : memref<32x512xf32, #tpu.memory_space<vmem>>, vector<32x512xf32>,
    } else {
    }
    %c0 = arith.constant 0 : index
    %c0_1 = arith.constant 0 : index
    %3 = vector.load %arg9[%c0, %c0_1] : memref<32x512xf32, #tpu.memory_space<vmem>>, vector<32x512xf32>
    %c0_2 = arith.constant 0 : index
    %c0_3 = arith.constant 0 : index
    %4 = vector.load %arg3[%c0_2, %c0_3] : memref<32x384xbf16, #tpu.memory_space<vmem>>, vector<32x384xbf16>
    %c0_4 = arith.constant 0 : index
    %c0_5 = arith.constant 0 : index
    %5 = vector.load %arg4[%c0_4, %c0_5] : memref<384x512xbf16, #tpu.memory_space<vmem>>, vector<384x512xbf16>
    %cst = arith.constant dense<0.000000e+00> : vector<32x512xf32>
    %6 = tpu.matmul %4, %5, %cst {dimension_numbers = #tpu.dot_dimension_numbers<[1], [0], [0], [1], [0, 0, 1, 1], [], []>} : vector<32x384xbf16>, vector<384x512xbf16>, vector<32x512xf32> -> vector<32x512xf32>
    %7 = arith.addf %3, %6 : vector<32x512xf32>
    %c0_6 = arith.constant 0 : index
    %c0_7 = arith.constant 0 : index
    %8 = vector.load %arg9[%c0_6, %c0_7] : memref<32x512xf32, #tpu.memory_space<vmem>>, vector<32x512xf32>
    tpu.vector_store %arg9[%c0_6, %c0_7], %7 {strides = array<i32>} : memref<32x512xf32, #tpu.memory_space<vmem>>, vector<32x512xf32>,
    %c5_i32 = arith.constant 5 : i32
    %9 = arith.cmpi eq, %arg2, %c5_i32 : i32
    %10 = arith.extui %9 : i1 to i32
    %c0_i32_8 = arith.constant 0 : i32
    %11 = arith.cmpi ne, %10, %c0_i32_8 : i32
    scf.if %11 {
      %c0_9 = arith.constant 0 : index
      %c0_10 = arith.constant 0 : index
      %12 = vector.load %arg9[%c0_9, %c0_10] : memref<32x512xf32, #tpu.memory_space<vmem>>, vector<32x512xf32>
      %c0_11 = arith.constant 0 : index
      %c0_12 = arith.constant 0 : index
      %13 = vector.load %arg5[%c0_11, %c0_12] : memref<1x512xf32, #tpu.memory_space<vmem>>, vector<1x512xf32>
      %14 = vector.broadcast %13 : vector<1x512xf32> to vector<32x512xf32>
      %15 = arith.addf %12, %14 : vector<32x512xf32>
      %c0_13 = arith.constant 0 : index
      %c0_14 = arith.constant 0 : index
      %16 = vector.load %arg6[%c0_13, %c0_14] : memref<32x512xf32, #tpu.memory_space<vmem>>, vector<32x512xf32>
      %17 = arith.addf %16, %15 : vector<32x512xf32>
      %cst_15 = arith.constant 1.000000e+00 : f32
      %18 = vector.broadcast %cst_15 : f32 to vector<32x512xf32>
      %19 = arith.cmpf oge, %17, %18 : vector<32x512xf32>
      %20 = arith.extui %19 : vector<32x512xi1> to vector<32x512xi32>
      %21 = arith.sitofp %20 : vector<32x512xi32> to vector<32x512xf32>
      %22 = arith.truncf %21 : vector<32x512xf32> to vector<32x512xbf16>
      %c0_16 = arith.constant 0 : index
      %c0_17 = arith.constant 0 : index
      %23 = vector.load %arg7[%c0_16, %c0_17] : memref<32x512xbf16, #tpu.memory_space<vmem>>, vector<32x512xbf16>
      tpu.vector_store %arg7[%c0_16, %c0_17], %22 {strides = array<i32>} : memref<32x512xbf16, #tpu.memory_space<vmem>>, vector<32x512xbf16>,
      %cst_18 = arith.constant 1.000000e+00 : f32
      %24 = vector.broadcast %cst_18 : f32 to vector<32x512xf32>
      %25 = arith.subf %24, %21 : vector<32x512xf32>
      %26 = arith.mulf %17, %25 : vector<32x512xf32>
      %c0_19 = arith.constant 0 : index
      %c0_20 = arith.constant 0 : index
      %27 = vector.load %arg8[%c0_19, %c0_20] : memref<32x512xf32, #tpu.memory_space<vmem>>, vector<32x512xf32>
      tpu.vector_store %arg8[%c0_19, %c0_20], %26 {strides = array<i32>} : memref<32x512xf32, #tpu.memory_space<vmem>>, vector<32x512xf32>,
    } else {
    }
    return
  }
  func.func @transform_0(%arg0: i32, %arg1: i32, %arg2: i32) -> (i32, i32) {
    %c0_i32 = arith.constant 0 : i32
    return %arg0, %arg2 : i32, i32
  }
  func.func @transform_1(%arg0: i32, %arg1: i32, %arg2: i32) -> (i32, i32) {
    %c0_i32 = arith.constant 0 : i32
    return %arg2, %arg1 : i32, i32
  }
  func.func @transform_2(%arg0: i32, %arg1: i32, %arg2: i32) -> (i32, i32) {
    %c0_i32 = arith.constant 0 : i32
    %c0_i32_0 = arith.constant 0 : i32
    return %c0_i32, %arg1 : i32, i32
  }
  func.func @transform_3(%arg0: i32, %arg1: i32, %arg2: i32) -> (i32, i32) {
    %c0_i32 = arith.constant 0 : i32
    return %arg0, %arg1 : i32, i32
  }
  func.func @transform_4(%arg0: i32, %arg1: i32, %arg2: i32) -> (i32, i32) {
    %c0_i32 = arith.constant 0 : i32
    return %arg0, %arg1 : i32, i32
  }
  func.func @transform_5(%arg0: i32, %arg1: i32, %arg2: i32) -> (i32, i32) {
    %c0_i32 = arith.constant 0 : i32
    return %arg0, %arg1 : i32, i32
  }
}

module attributes {stable_mosaic.version = 11 : i64} {
  func.func @_conv_bias_kernel(%arg0: i32, %arg1: i32, %arg2: i32, %arg3: memref<32x256xbf16, #tpu.memory_space<vmem>>, %arg4: memref<256x512xbf16, #tpu.memory_space<vmem>>, %arg5: memref<1x512xf32, #tpu.memory_space<vmem>>, %arg6: memref<32x512xf32, #tpu.memory_space<vmem>>, %arg7: memref<32x512xf32, #tpu.memory_space<vmem>>) attributes {dimension_semantics = [#tpu.dimension_semantics<parallel>, #tpu.dimension_semantics<parallel>, #tpu.dimension_semantics<arbitrary>], iteration_bounds = array<i64: 1, 1, 1>, scalar_prefetch = 0 : i64, scratch_operands = 1 : i64, tpu.core_type = #tpu.core_type<tc>, window_params = [{transform_indices = @transform_0, window_bounds = array<i64: 32, 256>}, {transform_indices = @transform_1, window_bounds = array<i64: 256, 512>}, {transform_indices = @transform_2, window_bounds = array<i64: 1, 512>}, {transform_indices = @transform_3, window_bounds = array<i64: 32, 512>}]} {
    %c0_i32 = arith.constant 0 : i32
    %0 = arith.cmpi eq, %arg2, %c0_i32 : i32
    %1 = arith.extui %0 : i1 to i32
    %c0_i32_0 = arith.constant 0 : i32
    %2 = arith.cmpi ne, %1, %c0_i32_0 : i32
    scf.if %2 {
      %cst_10 = arith.constant 0.000000e+00 : f32
      %12 = vector.broadcast %cst_10 : f32 to vector<32x512xf32>
      %c0_11 = arith.constant 0 : index
      %c0_12 = arith.constant 0 : index
      %13 = vector.load %arg7[%c0_11, %c0_12] : memref<32x512xf32, #tpu.memory_space<vmem>>, vector<32x512xf32>
      tpu.vector_store %arg7[%c0_11, %c0_12], %12 {strides = array<i32>} : memref<32x512xf32, #tpu.memory_space<vmem>>, vector<32x512xf32>,
    } else {
    }
    %c0 = arith.constant 0 : index
    %c0_1 = arith.constant 0 : index
    %3 = vector.load %arg7[%c0, %c0_1] : memref<32x512xf32, #tpu.memory_space<vmem>>, vector<32x512xf32>
    %c0_2 = arith.constant 0 : index
    %c0_3 = arith.constant 0 : index
    %4 = vector.load %arg3[%c0_2, %c0_3] : memref<32x256xbf16, #tpu.memory_space<vmem>>, vector<32x256xbf16>
    %c0_4 = arith.constant 0 : index
    %c0_5 = arith.constant 0 : index
    %5 = vector.load %arg4[%c0_4, %c0_5] : memref<256x512xbf16, #tpu.memory_space<vmem>>, vector<256x512xbf16>
    %cst = arith.constant dense<0.000000e+00> : vector<32x512xf32>
    %6 = tpu.matmul %4, %5, %cst {dimension_numbers = #tpu.dot_dimension_numbers<[1], [0], [0], [1], [0, 0, 1, 1], [], []>} : vector<32x256xbf16>, vector<256x512xbf16>, vector<32x512xf32> -> vector<32x512xf32>
    %7 = arith.addf %3, %6 : vector<32x512xf32>
    %c0_6 = arith.constant 0 : index
    %c0_7 = arith.constant 0 : index
    %8 = vector.load %arg7[%c0_6, %c0_7] : memref<32x512xf32, #tpu.memory_space<vmem>>, vector<32x512xf32>
    tpu.vector_store %arg7[%c0_6, %c0_7], %7 {strides = array<i32>} : memref<32x512xf32, #tpu.memory_space<vmem>>, vector<32x512xf32>,
    %c0_i32_8 = arith.constant 0 : i32
    %9 = arith.cmpi eq, %arg2, %c0_i32_8 : i32
    %10 = arith.extui %9 : i1 to i32
    %c0_i32_9 = arith.constant 0 : i32
    %11 = arith.cmpi ne, %10, %c0_i32_9 : i32
    scf.if %11 {
      %c0_10 = arith.constant 0 : index
      %c0_11 = arith.constant 0 : index
      %12 = vector.load %arg7[%c0_10, %c0_11] : memref<32x512xf32, #tpu.memory_space<vmem>>, vector<32x512xf32>
      %c0_12 = arith.constant 0 : index
      %c0_13 = arith.constant 0 : index
      %13 = vector.load %arg5[%c0_12, %c0_13] : memref<1x512xf32, #tpu.memory_space<vmem>>, vector<1x512xf32>
      %14 = vector.broadcast %13 : vector<1x512xf32> to vector<32x512xf32>
      %15 = arith.addf %12, %14 : vector<32x512xf32>
      %c0_14 = arith.constant 0 : index
      %c0_15 = arith.constant 0 : index
      %16 = vector.load %arg6[%c0_14, %c0_15] : memref<32x512xf32, #tpu.memory_space<vmem>>, vector<32x512xf32>
      tpu.vector_store %arg6[%c0_14, %c0_15], %15 {strides = array<i32>} : memref<32x512xf32, #tpu.memory_space<vmem>>, vector<32x512xf32>,
    } else {
    }
    return
  }
  func.func @transform_0(%arg0: i32, %arg1: i32, %arg2: i32) -> (i32, i32) {
    %c0_i32 = arith.constant 0 : i32
    return %arg0, %arg2 : i32, i32
  }
  func.func @transform_1(%arg0: i32, %arg1: i32, %arg2: i32) -> (i32, i32) {
    %c0_i32 = arith.constant 0 : i32
    return %arg2, %arg1 : i32, i32
  }
  func.func @transform_2(%arg0: i32, %arg1: i32, %arg2: i32) -> (i32, i32) {
    %c0_i32 = arith.constant 0 : i32
    %c0_i32_0 = arith.constant 0 : i32
    return %c0_i32, %arg1 : i32, i32
  }
  func.func @transform_3(%arg0: i32, %arg1: i32, %arg2: i32) -> (i32, i32) {
    %c0_i32 = arith.constant 0 : i32
    return %arg0, %arg1 : i32, i32
  }
}

module attributes {stable_mosaic.version = 11 : i64} {
  func.func @_conv_if_kernel(%arg0: i32, %arg1: i32, %arg2: i32, %arg3: memref<32x512xbf16, #tpu.memory_space<vmem>>, %arg4: memref<512x512xbf16, #tpu.memory_space<vmem>>, %arg5: memref<1x512xf32, #tpu.memory_space<vmem>>, %arg6: memref<32x512xf32, #tpu.memory_space<vmem>>, %arg7: memref<32x512xf32, #tpu.memory_space<vmem>>, %arg8: memref<32x512xbf16, #tpu.memory_space<vmem>>, %arg9: memref<32x512xf32, #tpu.memory_space<vmem>>, %arg10: memref<32x512xf32, #tpu.memory_space<vmem>>) attributes {dimension_semantics = [#tpu.dimension_semantics<parallel>, #tpu.dimension_semantics<parallel>, #tpu.dimension_semantics<arbitrary>], iteration_bounds = array<i64: 1, 1, 9>, scalar_prefetch = 0 : i64, scratch_operands = 1 : i64, tpu.core_type = #tpu.core_type<tc>, window_params = [{transform_indices = @transform_0, window_bounds = array<i64: 32, 512>}, {transform_indices = @transform_1, window_bounds = array<i64: 512, 512>}, {transform_indices = @transform_2, window_bounds = array<i64: 1, 512>}, {transform_indices = @transform_3, window_bounds = array<i64: 32, 512>}, {transform_indices = @transform_4, window_bounds = array<i64: 32, 512>}, {transform_indices = @transform_5, window_bounds = array<i64: 32, 512>}, {transform_indices = @transform_6, window_bounds = array<i64: 32, 512>}]} {
    %c0_i32 = arith.constant 0 : i32
    %0 = arith.cmpi eq, %arg2, %c0_i32 : i32
    %1 = arith.extui %0 : i1 to i32
    %c0_i32_0 = arith.constant 0 : i32
    %2 = arith.cmpi ne, %1, %c0_i32_0 : i32
    scf.if %2 {
      %cst_9 = arith.constant 0.000000e+00 : f32
      %12 = vector.broadcast %cst_9 : f32 to vector<32x512xf32>
      %c0_10 = arith.constant 0 : index
      %c0_11 = arith.constant 0 : index
      %13 = vector.load %arg10[%c0_10, %c0_11] : memref<32x512xf32, #tpu.memory_space<vmem>>, vector<32x512xf32>
      tpu.vector_store %arg10[%c0_10, %c0_11], %12 {strides = array<i32>} : memref<32x512xf32, #tpu.memory_space<vmem>>, vector<32x512xf32>,
    } else {
    }
    %c0 = arith.constant 0 : index
    %c0_1 = arith.constant 0 : index
    %3 = vector.load %arg10[%c0, %c0_1] : memref<32x512xf32, #tpu.memory_space<vmem>>, vector<32x512xf32>
    %c0_2 = arith.constant 0 : index
    %c0_3 = arith.constant 0 : index
    %4 = vector.load %arg3[%c0_2, %c0_3] : memref<32x512xbf16, #tpu.memory_space<vmem>>, vector<32x512xbf16>
    %c0_4 = arith.constant 0 : index
    %c0_5 = arith.constant 0 : index
    %5 = vector.load %arg4[%c0_4, %c0_5] : memref<512x512xbf16, #tpu.memory_space<vmem>>, vector<512x512xbf16>
    %cst = arith.constant dense<0.000000e+00> : vector<32x512xf32>
    %6 = tpu.matmul %4, %5, %cst {dimension_numbers = #tpu.dot_dimension_numbers<[1], [0], [0], [1], [0, 0, 1, 1], [], []>} : vector<32x512xbf16>, vector<512x512xbf16>, vector<32x512xf32> -> vector<32x512xf32>
    %7 = arith.addf %3, %6 : vector<32x512xf32>
    %c0_6 = arith.constant 0 : index
    %c0_7 = arith.constant 0 : index
    %8 = vector.load %arg10[%c0_6, %c0_7] : memref<32x512xf32, #tpu.memory_space<vmem>>, vector<32x512xf32>
    tpu.vector_store %arg10[%c0_6, %c0_7], %7 {strides = array<i32>} : memref<32x512xf32, #tpu.memory_space<vmem>>, vector<32x512xf32>,
    %c8_i32 = arith.constant 8 : i32
    %9 = arith.cmpi eq, %arg2, %c8_i32 : i32
    %10 = arith.extui %9 : i1 to i32
    %c0_i32_8 = arith.constant 0 : i32
    %11 = arith.cmpi ne, %10, %c0_i32_8 : i32
    scf.if %11 {
      %c0_9 = arith.constant 0 : index
      %c0_10 = arith.constant 0 : index
      %12 = vector.load %arg10[%c0_9, %c0_10] : memref<32x512xf32, #tpu.memory_space<vmem>>, vector<32x512xf32>
      %c0_11 = arith.constant 0 : index
      %c0_12 = arith.constant 0 : index
      %13 = vector.load %arg5[%c0_11, %c0_12] : memref<1x512xf32, #tpu.memory_space<vmem>>, vector<1x512xf32>
      %14 = vector.broadcast %13 : vector<1x512xf32> to vector<32x512xf32>
      %15 = arith.addf %12, %14 : vector<32x512xf32>
      %c0_13 = arith.constant 0 : index
      %c0_14 = arith.constant 0 : index
      %16 = vector.load %arg6[%c0_13, %c0_14] : memref<32x512xf32, #tpu.memory_space<vmem>>, vector<32x512xf32>
      %17 = arith.addf %15, %16 : vector<32x512xf32>
      %c0_15 = arith.constant 0 : index
      %c0_16 = arith.constant 0 : index
      %18 = vector.load %arg7[%c0_15, %c0_16] : memref<32x512xf32, #tpu.memory_space<vmem>>, vector<32x512xf32>
      %19 = arith.addf %18, %17 : vector<32x512xf32>
      %cst_17 = arith.constant 1.000000e+00 : f32
      %20 = vector.broadcast %cst_17 : f32 to vector<32x512xf32>
      %21 = arith.cmpf oge, %19, %20 : vector<32x512xf32>
      %22 = arith.extui %21 : vector<32x512xi1> to vector<32x512xi32>
      %23 = arith.sitofp %22 : vector<32x512xi32> to vector<32x512xf32>
      %24 = arith.truncf %23 : vector<32x512xf32> to vector<32x512xbf16>
      %c0_18 = arith.constant 0 : index
      %c0_19 = arith.constant 0 : index
      %25 = vector.load %arg8[%c0_18, %c0_19] : memref<32x512xbf16, #tpu.memory_space<vmem>>, vector<32x512xbf16>
      tpu.vector_store %arg8[%c0_18, %c0_19], %24 {strides = array<i32>} : memref<32x512xbf16, #tpu.memory_space<vmem>>, vector<32x512xbf16>,
      %cst_20 = arith.constant 1.000000e+00 : f32
      %26 = vector.broadcast %cst_20 : f32 to vector<32x512xf32>
      %27 = arith.subf %26, %23 : vector<32x512xf32>
      %28 = arith.mulf %19, %27 : vector<32x512xf32>
      %c0_21 = arith.constant 0 : index
      %c0_22 = arith.constant 0 : index
      %29 = vector.load %arg9[%c0_21, %c0_22] : memref<32x512xf32, #tpu.memory_space<vmem>>, vector<32x512xf32>
      tpu.vector_store %arg9[%c0_21, %c0_22], %28 {strides = array<i32>} : memref<32x512xf32, #tpu.memory_space<vmem>>, vector<32x512xf32>,
    } else {
    }
    return
  }
  func.func @transform_0(%arg0: i32, %arg1: i32, %arg2: i32) -> (i32, i32) {
    %c0_i32 = arith.constant 0 : i32
    return %arg0, %arg2 : i32, i32
  }
  func.func @transform_1(%arg0: i32, %arg1: i32, %arg2: i32) -> (i32, i32) {
    %c0_i32 = arith.constant 0 : i32
    return %arg2, %arg1 : i32, i32
  }
  func.func @transform_2(%arg0: i32, %arg1: i32, %arg2: i32) -> (i32, i32) {
    %c0_i32 = arith.constant 0 : i32
    %c0_i32_0 = arith.constant 0 : i32
    return %c0_i32, %arg1 : i32, i32
  }
  func.func @transform_3(%arg0: i32, %arg1: i32, %arg2: i32) -> (i32, i32) {
    %c0_i32 = arith.constant 0 : i32
    return %arg0, %arg1 : i32, i32
  }
  func.func @transform_4(%arg0: i32, %arg1: i32, %arg2: i32) -> (i32, i32) {
    %c0_i32 = arith.constant 0 : i32
    return %arg0, %arg1 : i32, i32
  }
  func.func @transform_5(%arg0: i32, %arg1: i32, %arg2: i32) -> (i32, i32) {
    %c0_i32 = arith.constant 0 : i32
    return %arg0, %arg1 : i32, i32
  }
  func.func @transform_6(%arg0: i32, %arg1: i32, %arg2: i32) -> (i32, i32) {
    %c0_i32 = arith.constant 0 : i32
    return %arg0, %arg1 : i32, i32
  }
}

module attributes {stable_mosaic.version = 11 : i64} {
  func.func @_pool_fc_kernel(%arg0: memref<2x16x512xbf16, #tpu.memory_space<vmem>>, %arg1: memref<512x128xf32, #tpu.memory_space<vmem>>, %arg2: memref<1x128xf32, #tpu.memory_space<vmem>>, %arg3: memref<2x128xf32, #tpu.memory_space<vmem>>) attributes {dimension_semantics = [], scalar_prefetch = 0 : i64, scratch_operands = 0 : i64, tpu.core_type = #tpu.core_type<tc>} {
    %c0 = arith.constant 0 : index
    %c0_0 = arith.constant 0 : index
    %c0_1 = arith.constant 0 : index
    %0 = vector.load %arg0[%c0, %c0_0, %c0_1] : memref<2x16x512xbf16, #tpu.memory_space<vmem>>, vector<2x16x512xbf16>
    %1 = arith.extf %0 : vector<2x16x512xbf16> to vector<2x16x512xf32>
    %cst = arith.constant dense<0.000000e+00> : vector<2x512xf32>
    %2 = vector.multi_reduction <add>, %1, %cst [1] : vector<2x16x512xf32> to vector<2x512xf32>
    %cst_2 = arith.constant 6.250000e-02 : f32
    %3 = vector.broadcast %cst_2 : f32 to vector<2x512xf32>
    %4 = arith.mulf %2, %3 : vector<2x512xf32>
    %c0_3 = arith.constant 0 : index
    %c0_4 = arith.constant 0 : index
    %5 = vector.load %arg1[%c0_3, %c0_4] : memref<512x128xf32, #tpu.memory_space<vmem>>, vector<512x128xf32>
    %cst_5 = arith.constant dense<0.000000e+00> : vector<2x128xf32>
    %6 = tpu.matmul %4, %5, %cst_5 {dimension_numbers = #tpu.dot_dimension_numbers<[1], [0], [0], [1], [0, 0, 1, 1], [], []>} : vector<2x512xf32>, vector<512x128xf32>, vector<2x128xf32> -> vector<2x128xf32>
    %c0_6 = arith.constant 0 : index
    %c0_7 = arith.constant 0 : index
    %7 = vector.load %arg2[%c0_6, %c0_7] : memref<1x128xf32, #tpu.memory_space<vmem>>, vector<1x128xf32>
    %8 = vector.broadcast %7 : vector<1x128xf32> to vector<2x128xf32>
    %9 = arith.addf %6, %8 : vector<2x128xf32>
    %c0_8 = arith.constant 0 : index
    %c0_9 = arith.constant 0 : index
    %10 = vector.load %arg3[%c0_8, %c0_9] : memref<2x128xf32, #tpu.memory_space<vmem>>, vector<2x128xf32>
    tpu.vector_store %arg3[%c0_8, %c0_9], %9 {strides = array<i32>} : memref<2x128xf32, #tpu.memory_space<vmem>>, vector<2x128xf32>,
    return
  }
}

</mosaic_0001>

<bundles_post_ra>
// kernel: custom-call.7
= control target key start
LH: loop header
LB: loop body
LE: loop exit
PB: predicated region body
PF: predicated region fallthrough
CT: control target
= control target key end

     0   :  { %s6_s0 = inlined_call_operand.vmem [shape: f32[2,2,10], index: 0, kind: output, shape index: {}]  }

// kernel: closed_call.81
= control target key start
LH: loop header
LB: loop body
LE: loop exit
PB: predicated region body
PF: predicated region fallthrough
CT: control target
= control target key end

     0   :  { %s1866_s18 = smov 0   ;;  %s1868_s19 = smov 0   ;;  %s2193_s0 = inlined_call_operand.vmem [shape: f32[512,128], index: 0, kind: input, shape index: {}]   ;;  %s2194_s1 = inlined_call_operand.vmem [shape: f32[128,128], index: 1, kind: input, shape index: {}]   ;;  %s2195_s2 = inlined_call_operand.vmem [shape: f32[1,128], index: 2, kind: input, shape index: {}]   ;;  %s2196_s3 = inlined_call_operand.vmem [shape: f32[512,128], index: 3, kind: input, shape index: {}]   ;;  %s2197_s4 = inlined_call_operand.vmem [shape: bf16[512,128], index: 4, kind: output, shape index: {0}]   ;;  %s2198_s5 = inlined_call_operand.vmem [shape: f32[512,128], index: 5, kind: output, shape index: {1}]  }
   0x1   :  { %s1870_s20 = smov 0  }
   0x2 LB: > { %s35_s21 = sadd.s32 1, %s1829_s19  ;;  %p1439_p0 = scmp.ge.s32.totalorder %s1833_s20, 1  ;;  %s1833_s20 = sphi %s1870_s20, %s16_s20   ;;  %s1829_s19 = sphi %s1868_s19, %s2200_s19   ;;  %s1825_s18 = sphi %s1866_s18, %s2199_s18  }
   0x3   : > { %p37_p1 = scmp.ge.s32.totalorder %s35_s21, 2  ;;  %p259_p2 = scmp.lt.s32.totalorder %s1833_s20, 3 }
   0x5   : > { %s2202_s21 = smov (%p37_p1, %s35_s21), 0  ;;  %p260_p3 = pnand %p1439_p0, %p259_p2 }
   0x6   : > { %v468_v0 = vld [vmem:[%s2194_s1] sm:$0xff] (!%p260_p3)  ;;  %v469_v1 = vld [vmem:[%s2194_s1 + $0x8] sm:$0xff] (!%p260_p3)  ;;  %v470_v2 = vld [vmem:[%s2194_s1 + $0x10] sm:$0xff] (!%p260_p3)  ;;  %s1440_s28 = sshll.u32 (!%p260_p3), %s1825_s18, 5 }
   0x7   : > { %263 = sbr.rel (%p260_p3) target bundleno = 313 (0x139), region = 36  ;;  %v1738_v3 = vpack.c.bf16 (!%p260_p3), %v469_v1, %v468_v0  ;;  %v471_v4 = vld [vmem:[%s2194_s1 + $0x18] sm:$0xff] (!%p260_p3)  ;;  %p321_p4 = scmp.lt.s32.totalorder (!%p260_p3), %s1440_s28, 63  ;;  %v472_v6 = vld [vmem:[%s2194_s1 + $0x20] sm:$0xff] (!%p260_p3)  ;;  %v473_v7 = vld [vmem:[%s2194_s1 + $0x28] sm:$0xff] (!%p260_p3) }
   0x8   : > { %v1742_v5 = vpack.c.bf16 (!%p260_p3), %v471_v4, %v470_v2  ;;  %v1746_v8 = vpack.c.bf16 (!%p260_p3), %v473_v7, %v472_v6  ;;  %v474_v9 = vld [vmem:[%s2194_s1 + $0x30] sm:$0xff] (!%p260_p3)  ;;  %v475_v10 = vld [vmem:[%s2194_s1 + $0x38] sm:$0xff] (!%p260_p3)  ;;  %v476_v14 = vld [vmem:[%s2194_s1 + $0x40] sm:$0xff] (!%p260_p3) }
   0x9   : > { %1739 = vmatprep.subr.bf16.mxu0 (!%p260_p3), %v1738_v3  ;;  %1770 = vmatprep.subr.bf16.mxu1 (!%p260_p3), %v1738_v3  ;;  %v1750_v13 = vpack.c.bf16 (!%p260_p3), %v475_v10, %v474_v9  ;;  %v477_v15 = vld [vmem:[%s2194_s1 + $0x48] sm:$0xff] (!%p260_p3)  ;;  %v478_v17 = vld [vmem:[%s2194_s1 + $0x50] sm:$0xff] (!%p260_p3)  ;;  %v479_v18 = vld [vmem:[%s2194_s1 + $0x58] sm:$0xff] (!%p260_p3) }
   0xa   : > { %1741 = vmatpush3.bf16.msra.mxu0 (!%p260_p3), %v1738_v3  ;;  %1778 = vmatpush3.bf16.msra.mxu1 (!%p260_p3), %v1738_v3  ;;  %v1754_v16 = vpack.c.bf16 (!%p260_p3), %v477_v15, %v476_v14  ;;  %v1758_v19 = vpack.c.bf16 (!%p260_p3), %v479_v18, %v478_v17  ;;  %v480_v20 = vld [vmem:[%s2194_s1 + $0x60] sm:$0xff] (!%p260_p3)  ;;  %v481_v21 = vld [vmem:[%s2194_s1 + $0x68] sm:$0xff] (!%p260_p3)  ;;  %v482_v23 = vld [vmem:[%s2194_s1 + $0x70] sm:$0xff] (!%p260_p3)  ;;  %v1835_v15 = vmov (!%p260_p3), 0.0  }
   0xb   : > { %1743 = vmatprep.subr.bf16.mxu0 (!%p260_p3), %v1742_v5  ;;  %1771 = vmatprep.subr.bf16.mxu1 (!%p260_p3), %v1742_v5  ;;  %v1762_v22 = vpack.c.bf16 (!%p260_p3), %v481_v21, %v480_v20  ;;  %v483_v24 = vld [vmem:[%s2194_s1 + $0x78] sm:$0xff] (!%p260_p3)  ;;  %v1984_v56 = vld [vmem:[%s2195_s2] ss:$0 sm:$0xff] (!%p260_p3) }
   0xc   : > { %v1766_v25 = vpack.c.bf16 (!%p260_p3), %v483_v24, %v482_v23 }
   0xe   : > { %s2204_s28 = smov (!%p321_p4, %s1440_s28), 63  ;;  %1745 = vmatpush3.bf16.msra.mxu0 %v1742_v5  ;;  %1779 = vmatpush3.bf16.msra.mxu1 %v1742_v5 }
   0xf   : > { %s1905_s10 = sshll.u32 %s2204_s28, 3  ;;  %1747 = vmatprep.subr.bf16.mxu0 %v1746_v8  ;;  %1772 = vmatprep.subr.bf16.mxu1 %v1746_v8 }
  0x10   : > { %s1917_s17 = scalar_lea.vmem %s2193_s0, %s1905_s10  ;;  %s1979_s16 = scalar_lea.vmem %s2196_s3, %s1905_s10 }
  0x11   : > { %v436_v11 = vld [vmem:[%s1917_s17] sm:$0xff]  ;;  %v437_v26 = vld [vmem:[%s1917_s17 + $0x8] sm:$0xff]  ;;  %v438_v28 = vld [vmem:[%s1917_s17 + $0x10] sm:$0xff]  ;;  %s2012_s27 = scalar_lea.vmem %s2198_s5, %s1905_s10 }
  0x12   : > { %v452_v12 = vld [vmem:[%s1917_s17 + $0x80] sm:$0xff]  ;;  %1690 = vmatprep.mubr.f32.mxu0 %v436_v11  ;;  %1749 = vmatpush3.bf16.msra.mxu0 %v1746_v8  ;;  %v453_v27 = vld [vmem:[%s1917_s17 + $0x88] sm:$0xff]  ;;  %v454_v29 = vld [vmem:[%s1917_s17 + $0x90] sm:$0xff] }
  0x13   : > { %1714 = vmatprep.mubr.f32.mxu1 %v452_v12  ;;  %1780 = vmatpush3.bf16.msra.mxu1 %v1746_v8  ;;  %v439_v30 = vld [vmem:[%s1917_s17 + $0x18] sm:$0xff]  ;;  %v440_v32 = vld [vmem:[%s1917_s17 + $0x20] sm:$0xff]  ;;  %v441_v34 = vld [vmem:[%s1917_s17 + $0x28] sm:$0xff] }
  0x14   : > { %1751 = vmatprep.subr.bf16.mxu0 %v1750_v13  ;;  %1773 = vmatprep.subr.bf16.mxu1 %v1750_v13  ;;  %v455_v31 = vld [vmem:[%s1917_s17 + $0x98] sm:$0xff]  ;;  %v456_v33 = vld [vmem:[%s1917_s17 + $0xa0] sm:$0xff]  ;;  %v457_v35 = vld [vmem:[%s1917_s17 + $0xa8] sm:$0xff] }
  0x15   : > { %v442_v36 = vld [vmem:[%s1917_s17 + $0x30] sm:$0xff]  ;;  %v443_v38 = vld [vmem:[%s1917_s17 + $0x38] sm:$0xff]  ;;  %v444_v40 = vld [vmem:[%s1917_s17 + $0x40] sm:$0xff] }
  0x16   : > { %1753 = vmatpush3.bf16.msra.mxu0 %v1750_v13  ;;  %v458_v37 = vld [vmem:[%s1917_s17 + $0xb0] sm:$0xff]  ;;  %v459_v39 = vld [vmem:[%s1917_s17 + $0xb8] sm:$0xff]  ;;  %v460_v41 = vld [vmem:[%s1917_s17 + $0xc0] sm:$0xff] }
  0x17   : > { %1781 = vmatpush3.bf16.msra.mxu1 %v1750_v13  ;;  %1755 = vmatprep.subr.bf16.mxu0 %v1754_v16  ;;  %v445_v42 = vld [vmem:[%s1917_s17 + $0x48] sm:$0xff]  ;;  %v446_v44 = vld [vmem:[%s1917_s17 + $0x50] sm:$0xff]  ;;  %v447_v46 = vld [vmem:[%s1917_s17 + $0x58] sm:$0xff] }
  0x18   : > { %1774 = vmatprep.subr.bf16.mxu1 %v1754_v16  ;;  %v461_v43 = vld [vmem:[%s1917_s17 + $0xc8] sm:$0xff]  ;;  %v462_v45 = vld [vmem:[%s1917_s17 + $0xd0] sm:$0xff]  ;;  %v463_v47 = vld [vmem:[%s1917_s17 + $0xd8] sm:$0xff] }
  0x19   : > { %v448_v48 = vld [vmem:[%s1917_s17 + $0x60] sm:$0xff]  ;;  %v449_v50 = vld [vmem:[%s1917_s17 + $0x68] sm:$0xff]  ;;  %v450_v52 = vld [vmem:[%s1917_s17 + $0x70] sm:$0xff] }
  0x1a   : > { %1757 = vmatpush3.bf16.msra.mxu0 %v1754_v16  ;;  %v464_v49 = vld [vmem:[%s1917_s17 + $0xe0] sm:$0xff]  ;;  %v465_v51 = vld [vmem:[%s1917_s17 + $0xe8] sm:$0xff]  ;;  %v466_v53 = vld [vmem:[%s1917_s17 + $0xf0] sm:$0xff] }
  0x1b   : > { %1782 = vmatpush3.bf16.msra.mxu1 %v1754_v16  ;;  %1759 = vmatprep.subr.bf16.mxu0 %v1758_v19  ;;  %v451_v54 = vld [vmem:[%s1917_s17 + $0x78] sm:$0xff]  ;;  %v848_v58 = vld [vmem:[%s1979_s16 + $0x8] sm:$0xff]  ;;  %v847_v0 = vld [vmem:[%s1979_s16] sm:$0xff] }
  0x1c   : > { %1775 = vmatprep.subr.bf16.mxu1 %v1758_v19  ;;  %v467_v55 = vld [vmem:[%s1917_s17 + $0xf8] sm:$0xff]  ;;  %v864_v60 = vld [vmem:[%s1979_s16 + $0x88] sm:$0xff]  ;;  %v863_v2 = vld [vmem:[%s1979_s16 + $0x80] sm:$0xff]  ;;  %s1445_s17 = sshll.u32 %s2204_s28, 2 }
  0x1d   : > { %v850_v18 = vld [vmem:[%s1979_s16 + $0x18] sm:$0xff]  ;;  %s2004_s24 = scalar_lea.vmem %s2197_s4, %s1445_s17 }
  0x1e   : > { %1761 = vmatpush3.bf16.msra.mxu0 %v1758_v19 }
  0x1f   : > { %1783 = vmatpush3.bf16.msra.mxu1 %v1758_v19  ;;  %1763 = vmatprep.subr.bf16.mxu0 %v1762_v22  ;;  %v866_v19 = vld [vmem:[%s1979_s16 + $0x98] sm:$0xff] }
  0x20   : > { %1776 = vmatprep.subr.bf16.mxu1 %v1762_v22 }
  0x22   : > { %1765 = vmatpush3.bf16.msra.mxu0 %v1762_v22 }
  0x23   : > { %1784 = vmatpush3.bf16.msra.mxu1 %v1762_v22  ;;  %1767 = vmatprep.subr.bf16.mxu0 %v1766_v25 }
  0x24   : > { %1777 = vmatprep.subr.bf16.mxu1 %v1766_v25 }
  0x26   : > { %1769 = vmatpush3.bf16.msra.mxu0 %v1766_v25 }
  0x27   : > { %1785 = vmatpush3.bf16.msra.mxu1 %v1766_v25 }
  0x29   : > { %1691 = vmatmul.mubr.f32.vlgmr.msra.gmra.mrb[0].mxu0 %v437_v26 }
  0x2a   : > { %1715 = vmatmul.mubr.f32.vlgmr.msra.gmra.mrb[0].mxu1 %v453_v27  ;;  %1693 = vmatprep.mubr.f32.mxu0 %v438_v28 }
  0x2b   : > { %1717 = vmatprep.mubr.f32.mxu1 %v454_v29 }
  0x2d   : > { %1694 = vmatmul.mubr.f32.gmra.mrb[2].mxu0 %v439_v30 }
  0x2e   : > { %1718 = vmatmul.mubr.f32.gmra.mrb[2].mxu1 %v455_v31  ;;  %1696 = vmatprep.mubr.f32.mxu0 %v440_v32 }
  0x2f   : > { %1720 = vmatprep.mubr.f32.mxu1 %v456_v33 }
  0x31   : > { %1697 = vmatmul.mubr.f32.gmra.mrb[4].mxu0 %v441_v34  ;;  %v849_v34 = vld [vmem:[%s1979_s16 + $0x10] sm:$0xff] }
  0x32   : > { %1721 = vmatmul.mubr.f32.gmra.mrb[4].mxu1 %v457_v35  ;;  %1699 = vmatprep.mubr.f32.mxu0 %v442_v36  ;;  %v865_v35 = vld [vmem:[%s1979_s16 + $0x90] sm:$0xff] }
  0x33   : > { %1723 = vmatprep.mubr.f32.mxu1 %v458_v37 }
  0x35   : > { %1700 = vmatmul.mubr.f32.gmra.mrb[6].mxu0 %v443_v38 }
  0x36   : > { %1724 = vmatmul.mubr.f32.gmra.mrb[6].mxu1 %v459_v39  ;;  %1702 = vmatprep.mubr.f32.mxu0 %v444_v40 }
  0x37   : > { %1726 = vmatprep.mubr.f32.mxu1 %v460_v41 }
  0x39   : > { %1703 = vmatmul.mubr.f32.gmra.mrb[8].mxu0 %v445_v42  ;;  %v852_v42 = vld [vmem:[%s1979_s16 + $0x28] sm:$0xff] }
  0x3a   : > { %1727 = vmatmul.mubr.f32.gmra.mrb[8].mxu1 %v461_v43  ;;  %1705 = vmatprep.mubr.f32.mxu0 %v446_v44  ;;  %v868_v43 = vld [vmem:[%s1979_s16 + $0xa8] sm:$0xff] }
  0x3b   : > { %1729 = vmatprep.mubr.f32.mxu1 %v462_v45 }
  0x3d   : > { %1706 = vmatmul.mubr.f32.gmra.mrb[10].mxu0 %v447_v46 }
  0x3e   : > { %1730 = vmatmul.mubr.f32.gmra.mrb[10].mxu1 %v463_v47  ;;  %1708 = vmatprep.mubr.f32.mxu0 %v448_v48 }
  0x3f   : > { %1732 = vmatprep.mubr.f32.mxu1 %v464_v49 }
  0x41   : > { %1709 = vmatmul.mubr.f32.gmra.mrb[12].mxu0 %v449_v50 }
  0x42   : > { %1733 = vmatmul.mubr.f32.gmra.mrb[12].mxu1 %v465_v51  ;;  %1711 = vmatprep.mubr.f32.mxu0 %v450_v52 }
  0x43   : > { %1735 = vmatprep.mubr.f32.mxu1 %v466_v53 }
  0x45   : > { %1712 = vmatmul.mubr.f32.gmra.mrb[14].mxu0 %v451_v54 }
  0x46   : > { %1736 = vmatmul.mubr.f32.gmra.mrb[14].mxu1 %v467_v55 }
  0xfc   : > { %v1692_v57 = vpop.f32.mrb[0].mxu0 }
  0xfd   : > { %v1716_v59 = vpop.f32.mrb[0].mxu1  ;;  %v816_v61 = vadd.f32 %v1692_v57, %v1984_v56  ;;  %v550_v63 = vpop.f32.mrb[1].mxu0 }
  0xfe   : > { %v832_v62 = vadd.f32 %v1716_v59, %v1984_v56  ;;  %v630_v1 = vpop.f32.mrb[1].mxu1  ;;  %v815_v3 = vadd.f32 %v1984_v56, %v550_v63 }
  0xff   : > { %v831_v4 = vadd.f32 %v1984_v56, %v630_v1  ;;  %v880_v5 = vadd.f32 %v848_v58, %v816_v61 }
 0x100   : > { %v896_v6 = vadd.f32 %v864_v60, %v832_v62  ;;  %v879_v7 = vadd.f32 %v847_v0, %v815_v3  ;;  %v1695_v9 = vpop.f32.mrb[2].mxu0  ;;  %v851_v60 = vld [vmem:[%s1979_s16 + $0x20] sm:$0xff] }
 0x101   : > { %v895_v8 = vadd.f32 %v863_v2, %v831_v4  ;;  %v1719_v10 = vpop.f32.mrb[2].mxu1  ;;  %vm912_vm0 = vcmp.ge.f32.partialorder %v880_v5, 1.0  ;;  %v818_v11 = vadd.f32 %v1695_v9, %v1984_v56  ;;  %v560_v13 = vpop.f32.mrb[3].mxu0  ;;  %v867_v62 = vld [vmem:[%s1979_s16 + $0xa0] sm:$0xff] }
 0x102   : > { %vm928_vm1 = vcmp.ge.f32.partialorder %v896_v6, 1.0  ;;  %v834_v12 = vadd.f32 %v1719_v10, %v1984_v56  ;;  %v640_v14 = vpop.f32.mrb[3].mxu1  ;;  %v1450_v16 = vsel %vm912_vm0, 1.0, %v1835_v15  ;;  %vm911_vm2 = vcmp.ge.f32.partialorder %v879_v7, 1.0 }
 0x103   : > { %v1466_v17 = vsel %vm928_vm1, 1.0, %v1835_v15  ;;  %vm927_vm3 = vcmp.ge.f32.partialorder %v895_v8, 1.0  ;;  %v1168_v20 = vsub.f32 1.0, %v1450_v16  ;;  %v1449_v22 = vsel %vm911_vm2, 1.0, %v1835_v15 }
 0x104   : > { %v1184_v21 = vsub.f32 1.0, %v1466_v17  ;;  %v1465_v23 = vsel %vm927_vm3, 1.0, %v1835_v15  ;;  %v1548_v24 = vpack.c.bf16 %v1450_v16, %v1449_v22  ;;  %v1167_v25 = vsub.f32 1.0, %v1449_v22  ;;  %v1698_v28 = vpop.f32.mrb[4].mxu0 }
 0x105   : > { %v1572_v26 = vpack.c.bf16 %v1466_v17, %v1465_v23  ;;  %v1183_v27 = vsub.f32 1.0, %v1465_v23  ;;  %v1722_v29 = vpop.f32.mrb[4].mxu1  ;;  %v1200_v30 = vmul.f32 %v1168_v20, %v880_v5  ;;  %v882_v32 = vadd.f32 %v850_v18, %v818_v11  ;;  %v570_v36 = vpop.f32.mrb[5].mxu0  ;;  %v854_v20 = vld [vmem:[%s1979_s16 + $0x38] sm:$0xff] }
 0x106   : > { %v1216_v31 = vmul.f32 %v1184_v21, %v896_v6  ;;  %v898_v33 = vadd.f32 %v866_v19, %v834_v12  ;;  %v650_v37 = vpop.f32.mrb[5].mxu1  ;;  %1549 = vst [vmem:[%s2004_s24] sm:$0xff] %v1548_v24   ;;  %v1199_v38 = vmul.f32 %v1167_v25, %v879_v7  ;;  %v817_v40 = vadd.f32 %v1984_v56, %v560_v13  ;;  %v870_v21 = vld [vmem:[%s1979_s16 + $0xb8] sm:$0xff] }
 0x107   : > { %1602 = vst [vmem:[%s2004_s24 + $0x40] sm:$0xff] %v1572_v26   ;;  %v1215_v39 = vmul.f32 %v1183_v27, %v895_v8  ;;  %v833_v41 = vadd.f32 %v1984_v56, %v640_v14  ;;  %1232 = vst [vmem:[%s2012_s27 + $0x8] sm:$0xff] %v1200_v30  ;;  %vm914_vm4 = vcmp.ge.f32.partialorder %v882_v32, 1.0  ;;  %v820_v44 = vadd.f32 %v1698_v28, %v1984_v56 }
 0x108   : > { %1248 = vst [vmem:[%s2012_s27 + $0x88] sm:$0xff] %v1216_v31  ;;  %vm930_vm5 = vcmp.ge.f32.partialorder %v898_v33, 1.0  ;;  %v836_v45 = vadd.f32 %v1722_v29, %v1984_v56  ;;  %1231 = vst [vmem:[%s2012_s27] sm:$0xff] %v1199_v38  ;;  %v1452_v46 = vsel %vm914_vm4, 1.0, %v1835_v15  ;;  %v881_v48 = vadd.f32 %v849_v34, %v817_v40  ;;  %v1701_v50 = vpop.f32.mrb[6].mxu0  ;;  %v853_v38 = vld [vmem:[%s1979_s16 + $0x30] sm:$0xff] }
 0x109   : > { %1247 = vst [vmem:[%s2012_s27 + $0x80] sm:$0xff] %v1215_v39  ;;  %v1468_v47 = vsel %vm930_vm5, 1.0, %v1835_v15  ;;  %v897_v49 = vadd.f32 %v865_v35, %v833_v41  ;;  %v1725_v51 = vpop.f32.mrb[6].mxu1  ;;  %v1170_v52 = vsub.f32 1.0, %v1452_v46  ;;  %v884_v54 = vadd.f32 %v852_v42, %v820_v44  ;;  %v580_v57 = vpop.f32.mrb[7].mxu0  ;;  %v869_v39 = vld [vmem:[%s1979_s16 + $0xb0] sm:$0xff] }
 0x10a   : > { %v1186_v53 = vsub.f32 1.0, %v1468_v47  ;;  %v900_v55 = vadd.f32 %v868_v43, %v836_v45  ;;  %v660_v58 = vpop.f32.mrb[7].mxu1  ;;  %vm913_vm6 = vcmp.ge.f32.partialorder %v881_v48, 1.0  ;;  %v819_v59 = vadd.f32 %v1984_v56, %v570_v36  ;;  %v856_v44 = vld [vmem:[%s1979_s16 + $0x48] sm:$0xff] }
 0x10b   : > { %vm929_vm7 = vcmp.ge.f32.partialorder %v897_v49, 1.0  ;;  %v835_v61 = vadd.f32 %v1984_v56, %v650_v37  ;;  %v1202_v63 = vmul.f32 %v1170_v52, %v882_v32  ;;  %v1451_v1 = vsel %vm913_vm6, 1.0, %v1835_v15  ;;  %v872_v45 = vld [vmem:[%s1979_s16 + $0xc8] sm:$0xff] }
 0x10c   : > { %v1218_v0 = vmul.f32 %v1186_v53, %v898_v33  ;;  %v1467_v2 = vsel %vm929_vm7, 1.0, %v1835_v15  ;;  %v1551_v3 = vpack.c.bf16 %v1452_v46, %v1451_v1  ;;  %v1169_v4 = vsub.f32 1.0, %v1451_v1  ;;  %v1704_v7 = vpop.f32.mrb[8].mxu0 }
 0x10d   : > { %v1575_v5 = vpack.c.bf16 %v1468_v47, %v1467_v2  ;;  %v1185_v6 = vsub.f32 1.0, %v1467_v2  ;;  %v1728_v8 = vpop.f32.mrb[8].mxu1  ;;  %1234 = vst [vmem:[%s2012_s27 + $0x18] sm:$0xff] %v1202_v63  ;;  %vm916_vm8 = vcmp.ge.f32.partialorder %v884_v54, 1.0  ;;  %vm932_vm9 = vcmp.ge.f32.partialorder %v900_v55, 1.0  ;;  %v2038_v11 = vpop.f32.mrb[9].mxu0 }
 0x10e   : > { %1250 = vst [vmem:[%s2012_s27 + $0x98] sm:$0xff] %v1218_v0  ;;  %v883_v9 = vadd.f32 %v851_v60, %v819_v59  ;;  %v899_v10 = vadd.f32 %v867_v62, %v835_v61  ;;  %v2040_v12 = vpop.f32.mrb[9].mxu1  ;;  %1595 = vst [vmem:[%s2004_s24 + $0x8] sm:$0xff] %v1551_v3   ;;  %v1201_v13 = vmul.f32 %v1169_v4, %v881_v48  ;;  %v1454_v16 = vsel %vm916_vm8, 1.0, %v1835_v15  ;;  %v855_v62 = vld [vmem:[%s1979_s16 + $0x40] sm:$0xff] }
 0x10f   : > { %1603 = vst [vmem:[%s2004_s24 + $0x48] sm:$0xff] %v1575_v5   ;;  %v1217_v14 = vmul.f32 %v1185_v6, %v897_v49  ;;  %v1470_v17 = vsel %vm932_vm9, 1.0, %v1835_v15  ;;  %v1172_v18 = vsub.f32 1.0, %v1454_v16  ;;  %v822_v24 = vadd.f32 %v1701_v50, %v1984_v56  ;;  %v871_v0 = vld [vmem:[%s1979_s16 + $0xc0] sm:$0xff] }
 0x110   : > { %v1188_v19 = vsub.f32 1.0, %v1470_v17  ;;  %vm915_vm10 = vcmp.ge.f32.partialorder %v883_v9, 1.0  ;;  %vm931_vm11 = vcmp.ge.f32.partialorder %v899_v10, 1.0  ;;  %1233 = vst [vmem:[%s2012_s27 + $0x10] sm:$0xff] %v1201_v13  ;;  %v838_v25 = vadd.f32 %v1725_v51, %v1984_v56  ;;  %v2054_v26 = vpop.f32.mrb[10].mxu0 }
 0x111   : > { %1249 = vst [vmem:[%s2012_s27 + $0x90] sm:$0xff] %v1217_v14  ;;  %v1453_v22 = vsel %vm915_vm10, 1.0, %v1835_v15  ;;  %v1469_v23 = vsel %vm931_vm11, 1.0, %v1835_v15  ;;  %v2056_v27 = vpop.f32.mrb[10].mxu1  ;;  %v1204_v28 = vmul.f32 %v1172_v18, %v884_v54  ;;  %v2058_v32 = vpop.f32.mrb[11].mxu0  ;;  %v886_v36 = vadd.f32 %v854_v20, %v822_v24 }
 0x112   : > { %v1220_v29 = vmul.f32 %v1188_v19, %v900_v55  ;;  %v1554_v30 = vpack.c.bf16 %v1454_v16, %v1453_v22  ;;  %v1171_v31 = vsub.f32 1.0, %v1453_v22  ;;  %v2060_v33 = vpop.f32.mrb[11].mxu1  ;;  %v1578_v34 = vpack.c.bf16 %v1470_v17, %v1469_v23  ;;  %v858_v22 = vld [vmem:[%s1979_s16 + $0x58] sm:$0xff] }
 0x113   : > { %v1187_v35 = vsub.f32 1.0, %v1469_v23  ;;  %v902_v37 = vadd.f32 %v870_v21, %v838_v25  ;;  %1236 = vst [vmem:[%s2012_s27 + $0x28] sm:$0xff] %v1204_v28  ;;  %v821_v41 = vadd.f32 %v1984_v56, %v580_v57  ;;  %v837_v42 = vadd.f32 %v1984_v56, %v660_v58  ;;  %v874_v23 = vld [vmem:[%s1979_s16 + $0xd8] sm:$0xff] }
 0x114   : > { %1252 = vst [vmem:[%s2012_s27 + $0xa8] sm:$0xff] %v1220_v29  ;;  %1596 = vst [vmem:[%s2004_s24 + $0x10] sm:$0xff] %v1554_v30   ;;  %v1203_v40 = vmul.f32 %v1171_v31, %v883_v9  ;;  %v824_v43 = vadd.f32 %v1704_v7, %v1984_v56  ;;  %vm918_vm12 = vcmp.ge.f32.partialorder %v886_v36, 1.0  ;;  %v840_v47 = vadd.f32 %v1728_v8, %v1984_v56  ;;  %v2074_v48 = vpop.f32.mrb[12].mxu0 }
 0x115   : > { %1604 = vst [vmem:[%s2004_s24 + $0x50] sm:$0xff] %v1578_v34   ;;  %v1219_v46 = vmul.f32 %v1187_v35, %v899_v10  ;;  %vm934_vm13 = vcmp.ge.f32.partialorder %v902_v37, 1.0  ;;  %v2076_v49 = vpop.f32.mrb[12].mxu1  ;;  %v1456_v50 = vsel %vm918_vm12, 1.0, %v1835_v15  ;;  %v885_v52 = vadd.f32 %v853_v38, %v821_v41  ;;  %v2081_v54 = vpop.f32.mrb[13].mxu0  ;;  %v873_v41 = vld [vmem:[%s1979_s16 + $0xd0] sm:$0xff] }
 0x116   : > { %1235 = vst [vmem:[%s2012_s27 + $0x20] sm:$0xff] %v1203_v40  ;;  %v1472_v51 = vsel %vm934_vm13, 1.0, %v1835_v15  ;;  %v901_v53 = vadd.f32 %v869_v39, %v837_v42  ;;  %v2083_v55 = vpop.f32.mrb[13].mxu1  ;;  %v1174_v57 = vsub.f32 1.0, %v1456_v50  ;;  %v888_v59 = vadd.f32 %v856_v44, %v824_v43  ;;  %v857_v40 = vld [vmem:[%s1979_s16 + $0x50] sm:$0xff]  ;;  %v860_v44 = vld [vmem:[%s1979_s16 + $0x68] sm:$0xff] }
 0x117   : > { %1251 = vst [vmem:[%s2012_s27 + $0xa0] sm:$0xff] %v1219_v46  ;;  %v1190_v58 = vsub.f32 1.0, %v1472_v51  ;;  %v904_v60 = vadd.f32 %v872_v45, %v840_v47  ;;  %vm917_vm14 = vcmp.ge.f32.partialorder %v885_v52, 1.0  ;;  %v823_v61 = vadd.f32 %v1984_v56, %v2038_v11  ;;  %v876_v45 = vld [vmem:[%s1979_s16 + $0xe8] sm:$0xff] }
 0x118   : > { %vm933_vm15 = vcmp.ge.f32.partialorder %v901_v53, 1.0  ;;  %v839_v63 = vadd.f32 %v1984_v56, %v2040_v12  ;;  %v1206_v1 = vmul.f32 %v1174_v57, %v886_v36  ;;  %v1455_v3 = vsel %vm917_vm14, 1.0, %v1835_v15  ;;  %v2094_v5 = vpop.f32.mrb[14].mxu0 }
 0x119   : > { %v1222_v2 = vmul.f32 %v1190_v58, %v902_v37  ;;  %v1471_v4 = vsel %vm933_vm15, 1.0, %v1835_v15  ;;  %v2096_v6 = vpop.f32.mrb[14].mxu1  ;;  %v1557_v7 = vpack.c.bf16 %v1456_v50, %v1455_v3  ;;  %v1173_v8 = vsub.f32 1.0, %v1455_v3  ;;  %v2098_v11 = vpop.f32.mrb[15].mxu0  ;;  %v859_v58 = vld [vmem:[%s1979_s16 + $0x60] sm:$0xff] }
 0x11a   : > { %v1581_v9 = vpack.c.bf16 %v1472_v51, %v1471_v4  ;;  %v1189_v10 = vsub.f32 1.0, %v1471_v4  ;;  %v2100_v12 = vpop.f32.mrb[15].mxu1  ;;  %1238 = vst [vmem:[%s2012_s27 + $0x38] sm:$0xff] %v1206_v1  ;;  %vm920_vm0 = vcmp.ge.f32.partialorder %v888_v59, 1.0  ;;  %vm936_vm1 = vcmp.ge.f32.partialorder %v904_v60, 1.0 }
 0x11b   : > { %1254 = vst [vmem:[%s2012_s27 + $0xb8] sm:$0xff] %v1222_v2  ;;  %v887_v13 = vadd.f32 %v855_v62, %v823_v61  ;;  %v903_v14 = vadd.f32 %v871_v0, %v839_v63  ;;  %1597 = vst [vmem:[%s2004_s24 + $0x18] sm:$0xff] %v1557_v7   ;;  %v1205_v16 = vmul.f32 %v1173_v8, %v885_v52  ;;  %v1458_v18 = vsel %vm920_vm0, 1.0, %v1835_v15 }
 0x11c   : > { %1605 = vst [vmem:[%s2004_s24 + $0x58] sm:$0xff] %v1581_v9   ;;  %v1221_v17 = vmul.f32 %v1189_v10, %v901_v53  ;;  %v1474_v19 = vsel %vm936_vm1, 1.0, %v1835_v15  ;;  %v1176_v20 = vsub.f32 1.0, %v1458_v18  ;;  %v826_v28 = vadd.f32 %v2054_v26, %v1984_v56 }
 0x11d   : > { %v1192_v21 = vsub.f32 1.0, %v1474_v19  ;;  %vm919_vm2 = vcmp.ge.f32.partialorder %v887_v13, 1.0  ;;  %vm935_vm3 = vcmp.ge.f32.partialorder %v903_v14, 1.0  ;;  %1237 = vst [vmem:[%s2012_s27 + $0x30] sm:$0xff] %v1205_v16  ;;  %v842_v29 = vadd.f32 %v2056_v27, %v1984_v56  ;;  %v862_v16 = vld [vmem:[%s1979_s16 + $0x78] sm:$0xff] }
 0x11e   : > { %1253 = vst [vmem:[%s2012_s27 + $0xb0] sm:$0xff] %v1221_v17  ;;  %v1457_v24 = vsel %vm919_vm2, 1.0, %v1835_v15  ;;  %v1473_v25 = vsel %vm935_vm3, 1.0, %v1835_v15  ;;  %v1208_v30 = vmul.f32 %v1176_v20, %v888_v59  ;;  %v890_v38 = vadd.f32 %v858_v22, %v826_v28  ;;  %v878_v17 = vld [vmem:[%s1979_s16 + $0xf8] sm:$0xff] }
 0x11f   : > { %v1224_v31 = vmul.f32 %v1192_v21, %v904_v60  ;;  %v1560_v34 = vpack.c.bf16 %v1458_v18, %v1457_v24  ;;  %v1175_v35 = vsub.f32 1.0, %v1457_v24  ;;  %v1584_v36 = vpack.c.bf16 %v1474_v19, %v1473_v25  ;;  %v875_v60 = vld [vmem:[%s1979_s16 + $0xe0] sm:$0xff] }
 0x120   : > { %v1191_v37 = vsub.f32 1.0, %v1473_v25  ;;  %v906_v39 = vadd.f32 %v874_v23, %v842_v29  ;;  %1240 = vst [vmem:[%s2012_s27 + $0x48] sm:$0xff] %v1208_v30  ;;  %v825_v27 = vadd.f32 %v1984_v56, %v2058_v32  ;;  %v841_v42 = vadd.f32 %v1984_v56, %v2060_v33 }
 0x121   : > { %1256 = vst [vmem:[%s2012_s27 + $0xc8] sm:$0xff] %v1224_v31  ;;  %1598 = vst [vmem:[%s2004_s24 + $0x20] sm:$0xff] %v1560_v34   ;;  %v1207_v26 = vmul.f32 %v1175_v35, %v887_v13  ;;  %v828_v43 = vadd.f32 %v2074_v48, %v1984_v56  ;;  %vm922_vm4 = vcmp.ge.f32.partialorder %v890_v38, 1.0  ;;  %v844_v47 = vadd.f32 %v2076_v49, %v1984_v56  ;;  %v861_v34 = vld [vmem:[%s1979_s16 + $0x70] sm:$0xff] }
 0x122   : > { %1606 = vst [vmem:[%s2004_s24 + $0x60] sm:$0xff] %v1584_v36   ;;  %v1223_v46 = vmul.f32 %v1191_v37, %v903_v14  ;;  %vm938_vm5 = vcmp.ge.f32.partialorder %v906_v39, 1.0  ;;  %v1460_v32 = vsel %vm922_vm4, 1.0, %v1835_v15  ;;  %v889_v33 = vadd.f32 %v857_v40, %v825_v27  ;;  %v877_v35 = vld [vmem:[%s1979_s16 + $0xf0] sm:$0xff] }
 0x123   : > { %1239 = vst [vmem:[%s2012_s27 + $0x40] sm:$0xff] %v1207_v26  ;;  %v1476_v50 = vsel %vm938_vm5, 1.0, %v1835_v15  ;;  %v905_v51 = vadd.f32 %v873_v41, %v841_v42  ;;  %v1178_v48 = vsub.f32 1.0, %v1460_v32  ;;  %v892_v53 = vadd.f32 %v860_v44, %v828_v43 }
 0x124   : > { %1255 = vst [vmem:[%s2012_s27 + $0xc0] sm:$0xff] %v1223_v46  ;;  %v1194_v52 = vsub.f32 1.0, %v1476_v50  ;;  %v908_v57 = vadd.f32 %v876_v45, %v844_v47  ;;  %vm921_vm6 = vcmp.ge.f32.partialorder %v889_v33, 1.0  ;;  %v827_v49 = vadd.f32 %v1984_v56, %v2081_v54 }
 0x125   : > { %vm937_vm7 = vcmp.ge.f32.partialorder %v905_v51, 1.0  ;;  %v843_v59 = vadd.f32 %v1984_v56, %v2083_v55  ;;  %v1210_v61 = vmul.f32 %v1178_v48, %v890_v38  ;;  %v1459_v63 = vsel %vm921_vm6, 1.0, %v1835_v15 }
 0x126   : > { %v1226_v62 = vmul.f32 %v1194_v52, %v906_v39  ;;  %v1475_v0 = vsel %vm937_vm7, 1.0, %v1835_v15  ;;  %v1563_v1 = vpack.c.bf16 %v1460_v32, %v1459_v63  ;;  %v1177_v2 = vsub.f32 1.0, %v1459_v63 }
 0x127   : > { %v1587_v3 = vpack.c.bf16 %v1476_v50, %v1475_v0  ;;  %v1193_v4 = vsub.f32 1.0, %v1475_v0  ;;  %1242 = vst [vmem:[%s2012_s27 + $0x58] sm:$0xff] %v1210_v61  ;;  %vm924_vm8 = vcmp.ge.f32.partialorder %v892_v53, 1.0  ;;  %vm940_vm9 = vcmp.ge.f32.partialorder %v908_v57, 1.0 }
 0x128   : > { %1258 = vst [vmem:[%s2012_s27 + $0xd8] sm:$0xff] %v1226_v62  ;;  %v891_v54 = vadd.f32 %v859_v58, %v827_v49  ;;  %v907_v55 = vadd.f32 %v875_v60, %v843_v59  ;;  %1599 = vst [vmem:[%s2004_s24 + $0x28] sm:$0xff] %v1563_v1   ;;  %v1209_v7 = vmul.f32 %v1177_v2, %v889_v33  ;;  %v1462_v9 = vsel %vm924_vm8, 1.0, %v1835_v15 }
 0x129   : > { %1607 = vst [vmem:[%s2004_s24 + $0x68] sm:$0xff] %v1587_v3   ;;  %v1225_v8 = vmul.f32 %v1193_v4, %v905_v51  ;;  %v1478_v10 = vsel %vm940_vm9, 1.0, %v1835_v15  ;;  %v1180_v13 = vsub.f32 1.0, %v1462_v9  ;;  %v830_v20 = vadd.f32 %v2094_v5, %v1984_v56 }
 0x12a   : > { %v1196_v14 = vsub.f32 1.0, %v1478_v10  ;;  %vm923_vm10 = vcmp.ge.f32.partialorder %v891_v54, 1.0  ;;  %vm939_vm11 = vcmp.ge.f32.partialorder %v907_v55, 1.0  ;;  %1241 = vst [vmem:[%s2012_s27 + $0x50] sm:$0xff] %v1209_v7  ;;  %v846_v21 = vadd.f32 %v2096_v6, %v1984_v56 }
 0x12b   : > { %1257 = vst [vmem:[%s2012_s27 + $0xd0] sm:$0xff] %v1225_v8  ;;  %v1461_v18 = vsel %vm923_vm10, 1.0, %v1835_v15  ;;  %v1477_v19 = vsel %vm939_vm11, 1.0, %v1835_v15  ;;  %v1212_v22 = vmul.f32 %v1180_v13, %v892_v53  ;;  %v894_v30 = vadd.f32 %v862_v16, %v830_v20 }
 0x12c   : > { %v1228_v23 = vmul.f32 %v1196_v14, %v908_v57  ;;  %v1566_v24 = vpack.c.bf16 %v1462_v9, %v1461_v18  ;;  %v1179_v25 = vsub.f32 1.0, %v1461_v18  ;;  %v1590_v28 = vpack.c.bf16 %v1478_v10, %v1477_v19 }
 0x12d   : > { %v1195_v29 = vsub.f32 1.0, %v1477_v19  ;;  %v910_v31 = vadd.f32 %v878_v17, %v846_v21  ;;  %1244 = vst [vmem:[%s2012_s27 + $0x68] sm:$0xff] %v1212_v22  ;;  %v829_v6 = vadd.f32 %v1984_v56, %v2098_v11  ;;  %v845_v36 = vadd.f32 %v1984_v56, %v2100_v12 }
 0x12e   : > { %1260 = vst [vmem:[%s2012_s27 + $0xe8] sm:$0xff] %v1228_v23  ;;  %1600 = vst [vmem:[%s2004_s24 + $0x30] sm:$0xff] %v1566_v24   ;;  %v1211_v5 = vmul.f32 %v1179_v25, %v891_v54  ;;  %vm926_vm12 = vcmp.ge.f32.partialorder %v894_v30, 1.0 }
 0x12f   : > { %1608 = vst [vmem:[%s2004_s24 + $0x70] sm:$0xff] %v1590_v28   ;;  %v1227_v37 = vmul.f32 %v1195_v29, %v907_v55  ;;  %vm942_vm13 = vcmp.ge.f32.partialorder %v910_v31, 1.0  ;;  %v1464_v38 = vsel %vm926_vm12, 1.0, %v1835_v15  ;;  %v893_v40 = vadd.f32 %v861_v34, %v829_v6 }
 0x130   : > { %1243 = vst [vmem:[%s2012_s27 + $0x60] sm:$0xff] %v1211_v5  ;;  %v1480_v39 = vsel %vm942_vm13, 1.0, %v1835_v15  ;;  %v909_v41 = vadd.f32 %v877_v35, %v845_v36  ;;  %v1182_v26 = vsub.f32 1.0, %v1464_v38 }
 0x131   : > { %1259 = vst [vmem:[%s2012_s27 + $0xe0] sm:$0xff] %v1227_v37  ;;  %v1198_v11 = vsub.f32 1.0, %v1480_v39  ;;  %vm925_vm14 = vcmp.ge.f32.partialorder %v893_v40, 1.0 }
 0x132   : > { %vm941_vm15 = vcmp.ge.f32.partialorder %v909_v41, 1.0  ;;  %v1214_v56 = vmul.f32 %v1182_v26, %v894_v30  ;;  %v1463_v27 = vsel %vm925_vm14, 1.0, %v1835_v15 }
 0x133   : > { %v1230_v12 = vmul.f32 %v1198_v11, %v910_v31  ;;  %v1479_v42 = vsel %vm941_vm15, 1.0, %v1835_v15  ;;  %v1569_v43 = vpack.c.bf16 %v1464_v38, %v1463_v27  ;;  %v1181_v44 = vsub.f32 1.0, %v1463_v27 }
 0x134   : > { %v1593_v45 = vpack.c.bf16 %v1480_v39, %v1479_v42  ;;  %v1197_v46 = vsub.f32 1.0, %v1479_v42  ;;  %1246 = vst [vmem:[%s2012_s27 + $0x78] sm:$0xff] %v1214_v56 }
 0x135   : > { %1262 = vst [vmem:[%s2012_s27 + $0xf8] sm:$0xff] %v1230_v12  ;;  %1601 = vst [vmem:[%s2004_s24 + $0x38] sm:$0xff] %v1569_v43   ;;  %v1213_v47 = vmul.f32 %v1181_v44, %v893_v40 }
 0x136   : > { %1609 = vst [vmem:[%s2004_s24 + $0x78] sm:$0xff] %v1593_v45   ;;  %v1229_v32 = vmul.f32 %v1197_v46, %v909_v41 }
 0x137   : > { %1245 = vst [vmem:[%s2012_s27 + $0x70] sm:$0xff] %v1213_v47 }
 0x138   : > { %1261 = vst [vmem:[%s2012_s27 + $0xf0] sm:$0xff] %v1229_v32 }
 0x139 PF: > { %s16_s20 = sadd.s32 1, %s1833_s20   ;;  %s2199_s18 = smov %s1829_s19 }
 0x13a   : > { %p13_p5 = scmp.ge.s32.totalorder %s16_s20, 4   ;;  %s2200_s19 = smov %s2202_s21 }
 0x13c   :  { %15 = sbr.rel (!%p13_p5) target bundleno = 2 (0x2), region = 95 }

// kernel: closed_call.82
= control target key start
LH: loop header
LB: loop body
LE: loop exit
PB: predicated region body
PF: predicated region fallthrough
CT: control target
= control target key end

     0   :  { %s2144_s18 = smov 0   ;;  %s2146_s19 = smov 0   ;;  %s2751_s0 = inlined_call_operand.vmem [shape: bf16[512,640], index: 0, kind: input, shape index: {}]   ;;  %s2752_s1 = inlined_call_operand.vmem [shape: bf16[640,128], index: 1, kind: input, shape index: {}]   ;;  %s2753_s2 = inlined_call_operand.vmem [shape: f32[1,128], index: 2, kind: input, shape index: {}]   ;;  %s2754_s3 = inlined_call_operand.vmem [shape: f32[512,128], index: 3, kind: input, shape index: {}]   ;;  %s2755_s4 = inlined_call_operand.vmem [shape: bf16[512,128], index: 4, kind: output, shape index: {0}]   ;;  %s2756_s5 = inlined_call_operand.vmem [shape: f32[512,128], index: 5, kind: output, shape index: {1}]  }
   0x1   :  { %s2148_s20 = smov 0   ;;  %s2150_s21 = smov 0  }
   0x2   :  { %s2152_s22 = smov 0   ;;  %s2154_s23 = smov 0  }
   0x3   :  { %s2156_s24 = smov 0  }
   0x4 LB: > { %s28_s25 = sadd.s32 1, %s2102_s22  ;;  %s35_s26 = sadd.s32 1, %s2106_s23  ;;  %s2110_s24 = sphi %s2156_s24, %s16_s24   ;;  %s2106_s23 = sphi %s2154_s23, %s2786_s23   ;;  %s2102_s22 = sphi %s2152_s22, %s2785_s22   ;;  %s2098_s21 = sphi %s2150_s21, %s2784_s21   ;;  %s2094_s20 = sphi %s2148_s20, %s2783_s20   ;;  %s2090_s19 = sphi %s2146_s19, %s2782_s19   ;;  %s2086_s18 = sphi %s2144_s18, %s2781_s18  }
   0x5   : > { %p29_p0 = scmp.ge.s32.totalorder %s28_s25, 5  ;;  %p51_p1 = scmp.ne.s32.totalorder %s2090_s19, %s2086_s18 }
   0x6   : > { %p52_p2 = scmp.eq.s32.totalorder %s2110_s24, 0  ;;  %s44_s30 = sadd.s32 1, %s2090_s19 }
   0x7   : > { %s2788_s25 = smov (%p29_p0, %s28_s25), 0  ;;  %s2790_s26 = smov (!%p29_p0, %s35_s26), %s2106_s23 }
   0x8   : > { %p53_p3 = por %p52_p2, %p51_p1  ;;  %p37_p4 = scmp.ge.s32.totalorder %s2790_s26, 2 }
   0x9   : > { %s40_s27 = ssub.s32 %s2102_s22, %s2788_s25  ;;  %p1682_p6 = scmp.ge.s32.totalorder %s2110_s24, 10 }
   0xa   : > { %s2792_s26 = smov (%p37_p4, %s2790_s26), 0 }
   0xb   : > { %s39_s28 = ssub.s32 %s2106_s23, %s2792_s26  ;;  %221 = sbr.rel (%p1682_p6) target bundleno = 46 (0x2e), region = 20 }
   0xc   : > { %s41_s29 = sor.u32 %s40_s27, %s39_s28 }
   0xd   : > { %p42_p5 = scmp.eq.s32.totalorder %s41_s29, 0 }
   0xf   : > { %s2195_s6 = scalar_select %p42_p5, %s2090_s19, %s44_s30  }
  0x12   : > { %224 = sbr.rel (!%p53_p3) target bundleno = 46 (0x2e), region = 24  ;;  %s226_s7 = sand.u32 (%p53_p3), 1, %s2090_s19  }
  0x13   : > { %s1973_s8 = smul.u32 (%p53_p3), 160, %s2106_s23  ;;  %s1683_s9 = sshll.u32 (%p53_p3), %s226_s7, 7 }
  0x14   : > { %s2209_s15 = scalar_lea.vmem (%p53_p3), [#allocation3], %s1683_s9 }
  0x15   : > { %s231_s10 = sadd.s32 (%p53_p3), %s2102_s22, %s1973_s8 }
  0x16   : > { %s1686_s11 = sshll.u32 (%p53_p3), %s231_s10, 2 }
  0x17   : > { %s2204_s14 = scalar_lea.vmem (%p53_p3), %s2751_s0, %s1686_s11 }
  0x18   : > { %v249_v0 = vld [vmem:[%s2204_s14] sm:$0xf] (%p53_p3)  ;;  %v251_v1 = vld [vmem:[%s2204_s14 + $0x14] sm:$0xf] (%p53_p3)  ;;  %v253_v2 = vld [vmem:[%s2204_s14 + $0x28] sm:$0xf] (%p53_p3) }
  0x19   : > { %250 = vst [vmem:[%s2209_s15] sm:$0xf] %v249_v0  ;;  %252 = vst [vmem:[%s2209_s15 + $0x4] sm:$0xf] %v251_v1  ;;  %v255_v3 = vld [vmem:[%s2204_s14 + $0x3c] sm:$0xf] }
  0x1a   : > { %254 = vst [vmem:[%s2209_s15 + $0x8] sm:$0xf] %v253_v2  ;;  %v257_v4 = vld [vmem:[%s2204_s14 + $0x50] sm:$0xf]  ;;  %v259_v5 = vld [vmem:[%s2204_s14 + $0x64] sm:$0xf] }
  0x1b   : > { %256 = vst [vmem:[%s2209_s15 + $0xc] sm:$0xf] %v255_v3  ;;  %258 = vst [vmem:[%s2209_s15 + $0x10] sm:$0xf] %v257_v4  ;;  %v261_v6 = vld [vmem:[%s2204_s14 + $0x78] sm:$0xf] }
  0x1c   : > { %260 = vst [vmem:[%s2209_s15 + $0x14] sm:$0xf] %v259_v5  ;;  %v263_v7 = vld [vmem:[%s2204_s14 + $0x8c] sm:$0xf]  ;;  %v265_v8 = vld [vmem:[%s2204_s14 + $0xa0] sm:$0xf] }
  0x1d   : > { %262 = vst [vmem:[%s2209_s15 + $0x18] sm:$0xf] %v261_v6  ;;  %264 = vst [vmem:[%s2209_s15 + $0x1c] sm:$0xf] %v263_v7  ;;  %v267_v9 = vld [vmem:[%s2204_s14 + $0xb4] sm:$0xf] }
  0x1e   : > { %266 = vst [vmem:[%s2209_s15 + $0x20] sm:$0xf] %v265_v8  ;;  %v269_v10 = vld [vmem:[%s2204_s14 + $0xc8] sm:$0xf]  ;;  %v271_v11 = vld [vmem:[%s2204_s14 + $0xdc] sm:$0xf] }
  0x1f   : > { %268 = vst [vmem:[%s2209_s15 + $0x24] sm:$0xf] %v267_v9  ;;  %270 = vst [vmem:[%s2209_s15 + $0x28] sm:$0xf] %v269_v10  ;;  %v273_v12 = vld [vmem:[%s2204_s14 + $0xf0] sm:$0xf] }
  0x20   : > { %272 = vst [vmem:[%s2209_s15 + $0x2c] sm:$0xf] %v271_v11  ;;  %v275_v13 = vld [vmem:[%s2204_s14 + $0x104] sm:$0xf]  ;;  %v277_v14 = vld [vmem:[%s2204_s14 + $0x118] sm:$0xf] }
  0x21   : > { %274 = vst [vmem:[%s2209_s15 + $0x30] sm:$0xf] %v273_v12  ;;  %276 = vst [vmem:[%s2209_s15 + $0x34] sm:$0xf] %v275_v13  ;;  %v279_v15 = vld [vmem:[%s2204_s14 + $0x12c] sm:$0xf] }
  0x22   : > { %278 = vst [vmem:[%s2209_s15 + $0x38] sm:$0xf] %v277_v14  ;;  %v281_v16 = vld [vmem:[%s2204_s14 + $0x140] sm:$0xf]  ;;  %v283_v17 = vld [vmem:[%s2204_s14 + $0x154] sm:$0xf] }
  0x23   : > { %280 = vst [vmem:[%s2209_s15 + $0x3c] sm:$0xf] %v279_v15  ;;  %282 = vst [vmem:[%s2209_s15 + $0x40] sm:$0xf] %v281_v16  ;;  %v285_v18 = vld [vmem:[%s2204_s14 + $0x168] sm:$0xf] }
  0x24   : > { %284 = vst [vmem:[%s2209_s15 + $0x44] sm:$0xf] %v283_v17  ;;  %v287_v19 = vld [vmem:[%s2204_s14 + $0x17c] sm:$0xf]  ;;  %v289_v20 = vld [vmem:[%s2204_s14 + $0x190] sm:$0xf] }
  0x25   : > { %286 = vst [vmem:[%s2209_s15 + $0x48] sm:$0xf] %v285_v18  ;;  %288 = vst [vmem:[%s2209_s15 + $0x4c] sm:$0xf] %v287_v19  ;;  %v291_v21 = vld [vmem:[%s2204_s14 + $0x1a4] sm:$0xf] }
  0x26   : > { %290 = vst [vmem:[%s2209_s15 + $0x50] sm:$0xf] %v289_v20  ;;  %v293_v22 = vld [vmem:[%s2204_s14 + $0x1b8] sm:$0xf]  ;;  %v295_v23 = vld [vmem:[%s2204_s14 + $0x1cc] sm:$0xf] }
  0x27   : > { %292 = vst [vmem:[%s2209_s15 + $0x54] sm:$0xf] %v291_v21  ;;  %294 = vst [vmem:[%s2209_s15 + $0x58] sm:$0xf] %v293_v22  ;;  %v297_v24 = vld [vmem:[%s2204_s14 + $0x1e0] sm:$0xf] }
  0x28   : > { %296 = vst [vmem:[%s2209_s15 + $0x5c] sm:$0xf] %v295_v23  ;;  %v299_v25 = vld [vmem:[%s2204_s14 + $0x1f4] sm:$0xf]  ;;  %v301_v26 = vld [vmem:[%s2204_s14 + $0x208] sm:$0xf] }
  0x29   : > { %298 = vst [vmem:[%s2209_s15 + $0x60] sm:$0xf] %v297_v24  ;;  %300 = vst [vmem:[%s2209_s15 + $0x64] sm:$0xf] %v299_v25  ;;  %v303_v27 = vld [vmem:[%s2204_s14 + $0x21c] sm:$0xf] }
  0x2a   : > { %302 = vst [vmem:[%s2209_s15 + $0x68] sm:$0xf] %v301_v26  ;;  %v305_v28 = vld [vmem:[%s2204_s14 + $0x230] sm:$0xf]  ;;  %v307_v29 = vld [vmem:[%s2204_s14 + $0x244] sm:$0xf] }
  0x2b   : > { %304 = vst [vmem:[%s2209_s15 + $0x6c] sm:$0xf] %v303_v27  ;;  %306 = vst [vmem:[%s2209_s15 + $0x70] sm:$0xf] %v305_v28  ;;  %v309_v30 = vld [vmem:[%s2204_s14 + $0x258] sm:$0xf] }
  0x2c   : > { %308 = vst [vmem:[%s2209_s15 + $0x74] sm:$0xf] %v307_v29  ;;  %v311_v31 = vld [vmem:[%s2204_s14 + $0x26c] sm:$0xf]  ;;  %310 = vst [vmem:[%s2209_s15 + $0x78] sm:$0xf] %v309_v30 }
  0x2d   : > { %312 = vst [vmem:[%s2209_s15 + $0x7c] sm:$0xf] %v311_v31 }
  0x2e PF: > { %p1687_p7 = scmp.ge.s32.totalorder %s2110_s24, 1  ;;  %p422_p8 = scmp.lt.s32.totalorder %s2110_s24, 11 }
  0x30   : > { %p423_p9 = pnand %p1687_p7, %p422_p8 }
  0x31   : > { %s429_s16 = sand.u32 (!%p423_p9), 1, %s2086_s18   ;;  %s1689_s17 = sshll.u32 (!%p423_p9), %s2094_s20, 4 }
  0x32   : > { %426 = sbr.rel (%p423_p9) target bundleno = 409 (0x199), region = 73  ;;  %s1688_s27 = sshll.u32 (!%p423_p9), %s429_s16, 7 }
  0x33   : > { %p488_p10 = scmp.lt.s32.totalorder (!%p423_p9), %s1689_s17, 79  ;;  %s1691_s28 = sshll.u32 (!%p423_p9), %s2098_s21, 5 }
  0x34   : > { %p500_p11 = scmp.lt.s32.totalorder (!%p423_p9), %s1691_s28, 63  ;;  %p1697_p12 = scmp.ne.s32.totalorder (!%p423_p9), %s2094_s20, 0 }
  0x39   : > { %s2794_s17 = smov (!%p488_p10, %s1689_s17), 79  ;;  %s2796_s28 = smov (!%p500_p11, %s1691_s28), 63 }
  0x3a   : > { %s1690_s29 = sshll.u32 %s2794_s17, 2  ;;  %s1692_s9 = sshll.u32 %s2796_s28, 3  ;;  %v2112_v32 = vmov (!%p1697_p12), 0.0  }
  0x3b   : > { %s2280_s8 = scalar_lea.vmem %s2752_s1, %s1690_s29  ;;  %s1694_s10 = sshll.u32 %s2796_s28, 2  ;;  %531 = vst [vmem:[#allocation2] sm:$0xff] (!%p1697_p12), %v2112_v32  ;;  %532 = vst [vmem:[#allocation2 + $0x8] sm:$0xff] (!%p1697_p12), %v2112_v32 }
  0x3c   : > { %s2285_s13 = scalar_lea.vmem %s2754_s3, %s1692_s9  ;;  %s2290_s21 = scalar_lea.vmem %s2755_s4, %s1694_s10  ;;  %533 = vst [vmem:[#allocation2 + $0x10] sm:$0xff] (!%p1697_p12), %v2112_v32  ;;  %534 = vst [vmem:[#allocation2 + $0x18] sm:$0xff] (!%p1697_p12), %v2112_v32 }
  0x3d   : > { %s2295_s17 = scalar_lea.vmem %s2756_s5, %s1692_s9  ;;  %s2297_s29 = scalar_lea.vmem [#allocation3], %s1688_s27  ;;  %535 = vst [vmem:[#allocation2 + $0x20] sm:$0xff] (!%p1697_p12), %v2112_v32  ;;  %536 = vst [vmem:[#allocation2 + $0x28] sm:$0xff] (!%p1697_p12), %v2112_v32 }
  0x3e   : > { %530 = sbr.rel (%p1697_p12) target bundleno = 75 (0x4b), region = 81  ;;  %537 = vst [vmem:[#allocation2 + $0x30] sm:$0xff] (!%p1697_p12), %v2112_v32  ;;  %538 = vst [vmem:[#allocation2 + $0x38] sm:$0xff] (!%p1697_p12), %v2112_v32 }
  0x3f   : > { %539 = vst [vmem:[#allocation2 + $0x40] sm:$0xff] (!%p1697_p12), %v2112_v32  ;;  %540 = vst [vmem:[#allocation2 + $0x48] sm:$0xff] (!%p1697_p12), %v2112_v32 }
  0x40   : > { %541 = vst [vmem:[#allocation2 + $0x50] sm:$0xff] (!%p1697_p12), %v2112_v32  ;;  %542 = vst [vmem:[#allocation2 + $0x58] sm:$0xff] (!%p1697_p12), %v2112_v32 }
  0x41   : > { %543 = vst [vmem:[#allocation2 + $0x60] sm:$0xff] (!%p1697_p12), %v2112_v32  ;;  %544 = vst [vmem:[#allocation2 + $0x68] sm:$0xff] (!%p1697_p12), %v2112_v32 }
  0x42   : > { %545 = vst [vmem:[#allocation2 + $0x70] sm:$0xff] (!%p1697_p12), %v2112_v32  ;;  %546 = vst [vmem:[#allocation2 + $0x78] sm:$0xff] (!%p1697_p12), %v2112_v32 }
  0x43   : > { %547 = vst [vmem:[#allocation2 + $0x80] sm:$0xff] (!%p1697_p12), %v2112_v32  ;;  %548 = vst [vmem:[#allocation2 + $0x88] sm:$0xff] (!%p1697_p12), %v2112_v32 }
  0x44   : > { %549 = vst [vmem:[#allocation2 + $0x90] sm:$0xff] (!%p1697_p12), %v2112_v32  ;;  %550 = vst [vmem:[#allocation2 + $0x98] sm:$0xff] (!%p1697_p12), %v2112_v32 }
  0x45   : > { %551 = vst [vmem:[#allocation2 + $0xa0] sm:$0xff] %v2112_v32  ;;  %552 = vst [vmem:[#allocation2 + $0xa8] sm:$0xff] %v2112_v32 }
  0x46   : > { %553 = vst [vmem:[#allocation2 + $0xb0] sm:$0xff] %v2112_v32  ;;  %554 = vst [vmem:[#allocation2 + $0xb8] sm:$0xff] %v2112_v32 }
  0x47   : > { %555 = vst [vmem:[#allocation2 + $0xc0] sm:$0xff] %v2112_v32  ;;  %556 = vst [vmem:[#allocation2 + $0xc8] sm:$0xff] %v2112_v32 }
  0x48   : > { %557 = vst [vmem:[#allocation2 + $0xd0] sm:$0xff] %v2112_v32  ;;  %558 = vst [vmem:[#allocation2 + $0xd8] sm:$0xff] %v2112_v32 }
  0x49   : > { %559 = vst [vmem:[#allocation2 + $0xe0] sm:$0xff] %v2112_v32  ;;  %560 = vst [vmem:[#allocation2 + $0xe8] sm:$0xff] %v2112_v32 }
  0x4a   : > { %561 = vst [vmem:[#allocation2 + $0xf0] sm:$0xff] %v2112_v32  ;;  %562 = vst [vmem:[#allocation2 + $0xf8] sm:$0xff] %v2112_v32 }
  0x4b PF: > { %v2032_v33 = vld [vmem:[%s2280_s8] sm:$0xff]   ;;  %v2033_v34 = vld [vmem:[%s2280_s8 + $0x8] sm:$0xff]   ;;  %v2034_v35 = vld [vmem:[%s2280_s8 + $0x10] sm:$0xff]   ;;  %p1722_p13 = scmp.ne.s32.totalorder %s2094_s20, 4 }
  0x4c   : > { %1909 = vmatprep.subr.bf16.mxu0 %v2032_v33  ;;  %1957 = vmatprep.subr.bf16.mxu1 %v2032_v33  ;;  %v2035_v36 = vld [vmem:[%s2280_s8 + $0x18] sm:$0xff]   ;;  %v2040_v37 = vld [vmem:[%s2297_s29] sm:$0xff]   ;;  %v2037_v40 = vld [vmem:[%s2280_s8 + $0x28] sm:$0xff]  }
  0x4d   : > { %1910 = vmatpush3.bf16.msra.mxu0 %v2032_v33  ;;  %1965 = vmatpush3.bf16.msra.mxu1 %v2032_v33  ;;  %v2041_v38 = vld [vmem:[%s2297_s29 + $0x40] sm:$0xff]   ;;  %v2038_v41 = vld [vmem:[%s2280_s8 + $0x30] sm:$0xff]   ;;  %v2039_v42 = vld [vmem:[%s2280_s8 + $0x38] sm:$0xff]  }
  0x4e   : > { %1911 = vmatprep.subr.bf16.mxu0 %v2033_v34  ;;  %1958 = vmatprep.subr.bf16.mxu1 %v2033_v34  ;;  %v2036_v39 = vld [vmem:[%s2280_s8 + $0x20] sm:$0xff]   ;;  %v2042_v43 = vld [vmem:[%s2297_s29 + $0x8] sm:$0xff]   ;;  %v2044_v45 = vld [vmem:[%s2297_s29 + $0x10] sm:$0xff]  }
  0x4f   : > { %1925 = vmatprep.mubr.bf16.mxu0 %v2040_v37  ;;  %1941 = vmatprep.mubr.bf16.mxu1 %v2041_v38  ;;  %v2043_v44 = vld [vmem:[%s2297_s29 + $0x48] sm:$0xff]   ;;  %v2045_v46 = vld [vmem:[%s2297_s29 + $0x50] sm:$0xff]   ;;  %v2046_v47 = vld [vmem:[%s2297_s29 + $0x18] sm:$0xff]  }
  0x50   : > { %v2047_v48 = vld [vmem:[%s2297_s29 + $0x58] sm:$0xff]   ;;  %v2048_v49 = vld [vmem:[%s2297_s29 + $0x20] sm:$0xff]   ;;  %v2050_v51 = vld [vmem:[%s2297_s29 + $0x28] sm:$0xff]  }
  0x51   : > { %1912 = vmatpush3.bf16.msra.mxu0 %v2033_v34  ;;  %1966 = vmatpush3.bf16.msra.mxu1 %v2033_v34  ;;  %v2049_v50 = vld [vmem:[%s2297_s29 + $0x60] sm:$0xff]   ;;  %v2051_v52 = vld [vmem:[%s2297_s29 + $0x68] sm:$0xff]   ;;  %v2052_v53 = vld [vmem:[%s2297_s29 + $0x30] sm:$0xff]  }
  0x52   : > { %1913 = vmatprep.subr.bf16.mxu0 %v2034_v35  ;;  %1959 = vmatprep.subr.bf16.mxu1 %v2034_v35  ;;  %v2053_v54 = vld [vmem:[%s2297_s29 + $0x70] sm:$0xff]   ;;  %v2054_v55 = vld [vmem:[%s2297_s29 + $0x38] sm:$0xff]   ;;  %v563_v59 = vld [vmem:[#allocation2] sm:$0xff] }
  0x53   : > { %v2055_v56 = vld [vmem:[%s2297_s29 + $0x78] sm:$0xff]   ;;  %v565_v57 = vld [vmem:[#allocation2 + $0x10] sm:$0xff]  ;;  %v579_v60 = vld [vmem:[#allocation2 + $0x80] sm:$0xff] }
  0x54   : > { %v581_v58 = vld [vmem:[#allocation2 + $0x90] sm:$0xff]  ;;  %v566_v63 = vld [vmem:[#allocation2 + $0x18] sm:$0xff]  ;;  %v564_v5 = vld [vmem:[#allocation2 + $0x8] sm:$0xff] }
  0x55   : > { %1914 = vmatpush3.bf16.msra.mxu0 %v2034_v35  ;;  %1967 = vmatpush3.bf16.msra.mxu1 %v2034_v35  ;;  %v582_v0 = vld [vmem:[#allocation2 + $0x98] sm:$0xff]  ;;  %v580_v6 = vld [vmem:[#allocation2 + $0x88] sm:$0xff]  ;;  %v569_v17 = vld [vmem:[#allocation2 + $0x30] sm:$0xff] }
  0x56   : > { %1915 = vmatprep.subr.bf16.mxu0 %v2035_v36  ;;  %1960 = vmatprep.subr.bf16.mxu1 %v2035_v36  ;;  %v585_v18 = vld [vmem:[#allocation2 + $0xb0] sm:$0xff]  ;;  %v567_v19 = vld [vmem:[#allocation2 + $0x20] sm:$0xff]  ;;  %v570_v23 = vld [vmem:[#allocation2 + $0x38] sm:$0xff] }
  0x57   : > { %v583_v20 = vld [vmem:[#allocation2 + $0xa0] sm:$0xff]  ;;  %v586_v24 = vld [vmem:[#allocation2 + $0xb8] sm:$0xff]  ;;  %v568_v29 = vld [vmem:[#allocation2 + $0x28] sm:$0xff] }
  0x58   : > { %v584_v30 = vld [vmem:[#allocation2 + $0xa8] sm:$0xff] }
  0x59   : > { %1916 = vmatpush3.bf16.msra.mxu0 %v2035_v36  ;;  %1968 = vmatpush3.bf16.msra.mxu1 %v2035_v36 }
  0x5a   : > { %1917 = vmatprep.subr.bf16.mxu0 %v2036_v39  ;;  %1961 = vmatprep.subr.bf16.mxu1 %v2036_v39 }
  0x5d   : > { %1918 = vmatpush3.bf16.msra.mxu0 %v2036_v39  ;;  %1969 = vmatpush3.bf16.msra.mxu1 %v2036_v39 }
  0x5e   : > { %1919 = vmatprep.subr.bf16.mxu0 %v2037_v40  ;;  %1962 = vmatprep.subr.bf16.mxu1 %v2037_v40 }
  0x61   : > { %1920 = vmatpush3.bf16.msra.mxu0 %v2037_v40  ;;  %1970 = vmatpush3.bf16.msra.mxu1 %v2037_v40 }
  0x62   : > { %1921 = vmatprep.subr.bf16.mxu0 %v2038_v41  ;;  %1963 = vmatprep.subr.bf16.mxu1 %v2038_v41 }
  0x65   : > { %1922 = vmatpush3.bf16.msra.mxu0 %v2038_v41  ;;  %1971 = vmatpush3.bf16.msra.mxu1 %v2038_v41  ;;  %v573_v41 = vld [vmem:[#allocation2 + $0x50] sm:$0xff] }
  0x66   : > { %1923 = vmatprep.subr.bf16.mxu0 %v2039_v42  ;;  %1964 = vmatprep.subr.bf16.mxu1 %v2039_v42 }
  0x69   : > { %1924 = vmatpush3.bf16.msra.mxu0 %v2039_v42  ;;  %1972 = vmatpush3.bf16.msra.mxu1 %v2039_v42  ;;  %v589_v42 = vld [vmem:[#allocation2 + $0xd0] sm:$0xff] }
  0x6c   : > { %1926 = vmatmul.mubr.bf16.vlgmr.msra.gmra.mrb[0].mxu0 %v2042_v43  ;;  %1942 = vmatmul.mubr.bf16.vlgmr.msra.gmra.mrb[0].mxu1 %v2043_v44  ;;  %v571_v43 = vld [vmem:[#allocation2 + $0x40] sm:$0xff] }
  0x6d   : > { %1929 = vmatprep.mubr.bf16.mxu0 %v2044_v45  ;;  %1945 = vmatprep.mubr.bf16.mxu1 %v2045_v46  ;;  %v587_v44 = vld [vmem:[#allocation2 + $0xc0] sm:$0xff] }
  0x74   : > { %1930 = vmatmul.mubr.bf16.gmra.mrb[4].mxu0 %v2046_v47  ;;  %1946 = vmatmul.mubr.bf16.gmra.mrb[4].mxu1 %v2047_v48  ;;  %v574_v47 = vld [vmem:[#allocation2 + $0x58] sm:$0xff] }
  0x75   : > { %1933 = vmatprep.mubr.bf16.mxu0 %v2048_v49  ;;  %1949 = vmatprep.mubr.bf16.mxu1 %v2049_v50  ;;  %v590_v48 = vld [vmem:[#allocation2 + $0xd8] sm:$0xff] }
  0x7c   : > { %1934 = vmatmul.mubr.bf16.gmra.mrb[8].mxu0 %v2050_v51  ;;  %1950 = vmatmul.mubr.bf16.gmra.mrb[8].mxu1 %v2051_v52 }
  0x7d   : > { %1937 = vmatprep.mubr.bf16.mxu0 %v2052_v53  ;;  %1953 = vmatprep.mubr.bf16.mxu1 %v2053_v54  ;;  %v572_v53 = vld [vmem:[#allocation2 + $0x48] sm:$0xff] }
  0x7e   : > { %v588_v54 = vld [vmem:[#allocation2 + $0xc8] sm:$0xff] }
  0x84   : > { %1938 = vmatmul.mubr.bf16.gmra.mrb[12].mxu0 %v2054_v55  ;;  %1954 = vmatmul.mubr.bf16.gmra.mrb[12].mxu1 %v2055_v56 }
 0x13f   : > { %v1927_v61 = vpop.f32.mrb[0].mxu0  ;;  %v1943_v62 = vpop.f32.mrb[0].mxu1 }
 0x140   : > { %v950_v1 = vadd.f32 %v1927_v61, %v565_v57  ;;  %v966_v2 = vadd.f32 %v1943_v62, %v581_v58  ;;  %v821_v3 = vpop.f32.mrb[1].mxu0  ;;  %v885_v4 = vpop.f32.mrb[1].mxu1 }
 0x141   : > { %v948_v7 = vadd.f32 %v821_v3, %v563_v59  ;;  %v964_v8 = vadd.f32 %v885_v4, %v579_v60  ;;  %v1928_v9 = vpop.f32.mrb[2].mxu0  ;;  %v1944_v10 = vpop.f32.mrb[2].mxu1  ;;  %v575_v3 = vld [vmem:[#allocation2 + $0x60] sm:$0xff] }
 0x142   : > { %982 = vst [vmem:[#allocation2 + $0x10] sm:$0xff] %v950_v1  ;;  %998 = vst [vmem:[#allocation2 + $0x90] sm:$0xff] %v966_v2  ;;  %v951_v11 = vadd.f32 %v1928_v9, %v566_v63  ;;  %v967_v12 = vadd.f32 %v1944_v10, %v582_v0  ;;  %v824_v13 = vpop.f32.mrb[3].mxu0  ;;  %v888_v14 = vpop.f32.mrb[3].mxu1  ;;  %v577_v1 = vld [vmem:[#allocation2 + $0x70] sm:$0xff]  ;;  %v591_v4 = vld [vmem:[#allocation2 + $0xe0] sm:$0xff] }
 0x143   : > { %980 = vst [vmem:[#allocation2] sm:$0xff] %v948_v7  ;;  %996 = vst [vmem:[#allocation2 + $0x80] sm:$0xff] %v964_v8  ;;  %v949_v15 = vadd.f32 %v824_v13, %v564_v5  ;;  %v965_v16 = vadd.f32 %v888_v14, %v580_v6  ;;  %v593_v2 = vld [vmem:[#allocation2 + $0xf0] sm:$0xff]  ;;  %v578_v7 = vld [vmem:[#allocation2 + $0x78] sm:$0xff] }
 0x144   : > { %983 = vst [vmem:[#allocation2 + $0x18] sm:$0xff] %v951_v11  ;;  %999 = vst [vmem:[#allocation2 + $0x98] sm:$0xff] %v967_v12  ;;  %v594_v8 = vld [vmem:[#allocation2 + $0xf8] sm:$0xff]  ;;  %v576_v13 = vld [vmem:[#allocation2 + $0x68] sm:$0xff] }
 0x145   : > { %981 = vst [vmem:[#allocation2 + $0x8] sm:$0xff] %v949_v15  ;;  %997 = vst [vmem:[#allocation2 + $0x88] sm:$0xff] %v965_v16  ;;  %v592_v14 = vld [vmem:[#allocation2 + $0xe8] sm:$0xff] }
 0x147   : > { %v1931_v21 = vpop.f32.mrb[4].mxu0  ;;  %v1947_v22 = vpop.f32.mrb[4].mxu1 }
 0x148   : > { %v954_v25 = vadd.f32 %v1931_v21, %v569_v17  ;;  %v970_v26 = vadd.f32 %v1947_v22, %v585_v18  ;;  %v837_v27 = vpop.f32.mrb[5].mxu0  ;;  %v901_v28 = vpop.f32.mrb[5].mxu1 }
 0x149   : > { %v952_v31 = vadd.f32 %v837_v27, %v567_v19  ;;  %v968_v32 = vadd.f32 %v901_v28, %v583_v20  ;;  %v1932_v33 = vpop.f32.mrb[6].mxu0  ;;  %v1948_v34 = vpop.f32.mrb[6].mxu1 }
 0x14a   : > { %986 = vst [vmem:[#allocation2 + $0x30] sm:$0xff] %v954_v25  ;;  %1002 = vst [vmem:[#allocation2 + $0xb0] sm:$0xff] %v970_v26  ;;  %v955_v35 = vadd.f32 %v1932_v33, %v570_v23  ;;  %v971_v36 = vadd.f32 %v1948_v34, %v586_v24  ;;  %v840_v37 = vpop.f32.mrb[7].mxu0  ;;  %v904_v38 = vpop.f32.mrb[7].mxu1 }
 0x14b   : > { %984 = vst [vmem:[#allocation2 + $0x20] sm:$0xff] %v952_v31  ;;  %1000 = vst [vmem:[#allocation2 + $0xa0] sm:$0xff] %v968_v32  ;;  %v953_v39 = vadd.f32 %v840_v37, %v568_v29  ;;  %v969_v40 = vadd.f32 %v904_v38, %v584_v30 }
 0x14c   : > { %987 = vst [vmem:[#allocation2 + $0x38] sm:$0xff] %v955_v35  ;;  %1003 = vst [vmem:[#allocation2 + $0xb8] sm:$0xff] %v971_v36 }
 0x14d   : > { %985 = vst [vmem:[#allocation2 + $0x28] sm:$0xff] %v953_v39  ;;  %1001 = vst [vmem:[#allocation2 + $0xa8] sm:$0xff] %v969_v40 }
 0x14f   : > { %v1935_v45 = vpop.f32.mrb[8].mxu0  ;;  %v1951_v46 = vpop.f32.mrb[8].mxu1 }
 0x150   : > { %v958_v49 = vadd.f32 %v1935_v45, %v573_v41  ;;  %v974_v50 = vadd.f32 %v1951_v46, %v589_v42  ;;  %v853_v51 = vpop.f32.mrb[9].mxu0  ;;  %v917_v52 = vpop.f32.mrb[9].mxu1 }
 0x151   : > { %v956_v55 = vadd.f32 %v853_v51, %v571_v43  ;;  %v972_v56 = vadd.f32 %v917_v52, %v587_v44  ;;  %v1936_v57 = vpop.f32.mrb[10].mxu0  ;;  %v1952_v58 = vpop.f32.mrb[10].mxu1 }
 0x152   : > { %990 = vst [vmem:[#allocation2 + $0x50] sm:$0xff] %v958_v49  ;;  %1006 = vst [vmem:[#allocation2 + $0xd0] sm:$0xff] %v974_v50  ;;  %v959_v59 = vadd.f32 %v1936_v57, %v574_v47  ;;  %v975_v60 = vadd.f32 %v1952_v58, %v590_v48  ;;  %v856_v61 = vpop.f32.mrb[11].mxu0  ;;  %v920_v62 = vpop.f32.mrb[11].mxu1 }
 0x153   : > { %988 = vst [vmem:[#allocation2 + $0x40] sm:$0xff] %v956_v55  ;;  %1004 = vst [vmem:[#allocation2 + $0xc0] sm:$0xff] %v972_v56  ;;  %v957_v63 = vadd.f32 %v856_v61, %v572_v53  ;;  %v973_v0 = vadd.f32 %v920_v62, %v588_v54 }
 0x154   : > { %991 = vst [vmem:[#allocation2 + $0x58] sm:$0xff] %v959_v59  ;;  %1007 = vst [vmem:[#allocation2 + $0xd8] sm:$0xff] %v975_v60 }
 0x155   : > { %989 = vst [vmem:[#allocation2 + $0x48] sm:$0xff] %v957_v63  ;;  %1005 = vst [vmem:[#allocation2 + $0xc8] sm:$0xff] %v973_v0 }
 0x157   : > { %v1939_v5 = vpop.f32.mrb[12].mxu0  ;;  %v1955_v6 = vpop.f32.mrb[12].mxu1  ;;  %1015 = sbr.rel (%p1722_p13) target bundleno = 409 (0x199), region = 85 }
 0x158   : > { %v962_v9 = vadd.f32 %v1939_v5, %v577_v1  ;;  %v978_v10 = vadd.f32 %v1955_v6, %v593_v2  ;;  %v869_v11 = vpop.f32.mrb[13].mxu0  ;;  %v933_v12 = vpop.f32.mrb[13].mxu1 }
 0x159   : > { %v960_v15 = vadd.f32 %v869_v11, %v575_v3  ;;  %v976_v16 = vadd.f32 %v933_v12, %v591_v4  ;;  %v1940_v17 = vpop.f32.mrb[14].mxu0  ;;  %v1956_v18 = vpop.f32.mrb[14].mxu1 }
 0x15a   : > { %994 = vst [vmem:[#allocation2 + $0x70] sm:$0xff] %v962_v9  ;;  %1010 = vst [vmem:[#allocation2 + $0xf0] sm:$0xff] %v978_v10  ;;  %v963_v19 = vadd.f32 %v1940_v17, %v578_v7  ;;  %v979_v20 = vadd.f32 %v1956_v18, %v594_v8  ;;  %v872_v21 = vpop.f32.mrb[15].mxu0  ;;  %v936_v22 = vpop.f32.mrb[15].mxu1 }
 0x15b   : > { %992 = vst [vmem:[#allocation2 + $0x60] sm:$0xff] %v960_v15  ;;  %1008 = vst [vmem:[#allocation2 + $0xe0] sm:$0xff] %v976_v16  ;;  %v961_v23 = vadd.f32 %v872_v21, %v576_v13  ;;  %v977_v24 = vadd.f32 %v936_v22, %v592_v14 }
 0x15c   : > { %995 = vst [vmem:[#allocation2 + $0x78] sm:$0xff] %v963_v19  ;;  %1011 = vst [vmem:[#allocation2 + $0xf8] sm:$0xff] %v979_v20 }
 0x15d   : > { %993 = vst [vmem:[#allocation2 + $0x68] sm:$0xff] %v961_v23  ;;  %1009 = vst [vmem:[#allocation2 + $0xe8] sm:$0xff] %v977_v24 }
 0x15e   : > { %v1016_v25 = vld [vmem:[#allocation2] sm:$0xff]  ;;  %v1017_v26 = vld [vmem:[#allocation2 + $0x8] sm:$0xff]  ;;  %v1018_v32 = vld [vmem:[#allocation2 + $0x10] sm:$0xff]  ;;  %v2113_v52 = vmov 0.0  }
 0x15f   : > { %v2328_v27 = vld [vmem:[%s2753_s2] ss:$0 sm:$0xff]  ;;  %v1088_v31 = vld [vmem:[%s2285_s13 + $0x8] sm:$0xff]  ;;  %v1019_v33 = vld [vmem:[#allocation2 + $0x18] sm:$0xff] }
 0x160   : > { %v1055_v28 = vadd.f32 %v2328_v27, %v1016_v25  ;;  %v1056_v29 = vadd.f32 %v2328_v27, %v1017_v26  ;;  %v1087_v30 = vld [vmem:[%s2285_s13] sm:$0xff]  ;;  %v1057_v34 = vadd.f32 %v2328_v27, %v1018_v32  ;;  %v1089_v35 = vld [vmem:[%s2285_s13 + $0x10] sm:$0xff]  ;;  %v1090_v36 = vld [vmem:[%s2285_s13 + $0x18] sm:$0xff]  ;;  %v1058_v39 = vadd.f32 %v2328_v27, %v1019_v33 }
 0x161   : > { %v1020_v40 = vld [vmem:[#allocation2 + $0x20] sm:$0xff]  ;;  %v1021_v41 = vld [vmem:[#allocation2 + $0x28] sm:$0xff]  ;;  %v1022_v47 = vld [vmem:[#allocation2 + $0x30] sm:$0xff] }
 0x162   : > { %v2337_v37 = vadd.f32 %v1087_v30, %v1055_v28  ;;  %v2339_v38 = vadd.f32 %v1088_v31, %v1056_v29  ;;  %v1091_v42 = vld [vmem:[%s2285_s13 + $0x20] sm:$0xff]  ;;  %v2343_v43 = vadd.f32 %v1089_v35, %v1057_v34  ;;  %v1059_v44 = vadd.f32 %v2328_v27, %v1020_v40  ;;  %v1092_v46 = vld [vmem:[%s2285_s13 + $0x28] sm:$0xff]  ;;  %v1023_v49 = vld [vmem:[#allocation2 + $0x38] sm:$0xff] }
 0x163   : > { %v1060_v45 = vadd.f32 %v2328_v27, %v1021_v41  ;;  %v2350_v48 = vadd.f32 %v1090_v36, %v1058_v39  ;;  %v1061_v50 = vadd.f32 %v2328_v27, %v1022_v47  ;;  %v1093_v51 = vld [vmem:[%s2285_s13 + $0x30] sm:$0xff]  ;;  %v1024_v56 = vld [vmem:[#allocation2 + $0x40] sm:$0xff]  ;;  %v1094_v60 = vld [vmem:[%s2285_s13 + $0x38] sm:$0xff]  ;;  %v1062_v63 = vadd.f32 %v2328_v27, %v1023_v49 }
 0x164   : > { %vm1151_vm0 = vcmp.ge.f32.partialorder %v2337_v37, 1.0  ;;  %vm1152_vm1 = vcmp.ge.f32.partialorder %v2339_v38, 1.0  ;;  %vm1153_vm2 = vcmp.ge.f32.partialorder %v2343_v43, 1.0  ;;  %v2361_v55 = vadd.f32 %v1091_v42, %v1059_v44  ;;  %v1025_v61 = vld [vmem:[#allocation2 + $0x48] sm:$0xff]  ;;  %v1095_v1 = vld [vmem:[%s2285_s13 + $0x40] sm:$0xff]  ;;  %v1026_v2 = vld [vmem:[#allocation2 + $0x50] sm:$0xff] }
 0x165   : > { %v2355_v53 = vsel %vm1151_vm0, 1.0, %v2113_v52  ;;  %v2358_v54 = vsel %vm1152_vm1, 1.0, %v2113_v52  ;;  %vm1154_vm3 = vcmp.ge.f32.partialorder %v2350_v48, 1.0  ;;  %v2367_v58 = vsel %vm1153_vm2, 1.0, %v2113_v52  ;;  %v1096_v6 = vld [vmem:[%s2285_s13 + $0x48] sm:$0xff]  ;;  %v1027_v7 = vld [vmem:[#allocation2 + $0x58] sm:$0xff] }
 0x166   : > { %v1823_v57 = vpack.c.bf16 %v2358_v54, %v2355_v53  ;;  %v2369_v59 = vadd.f32 %v1092_v46, %v1060_v45  ;;  %v2373_v62 = vsel %vm1154_vm3, 1.0, %v2113_v52  ;;  %vm1155_vm4 = vcmp.ge.f32.partialorder %v2361_v55, 1.0  ;;  %v1028_v8 = vld [vmem:[#allocation2 + $0x60] sm:$0xff]  ;;  %v1097_v12 = vld [vmem:[%s2285_s13 + $0x50] sm:$0xff]  ;;  %v1029_v13 = vld [vmem:[#allocation2 + $0x68] sm:$0xff] }
 0x167   : > { %v2377_v0 = vadd.f32 %v1093_v51, %v1061_v50  ;;  %v1826_v3 = vpack.c.bf16 %v2373_v62, %v2367_v58  ;;  %v2385_v4 = vsel %vm1155_vm4, 1.0, %v2113_v52  ;;  %v1063_v5 = vadd.f32 %v2328_v27, %v1024_v56  ;;  %v1098_v18 = vld [vmem:[%s2285_s13 + $0x58] sm:$0xff]  ;;  %v1099_v22 = vld [vmem:[%s2285_s13 + $0x60] sm:$0xff]  ;;  %v1100_v23 = vld [vmem:[%s2285_s13 + $0x68] sm:$0xff] }
 0x168   : > { %1824 = vst [vmem:[%s2290_s21] sm:$0xff] %v1823_v57   ;;  %vm1156_vm5 = vcmp.ge.f32.partialorder %v2369_v59, 1.0  ;;  %v2392_v10 = vadd.f32 %v1094_v60, %v1062_v63  ;;  %v1064_v11 = vadd.f32 %v2328_v27, %v1025_v61  ;;  %v1065_v17 = vadd.f32 %v2328_v27, %v1026_v2  ;;  %v1030_v28 = vld [vmem:[#allocation2 + $0x70] sm:$0xff]  ;;  %v1031_v32 = vld [vmem:[#allocation2 + $0x78] sm:$0xff]  ;;  %v1032_v44 = vld [vmem:[#allocation2 + $0x80] sm:$0xff] }
 0x169   : > { %v2390_v9 = vsel %vm1156_vm5, 1.0, %v2113_v52  ;;  %vm1157_vm6 = vcmp.ge.f32.partialorder %v2377_v0, 1.0  ;;  %1870 = vst [vmem:[%s2290_s21 + $0x8] sm:$0xff] %v1826_v3   ;;  %v2403_v16 = vadd.f32 %v1095_v1, %v1063_v5  ;;  %v1066_v20 = vadd.f32 %v2328_v27, %v1027_v7  ;;  %v1101_v36 = vld [vmem:[%s2285_s13 + $0x70] sm:$0xff]  ;;  %v1102_v42 = vld [vmem:[%s2285_s13 + $0x78] sm:$0xff]  ;;  %v1033_v45 = vld [vmem:[#allocation2 + $0x88] sm:$0xff] }
 0x16a   : > { %v1829_v14 = vpack.c.bf16 %v2390_v9, %v2385_v4  ;;  %v2401_v15 = vsel %vm1157_vm6, 1.0, %v2113_v52  ;;  %vm1158_vm7 = vcmp.ge.f32.partialorder %v2392_v10, 1.0  ;;  %v2408_v19 = vadd.f32 %v1096_v6, %v1064_v11  ;;  %v1034_v49 = vld [vmem:[#allocation2 + $0x90] sm:$0xff]  ;;  %v1035_v50 = vld [vmem:[#allocation2 + $0x98] sm:$0xff]  ;;  %v1036_v51 = vld [vmem:[#allocation2 + $0xa0] sm:$0xff] }
 0x16b   : > { %v1067_v21 = vadd.f32 %v2328_v27, %v1028_v8  ;;  %v2416_v24 = vsel %vm1158_vm7, 1.0, %v2113_v52  ;;  %vm1159_vm8 = vcmp.ge.f32.partialorder %v2403_v16, 1.0  ;;  %v2419_v25 = vadd.f32 %v1097_v12, %v1065_v17  ;;  %v1103_v63 = vld [vmem:[%s2285_s13 + $0x80] sm:$0xff]  ;;  %v1104_v1 = vld [vmem:[%s2285_s13 + $0x88] sm:$0xff]  ;;  %v1105_v7 = vld [vmem:[%s2285_s13 + $0x90] sm:$0xff] }
 0x16c   : > { %1871 = vst [vmem:[%s2290_s21 + $0x10] sm:$0xff] %v1829_v14   ;;  %v1068_v26 = vadd.f32 %v2328_v27, %v1029_v13  ;;  %v1832_v29 = vpack.c.bf16 %v2416_v24, %v2401_v15  ;;  %vm1160_vm9 = vcmp.ge.f32.partialorder %v2408_v19, 1.0  ;;  %v2426_v30 = vsel %vm1159_vm8, 1.0, %v2113_v52  ;;  %v1106_v8 = vld [vmem:[%s2285_s13 + $0x98] sm:$0xff]  ;;  %v1037_v11 = vld [vmem:[#allocation2 + $0xa8] sm:$0xff]  ;;  %v1107_v17 = vld [vmem:[%s2285_s13 + $0xa0] sm:$0xff] }
 0x16d   : > { %v2428_v31 = vadd.f32 %v1098_v18, %v1066_v20  ;;  %v2431_v33 = vsel %vm1160_vm9, 1.0, %v2113_v52  ;;  %vm1161_vm10 = vcmp.ge.f32.partialorder %v2419_v25, 1.0  ;;  %v2434_v34 = vadd.f32 %v1099_v22, %v1067_v21 }
 0x16e   : > { %v2436_v35 = vadd.f32 %v1100_v23, %v1068_v26  ;;  %1872 = vst [vmem:[%s2290_s21 + $0x18] sm:$0xff] %v1832_v29   ;;  %v1835_v39 = vpack.c.bf16 %v2431_v33, %v2426_v30  ;;  %v2444_v40 = vsel %vm1161_vm10, 1.0, %v2113_v52  ;;  %v1069_v41 = vadd.f32 %v2328_v27, %v1030_v28  ;;  %v1108_v29 = vld [vmem:[%s2285_s13 + $0xa8] sm:$0xff] }
 0x16f   : > { %vm1162_vm11 = vcmp.ge.f32.partialorder %v2428_v31, 1.0  ;;  %vm1163_vm12 = vcmp.ge.f32.partialorder %v2434_v34, 1.0  ;;  %v1070_v47 = vadd.f32 %v2328_v27, %v1031_v32  ;;  %v1071_v5 = vadd.f32 %v2328_v27, %v1032_v44 }
 0x170   : > { %v2449_v46 = vsel %vm1162_vm11, 1.0, %v2113_v52  ;;  %vm1164_vm13 = vcmp.ge.f32.partialorder %v2436_v35, 1.0  ;;  %1873 = vst [vmem:[%s2290_s21 + $0x20] sm:$0xff] %v1835_v39   ;;  %v2458_v57 = vsel %vm1163_vm12, 1.0, %v2113_v52  ;;  %v2463_v61 = vadd.f32 %v1101_v36, %v1069_v41  ;;  %v1038_v39 = vld [vmem:[#allocation2 + $0xb0] sm:$0xff]  ;;  %v1039_v41 = vld [vmem:[#allocation2 + $0xb8] sm:$0xff] }
 0x171   : > { %v1838_v56 = vpack.c.bf16 %v2449_v46, %v2444_v40  ;;  %v2461_v60 = vsel %vm1164_vm13, 1.0, %v2113_v52  ;;  %v2469_v3 = vadd.f32 %v1102_v42, %v1070_v47  ;;  %v1072_v6 = vadd.f32 %v2328_v27, %v1033_v45  ;;  %v1040_v45 = vld [vmem:[#allocation2 + $0xc0] sm:$0xff]  ;;  %v1041_v47 = vld [vmem:[#allocation2 + $0xc8] sm:$0xff] }
 0x172   : > { %v1841_v2 = vpack.c.bf16 %v2461_v60, %v2458_v57  ;;  %vm1165_vm14 = vcmp.ge.f32.partialorder %v2463_v61, 1.0  ;;  %v1073_v12 = vadd.f32 %v2328_v27, %v1034_v49  ;;  %v1074_v13 = vadd.f32 %v2328_v27, %v1035_v50 }
 0x173   : > { %1874 = vst [vmem:[%s2290_s21 + $0x28] sm:$0xff] %v1838_v56   ;;  %v1075_v14 = vadd.f32 %v2328_v27, %v1036_v51  ;;  %vm1166_vm15 = vcmp.ge.f32.partialorder %v2469_v3, 1.0  ;;  %v2484_v18 = vsel %vm1165_vm14, 1.0, %v2113_v52  ;;  %v2486_v20 = vadd.f32 %v1103_v63, %v1071_v5  ;;  %v1109_v63 = vld [vmem:[%s2285_s13 + $0xb0] sm:$0xff] }
 0x174   : > { %1875 = vst [vmem:[%s2290_s21 + $0x30] sm:$0xff] %v1841_v2   ;;  %v2488_v21 = vadd.f32 %v1104_v1, %v1072_v6  ;;  %v2491_v22 = vsel %vm1166_vm15, 1.0, %v2113_v52  ;;  %v2493_v23 = vadd.f32 %v1105_v7, %v1073_v12  ;;  %v2495_v26 = vadd.f32 %v1106_v8, %v1074_v13  ;;  %v1110_v1 = vld [vmem:[%s2285_s13 + $0xb8] sm:$0xff]  ;;  %v1042_v2 = vld [vmem:[#allocation2 + $0xd0] sm:$0xff]  ;;  %v1111_v8 = vld [vmem:[%s2285_s13 + $0xc0] sm:$0xff] }
 0x175   : > { %v1076_v28 = vadd.f32 %v2328_v27, %v1037_v11  ;;  %v1844_v32 = vpack.c.bf16 %v2491_v22, %v2484_v18  ;;  %vm1167_vm0 = vcmp.ge.f32.partialorder %v2486_v20, 1.0  ;;  %v2503_v36 = vadd.f32 %v1107_v17, %v1075_v14  ;;  %v1112_v11 = vld [vmem:[%s2285_s13 + $0xc8] sm:$0xff]  ;;  %v1043_v12 = vld [vmem:[#allocation2 + $0xd8] sm:$0xff] }
 0x176   : > { %vm1168_vm1 = vcmp.ge.f32.partialorder %v2488_v21, 1.0  ;;  %v2506_v42 = vsel %vm1167_vm0, 1.0, %v2113_v52  ;;  %vm1169_vm2 = vcmp.ge.f32.partialorder %v2493_v23, 1.0  ;;  %vm1170_vm3 = vcmp.ge.f32.partialorder %v2495_v26, 1.0 }
 0x177   : > { %2765 = vst [vmem:[#allocation4_spill] sm:$0xff] %v2503_v36  ;;  %v2509_v44 = vsel %vm1168_vm1, 1.0, %v2113_v52  ;;  %1876 = vst [vmem:[%s2290_s21 + $0x38] sm:$0xff] %v1844_v32   ;;  %v2517_v50 = vsel %vm1169_vm2, 1.0, %v2113_v52  ;;  %v2520_v51 = vsel %vm1170_vm3, 1.0, %v2113_v52  ;;  %v2522_v56 = vadd.f32 %v1108_v29, %v1076_v28  ;;  %v1113_v28 = vld [vmem:[%s2285_s13 + $0xd0] sm:$0xff] }
 0x178   : > { %v1847_v49 = vpack.c.bf16 %v2509_v44, %v2506_v42  ;;  %v1850_v5 = vpack.c.bf16 %v2520_v51, %v2517_v50  ;;  %vm1171_vm4 = vcmp.ge.f32.partialorder %v2503_v36, 1.0  ;;  %v1077_v6 = vadd.f32 %v2328_v27, %v1038_v39  ;;  %v1044_v29 = vld [vmem:[#allocation2 + $0xe0] sm:$0xff] }
 0x179   : > { %2766 = vst [vmem:[#allocation5_spill] sm:$0xff] %v2522_v56  ;;  %v1078_v7 = vadd.f32 %v2328_v27, %v1039_v41  ;;  %vm1172_vm5 = vcmp.ge.f32.partialorder %v2522_v56, 1.0  ;;  %v2536_v13 = vsel %vm1171_vm4, 1.0, %v2113_v52  ;;  %v1079_v14 = vadd.f32 %v2328_v27, %v1040_v45 }
 0x17a   : > { %1877 = vst [vmem:[%s2290_s21 + $0x40] sm:$0xff] %v1847_v49   ;;  %v1080_v17 = vadd.f32 %v2328_v27, %v1041_v47  ;;  %1878 = vst [vmem:[%s2290_s21 + $0x48] sm:$0xff] %v1850_v5   ;;  %v2543_v32 = vsel %vm1172_vm5, 1.0, %v2113_v52  ;;  %v2545_v39 = vadd.f32 %v1109_v63, %v1077_v6  ;;  %v1081_v49 = vadd.f32 %v2328_v27, %v1042_v2  ;;  %v1114_v5 = vld [vmem:[%s2285_s13 + $0xd8] sm:$0xff]  ;;  %v1115_v6 = vld [vmem:[%s2285_s13 + $0xe0] sm:$0xff] }
 0x17b   : > { %v2547_v41 = vadd.f32 %v1110_v1, %v1078_v7  ;;  %v1853_v56 = vpack.c.bf16 %v2543_v32, %v2536_v13  ;;  %v2552_v45 = vadd.f32 %v1111_v8, %v1079_v14  ;;  %v1082_v36 = vadd.f32 %v2328_v27, %v1043_v12  ;;  %v1045_v1 = vld [vmem:[#allocation2 + $0xe8] sm:$0xff]  ;;  %v1047_v12 = vld [vmem:[#allocation2 + $0xf8] sm:$0xff] }
 0x17c   : > { %2767 = vst [vmem:[#allocation6_spill] sm:$0xff] %v2545_v39  ;;  %v2554_v47 = vadd.f32 %v1112_v11, %v1080_v17  ;;  %vm1173_vm6 = vcmp.ge.f32.partialorder %v2545_v39, 1.0  ;;  %v2560_v63 = vadd.f32 %v1113_v28, %v1081_v49  ;;  %v1083_v2 = vadd.f32 %v2328_v27, %v1044_v29  ;;  %v1046_v11 = vld [vmem:[#allocation2 + $0xf0] sm:$0xff]  ;;  %v1116_v29 = vld [vmem:[%s2285_s13 + $0xe8] sm:$0xff]  ;;  %v1118_v39 = vld [vmem:[%s2285_s13 + $0xf8] sm:$0xff] }
 0x17d   : > { %2768 = vst [vmem:[#allocation7_spill] sm:$0xff] %v2547_v41  ;;  %2769 = vst [vmem:[#allocation8_spill] sm:$0xff] %v2552_v45  ;;  %vm1174_vm7 = vcmp.ge.f32.partialorder %v2547_v41, 1.0  ;;  %v2566_v7 = vsel %vm1173_vm6, 1.0, %v2113_v52  ;;  %vm1175_vm8 = vcmp.ge.f32.partialorder %v2552_v45, 1.0  ;;  %v2581_v28 = vadd.f32 %v1114_v5, %v1082_v36  ;;  %v1117_v41 = vld [vmem:[%s2285_s13 + $0xf0] sm:$0xff] }
 0x17e   : > { %2770 = vst [vmem:[#allocation9_spill] sm:$0xff] %v2554_v47  ;;  %2771 = vst [vmem:[#allocation10_spill] sm:$0xff] %v2560_v63  ;;  %v2569_v8 = vsel %vm1174_vm7, 1.0, %v2113_v52  ;;  %vm1176_vm9 = vcmp.ge.f32.partialorder %v2554_v47, 1.0  ;;  %vm1177_vm10 = vcmp.ge.f32.partialorder %v2560_v63, 1.0  ;;  %v1084_v47 = vadd.f32 %v2328_v27, %v1045_v1 }
 0x17f   : > { %1879 = vst [vmem:[%s2290_s21 + $0x50] sm:$0xff] %v1853_v56   ;;  %2772 = vst [vmem:[#allocation11_spill] sm:$0xff] %v2569_v8  ;;  %v1856_v14 = vpack.c.bf16 %v2569_v8, %v2566_v7  ;;  %v2576_v56 = vsel %vm1175_vm8, 1.0, %v2113_v52  ;;  %v2579_v17 = vsel %vm1176_vm9, 1.0, %v2113_v52  ;;  %v2588_v45 = vadd.f32 %v1115_v6, %v1083_v2 }
 0x180   : > { %v1859_v49 = vpack.c.bf16 %v2579_v17, %v2576_v56  ;;  %vm1178_vm11 = vcmp.ge.f32.partialorder %v2581_v28, 1.0  ;;  %v2595_v8 = vsel %vm1177_vm10, 1.0, %v2113_v52  ;;  %v1085_v36 = vadd.f32 %v2328_v27, %v1046_v11 }
 0x181   : > { %1880 = vst [vmem:[%s2290_s21 + $0x58] sm:$0xff] %v1856_v14   ;;  %v1086_v5 = vadd.f32 %v2328_v27, %v1047_v12  ;;  %v2601_v63 = vsel %vm1178_vm11, 1.0, %v2113_v52  ;;  %v2603_v1 = vadd.f32 %v1116_v29, %v1084_v47  ;;  %vm1179_vm12 = vcmp.ge.f32.partialorder %v2588_v45, 1.0 }
 0x182   : > { %1881 = vst [vmem:[%s2290_s21 + $0x60] sm:$0xff] %v1859_v49   ;;  %v1407_v2 = vsub.f32 1.0, %v2355_v53  ;;  %v1862_v6 = vpack.c.bf16 %v2601_v63, %v2595_v8  ;;  %v2610_v14 = vsel %vm1179_vm12, 1.0, %v2113_v52  ;;  %v2612_v11 = vadd.f32 %v1117_v41, %v1085_v36 }
 0x183   : > { %v2614_v27 = vadd.f32 %v1118_v39, %v1086_v5  ;;  %vm1180_vm13 = vcmp.ge.f32.partialorder %v2603_v1, 1.0  ;;  %v1408_v12 = vsub.f32 1.0, %v2358_v54  ;;  %v1409_v53 = vsub.f32 1.0, %v2367_v58 }
 0x184   : > { %v1439_v47 = vmul.f32 %v1407_v2, %v2337_v37  ;;  %1882 = vst [vmem:[%s2290_s21 + $0x68] sm:$0xff] %v1862_v6   ;;  %v2622_v29 = vsel %vm1180_vm13, 1.0, %v2113_v52  ;;  %vm1181_vm14 = vcmp.ge.f32.partialorder %v2612_v11, 1.0  ;;  %v1410_v39 = vsub.f32 1.0, %v2373_v62 }
 0x185   : > { %vm1182_vm15 = vcmp.ge.f32.partialorder %v2614_v27, 1.0  ;;  %v1865_v37 = vpack.c.bf16 %v2622_v29, %v2610_v14  ;;  %v2630_v54 = vsel %vm1181_vm14, 1.0, %v2113_v52  ;;  %v1440_v41 = vmul.f32 %v1408_v12, %v2339_v38 }
 0x186   : > { %v2633_v58 = vsel %vm1182_vm15, 1.0, %v2113_v52  ;;  %1471 = vst [vmem:[%s2295_s17] sm:$0xff] %v1439_v47  ;;  %v1441_v62 = vmul.f32 %v1409_v53, %v2343_v43  ;;  %v1442_v36 = vmul.f32 %v1410_v39, %v2350_v48  ;;  %v1411_v5 = vsub.f32 1.0, %v2385_v4  ;;  %v2776_v39 = vld [vmem:[#allocation6_spill] sm:$0xff] }
 0x187   : > { %v1868_v49 = vpack.c.bf16 %v2633_v58, %v2630_v54  ;;  %1883 = vst [vmem:[%s2290_s21 + $0x70] sm:$0xff] %v1865_v37   ;;  %1472 = vst [vmem:[%s2295_s17 + $0x8] sm:$0xff] %v1440_v41  ;;  %v1412_v2 = vsub.f32 1.0, %v2390_v9  ;;  %v1413_v52 = vsub.f32 1.0, %v2401_v15  ;;  %v1414_v6 = vsub.f32 1.0, %v2416_v24  ;;  %v2777_v37 = vld [vmem:[#allocation7_spill] sm:$0xff] }
 0x188   : > { %v1415_v38 = vsub.f32 1.0, %v2426_v30  ;;  %1473 = vst [vmem:[%s2295_s17 + $0x10] sm:$0xff] %v1441_v62  ;;  %1474 = vst [vmem:[%s2295_s17 + $0x18] sm:$0xff] %v1442_v36  ;;  %v1443_v43 = vmul.f32 %v1411_v5, %v2361_v55  ;;  %v1416_v48 = vsub.f32 1.0, %v2431_v33  ;;  %v1417_v4 = vsub.f32 1.0, %v2444_v40  ;;  %v2779_v36 = vld [vmem:[#allocation9_spill] sm:$0xff] }
 0x189   : > { %1884 = vst [vmem:[%s2290_s21 + $0x78] sm:$0xff] %v1868_v49   ;;  %v1418_v9 = vsub.f32 1.0, %v2449_v46  ;;  %v1444_v15 = vmul.f32 %v1412_v2, %v2369_v59  ;;  %v1445_v24 = vmul.f32 %v1413_v52, %v2377_v0  ;;  %v1446_v30 = vmul.f32 %v1414_v6, %v2392_v10  ;;  %v2778_v49 = vld [vmem:[#allocation8_spill] sm:$0xff]  ;;  %v2780_v2 = vld [vmem:[#allocation10_spill] sm:$0xff] }
 0x18a   : > { %v1447_v47 = vmul.f32 %v1415_v38, %v2403_v16  ;;  %1475 = vst [vmem:[%s2295_s17 + $0x20] sm:$0xff] %v1443_v43  ;;  %v1448_v55 = vmul.f32 %v1416_v48, %v2408_v19  ;;  %v1449_v33 = vmul.f32 %v1417_v4, %v2419_v25  ;;  %v1419_v46 = vsub.f32 1.0, %v2458_v57 }
 0x18b   : > { %v1450_v40 = vmul.f32 %v1418_v9, %v2428_v31  ;;  %1476 = vst [vmem:[%s2295_s17 + $0x28] sm:$0xff] %v1444_v15  ;;  %1477 = vst [vmem:[%s2295_s17 + $0x30] sm:$0xff] %v1445_v24  ;;  %v1420_v59 = vsub.f32 1.0, %v2461_v60  ;;  %v1421_v0 = vsub.f32 1.0, %v2484_v18  ;;  %v1422_v10 = vsub.f32 1.0, %v2491_v22 }
 0x18c   : > { %1478 = vst [vmem:[%s2295_s17 + $0x38] sm:$0xff] %v1446_v30  ;;  %1479 = vst [vmem:[%s2295_s17 + $0x40] sm:$0xff] %v1447_v47  ;;  %v1423_v16 = vsub.f32 1.0, %v2506_v42  ;;  %v1451_v19 = vmul.f32 %v1419_v46, %v2434_v34  ;;  %v1424_v25 = vsub.f32 1.0, %v2509_v44  ;;  %v1425_v31 = vsub.f32 1.0, %v2517_v50 }
 0x18d   : > { %1480 = vst [vmem:[%s2295_s17 + $0x48] sm:$0xff] %v1448_v55  ;;  %1481 = vst [vmem:[%s2295_s17 + $0x50] sm:$0xff] %v1449_v33  ;;  %v1426_v57 = vsub.f32 1.0, %v2520_v51  ;;  %v1452_v60 = vmul.f32 %v1420_v59, %v2436_v35  ;;  %v1453_v18 = vmul.f32 %v1421_v0, %v2463_v61  ;;  %v1454_v22 = vmul.f32 %v1422_v10, %v2469_v3  ;;  %v2773_v3 = vld [vmem:[#allocation11_spill] sm:$0xff] }
 0x18e   : > { %1482 = vst [vmem:[%s2295_s17 + $0x58] sm:$0xff] %v1450_v40  ;;  %v1455_v42 = vmul.f32 %v1423_v16, %v2486_v20  ;;  %1483 = vst [vmem:[%s2295_s17 + $0x60] sm:$0xff] %v1451_v19  ;;  %v1456_v34 = vmul.f32 %v1424_v25, %v2488_v21  ;;  %v1457_v44 = vmul.f32 %v1425_v31, %v2493_v23  ;;  %v1427_v51 = vsub.f32 1.0, %v2536_v13  ;;  %v2774_v21 = vld [vmem:[#allocation4_spill] sm:$0xff] }
 0x18f   : > { %v1458_v50 = vmul.f32 %v1426_v57, %v2495_v26  ;;  %1484 = vst [vmem:[%s2295_s17 + $0x68] sm:$0xff] %v1452_v60  ;;  %1485 = vst [vmem:[%s2295_s17 + $0x70] sm:$0xff] %v1453_v18  ;;  %v1428_v35 = vsub.f32 1.0, %v2543_v32  ;;  %v1429_v61 = vsub.f32 1.0, %v2566_v7  ;;  %v1430_v20 = vsub.f32 1.0, %v2773_v3  ;;  %v2775_v7 = vld [vmem:[#allocation5_spill] sm:$0xff] }
 0x190   : > { %1486 = vst [vmem:[%s2295_s17 + $0x78] sm:$0xff] %v1454_v22  ;;  %1487 = vst [vmem:[%s2295_s17 + $0x80] sm:$0xff] %v1455_v42  ;;  %v1431_v12 = vsub.f32 1.0, %v2576_v56  ;;  %v1459_v23 = vmul.f32 %v1427_v51, %v2774_v21  ;;  %v1432_v26 = vsub.f32 1.0, %v2579_v17  ;;  %v1433_v13 = vsub.f32 1.0, %v2595_v8 }
 0x191   : > { %1488 = vst [vmem:[%s2295_s17 + $0x88] sm:$0xff] %v1456_v34  ;;  %1489 = vst [vmem:[%s2295_s17 + $0x90] sm:$0xff] %v1457_v44  ;;  %v1434_v32 = vsub.f32 1.0, %v2601_v63  ;;  %v1460_v53 = vmul.f32 %v1428_v35, %v2775_v7  ;;  %v1461_v56 = vmul.f32 %v1429_v61, %v2776_v39  ;;  %v1462_v41 = vmul.f32 %v1430_v20, %v2777_v37 }
 0x192   : > { %1490 = vst [vmem:[%s2295_s17 + $0x98] sm:$0xff] %v1458_v50  ;;  %v1463_v62 = vmul.f32 %v1431_v12, %v2778_v49  ;;  %1491 = vst [vmem:[%s2295_s17 + $0xa0] sm:$0xff] %v1459_v23  ;;  %v1464_v5 = vmul.f32 %v1432_v26, %v2779_v36  ;;  %v1465_v17 = vmul.f32 %v1433_v13, %v2780_v2  ;;  %v1435_v63 = vsub.f32 1.0, %v2610_v14 }
 0x193   : > { %v1466_v8 = vmul.f32 %v1434_v32, %v2581_v28  ;;  %1492 = vst [vmem:[%s2295_s17 + $0xa8] sm:$0xff] %v1460_v53  ;;  %1493 = vst [vmem:[%s2295_s17 + $0xb0] sm:$0xff] %v1461_v56  ;;  %v1436_v52 = vsub.f32 1.0, %v2622_v29  ;;  %v1437_v6 = vsub.f32 1.0, %v2630_v54  ;;  %v1438_v38 = vsub.f32 1.0, %v2633_v58 }
 0x194   : > { %1494 = vst [vmem:[%s2295_s17 + $0xb8] sm:$0xff] %v1462_v41  ;;  %1495 = vst [vmem:[%s2295_s17 + $0xc0] sm:$0xff] %v1463_v62  ;;  %v1467_v28 = vmul.f32 %v1435_v63, %v2588_v45 }
 0x195   : > { %1496 = vst [vmem:[%s2295_s17 + $0xc8] sm:$0xff] %v1464_v5  ;;  %1497 = vst [vmem:[%s2295_s17 + $0xd0] sm:$0xff] %v1465_v17  ;;  %v1468_v14 = vmul.f32 %v1436_v52, %v2603_v1  ;;  %v1469_v43 = vmul.f32 %v1437_v6, %v2612_v11  ;;  %v1470_v48 = vmul.f32 %v1438_v38, %v2614_v27 }
 0x196   : > { %1498 = vst [vmem:[%s2295_s17 + $0xd8] sm:$0xff] %v1466_v8  ;;  %1499 = vst [vmem:[%s2295_s17 + $0xe0] sm:$0xff] %v1467_v28 }
 0x197   : > { %1500 = vst [vmem:[%s2295_s17 + $0xe8] sm:$0xff] %v1468_v14  ;;  %1501 = vst [vmem:[%s2295_s17 + $0xf0] sm:$0xff] %v1469_v43 }
 0x198   : > { %1502 = vst [vmem:[%s2295_s17 + $0xf8] sm:$0xff] %v1470_v48 }
 0x199 PF: > { %s16_s24 = sadd.s32 1, %s2110_s24   ;;  %s2781_s18 = smov %s2090_s19 }
 0x19a   : > { %p13_p0 = scmp.ge.s32.totalorder %s16_s24, 12   ;;  %s2782_s19 = smov %s2195_s6 }
 0x19b   : > { %s2783_s20 = smov %s2102_s22  ;;  %s2784_s21 = smov %s2106_s23 }
 0x19c   : > { %s2785_s22 = smov %s2788_s25  ;;  %s2786_s23 = smov %s2792_s26 }
 0x19d   :  { %15 = sbr.rel (!%p13_p0) target bundleno = 4 (0x4), region = 141 }

// kernel: closed_call.83
= control target key start
LH: loop header
LB: loop body
LE: loop exit
PB: predicated region body
PF: predicated region fallthrough
CT: control target
= control target key end

     0   :  { %s1180_s12 = smov 0   ;;  %s1182_s13 = smov 0   ;;  %s1330_s0 = inlined_call_operand.vmem [shape: bf16[512,128], index: 0, kind: input, shape index: {}]   ;;  %s1331_s1 = inlined_call_operand.vmem [shape: bf16[128,128], index: 1, kind: input, shape index: {}]   ;;  %s1332_s2 = inlined_call_operand.vmem [shape: f32[1,128], index: 2, kind: input, shape index: {}]   ;;  %s1333_s3 = inlined_call_operand.vmem [shape: f32[512,128], index: 3, kind: output, shape index: {}]  }
   0x1   :  { %s1184_s14 = smov 0  }
   0x2 LB: > { %s32_s15 = sadd.s32 1, %s1154_s13  ;;  %p968_p0 = scmp.ge.s32.totalorder %s1158_s14, 1  ;;  %s1158_s14 = sphi %s1184_s14, %s13_s14   ;;  %s1154_s13 = sphi %s1182_s13, %s1335_s13   ;;  %s1150_s12 = sphi %s1180_s12, %s1334_s12  }
   0x3   : > { %p34_p1 = scmp.ge.s32.totalorder %s32_s15, 2  ;;  %p188_p2 = scmp.lt.s32.totalorder %s1158_s14, 3 }
   0x5   : > { %s1337_s15 = smov (%p34_p1, %s32_s15), 0  ;;  %p189_p3 = pnand %p968_p0, %p188_p2 }
   0x6   : > { %v1112_v0 = vld [vmem:[%s1331_s1] sm:$0xff] (!%p189_p3)   ;;  %s969_s18 = sshll.u32 (!%p189_p3), %s1150_s12, 5  ;;  %v1113_v1 = vld [vmem:[%s1331_s1 + $0x8] sm:$0xff] (!%p189_p3)   ;;  %v1114_v2 = vld [vmem:[%s1331_s1 + $0x10] sm:$0xff] (!%p189_p3)  }
   0x7   : > { %192 = sbr.rel (%p189_p3) target bundleno = 281 (0x119), region = 32  ;;  %p230_p4 = scmp.lt.s32.totalorder (!%p189_p3), %s969_s18, 63  ;;  %1024 = vmatprep.subr.bf16.mxu0 (!%p189_p3), %v1112_v0  ;;  %1072 = vmatprep.subr.bf16.mxu1 (!%p189_p3), %v1112_v0  ;;  %v1115_v3 = vld [vmem:[%s1331_s1 + $0x18] sm:$0xff] (!%p189_p3)   ;;  %v1116_v6 = vld [vmem:[%s1331_s1 + $0x20] sm:$0xff] (!%p189_p3)   ;;  %v1117_v7 = vld [vmem:[%s1331_s1 + $0x28] sm:$0xff] (!%p189_p3)  }
   0x8   : > { %1025 = vmatpush3.bf16.msra.mxu0 (!%p189_p3), %v1112_v0  ;;  %1080 = vmatpush3.bf16.msra.mxu1 (!%p189_p3), %v1112_v0  ;;  %v1118_v8 = vld [vmem:[%s1331_s1 + $0x30] sm:$0xff] (!%p189_p3)   ;;  %v1119_v9 = vld [vmem:[%s1331_s1 + $0x38] sm:$0xff] (!%p189_p3)   ;;  %v1250_v24 = vld [vmem:[%s1332_s2] ss:$0 sm:$0xff] (!%p189_p3) }
   0x9   : > { %1026 = vmatprep.subr.bf16.mxu0 (!%p189_p3), %v1113_v1  ;;  %1073 = vmatprep.subr.bf16.mxu1 (!%p189_p3), %v1113_v1 }
   0xc   : > { %1027 = vmatpush3.bf16.msra.mxu0 (!%p189_p3), %v1113_v1  ;;  %1081 = vmatpush3.bf16.msra.mxu1 (!%p189_p3), %v1113_v1 }
   0xd   : > { %1028 = vmatprep.subr.bf16.mxu0 (!%p189_p3), %v1114_v2  ;;  %1074 = vmatprep.subr.bf16.mxu1 (!%p189_p3), %v1114_v2 }
   0xe   : > { %s1339_s18 = smov (!%p230_p4, %s969_s18), 63 }
   0xf   : > { %s970_s23 = sshll.u32 %s1339_s18, 2  ;;  %s972_s10 = sshll.u32 %s1339_s18, 3 }
  0x10   : > { %s1213_s26 = scalar_lea.vmem %s1330_s0, %s970_s23  ;;  %1029 = vmatpush3.bf16.msra.mxu0 %v1114_v2  ;;  %1082 = vmatpush3.bf16.msra.mxu1 %v1114_v2  ;;  %s1255_s19 = scalar_lea.vmem %s1333_s3, %s972_s10 }
  0x11   : > { %v1120_v4 = vld [vmem:[%s1213_s26] sm:$0xff]   ;;  %1030 = vmatprep.subr.bf16.mxu0 %v1115_v3  ;;  %1075 = vmatprep.subr.bf16.mxu1 %v1115_v3  ;;  %v1122_v10 = vld [vmem:[%s1213_s26 + $0x8] sm:$0xff]   ;;  %v1124_v12 = vld [vmem:[%s1213_s26 + $0x10] sm:$0xff]  }
  0x12   : > { %v1121_v5 = vld [vmem:[%s1213_s26 + $0x40] sm:$0xff]   ;;  %1040 = vmatprep.mubr.bf16.mxu0 %v1120_v4  ;;  %v1123_v11 = vld [vmem:[%s1213_s26 + $0x48] sm:$0xff]   ;;  %v1125_v13 = vld [vmem:[%s1213_s26 + $0x50] sm:$0xff]  }
  0x13   : > { %1056 = vmatprep.mubr.bf16.mxu1 %v1121_v5  ;;  %v1126_v14 = vld [vmem:[%s1213_s26 + $0x18] sm:$0xff]   ;;  %v1128_v16 = vld [vmem:[%s1213_s26 + $0x20] sm:$0xff]   ;;  %v1130_v18 = vld [vmem:[%s1213_s26 + $0x28] sm:$0xff]  }
  0x14   : > { %1031 = vmatpush3.bf16.msra.mxu0 %v1115_v3  ;;  %1083 = vmatpush3.bf16.msra.mxu1 %v1115_v3  ;;  %v1127_v15 = vld [vmem:[%s1213_s26 + $0x58] sm:$0xff]   ;;  %v1129_v17 = vld [vmem:[%s1213_s26 + $0x60] sm:$0xff]   ;;  %v1131_v19 = vld [vmem:[%s1213_s26 + $0x68] sm:$0xff]  }
  0x15   : > { %1032 = vmatprep.subr.bf16.mxu0 %v1116_v6  ;;  %1076 = vmatprep.subr.bf16.mxu1 %v1116_v6  ;;  %v1132_v20 = vld [vmem:[%s1213_s26 + $0x30] sm:$0xff]   ;;  %v1134_v22 = vld [vmem:[%s1213_s26 + $0x38] sm:$0xff]  }
  0x16   : > { %v1133_v21 = vld [vmem:[%s1213_s26 + $0x70] sm:$0xff]   ;;  %v1135_v23 = vld [vmem:[%s1213_s26 + $0x78] sm:$0xff]  }
  0x18   : > { %1033 = vmatpush3.bf16.msra.mxu0 %v1116_v6  ;;  %1084 = vmatpush3.bf16.msra.mxu1 %v1116_v6 }
  0x19   : > { %1034 = vmatprep.subr.bf16.mxu0 %v1117_v7  ;;  %1077 = vmatprep.subr.bf16.mxu1 %v1117_v7 }
  0x1c   : > { %1035 = vmatpush3.bf16.msra.mxu0 %v1117_v7  ;;  %1085 = vmatpush3.bf16.msra.mxu1 %v1117_v7 }
  0x1d   : > { %1036 = vmatprep.subr.bf16.mxu0 %v1118_v8  ;;  %1078 = vmatprep.subr.bf16.mxu1 %v1118_v8 }
  0x20   : > { %1037 = vmatpush3.bf16.msra.mxu0 %v1118_v8  ;;  %1086 = vmatpush3.bf16.msra.mxu1 %v1118_v8 }
  0x21   : > { %1038 = vmatprep.subr.bf16.mxu0 %v1119_v9  ;;  %1079 = vmatprep.subr.bf16.mxu1 %v1119_v9 }
  0x24   : > { %1039 = vmatpush3.bf16.msra.mxu0 %v1119_v9  ;;  %1087 = vmatpush3.bf16.msra.mxu1 %v1119_v9 }
  0x27   : > { %1041 = vmatmul.mubr.bf16.vlgmr.msra.gmra.mrb[0].mxu0 %v1122_v10  ;;  %1057 = vmatmul.mubr.bf16.vlgmr.msra.gmra.mrb[0].mxu1 %v1123_v11 }
  0x28   : > { %1044 = vmatprep.mubr.bf16.mxu0 %v1124_v12  ;;  %1060 = vmatprep.mubr.bf16.mxu1 %v1125_v13 }
  0x2f   : > { %1045 = vmatmul.mubr.bf16.gmra.mrb[4].mxu0 %v1126_v14  ;;  %1061 = vmatmul.mubr.bf16.gmra.mrb[4].mxu1 %v1127_v15 }
  0x30   : > { %1048 = vmatprep.mubr.bf16.mxu0 %v1128_v16  ;;  %1064 = vmatprep.mubr.bf16.mxu1 %v1129_v17 }
  0x37   : > { %1049 = vmatmul.mubr.bf16.gmra.mrb[8].mxu0 %v1130_v18  ;;  %1065 = vmatmul.mubr.bf16.gmra.mrb[8].mxu1 %v1131_v19 }
  0x38   : > { %1052 = vmatprep.mubr.bf16.mxu0 %v1132_v20  ;;  %1068 = vmatprep.mubr.bf16.mxu1 %v1133_v21 }
  0x3f   : > { %1053 = vmatmul.mubr.bf16.gmra.mrb[12].mxu0 %v1134_v22  ;;  %1069 = vmatmul.mubr.bf16.gmra.mrb[12].mxu1 %v1135_v23 }
  0xfa   : > { %v1042_v25 = vpop.f32.mrb[0].mxu0  ;;  %v1058_v26 = vpop.f32.mrb[0].mxu1 }
  0xfb   : > { %v789_v27 = vadd.f32 %v1042_v25, %v1250_v24  ;;  %v805_v28 = vadd.f32 %v1058_v26, %v1250_v24  ;;  %v554_v29 = vpop.f32.mrb[1].mxu0  ;;  %v618_v30 = vpop.f32.mrb[1].mxu1 }
  0xfc   : > { %v787_v31 = vadd.f32 %v1250_v24, %v554_v29  ;;  %v803_v32 = vadd.f32 %v1250_v24, %v618_v30  ;;  %v1043_v33 = vpop.f32.mrb[2].mxu0  ;;  %v1059_v34 = vpop.f32.mrb[2].mxu1 }
  0xfd   : > { %821 = vst [vmem:[%s1255_s19 + $0x10] sm:$0xff] %v789_v27  ;;  %837 = vst [vmem:[%s1255_s19 + $0x90] sm:$0xff] %v805_v28  ;;  %v790_v35 = vadd.f32 %v1043_v33, %v1250_v24  ;;  %v806_v36 = vadd.f32 %v1059_v34, %v1250_v24  ;;  %v557_v37 = vpop.f32.mrb[3].mxu0  ;;  %v621_v38 = vpop.f32.mrb[3].mxu1 }
  0xfe   : > { %819 = vst [vmem:[%s1255_s19] sm:$0xff] %v787_v31  ;;  %835 = vst [vmem:[%s1255_s19 + $0x80] sm:$0xff] %v803_v32  ;;  %v788_v39 = vadd.f32 %v1250_v24, %v557_v37  ;;  %v804_v40 = vadd.f32 %v1250_v24, %v621_v38 }
  0xff   : > { %822 = vst [vmem:[%s1255_s19 + $0x18] sm:$0xff] %v790_v35  ;;  %838 = vst [vmem:[%s1255_s19 + $0x98] sm:$0xff] %v806_v36 }
 0x100   : > { %820 = vst [vmem:[%s1255_s19 + $0x8] sm:$0xff] %v788_v39  ;;  %836 = vst [vmem:[%s1255_s19 + $0x88] sm:$0xff] %v804_v40 }
 0x102   : > { %v1046_v41 = vpop.f32.mrb[4].mxu0  ;;  %v1062_v42 = vpop.f32.mrb[4].mxu1 }
 0x103   : > { %v793_v43 = vadd.f32 %v1046_v41, %v1250_v24  ;;  %v809_v44 = vadd.f32 %v1062_v42, %v1250_v24  ;;  %v570_v45 = vpop.f32.mrb[5].mxu0  ;;  %v634_v46 = vpop.f32.mrb[5].mxu1 }
 0x104   : > { %v791_v47 = vadd.f32 %v1250_v24, %v570_v45  ;;  %v807_v48 = vadd.f32 %v1250_v24, %v634_v46  ;;  %v1047_v49 = vpop.f32.mrb[6].mxu0  ;;  %v1063_v50 = vpop.f32.mrb[6].mxu1 }
 0x105   : > { %825 = vst [vmem:[%s1255_s19 + $0x30] sm:$0xff] %v793_v43  ;;  %841 = vst [vmem:[%s1255_s19 + $0xb0] sm:$0xff] %v809_v44  ;;  %v794_v51 = vadd.f32 %v1047_v49, %v1250_v24  ;;  %v810_v52 = vadd.f32 %v1063_v50, %v1250_v24  ;;  %v573_v53 = vpop.f32.mrb[7].mxu0  ;;  %v637_v54 = vpop.f32.mrb[7].mxu1 }
 0x106   : > { %823 = vst [vmem:[%s1255_s19 + $0x20] sm:$0xff] %v791_v47  ;;  %839 = vst [vmem:[%s1255_s19 + $0xa0] sm:$0xff] %v807_v48  ;;  %v792_v55 = vadd.f32 %v1250_v24, %v573_v53  ;;  %v808_v56 = vadd.f32 %v1250_v24, %v637_v54 }
 0x107   : > { %826 = vst [vmem:[%s1255_s19 + $0x38] sm:$0xff] %v794_v51  ;;  %842 = vst [vmem:[%s1255_s19 + $0xb8] sm:$0xff] %v810_v52 }
 0x108   : > { %824 = vst [vmem:[%s1255_s19 + $0x28] sm:$0xff] %v792_v55  ;;  %840 = vst [vmem:[%s1255_s19 + $0xa8] sm:$0xff] %v808_v56 }
 0x10a   : > { %v1050_v57 = vpop.f32.mrb[8].mxu0  ;;  %v1066_v58 = vpop.f32.mrb[8].mxu1 }
 0x10b   : > { %v797_v59 = vadd.f32 %v1050_v57, %v1250_v24  ;;  %v813_v60 = vadd.f32 %v1066_v58, %v1250_v24  ;;  %v586_v61 = vpop.f32.mrb[9].mxu0  ;;  %v650_v62 = vpop.f32.mrb[9].mxu1 }
 0x10c   : > { %v795_v63 = vadd.f32 %v1250_v24, %v586_v61  ;;  %v811_v0 = vadd.f32 %v1250_v24, %v650_v62  ;;  %v1051_v1 = vpop.f32.mrb[10].mxu0  ;;  %v1067_v2 = vpop.f32.mrb[10].mxu1 }
 0x10d   : > { %829 = vst [vmem:[%s1255_s19 + $0x50] sm:$0xff] %v797_v59  ;;  %845 = vst [vmem:[%s1255_s19 + $0xd0] sm:$0xff] %v813_v60  ;;  %v798_v3 = vadd.f32 %v1051_v1, %v1250_v24  ;;  %v814_v4 = vadd.f32 %v1067_v2, %v1250_v24  ;;  %v589_v5 = vpop.f32.mrb[11].mxu0  ;;  %v653_v6 = vpop.f32.mrb[11].mxu1 }
 0x10e   : > { %827 = vst [vmem:[%s1255_s19 + $0x40] sm:$0xff] %v795_v63  ;;  %843 = vst [vmem:[%s1255_s19 + $0xc0] sm:$0xff] %v811_v0  ;;  %v796_v7 = vadd.f32 %v1250_v24, %v589_v5  ;;  %v812_v8 = vadd.f32 %v1250_v24, %v653_v6 }
 0x10f   : > { %830 = vst [vmem:[%s1255_s19 + $0x58] sm:$0xff] %v798_v3  ;;  %846 = vst [vmem:[%s1255_s19 + $0xd8] sm:$0xff] %v814_v4 }
 0x110   : > { %828 = vst [vmem:[%s1255_s19 + $0x48] sm:$0xff] %v796_v7  ;;  %844 = vst [vmem:[%s1255_s19 + $0xc8] sm:$0xff] %v812_v8 }
 0x112   : > { %v1054_v9 = vpop.f32.mrb[12].mxu0  ;;  %v1070_v10 = vpop.f32.mrb[12].mxu1 }
 0x113   : > { %v801_v11 = vadd.f32 %v1054_v9, %v1250_v24  ;;  %v817_v12 = vadd.f32 %v1070_v10, %v1250_v24  ;;  %v602_v13 = vpop.f32.mrb[13].mxu0  ;;  %v666_v14 = vpop.f32.mrb[13].mxu1 }
 0x114   : > { %v799_v15 = vadd.f32 %v1250_v24, %v602_v13  ;;  %v815_v16 = vadd.f32 %v1250_v24, %v666_v14  ;;  %v1055_v17 = vpop.f32.mrb[14].mxu0  ;;  %v1071_v18 = vpop.f32.mrb[14].mxu1 }
 0x115   : > { %833 = vst [vmem:[%s1255_s19 + $0x70] sm:$0xff] %v801_v11  ;;  %849 = vst [vmem:[%s1255_s19 + $0xf0] sm:$0xff] %v817_v12  ;;  %v802_v19 = vadd.f32 %v1055_v17, %v1250_v24  ;;  %v818_v20 = vadd.f32 %v1071_v18, %v1250_v24  ;;  %v605_v21 = vpop.f32.mrb[15].mxu0  ;;  %v669_v22 = vpop.f32.mrb[15].mxu1 }
 0x116   : > { %831 = vst [vmem:[%s1255_s19 + $0x60] sm:$0xff] %v799_v15  ;;  %847 = vst [vmem:[%s1255_s19 + $0xe0] sm:$0xff] %v815_v16  ;;  %v800_v23 = vadd.f32 %v1250_v24, %v605_v21  ;;  %v816_v25 = vadd.f32 %v1250_v24, %v669_v22 }
 0x117   : > { %834 = vst [vmem:[%s1255_s19 + $0x78] sm:$0xff] %v802_v19  ;;  %850 = vst [vmem:[%s1255_s19 + $0xf8] sm:$0xff] %v818_v20 }
 0x118   : > { %832 = vst [vmem:[%s1255_s19 + $0x68] sm:$0xff] %v800_v23  ;;  %848 = vst [vmem:[%s1255_s19 + $0xe8] sm:$0xff] %v816_v25 }
 0x119 PF: > { %s13_s14 = sadd.s32 1, %s1158_s14   ;;  %s1334_s12 = smov %s1154_s13 }
 0x11a   : > { %p10_p5 = scmp.ge.s32.totalorder %s13_s14, 4   ;;  %s1335_s13 = smov %s1337_s15 }
 0x11c   :  { %12 = sbr.rel (!%p10_p5) target bundleno = 2 (0x2), region = 76 }

// kernel: closed_call.84
= control target key start
LH: loop header
LB: loop body
LE: loop exit
PB: predicated region body
PF: predicated region fallthrough
CT: control target
= control target key end

     0   :  { %s3840_s0 = inlined_call_operand.vmem [shape: bf16[512,1152], index: 0, kind: input, shape index: {}]   ;;  %s3841_s1 = inlined_call_operand.vmem [shape: bf16[1152,128], index: 1, kind: input, shape index: {}]   ;;  %s3842_s2 = inlined_call_operand.vmem [shape: f32[1,128], index: 2, kind: input, shape index: {}]   ;;  %s3843_s3 = inlined_call_operand.vmem [shape: f32[512,128], index: 3, kind: input, shape index: {}]   ;;  %s3844_s4 = inlined_call_operand.vmem [shape: f32[512,128], index: 4, kind: input, shape index: {}]   ;;  %s3845_s5 = inlined_call_operand.vmem [shape: bf16[512,128], index: 5, kind: output, shape index: {0}]   ;;  %s3846_s6 = inlined_call_operand.vmem [shape: f32[512,128], index: 6, kind: output, shape index: {1}]  }
   0x1   :  { %3863 = sst [smem:[#allocation18_spill]] %s3840_s0 }
   0x2   :  { %3864 = sst [smem:[#allocation19_spill]] %s3841_s1 }
   0x3   :  { %s3054_s21 = smov 0   ;;  %s3056_s22 = smov 0  }
   0x4   :  { %s3058_s23 = smov 0   ;;  %s3060_s24 = smov 0  }
   0x5   :  { %s3062_s25 = smov 0   ;;  %s3064_s26 = smov 0  }
   0x6   :  { %s3066_s27 = smov 0  }
   0x7 LB: > { %s29_s28 = sadd.s32 1, %s3007_s25  ;;  %s36_s29 = sadd.s32 1, %s3011_s26  ;;  %s3015_s27 = sphi %s3066_s27, %s17_s27   ;;  %s3011_s26 = sphi %s3064_s26, %s3901_s26   ;;  %s3007_s25 = sphi %s3062_s25, %s3900_s25   ;;  %s3003_s24 = sphi %s3060_s24, %s3899_s24   ;;  %s2999_s23 = sphi %s3058_s23, %s3898_s23   ;;  %s2995_s22 = sphi %s3056_s22, %s3897_s22   ;;  %s2991_s21 = sphi %s3054_s21, %s3896_s21  }
   0x8   : > { %p30_p0 = scmp.ge.s32.totalorder %s29_s28, 3  ;;  %p52_p1 = scmp.ne.s32.totalorder %s2995_s22, %s2991_s21 }
   0x9   : > { %p53_p2 = scmp.eq.s32.totalorder %s3015_s27, 0  ;;  %s45_s9 = sadd.s32 1, %s2995_s22 }
   0xa   : > { %s3903_s28 = smov (%p30_p0, %s29_s28), 0  ;;  %s3905_s29 = smov (!%p30_p0, %s36_s29), %s3011_s26 }
   0xb   : > { %p54_p3 = por %p53_p2, %p52_p1  ;;  %p38_p4 = scmp.ge.s32.totalorder %s3905_s29, 2 }
   0xc   : > { %s41_s30 = ssub.s32 %s3007_s25, %s3903_s28  ;;  %p2298_p6 = scmp.ge.s32.totalorder %s3015_s27, 6 }
   0xd   : > { %s3907_s29 = smov (%p38_p4, %s3905_s29), 0 }
   0xe   : > { %s40_s7 = ssub.s32 %s3011_s26, %s3907_s29  ;;  %250 = sbr.rel (%p2298_p6) target bundleno = 67 (0x43), region = 20 }
   0xf   : > { %s42_s8 = sor.u32 %s41_s30, %s40_s7 }
  0x10   : > { %p43_p5 = scmp.eq.s32.totalorder %s42_s8, 0 }
  0x12   : > { %s3105_s10 = scalar_select %p43_p5, %s2995_s22, %s45_s9  }
  0x15   : > { %253 = sbr.rel (!%p54_p3) target bundleno = 67 (0x43), region = 24  ;;  %s255_s11 = sand.u32 (%p54_p3), 1, %s2995_s22  }
  0x16   : > { %s259_s12 = smul.u32 (%p54_p3), 3, %s3007_s25  ;;  %s3865_s0 = sld [smem:[#allocation18_spill]] (%p54_p3) }
  0x17   : > { %s2812_s13 = smul.u32 (%p54_p3), 384, %s255_s11 }
  0x18   : > { %s2813_s14 = smul.u32 (%p54_p3), 288, %s3011_s26 }
  0x19   : > { %s3119_s20 = scalar_lea.vmem (%p54_p3), [#allocation3], %s2812_s13 }
  0x1a   : > { %s261_s15 = sadd.s32 (%p54_p3), %s2813_s14, %s259_s12 }
  0x1b   : > { %s2301_s16 = sshll.u32 (%p54_p3), %s261_s15, 2 }
  0x1c   : > { %s3114_s19 = scalar_lea.vmem %s3865_s0, %s2301_s16 }
  0x1d   : > { %v278_v0 = vld [vmem:[%s3114_s19] sm:$0xff]  ;;  %v282_v2 = vld [vmem:[%s3114_s19 + $0x48] sm:$0xff]  ;;  %v286_v4 = vld [vmem:[%s3114_s19 + $0x90] sm:$0xff] }
  0x1e   : > { %v280_v1 = vld [vmem:[%s3114_s19 + $0x24] sm:$0xff]  ;;  %279 = vst [vmem:[%s3119_s20] sm:$0xff] %v278_v0  ;;  %283 = vst [vmem:[%s3119_s20 + $0x18] sm:$0xff] %v282_v2  ;;  %v284_v3 = vld [vmem:[%s3114_s19 + $0x6c] sm:$0xff] }
  0x1f   : > { %281 = vst [vmem:[%s3119_s20 + $0xc] sm:$0xff] %v280_v1  ;;  %v288_v5 = vld [vmem:[%s3114_s19 + $0xb4] sm:$0xff]  ;;  %285 = vst [vmem:[%s3119_s20 + $0x24] sm:$0xff] %v284_v3  ;;  %v292_v7 = vld [vmem:[%s3114_s19 + $0xfc] sm:$0xff] }
  0x20   : > { %287 = vst [vmem:[%s3119_s20 + $0x30] sm:$0xff] %v286_v4  ;;  %289 = vst [vmem:[%s3119_s20 + $0x3c] sm:$0xff] %v288_v5  ;;  %v290_v6 = vld [vmem:[%s3114_s19 + $0xd8] sm:$0xff]  ;;  %v294_v8 = vld [vmem:[%s3114_s19 + $0x120] sm:$0xff] }
  0x21   : > { %291 = vst [vmem:[%s3119_s20 + $0x48] sm:$0xff] %v290_v6  ;;  %293 = vst [vmem:[%s3119_s20 + $0x54] sm:$0xff] %v292_v7  ;;  %v296_v9 = vld [vmem:[%s3114_s19 + $0x144] sm:$0xff]  ;;  %v300_v11 = vld [vmem:[%s3114_s19 + $0x18c] sm:$0xff] }
  0x22   : > { %295 = vst [vmem:[%s3119_s20 + $0x60] sm:$0xff] %v294_v8  ;;  %v298_v10 = vld [vmem:[%s3114_s19 + $0x168] sm:$0xff]  ;;  %297 = vst [vmem:[%s3119_s20 + $0x6c] sm:$0xff] %v296_v9  ;;  %v302_v12 = vld [vmem:[%s3114_s19 + $0x1b0] sm:$0xff] }
  0x23   : > { %299 = vst [vmem:[%s3119_s20 + $0x78] sm:$0xff] %v298_v10  ;;  %301 = vst [vmem:[%s3119_s20 + $0x84] sm:$0xff] %v300_v11  ;;  %v304_v13 = vld [vmem:[%s3114_s19 + $0x1d4] sm:$0xff]  ;;  %v308_v15 = vld [vmem:[%s3114_s19 + $0x21c] sm:$0xff] }
  0x24   : > { %v306_v14 = vld [vmem:[%s3114_s19 + $0x1f8] sm:$0xff]  ;;  %303 = vst [vmem:[%s3119_s20 + $0x90] sm:$0xff] %v302_v12  ;;  %305 = vst [vmem:[%s3119_s20 + $0x9c] sm:$0xff] %v304_v13  ;;  %v310_v16 = vld [vmem:[%s3114_s19 + $0x240] sm:$0xff] }
  0x25   : > { %307 = vst [vmem:[%s3119_s20 + $0xa8] sm:$0xff] %v306_v14  ;;  %v312_v17 = vld [vmem:[%s3114_s19 + $0x264] sm:$0xff]  ;;  %309 = vst [vmem:[%s3119_s20 + $0xb4] sm:$0xff] %v308_v15  ;;  %v316_v19 = vld [vmem:[%s3114_s19 + $0x2ac] sm:$0xff] }
  0x26   : > { %311 = vst [vmem:[%s3119_s20 + $0xc0] sm:$0xff] %v310_v16  ;;  %313 = vst [vmem:[%s3119_s20 + $0xcc] sm:$0xff] %v312_v17  ;;  %v314_v18 = vld [vmem:[%s3114_s19 + $0x288] sm:$0xff]  ;;  %v318_v20 = vld [vmem:[%s3114_s19 + $0x2d0] sm:$0xff] }
  0x27   : > { %315 = vst [vmem:[%s3119_s20 + $0xd8] sm:$0xff] %v314_v18  ;;  %317 = vst [vmem:[%s3119_s20 + $0xe4] sm:$0xff] %v316_v19  ;;  %v320_v21 = vld [vmem:[%s3114_s19 + $0x2f4] sm:$0xff]  ;;  %v324_v23 = vld [vmem:[%s3114_s19 + $0x33c] sm:$0xff] }
  0x28   : > { %319 = vst [vmem:[%s3119_s20 + $0xf0] sm:$0xff] %v318_v20  ;;  %v322_v22 = vld [vmem:[%s3114_s19 + $0x318] sm:$0xff]  ;;  %321 = vst [vmem:[%s3119_s20 + $0xfc] sm:$0xff] %v320_v21  ;;  %v326_v24 = vld [vmem:[%s3114_s19 + $0x360] sm:$0xff] }
  0x29   : > { %323 = vst [vmem:[%s3119_s20 + $0x108] sm:$0xff] %v322_v22  ;;  %325 = vst [vmem:[%s3119_s20 + $0x114] sm:$0xff] %v324_v23  ;;  %v328_v25 = vld [vmem:[%s3114_s19 + $0x384] sm:$0xff]  ;;  %v332_v27 = vld [vmem:[%s3114_s19 + $0x3cc] sm:$0xff] }
  0x2a   : > { %v330_v26 = vld [vmem:[%s3114_s19 + $0x3a8] sm:$0xff]  ;;  %327 = vst [vmem:[%s3119_s20 + $0x120] sm:$0xff] %v326_v24  ;;  %329 = vst [vmem:[%s3119_s20 + $0x12c] sm:$0xff] %v328_v25  ;;  %v334_v28 = vld [vmem:[%s3114_s19 + $0x3f0] sm:$0xff] }
  0x2b   : > { %331 = vst [vmem:[%s3119_s20 + $0x138] sm:$0xff] %v330_v26  ;;  %v336_v29 = vld [vmem:[%s3114_s19 + $0x414] sm:$0xff]  ;;  %333 = vst [vmem:[%s3119_s20 + $0x144] sm:$0xff] %v332_v27  ;;  %v340_v31 = vld [vmem:[%s3114_s19 + $0x45c] sm:$0xff] }
  0x2c   : > { %335 = vst [vmem:[%s3119_s20 + $0x150] sm:$0xff] %v334_v28  ;;  %337 = vst [vmem:[%s3119_s20 + $0x15c] sm:$0xff] %v336_v29  ;;  %v338_v30 = vld [vmem:[%s3114_s19 + $0x438] sm:$0xff]  ;;  %v2302_v32 = vld [vmem:[%s3114_s19 + $0x8] sm:$0xf] }
  0x2d   : > { %339 = vst [vmem:[%s3119_s20 + $0x168] sm:$0xff] %v338_v30  ;;  %341 = vst [vmem:[%s3119_s20 + $0x174] sm:$0xff] %v340_v31  ;;  %v2304_v33 = vld [vmem:[%s3114_s19 + $0x2c] sm:$0xf]  ;;  %v2306_v34 = vld [vmem:[%s3114_s19 + $0x50] sm:$0xf] }
  0x2e   : > { %2303 = vst [vmem:[%s3119_s20 + $0x8] sm:$0xf] %v2302_v32  ;;  %v2308_v35 = vld [vmem:[%s3114_s19 + $0x74] sm:$0xf]  ;;  %2305 = vst [vmem:[%s3119_s20 + $0x14] sm:$0xf] %v2304_v33 }
  0x2f   : > { %2307 = vst [vmem:[%s3119_s20 + $0x20] sm:$0xf] %v2306_v34  ;;  %2309 = vst [vmem:[%s3119_s20 + $0x2c] sm:$0xf] %v2308_v35  ;;  %v2310_v36 = vld [vmem:[%s3114_s19 + $0x98] sm:$0xf] }
  0x30   : > { %v2312_v37 = vld [vmem:[%s3114_s19 + $0xbc] sm:$0xf]  ;;  %v2314_v38 = vld [vmem:[%s3114_s19 + $0xe0] sm:$0xf]  ;;  %2311 = vst [vmem:[%s3119_s20 + $0x38] sm:$0xf] %v2310_v36 }
  0x31   : > { %2313 = vst [vmem:[%s3119_s20 + $0x44] sm:$0xf] %v2312_v37  ;;  %2315 = vst [vmem:[%s3119_s20 + $0x50] sm:$0xf] %v2314_v38  ;;  %v2316_v39 = vld [vmem:[%s3114_s19 + $0x104] sm:$0xf] }
  0x32   : > { %v2318_v40 = vld [vmem:[%s3114_s19 + $0x128] sm:$0xf]  ;;  %v2320_v41 = vld [vmem:[%s3114_s19 + $0x14c] sm:$0xf]  ;;  %2317 = vst [vmem:[%s3119_s20 + $0x5c] sm:$0xf] %v2316_v39 }
  0x33   : > { %2319 = vst [vmem:[%s3119_s20 + $0x68] sm:$0xf] %v2318_v40  ;;  %2321 = vst [vmem:[%s3119_s20 + $0x74] sm:$0xf] %v2320_v41  ;;  %v2322_v42 = vld [vmem:[%s3114_s19 + $0x170] sm:$0xf] }
  0x34   : > { %v2324_v43 = vld [vmem:[%s3114_s19 + $0x194] sm:$0xf]  ;;  %v2326_v44 = vld [vmem:[%s3114_s19 + $0x1b8] sm:$0xf]  ;;  %2323 = vst [vmem:[%s3119_s20 + $0x80] sm:$0xf] %v2322_v42 }
  0x35   : > { %2325 = vst [vmem:[%s3119_s20 + $0x8c] sm:$0xf] %v2324_v43  ;;  %2327 = vst [vmem:[%s3119_s20 + $0x98] sm:$0xf] %v2326_v44  ;;  %v2328_v45 = vld [vmem:[%s3114_s19 + $0x1dc] sm:$0xf] }
  0x36   : > { %v2330_v46 = vld [vmem:[%s3114_s19 + $0x200] sm:$0xf]  ;;  %v2332_v47 = vld [vmem:[%s3114_s19 + $0x224] sm:$0xf]  ;;  %2329 = vst [vmem:[%s3119_s20 + $0xa4] sm:$0xf] %v2328_v45 }
  0x37   : > { %2331 = vst [vmem:[%s3119_s20 + $0xb0] sm:$0xf] %v2330_v46  ;;  %2333 = vst [vmem:[%s3119_s20 + $0xbc] sm:$0xf] %v2332_v47  ;;  %v2334_v48 = vld [vmem:[%s3114_s19 + $0x248] sm:$0xf] }
  0x38   : > { %v2336_v49 = vld [vmem:[%s3114_s19 + $0x26c] sm:$0xf]  ;;  %v2338_v50 = vld [vmem:[%s3114_s19 + $0x290] sm:$0xf]  ;;  %2335 = vst [vmem:[%s3119_s20 + $0xc8] sm:$0xf] %v2334_v48 }
  0x39   : > { %2337 = vst [vmem:[%s3119_s20 + $0xd4] sm:$0xf] %v2336_v49  ;;  %2339 = vst [vmem:[%s3119_s20 + $0xe0] sm:$0xf] %v2338_v50  ;;  %v2340_v51 = vld [vmem:[%s3114_s19 + $0x2b4] sm:$0xf] }
  0x3a   : > { %v2342_v52 = vld [vmem:[%s3114_s19 + $0x2d8] sm:$0xf]  ;;  %v2344_v53 = vld [vmem:[%s3114_s19 + $0x2fc] sm:$0xf]  ;;  %2341 = vst [vmem:[%s3119_s20 + $0xec] sm:$0xf] %v2340_v51 }
  0x3b   : > { %2343 = vst [vmem:[%s3119_s20 + $0xf8] sm:$0xf] %v2342_v52  ;;  %2345 = vst [vmem:[%s3119_s20 + $0x104] sm:$0xf] %v2344_v53  ;;  %v2346_v54 = vld [vmem:[%s3114_s19 + $0x320] sm:$0xf] }
  0x3c   : > { %v2348_v55 = vld [vmem:[%s3114_s19 + $0x344] sm:$0xf]  ;;  %v2350_v56 = vld [vmem:[%s3114_s19 + $0x368] sm:$0xf]  ;;  %2347 = vst [vmem:[%s3119_s20 + $0x110] sm:$0xf] %v2346_v54 }
  0x3d   : > { %2349 = vst [vmem:[%s3119_s20 + $0x11c] sm:$0xf] %v2348_v55  ;;  %2351 = vst [vmem:[%s3119_s20 + $0x128] sm:$0xf] %v2350_v56  ;;  %v2352_v57 = vld [vmem:[%s3114_s19 + $0x38c] sm:$0xf] }
  0x3e   : > { %v2354_v58 = vld [vmem:[%s3114_s19 + $0x3b0] sm:$0xf]  ;;  %v2356_v59 = vld [vmem:[%s3114_s19 + $0x3d4] sm:$0xf]  ;;  %2353 = vst [vmem:[%s3119_s20 + $0x134] sm:$0xf] %v2352_v57 }
  0x3f   : > { %2355 = vst [vmem:[%s3119_s20 + $0x140] sm:$0xf] %v2354_v58  ;;  %2357 = vst [vmem:[%s3119_s20 + $0x14c] sm:$0xf] %v2356_v59  ;;  %v2358_v60 = vld [vmem:[%s3114_s19 + $0x3f8] sm:$0xf] }
  0x40   : > { %v2360_v61 = vld [vmem:[%s3114_s19 + $0x41c] sm:$0xf]  ;;  %v2362_v62 = vld [vmem:[%s3114_s19 + $0x440] sm:$0xf]  ;;  %2359 = vst [vmem:[%s3119_s20 + $0x158] sm:$0xf] %v2358_v60 }
  0x41   : > { %2361 = vst [vmem:[%s3119_s20 + $0x164] sm:$0xf] %v2360_v61  ;;  %2363 = vst [vmem:[%s3119_s20 + $0x170] sm:$0xf] %v2362_v62  ;;  %v2364_v63 = vld [vmem:[%s3114_s19 + $0x464] sm:$0xf] }
  0x42   : > { %2365 = vst [vmem:[%s3119_s20 + $0x17c] sm:$0xf] %v2364_v63 }
  0x43 PF: > { %p2366_p7 = scmp.ge.s32.totalorder %s3015_s27, 1  ;;  %p453_p8 = scmp.lt.s32.totalorder %s3015_s27, 7 }
  0x45   : > { %p454_p9 = pnand %p2366_p7, %p453_p8 }
  0x46   : > { %s460_s30 = sand.u32 (!%p454_p9), 1, %s2991_s21   ;;  %s529_s7 = smul.u32 (!%p454_p9), 48, %s2999_s23 }
  0x47   : > { %457 = sbr.rel (%p454_p9) target bundleno = 506 (0x1fa), region = 62  ;;  %s2368_s9 = sshll.u32 (!%p454_p9), %s3003_s24, 5 }
  0x48   : > { %s2814_s8 = smul.u32 (!%p454_p9), 384, %s460_s30  ;;  %p530_p10 = scmp.lt.s32.totalorder (!%p454_p9), %s529_s7, 143 }
  0x49   : > { %p542_p11 = scmp.lt.s32.totalorder (!%p454_p9), %s2368_s9, 63  ;;  %s3866_s1 = sld [smem:[#allocation19_spill]] (!%p454_p9) }
  0x4a   : > { %p2376_p12 = scmp.ne.s32.totalorder (!%p454_p9), %s2999_s23, 0 }
  0x4e   : > { %s3909_s7 = smov (!%p530_p10, %s529_s7), 143  ;;  %s3911_s9 = smov (!%p542_p11, %s2368_s9), 63 }
  0x4f   : > { %s2367_s11 = sshll.u32 %s3909_s7, 2  ;;  %s2369_s15 = sshll.u32 %s3911_s9, 3  ;;  %v3017_v0 = vmov (!%p2376_p12), 0.0  }
  0x50   : > { %s3254_s14 = scalar_lea.vmem %s3866_s1, %s2367_s11  ;;  %s3259_s18 = scalar_lea.vmem %s3843_s3, %s2369_s15  ;;  %582 = vst [vmem:[#allocation2] sm:$0xff] (!%p2376_p12), %v3017_v0  ;;  %583 = vst [vmem:[#allocation2 + $0x8] sm:$0xff] (!%p2376_p12), %v3017_v0 }
  0x51   : > { %s3264_s24 = scalar_lea.vmem %s3844_s4, %s2369_s15  ;;  %s2373_s20 = sshll.u32 %s3911_s9, 2  ;;  %584 = vst [vmem:[#allocation2 + $0x10] sm:$0xff] (!%p2376_p12), %v3017_v0  ;;  %585 = vst [vmem:[#allocation2 + $0x18] sm:$0xff] (!%p2376_p12), %v3017_v0 }
  0x52   : > { %s3269_s7 = scalar_lea.vmem %s3846_s6, %s2369_s15  ;;  %s3274_s13 = scalar_lea.vmem %s3845_s5, %s2373_s20  ;;  %586 = vst [vmem:[#allocation2 + $0x20] sm:$0xff] (!%p2376_p12), %v3017_v0  ;;  %587 = vst [vmem:[#allocation2 + $0x28] sm:$0xff] (!%p2376_p12), %v3017_v0 }
  0x53   : > { %s3276_s1 = scalar_lea.vmem [#allocation3], %s2814_s8  ;;  %581 = sbr.rel (%p2376_p12) target bundleno = 96 (0x60), region = 70  ;;  %588 = vst [vmem:[#allocation2 + $0x30] sm:$0xff] (!%p2376_p12), %v3017_v0  ;;  %589 = vst [vmem:[#allocation2 + $0x38] sm:$0xff] (!%p2376_p12), %v3017_v0 }
  0x54   : > { %590 = vst [vmem:[#allocation2 + $0x40] sm:$0xff] (!%p2376_p12), %v3017_v0  ;;  %591 = vst [vmem:[#allocation2 + $0x48] sm:$0xff] (!%p2376_p12), %v3017_v0 }
  0x55   : > { %592 = vst [vmem:[#allocation2 + $0x50] sm:$0xff] (!%p2376_p12), %v3017_v0  ;;  %593 = vst [vmem:[#allocation2 + $0x58] sm:$0xff] (!%p2376_p12), %v3017_v0 }
  0x56   : > { %594 = vst [vmem:[#allocation2 + $0x60] sm:$0xff] (!%p2376_p12), %v3017_v0  ;;  %595 = vst [vmem:[#allocation2 + $0x68] sm:$0xff] (!%p2376_p12), %v3017_v0 }
  0x57   : > { %596 = vst [vmem:[#allocation2 + $0x70] sm:$0xff] (!%p2376_p12), %v3017_v0  ;;  %597 = vst [vmem:[#allocation2 + $0x78] sm:$0xff] (!%p2376_p12), %v3017_v0 }
  0x58   : > { %598 = vst [vmem:[#allocation2 + $0x80] sm:$0xff] (!%p2376_p12), %v3017_v0  ;;  %599 = vst [vmem:[#allocation2 + $0x88] sm:$0xff] (!%p2376_p12), %v3017_v0 }
  0x59   : > { %600 = vst [vmem:[#allocation2 + $0x90] sm:$0xff] (!%p2376_p12), %v3017_v0  ;;  %601 = vst [vmem:[#allocation2 + $0x98] sm:$0xff] (!%p2376_p12), %v3017_v0 }
  0x5a   : > { %602 = vst [vmem:[#allocation2 + $0xa0] sm:$0xff] %v3017_v0  ;;  %603 = vst [vmem:[#allocation2 + $0xa8] sm:$0xff] %v3017_v0 }
  0x5b   : > { %604 = vst [vmem:[#allocation2 + $0xb0] sm:$0xff] %v3017_v0  ;;  %605 = vst [vmem:[#allocation2 + $0xb8] sm:$0xff] %v3017_v0 }
  0x5c   : > { %606 = vst [vmem:[#allocation2 + $0xc0] sm:$0xff] %v3017_v0  ;;  %607 = vst [vmem:[#allocation2 + $0xc8] sm:$0xff] %v3017_v0 }
  0x5d   : > { %608 = vst [vmem:[#allocation2 + $0xd0] sm:$0xff] %v3017_v0  ;;  %609 = vst [vmem:[#allocation2 + $0xd8] sm:$0xff] %v3017_v0 }
  0x5e   : > { %610 = vst [vmem:[#allocation2 + $0xe0] sm:$0xff] %v3017_v0  ;;  %611 = vst [vmem:[#allocation2 + $0xe8] sm:$0xff] %v3017_v0 }
  0x5f   : > { %612 = vst [vmem:[#allocation2 + $0xf0] sm:$0xff] %v3017_v0  ;;  %613 = vst [vmem:[#allocation2 + $0xf8] sm:$0xff] %v3017_v0 }
  0x60 PF: > { %v2873_v1 = vld [vmem:[%s3254_s14 + $0x40] sm:$0xff]   ;;  %v2875_v3 = vld [vmem:[%s3254_s14 + $0x48] sm:$0xff]   ;;  %v2877_v5 = vld [vmem:[%s3254_s14 + $0x50] sm:$0xff]   ;;  %p2449_p13 = scmp.ne.s32.totalorder %s2999_s23, 2 }
  0x61   : > { %v2874_v2 = vld [vmem:[%s3254_s14] sm:$0xff]   ;;  %2612 = vmatprep.subr.bf16.mxu0 %v2873_v1  ;;  %2796 = vmatprep.subr.bf16.mxu1 %v2873_v1  ;;  %v2876_v4 = vld [vmem:[%s3254_s14 + $0x8] sm:$0xff]   ;;  %v2878_v6 = vld [vmem:[%s3254_s14 + $0x10] sm:$0xff]  }
  0x62   : > { %2613 = vmatpush3.bf16.msra.mxu0 %v2874_v2  ;;  %2804 = vmatpush3.bf16.msra.mxu1 %v2874_v2  ;;  %v2879_v7 = vld [vmem:[%s3254_s14 + $0x58] sm:$0xff]   ;;  %v2881_v9 = vld [vmem:[%s3254_s14 + $0x60] sm:$0xff]   ;;  %v2883_v11 = vld [vmem:[%s3254_s14 + $0x68] sm:$0xff]  }
  0x63   : > { %2614 = vmatprep.subr.bf16.mxu0 %v2875_v3  ;;  %2797 = vmatprep.subr.bf16.mxu1 %v2875_v3  ;;  %v2880_v8 = vld [vmem:[%s3254_s14 + $0x18] sm:$0xff]   ;;  %v2882_v10 = vld [vmem:[%s3254_s14 + $0x20] sm:$0xff]   ;;  %v2884_v14 = vld [vmem:[%s3254_s14 + $0x28] sm:$0xff]  }
  0x64   : > { %v2891_v12 = vld [vmem:[%s3276_s1 + $0x4] ss:$12 sps:$4 sm:$0xff]   ;;  %v2887_v17 = vld [vmem:[%s3254_s14 + $0x78] sm:$0xff]   ;;  %v2889_v20 = vld [vmem:[%s3276_s1] ss:$12 sps:$4 sm:$0xff]  }
  0x65   : > { %v2894_v13 = vld [vmem:[%s3276_s1 + $0x124] ss:$12 sps:$4 sm:$0xff]   ;;  %1190 = vmatprep.mubr.bf16.mxu0 %v2891_v12  ;;  %v2888_v18 = vld [vmem:[%s3254_s14 + $0x38] sm:$0xff]   ;;  %v2892_v21 = vld [vmem:[%s3276_s1 + $0x120] ss:$12 sps:$4 sm:$0xff]  }
  0x66   : > { %2615 = vmatpush3.bf16.msra.mxu0 %v2876_v4  ;;  %2805 = vmatpush3.bf16.msra.mxu1 %v2876_v4  ;;  %v2885_v15 = vld [vmem:[%s3254_s14 + $0x70] sm:$0xff]   ;;  %v2895_v19 = vld [vmem:[%s3254_s14 + $0x80] sm:$0xff]   ;;  %v2897_v22 = vld [vmem:[%s3276_s1 + $0x1c] ss:$12 sps:$4 sm:$0xff]  }
  0x67   : > { %2616 = vmatprep.subr.bf16.mxu0 %v2877_v5  ;;  %2798 = vmatprep.subr.bf16.mxu1 %v2877_v5  ;;  %v2886_v16 = vld [vmem:[%s3254_s14 + $0x30] sm:$0xff]   ;;  %v2896_v23 = vld [vmem:[%s3254_s14 + $0x88] sm:$0xff]   ;;  %v2901_v25 = vld [vmem:[%s3276_s1 + $0x18] ss:$12 sps:$4 sm:$0xff]  }
  0x68   : > { %1286 = vmatprep.mubr.bf16.mxu1 %v2894_v13  ;;  %v2899_v24 = vld [vmem:[%s3276_s1 + $0x13c] ss:$12 sps:$4 sm:$0xff]   ;;  %v2903_v26 = vld [vmem:[%s3254_s14 + $0x90] sm:$0xff]   ;;  %v2902_v27 = vld [vmem:[%s3276_s1 + $0x138] ss:$12 sps:$4 sm:$0xff]  }
  0x69   : > { %v2904_v28 = vld [vmem:[%s3254_s14 + $0x98] sm:$0xff]   ;;  %v2905_v29 = vld [vmem:[%s3276_s1 + $0x34] ss:$12 sps:$4 sm:$0xff]   ;;  %v2912_v34 = vld [vmem:[%s3254_s14 + $0xa8] sm:$0xff]  }
  0x6a   : > { %2617 = vmatpush3.bf16.msra.mxu0 %v2878_v6  ;;  %2806 = vmatpush3.bf16.msra.mxu1 %v2878_v6  ;;  %v2907_v30 = vld [vmem:[%s3276_s1 + $0x154] ss:$12 sps:$4 sm:$0xff]   ;;  %v2909_v32 = vld [vmem:[%s3276_s1 + $0x30] ss:$12 sps:$4 sm:$0xff]   ;;  %v2913_v35 = vld [vmem:[%s3276_s1 + $0x4c] ss:$12 sps:$4 sm:$0xff]  }
  0x6b   : > { %2618 = vmatprep.subr.bf16.mxu0 %v2879_v7  ;;  %2799 = vmatprep.subr.bf16.mxu1 %v2879_v7  ;;  %v2911_v31 = vld [vmem:[%s3254_s14 + $0xa0] sm:$0xff]   ;;  %v2910_v33 = vld [vmem:[%s3276_s1 + $0x150] ss:$12 sps:$4 sm:$0xff]   ;;  %v2915_v36 = vld [vmem:[%s3276_s1 + $0x16c] ss:$12 sps:$4 sm:$0xff]  }
  0x6c   : > { %v2919_v37 = vld [vmem:[%s3254_s14 + $0xb0] sm:$0xff]   ;;  %v2920_v41 = vld [vmem:[%s3254_s14 + $0xb8] sm:$0xff]   ;;  %v2924_v43 = vld [vmem:[%s3276_s1 + $0x60] ss:$12 sps:$4 sm:$0xff]  }
  0x6d   : > { %v2917_v38 = vld [vmem:[%s3276_s1 + $0x48] ss:$12 sps:$4 sm:$0xff]   ;;  %v2921_v40 = vld [vmem:[%s3276_s1 + $0x64] ss:$12 sps:$4 sm:$0xff]   ;;  %v2925_v44 = vld [vmem:[%s3276_s1 + $0x20] ss:$12 sps:$4 sm:$0xff]  }
  0x6e   : > { %2619 = vmatpush3.bf16.msra.mxu0 %v2880_v8  ;;  %2807 = vmatpush3.bf16.msra.mxu1 %v2880_v8  ;;  %v2918_v39 = vld [vmem:[%s3276_s1 + $0x168] ss:$12 sps:$4 sm:$0xff]   ;;  %v2928_v46 = vld [vmem:[%s3276_s1 + $0x38] ss:$12 sps:$4 sm:$0xff]   ;;  %v2930_v48 = vld [vmem:[%s3276_s1 + $0x50] ss:$12 sps:$4 sm:$0xff]  }
  0x6f   : > { %2620 = vmatprep.subr.bf16.mxu0 %v2881_v9  ;;  %2800 = vmatprep.subr.bf16.mxu1 %v2881_v9  ;;  %v2923_v42 = vld [vmem:[%s3276_s1 + $0x8] ss:$12 sps:$4 sm:$0xff]   ;;  %v2929_v47 = vld [vmem:[%s3276_s1 + $0x78] ss:$12 sps:$4 sm:$0xff]   ;;  %v2934_v51 = vld [vmem:[%s3276_s1 + $0x90] ss:$12 sps:$4 sm:$0xff]  }
  0x70   : > { %v2926_v45 = vld [vmem:[%s3276_s1 + $0x7c] ss:$12 sps:$4 sm:$0xff]   ;;  %v2931_v49 = vld [vmem:[%s3276_s1 + $0x94] ss:$12 sps:$4 sm:$0xff]   ;;  %v2936_v53 = vld [vmem:[%s3276_s1 + $0xac] ss:$12 sps:$4 sm:$0xff]  }
  0x71   : > { %v2933_v50 = vld [vmem:[%s3276_s1 + $0x68] ss:$12 sps:$4 sm:$0xff]   ;;  %v2935_v52 = vld [vmem:[%s3276_s1 + $0x80] ss:$12 sps:$4 sm:$0xff]   ;;  %v2938_v54 = vld [vmem:[%s3276_s1 + $0x98] ss:$12 sps:$4 sm:$0xff]  }
  0x72   : > { %2621 = vmatpush3.bf16.msra.mxu0 %v2882_v10  ;;  %2808 = vmatpush3.bf16.msra.mxu1 %v2882_v10  ;;  %v2939_v55 = vld [vmem:[%s3276_s1 + $0xa8] ss:$12 sps:$4 sm:$0xff]   ;;  %v2940_v56 = vld [vmem:[%s3276_s1 + $0xb0] ss:$12 sps:$4 sm:$0xff]   ;;  %v2944_v59 = vld [vmem:[%s3276_s1 + $0xc0] ss:$12 sps:$4 sm:$0xff]  }
  0x73   : > { %2622 = vmatprep.subr.bf16.mxu0 %v2883_v11  ;;  %2801 = vmatprep.subr.bf16.mxu1 %v2883_v11  ;;  %v2941_v57 = vld [vmem:[%s3276_s1 + $0xc4] ss:$12 sps:$4 sm:$0xff]   ;;  %v2943_v58 = vld [vmem:[%s3276_s1 + $0xc8] ss:$12 sps:$4 sm:$0xff]   ;;  %v2945_v60 = vld [vmem:[%s3276_s1 + $0xe0] ss:$12 sps:$4 sm:$0xff]  }
  0x74   : > { %v2946_v61 = vld [vmem:[%s3276_s1 + $0xdc] ss:$12 sps:$4 sm:$0xff]   ;;  %v2948_v62 = vld [vmem:[%s3276_s1 + $0xf8] ss:$12 sps:$4 sm:$0xff]   ;;  %v2951_v1 = vld [vmem:[%s3276_s1 + $0xf4] ss:$12 sps:$4 sm:$0xff]  }
  0x75   : > { %v2949_v63 = vld [vmem:[%s3276_s1 + $0xd8] ss:$12 sps:$4 sm:$0xff]   ;;  %v2950_v0 = vld [vmem:[%s3276_s1 + $0x110] ss:$12 sps:$4 sm:$0xff]   ;;  %v2953_v2 = vld [vmem:[%s3276_s1 + $0x128] ss:$12 sps:$4 sm:$0xff]  }
  0x76   : > { %2623 = vmatpush3.bf16.msra.mxu0 %v2884_v14  ;;  %2809 = vmatpush3.bf16.msra.mxu1 %v2884_v14  ;;  %v2954_v3 = vld [vmem:[%s3276_s1 + $0xf0] ss:$12 sps:$4 sm:$0xff]   ;;  %v2955_v4 = vld [vmem:[%s3276_s1 + $0x140] ss:$12 sps:$4 sm:$0xff]   ;;  %v2958_v6 = vld [vmem:[%s3276_s1 + $0x158] ss:$12 sps:$4 sm:$0xff]  }
  0x77   : > { %2624 = vmatprep.subr.bf16.mxu0 %v2885_v15  ;;  %2802 = vmatprep.subr.bf16.mxu1 %v2885_v15  ;;  %v2956_v5 = vld [vmem:[%s3276_s1 + $0x10c] ss:$12 sps:$4 sm:$0xff]   ;;  %v2959_v7 = vld [vmem:[%s3276_s1 + $0x108] ss:$12 sps:$4 sm:$0xff]   ;;  %v2960_v8 = vld [vmem:[%s3276_s1 + $0x170] ss:$12 sps:$4 sm:$0xff]  }
  0x7a   : > { %2625 = vmatpush3.bf16.msra.mxu0 %v2886_v16  ;;  %2810 = vmatpush3.bf16.msra.mxu1 %v2886_v16 }
  0x7b   : > { %2626 = vmatprep.subr.bf16.mxu0 %v2887_v17  ;;  %2803 = vmatprep.subr.bf16.mxu1 %v2887_v17 }
  0x7e   : > { %2627 = vmatpush3.bf16.msra.mxu0 %v2888_v18  ;;  %2811 = vmatpush3.bf16.msra.mxu1 %v2888_v18 }
  0x7f   : > { %2748 = vmatprep.subr.bf16.mxu1 %v2895_v19 }
  0x81   : > { %1191 = vmatmul.mubr.bf16.vlgmr.msra.gmra.mrb[0].mxu0 %v2889_v20  ;;  %1287 = vmatmul.mubr.bf16.vlgmr.msra.gmra.mrb[0].mxu1 %v2892_v21 }
  0x82   : > { %2749 = vmatpush3.bf16.msra.mxu1 %v2895_v19  ;;  %1198 = vmatprep.mubr.bf16.mxu0 %v2897_v22 }
  0x83   : > { %2750 = vmatprep.subr.bf16.mxu1 %v2896_v23  ;;  %1294 = vmatprep.mubr.bf16.mxu1 %v2899_v24 }
  0x86   : > { %2751 = vmatpush3.bf16.msra.mxu1 %v2896_v23 }
  0x87   : > { %2752 = vmatprep.subr.bf16.mxu1 %v2903_v26 }
  0x89   : > { %1199 = vmatmul.mubr.bf16.gmra.mrb[4].mxu0 %v2901_v25  ;;  %1295 = vmatmul.mubr.bf16.gmra.mrb[4].mxu1 %v2902_v27 }
  0x8a   : > { %2753 = vmatpush3.bf16.msra.mxu1 %v2903_v26  ;;  %1206 = vmatprep.mubr.bf16.mxu0 %v2905_v29 }
  0x8b   : > { %2754 = vmatprep.subr.bf16.mxu1 %v2904_v28  ;;  %1302 = vmatprep.mubr.bf16.mxu1 %v2907_v30 }
  0x8e   : > { %2755 = vmatpush3.bf16.msra.mxu1 %v2904_v28 }
  0x8f   : > { %2756 = vmatprep.subr.bf16.mxu1 %v2911_v31 }
  0x91   : > { %1207 = vmatmul.mubr.bf16.gmra.mrb[8].mxu0 %v2909_v32  ;;  %1303 = vmatmul.mubr.bf16.gmra.mrb[8].mxu1 %v2910_v33 }
  0x92   : > { %2757 = vmatpush3.bf16.msra.mxu1 %v2911_v31  ;;  %1214 = vmatprep.mubr.bf16.mxu0 %v2913_v35 }
  0x93   : > { %2758 = vmatprep.subr.bf16.mxu1 %v2912_v34  ;;  %1310 = vmatprep.mubr.bf16.mxu1 %v2915_v36 }
  0x96   : > { %2759 = vmatpush3.bf16.msra.mxu1 %v2912_v34 }
  0x97   : > { %2760 = vmatprep.subr.bf16.mxu1 %v2919_v37 }
  0x99   : > { %1215 = vmatmul.mubr.bf16.gmra.mrb[12].mxu0 %v2917_v38  ;;  %1311 = vmatmul.mubr.bf16.gmra.mrb[12].mxu1 %v2918_v39 }
  0x9a   : > { %2761 = vmatpush3.bf16.msra.mxu1 %v2919_v37  ;;  %1222 = vmatprep.mubr.bf16.mxu0 %v2921_v40 }
  0x9b   : > { %2762 = vmatprep.subr.bf16.mxu1 %v2920_v41  ;;  %2764 = vmatprep.mubr.bf16.mxu1 %v2923_v42 }
  0x9e   : > { %2763 = vmatpush3.bf16.msra.mxu1 %v2920_v41 }
  0xa1   : > { %1223 = vmatmul.mubr.bf16.gmra.mrb[16].mxu0 %v2924_v43  ;;  %2765 = vmatmul.mubr.bf16.vlgmr.msra.gmra.mrb[16].mxu1 %v2925_v44 }
  0xa2   : > { %1230 = vmatprep.mubr.bf16.mxu0 %v2926_v45  ;;  %2768 = vmatprep.mubr.bf16.mxu1 %v2928_v46 }
  0xa9   : > { %1231 = vmatmul.mubr.bf16.gmra.mrb[20].mxu0 %v2929_v47  ;;  %2769 = vmatmul.mubr.bf16.gmra.mrb[20].mxu1 %v2930_v48 }
  0xaa   : > { %1238 = vmatprep.mubr.bf16.mxu0 %v2931_v49  ;;  %2772 = vmatprep.mubr.bf16.mxu1 %v2933_v50 }
  0xb1   : > { %1239 = vmatmul.mubr.bf16.gmra.mrb[24].mxu0 %v2934_v51  ;;  %2773 = vmatmul.mubr.bf16.gmra.mrb[24].mxu1 %v2935_v52 }
  0xb2   : > { %1246 = vmatprep.mubr.bf16.mxu0 %v2936_v53  ;;  %2776 = vmatprep.mubr.bf16.mxu1 %v2938_v54 }
  0xb9   : > { %1247 = vmatmul.mubr.bf16.gmra.mrb[28].mxu0 %v2939_v55  ;;  %2777 = vmatmul.mubr.bf16.gmra.mrb[28].mxu1 %v2940_v56 }
  0xba   : > { %1254 = vmatprep.mubr.bf16.mxu0 %v2941_v57  ;;  %2780 = vmatprep.mubr.bf16.mxu1 %v2943_v58  ;;  %v616_v58 = vld [vmem:[#allocation2 + $0x10] sm:$0xff] }
  0xc1   : > { %1255 = vmatmul.mubr.bf16.gmra.mrb[32].mxu0 %v2944_v59  ;;  %2781 = vmatmul.mubr.bf16.gmra.mrb[32].mxu1 %v2945_v60 }
  0xc2   : > { %1262 = vmatprep.mubr.bf16.mxu0 %v2946_v61  ;;  %2784 = vmatprep.mubr.bf16.mxu1 %v2948_v62  ;;  %v614_v62 = vld [vmem:[#allocation2] sm:$0xff] }
  0xc9   : > { %1263 = vmatmul.mubr.bf16.gmra.mrb[36].mxu0 %v2949_v63  ;;  %2785 = vmatmul.mubr.bf16.gmra.mrb[36].mxu1 %v2950_v0 }
  0xca   : > { %1270 = vmatprep.mubr.bf16.mxu0 %v2951_v1  ;;  %2788 = vmatprep.mubr.bf16.mxu1 %v2953_v2 }
  0xd1   : > { %1271 = vmatmul.mubr.bf16.gmra.mrb[40].mxu0 %v2954_v3  ;;  %2789 = vmatmul.mubr.bf16.gmra.mrb[40].mxu1 %v2955_v4  ;;  %v617_v3 = vld [vmem:[#allocation2 + $0x18] sm:$0xff] }
  0xd2   : > { %1278 = vmatprep.mubr.bf16.mxu0 %v2956_v5  ;;  %2792 = vmatprep.mubr.bf16.mxu1 %v2958_v6 }
  0xd9   : > { %1279 = vmatmul.mubr.bf16.gmra.mrb[44].mxu0 %v2959_v7  ;;  %2793 = vmatmul.mubr.bf16.gmra.mrb[44].mxu1 %v2960_v8  ;;  %v615_v8 = vld [vmem:[#allocation2 + $0x8] sm:$0xff] }
 0x154   : > { %v2628_v9 = vpop.f32.mrb[0].mxu0  ;;  %v2700_v10 = vpop.f32.mrb[0].mxu1 }
 0x155   : > { %v2629_v11 = vpop.f32.mrb[1].mxu0  ;;  %v2701_v12 = vpop.f32.mrb[1].mxu1 }
 0x156   : > { %v2630_v13 = vadd.f32 %v2629_v11, %v2628_v9  ;;  %v3351_v14 = vadd.f32 %v2701_v12, %v2700_v10  ;;  %v2631_v15 = vpop.f32.mrb[2].mxu0  ;;  %v2703_v16 = vpop.f32.mrb[2].mxu1 }
 0x157   : > { %v2632_v17 = vpop.f32.mrb[3].mxu0  ;;  %v2704_v18 = vpop.f32.mrb[3].mxu1 }
 0x158   : > { %v2633_v19 = vadd.f32 %v2632_v17, %v2631_v15  ;;  %v3353_v20 = vadd.f32 %v2704_v18, %v2703_v16  ;;  %v620_v18 = vld [vmem:[#allocation2 + $0x30] sm:$0xff] }
 0x15c   : > { %v2634_v21 = vpop.f32.mrb[4].mxu0  ;;  %v2706_v22 = vpop.f32.mrb[4].mxu1 }
 0x15d   : > { %v2635_v23 = vpop.f32.mrb[5].mxu0  ;;  %v2707_v24 = vpop.f32.mrb[5].mxu1 }
 0x15e   : > { %v2636_v25 = vadd.f32 %v2635_v23, %v2634_v21  ;;  %v3355_v26 = vadd.f32 %v2707_v24, %v2706_v22  ;;  %v2637_v27 = vpop.f32.mrb[6].mxu0  ;;  %v2709_v28 = vpop.f32.mrb[6].mxu1  ;;  %v618_v23 = vld [vmem:[#allocation2 + $0x20] sm:$0xff] }
 0x15f   : > { %v2638_v29 = vpop.f32.mrb[7].mxu0  ;;  %v2710_v30 = vpop.f32.mrb[7].mxu1 }
 0x160   : > { %v2639_v31 = vadd.f32 %v2638_v29, %v2637_v27  ;;  %v3357_v32 = vadd.f32 %v2710_v30, %v2709_v28  ;;  %v621_v29 = vld [vmem:[#allocation2 + $0x38] sm:$0xff] }
 0x164   : > { %v2640_v33 = vpop.f32.mrb[8].mxu0  ;;  %v2712_v34 = vpop.f32.mrb[8].mxu1 }
 0x165   : > { %v2641_v35 = vpop.f32.mrb[9].mxu0  ;;  %v2713_v36 = vpop.f32.mrb[9].mxu1 }
 0x166   : > { %v2642_v37 = vadd.f32 %v2641_v35, %v2640_v33  ;;  %v3359_v38 = vadd.f32 %v2713_v36, %v2712_v34  ;;  %v2643_v39 = vpop.f32.mrb[10].mxu0  ;;  %v2715_v40 = vpop.f32.mrb[10].mxu1  ;;  %v619_v34 = vld [vmem:[#allocation2 + $0x28] sm:$0xff] }
 0x167   : > { %v2644_v41 = vpop.f32.mrb[11].mxu0  ;;  %v2716_v42 = vpop.f32.mrb[11].mxu1 }
 0x168   : > { %v2645_v43 = vadd.f32 %v2644_v41, %v2643_v39  ;;  %v3361_v44 = vadd.f32 %v2716_v42, %v2715_v40 }
 0x16c   : > { %v2646_v45 = vpop.f32.mrb[12].mxu0  ;;  %v2718_v46 = vpop.f32.mrb[12].mxu1 }
 0x16d   : > { %v2647_v47 = vpop.f32.mrb[13].mxu0  ;;  %v2719_v48 = vpop.f32.mrb[13].mxu1 }
 0x16e   : > { %v2648_v49 = vadd.f32 %v2647_v47, %v2646_v45  ;;  %v3363_v50 = vadd.f32 %v2719_v48, %v2718_v46  ;;  %v2649_v51 = vpop.f32.mrb[14].mxu0  ;;  %v2721_v52 = vpop.f32.mrb[14].mxu1  ;;  %v624_v46 = vld [vmem:[#allocation2 + $0x50] sm:$0xff] }
 0x16f   : > { %v2650_v53 = vpop.f32.mrb[15].mxu0  ;;  %v2722_v54 = vpop.f32.mrb[15].mxu1 }
 0x170   : > { %v2651_v55 = vadd.f32 %v2650_v53, %v2649_v51  ;;  %v3365_v56 = vadd.f32 %v2722_v54, %v2721_v52 }
 0x174   : > { %v2652_v57 = vpop.f32.mrb[16].mxu0  ;;  %v2766_v59 = vpop.f32.mrb[16].mxu1 }
 0x175   : > { %v1362_v60 = vadd.f32 %v2766_v59, %v2636_v25  ;;  %v2653_v61 = vpop.f32.mrb[17].mxu0  ;;  %v1353_v63 = vpop.f32.mrb[17].mxu1 }
 0x176   : > { %v2654_v0 = vadd.f32 %v2653_v61, %v2652_v57  ;;  %v1354_v1 = vadd.f32 %v2630_v13, %v1353_v63  ;;  %v2655_v2 = vpop.f32.mrb[18].mxu0  ;;  %v2767_v4 = vpop.f32.mrb[18].mxu1 }
 0x177   : > { %v1482_v5 = vadd.f32 %v1362_v60, %v616_v58  ;;  %v1365_v6 = vadd.f32 %v2767_v4, %v2639_v31  ;;  %v2656_v7 = vpop.f32.mrb[19].mxu0  ;;  %v1356_v9 = vpop.f32.mrb[19].mxu1  ;;  %v623_v60 = vld [vmem:[#allocation2 + $0x48] sm:$0xff] }
 0x178   : > { %v1480_v10 = vadd.f32 %v1354_v1, %v614_v62  ;;  %v2657_v11 = vadd.f32 %v2656_v7, %v2655_v2  ;;  %v1357_v12 = vadd.f32 %v2633_v19, %v1356_v9 }
 0x179   : > { %1514 = vst [vmem:[#allocation2 + $0x10] sm:$0xff] %v1482_v5  ;;  %v1483_v15 = vadd.f32 %v1365_v6, %v617_v3  ;;  %v626_v6 = vld [vmem:[#allocation2 + $0x60] sm:$0xff] }
 0x17a   : > { %1512 = vst [vmem:[#allocation2] sm:$0xff] %v1480_v10  ;;  %v1481_v16 = vadd.f32 %v1357_v12, %v615_v8 }
 0x17b   : > { %1515 = vst [vmem:[#allocation2 + $0x18] sm:$0xff] %v1483_v15  ;;  %v628_v15 = vld [vmem:[#allocation2 + $0x70] sm:$0xff] }
 0x17c   : > { %1513 = vst [vmem:[#allocation2 + $0x8] sm:$0xff] %v1481_v16  ;;  %v2658_v17 = vpop.f32.mrb[20].mxu0  ;;  %v2770_v13 = vpop.f32.mrb[20].mxu1 }
 0x17d   : > { %v1378_v21 = vadd.f32 %v2770_v13, %v2648_v49  ;;  %v2659_v22 = vpop.f32.mrb[21].mxu0  ;;  %v1369_v24 = vpop.f32.mrb[21].mxu1  ;;  %v622_v49 = vld [vmem:[#allocation2 + $0x40] sm:$0xff] }
 0x17e   : > { %v2660_v25 = vadd.f32 %v2659_v22, %v2658_v17  ;;  %v1370_v27 = vadd.f32 %v2642_v37, %v1369_v24  ;;  %v2661_v28 = vpop.f32.mrb[22].mxu0  ;;  %v2771_v30 = vpop.f32.mrb[22].mxu1  ;;  %v627_v17 = vld [vmem:[#allocation2 + $0x68] sm:$0xff] }
 0x17f   : > { %v1486_v31 = vadd.f32 %v1378_v21, %v620_v18  ;;  %v1381_v19 = vadd.f32 %v2771_v30, %v2651_v55  ;;  %v2662_v33 = vpop.f32.mrb[23].mxu0  ;;  %v1372_v35 = vpop.f32.mrb[23].mxu1  ;;  %v625_v55 = vld [vmem:[#allocation2 + $0x58] sm:$0xff] }
 0x180   : > { %v1484_v36 = vadd.f32 %v1370_v27, %v618_v23  ;;  %v2663_v39 = vadd.f32 %v2662_v33, %v2661_v28  ;;  %v1373_v40 = vadd.f32 %v2645_v43, %v1372_v35  ;;  %v629_v23 = vld [vmem:[#allocation2 + $0x78] sm:$0xff] }
 0x181   : > { %1518 = vst [vmem:[#allocation2 + $0x30] sm:$0xff] %v1486_v31  ;;  %v1487_v41 = vadd.f32 %v1381_v19, %v621_v29 }
 0x182   : > { %1516 = vst [vmem:[#allocation2 + $0x20] sm:$0xff] %v1484_v36  ;;  %v1485_v42 = vadd.f32 %v1373_v40, %v619_v34  ;;  %v630_v36 = vld [vmem:[#allocation2 + $0x80] sm:$0xff] }
 0x183   : > { %1519 = vst [vmem:[#allocation2 + $0x38] sm:$0xff] %v1487_v41 }
 0x184   : > { %1517 = vst [vmem:[#allocation2 + $0x28] sm:$0xff] %v1485_v42  ;;  %v2664_v45 = vpop.f32.mrb[24].mxu0  ;;  %v2774_v37 = vpop.f32.mrb[24].mxu1 }
 0x185   : > { %v1394_v47 = vadd.f32 %v2774_v37, %v2660_v25  ;;  %v2665_v48 = vpop.f32.mrb[25].mxu0  ;;  %v1385_v51 = vpop.f32.mrb[25].mxu1 }
 0x186   : > { %v2666_v52 = vadd.f32 %v2665_v48, %v2664_v45  ;;  %v1386_v53 = vadd.f32 %v2654_v0, %v1385_v51  ;;  %v2667_v54 = vpop.f32.mrb[26].mxu0  ;;  %v2775_v57 = vpop.f32.mrb[26].mxu1  ;;  %v631_v45 = vld [vmem:[#allocation2 + $0x88] sm:$0xff] }
 0x187   : > { %v1490_v58 = vadd.f32 %v1394_v47, %v624_v46  ;;  %v1397_v43 = vadd.f32 %v2775_v57, %v2663_v39  ;;  %v2668_v59 = vpop.f32.mrb[27].mxu0  ;;  %v1388_v61 = vpop.f32.mrb[27].mxu1  ;;  %v632_v57 = vld [vmem:[#allocation2 + $0x90] sm:$0xff] }
 0x188   : > { %v1488_v62 = vadd.f32 %v1386_v53, %v622_v49  ;;  %v2669_v63 = vadd.f32 %v2668_v59, %v2667_v54  ;;  %v1389_v1 = vadd.f32 %v2657_v11, %v1388_v61  ;;  %v633_v61 = vld [vmem:[#allocation2 + $0x98] sm:$0xff] }
 0x189   : > { %1522 = vst [vmem:[#allocation2 + $0x50] sm:$0xff] %v1490_v58  ;;  %v1491_v2 = vadd.f32 %v1397_v43, %v625_v55 }
 0x18a   : > { %1520 = vst [vmem:[#allocation2 + $0x40] sm:$0xff] %v1488_v62  ;;  %v1489_v3 = vadd.f32 %v1389_v1, %v623_v60 }
 0x18b   : > { %1523 = vst [vmem:[#allocation2 + $0x58] sm:$0xff] %v1491_v2 }
 0x18c   : > { %1521 = vst [vmem:[#allocation2 + $0x48] sm:$0xff] %v1489_v3  ;;  %v2670_v4 = vpop.f32.mrb[28].mxu0  ;;  %v2778_v5 = vpop.f32.mrb[28].mxu1  ;;  %v640_v3 = vld [vmem:[#allocation2 + $0xd0] sm:$0xff] }
 0x18d   : > { %v2671_v0 = vpop.f32.mrb[29].mxu0  ;;  %v1401_v7 = vpop.f32.mrb[29].mxu1 }
 0x18e   : > { %v2672_v8 = vadd.f32 %v2671_v0, %v2670_v4  ;;  %v1402_v9 = vadd.f32 %v2666_v52, %v1401_v7  ;;  %v2673_v10 = vpop.f32.mrb[30].mxu0  ;;  %v2779_v12 = vpop.f32.mrb[30].mxu1 }
 0x18f   : > { %v2674_v16 = vpop.f32.mrb[31].mxu0  ;;  %v1404_v18 = vpop.f32.mrb[31].mxu1 }
 0x190   : > { %v1410_v11 = vadd.f32 %v2778_v5, %v2672_v8  ;;  %v1492_v13 = vadd.f32 %v1402_v9, %v626_v6  ;;  %v2675_v21 = vadd.f32 %v2674_v16, %v2673_v10  ;;  %v1405_v22 = vadd.f32 %v2669_v63, %v1404_v18  ;;  %v638_v6 = vld [vmem:[#allocation2 + $0xc0] sm:$0xff] }
 0x192   : > { %v1494_v24 = vadd.f32 %v1410_v11, %v628_v15  ;;  %1524 = vst [vmem:[#allocation2 + $0x60] sm:$0xff] %v1492_v13  ;;  %v1413_v25 = vadd.f32 %v2779_v12, %v2675_v21  ;;  %v1493_v27 = vadd.f32 %v1405_v22, %v627_v17  ;;  %v641_v12 = vld [vmem:[#allocation2 + $0xd8] sm:$0xff]  ;;  %v634_v17 = vld [vmem:[#allocation2 + $0xa0] sm:$0xff]  ;;  %v639_v13 = vld [vmem:[#allocation2 + $0xc8] sm:$0xff] }
 0x194   : > { %1526 = vst [vmem:[#allocation2 + $0x70] sm:$0xff] %v1494_v24  ;;  %v1495_v28 = vadd.f32 %v1413_v25, %v629_v23  ;;  %1525 = vst [vmem:[#allocation2 + $0x68] sm:$0xff] %v1493_v27  ;;  %v2676_v29 = vpop.f32.mrb[32].mxu0  ;;  %v2782_v30 = vpop.f32.mrb[32].mxu1  ;;  %v635_v27 = vld [vmem:[#allocation2 + $0xa8] sm:$0xff] }
 0x195   : > { %v2677_v31 = vpop.f32.mrb[33].mxu0  ;;  %v1417_v19 = vpop.f32.mrb[33].mxu1 }
 0x196   : > { %1527 = vst [vmem:[#allocation2 + $0x78] sm:$0xff] %v1495_v28  ;;  %v2678_v33 = vadd.f32 %v2677_v31, %v2676_v29  ;;  %v2679_v34 = vpop.f32.mrb[34].mxu0  ;;  %v2783_v35 = vpop.f32.mrb[34].mxu1  ;;  %v644_v31 = vld [vmem:[#allocation2 + $0xf0] sm:$0xff] }
 0x197   : > { %v2680_v39 = vpop.f32.mrb[35].mxu0  ;;  %v1420_v40 = vpop.f32.mrb[35].mxu1 }
 0x198   : > { %v1418_v41 = vadd.f32 %v2678_v33, %v1417_v19  ;;  %v2681_v42 = vadd.f32 %v2680_v39, %v2679_v34 }
 0x19a   : > { %v1496_v46 = vadd.f32 %v1418_v41, %v630_v36  ;;  %v1421_v37 = vadd.f32 %v2681_v42, %v1420_v40  ;;  %v645_v41 = vld [vmem:[#allocation2 + $0xf8] sm:$0xff] }
 0x19c   : > { %1528 = vst [vmem:[#allocation2 + $0x80] sm:$0xff] %v1496_v46  ;;  %v1497_v47 = vadd.f32 %v1421_v37, %v631_v45  ;;  %v2682_v48 = vpop.f32.mrb[36].mxu0  ;;  %v3367_v49 = vpop.f32.mrb[36].mxu1  ;;  %v636_v46 = vld [vmem:[#allocation2 + $0xb0] sm:$0xff] }
 0x19d   : > { %v2683_v51 = vpop.f32.mrb[37].mxu0  ;;  %v1433_v52 = vpop.f32.mrb[37].mxu1 }
 0x19e   : > { %1529 = vst [vmem:[#allocation2 + $0x88] sm:$0xff] %v1497_v47  ;;  %v2684_v53 = vadd.f32 %v2683_v51, %v2682_v48  ;;  %v2685_v54 = vpop.f32.mrb[38].mxu0  ;;  %v3369_v55 = vpop.f32.mrb[38].mxu1  ;;  %v643_v48 = vld [vmem:[#allocation2 + $0xe8] sm:$0xff] }
 0x19f   : > { %v2686_v58 = vpop.f32.mrb[39].mxu0  ;;  %v1436_v43 = vpop.f32.mrb[39].mxu1 }
 0x1a0   : > { %v1426_v59 = vadd.f32 %v2782_v30, %v2684_v53  ;;  %v2687_v60 = vadd.f32 %v2686_v58, %v2685_v54  ;;  %v637_v58 = vld [vmem:[#allocation2 + $0xb8] sm:$0xff] }
 0x1a2   : > { %v1498_v62 = vadd.f32 %v1426_v59, %v632_v57  ;;  %v1429_v63 = vadd.f32 %v2783_v35, %v2687_v60  ;;  %v642_v35 = vld [vmem:[#allocation2 + $0xe0] sm:$0xff] }
 0x1a4   : > { %1530 = vst [vmem:[#allocation2 + $0x90] sm:$0xff] %v1498_v62  ;;  %v1499_v1 = vadd.f32 %v1429_v63, %v633_v61  ;;  %v2688_v2 = vpop.f32.mrb[40].mxu0  ;;  %v2790_v4 = vpop.f32.mrb[40].mxu1 }
 0x1a5   : > { %v1458_v5 = vadd.f32 %v2790_v4, %v3355_v26  ;;  %v2689_v0 = vpop.f32.mrb[41].mxu0  ;;  %v1449_v7 = vpop.f32.mrb[41].mxu1 }
 0x1a6   : > { %1531 = vst [vmem:[#allocation2 + $0x98] sm:$0xff] %v1499_v1  ;;  %v2690_v8 = vadd.f32 %v2689_v0, %v2688_v2  ;;  %v1450_v9 = vadd.f32 %v3351_v14, %v1449_v7  ;;  %v2691_v10 = vpop.f32.mrb[42].mxu0  ;;  %v2791_v15 = vpop.f32.mrb[42].mxu1 }
 0x1a7   : > { %v1506_v16 = vadd.f32 %v1458_v5, %v640_v3  ;;  %v1461_v18 = vadd.f32 %v2791_v15, %v3357_v32  ;;  %v2692_v11 = vpop.f32.mrb[43].mxu0  ;;  %v1452_v21 = vpop.f32.mrb[43].mxu1 }
 0x1a8   : > { %v1434_v22 = vadd.f32 %v2690_v8, %v1433_v52  ;;  %v1504_v23 = vadd.f32 %v1450_v9, %v638_v6  ;;  %v2693_v26 = vadd.f32 %v2692_v11, %v2691_v10  ;;  %v1453_v24 = vadd.f32 %v3353_v20, %v1452_v21 }
 0x1a9   : > { %1538 = vst [vmem:[#allocation2 + $0xd0] sm:$0xff] %v1506_v16  ;;  %v1507_v25 = vadd.f32 %v1461_v18, %v641_v12 }
 0x1aa   : > { %v1500_v28 = vadd.f32 %v1434_v22, %v634_v17  ;;  %1536 = vst [vmem:[#allocation2 + $0xc0] sm:$0xff] %v1504_v23  ;;  %v1437_v14 = vadd.f32 %v2693_v26, %v1436_v43  ;;  %v1505_v29 = vadd.f32 %v1453_v24, %v639_v13 }
 0x1ab   : > { %1539 = vst [vmem:[#allocation2 + $0xd8] sm:$0xff] %v1507_v25 }
 0x1ac   : > { %1532 = vst [vmem:[#allocation2 + $0xa0] sm:$0xff] %v1500_v28  ;;  %v1501_v30 = vadd.f32 %v1437_v14, %v635_v27  ;;  %1537 = vst [vmem:[#allocation2 + $0xc8] sm:$0xff] %v1505_v29  ;;  %v2694_v32 = vpop.f32.mrb[44].mxu0  ;;  %v2794_v19 = vpop.f32.mrb[44].mxu1 }
 0x1ad   : > { %v1474_v33 = vadd.f32 %v2794_v19, %v3363_v50  ;;  %v2695_v34 = vpop.f32.mrb[45].mxu0  ;;  %v1465_v36 = vpop.f32.mrb[45].mxu1 }
 0x1ae   : > { %1533 = vst [vmem:[#allocation2 + $0xa8] sm:$0xff] %v1501_v30  ;;  %v2696_v20 = vadd.f32 %v2695_v34, %v2694_v32  ;;  %v1466_v39 = vadd.f32 %v3359_v38, %v1465_v36  ;;  %v2697_v40 = vpop.f32.mrb[46].mxu0  ;;  %v2795_v42 = vpop.f32.mrb[46].mxu1 }
 0x1af   : > { %v1510_v45 = vadd.f32 %v1474_v33, %v644_v31  ;;  %v1477_v37 = vadd.f32 %v2795_v42, %v3365_v56  ;;  %v2698_v47 = vpop.f32.mrb[47].mxu0  ;;  %v1468_v51 = vpop.f32.mrb[47].mxu1 }
 0x1b0   : > { %v1442_v52 = vadd.f32 %v3367_v49, %v2696_v20  ;;  %v1508_v50 = vadd.f32 %v1466_v39, %v642_v35  ;;  %v2699_v53 = vadd.f32 %v2698_v47, %v2697_v40  ;;  %v1469_v54 = vadd.f32 %v3361_v44, %v1468_v51  ;;  %1547 = sbr.rel (%p2449_p13) target bundleno = 506 (0x1fa), region = 74 }
 0x1b1   : > { %1542 = vst [vmem:[#allocation2 + $0xf0] sm:$0xff] %v1510_v45  ;;  %v1511_v57 = vadd.f32 %v1477_v37, %v645_v41 }
 0x1b2   : > { %v1502_v38 = vadd.f32 %v1442_v52, %v636_v46  ;;  %1540 = vst [vmem:[#allocation2 + $0xe0] sm:$0xff] %v1508_v50  ;;  %v1445_v43 = vadd.f32 %v3369_v55, %v2699_v53  ;;  %v1509_v59 = vadd.f32 %v1469_v54, %v643_v48 }
 0x1b3   : > { %1543 = vst [vmem:[#allocation2 + $0xf8] sm:$0xff] %v1511_v57 }
 0x1b4   : > { %1534 = vst [vmem:[#allocation2 + $0xb0] sm:$0xff] %v1502_v38  ;;  %v1503_v56 = vadd.f32 %v1445_v43, %v637_v58  ;;  %1541 = vst [vmem:[#allocation2 + $0xe8] sm:$0xff] %v1509_v59 }
 0x1b6   : > { %1535 = vst [vmem:[#allocation2 + $0xb8] sm:$0xff] %v1503_v56 }
 0x1b7   : > { %v1548_v49 = vld [vmem:[#allocation2] sm:$0xff]  ;;  %v1549_v44 = vld [vmem:[#allocation2 + $0x8] sm:$0xff]  ;;  %v1550_v3 = vld [vmem:[#allocation2 + $0x10] sm:$0xff]  ;;  %v3858_v29 = vmov 0.0  }
 0x1b8   : > { %v3385_v55 = vld [vmem:[%s3842_s2] ss:$0 sm:$0xff]  ;;  %v1620_v63 = vld [vmem:[%s3259_s18 + $0x8] sm:$0xff]  ;;  %v1551_v4 = vld [vmem:[#allocation2 + $0x18] sm:$0xff] }
 0x1b9   : > { %v1587_v60 = vadd.f32 %v3385_v55, %v1548_v49  ;;  %v1588_v61 = vadd.f32 %v3385_v55, %v1549_v44  ;;  %v1619_v62 = vld [vmem:[%s3259_s18] sm:$0xff]  ;;  %v1684_v2 = vld [vmem:[%s3264_s24 + $0x8] sm:$0xff]  ;;  %v1589_v6 = vadd.f32 %v3385_v55, %v1550_v3  ;;  %v1590_v7 = vadd.f32 %v3385_v55, %v1551_v4  ;;  %v1621_v8 = vld [vmem:[%s3259_s18 + $0x10] sm:$0xff] }
 0x1ba   : > { %v1683_v1 = vld [vmem:[%s3264_s24] sm:$0xff]  ;;  %v1622_v9 = vld [vmem:[%s3259_s18 + $0x18] sm:$0xff]  ;;  %v1685_v10 = vld [vmem:[%s3264_s24 + $0x10] sm:$0xff] }
 0x1bb   : > { %v1651_v5 = vadd.f32 %v1619_v62, %v1587_v60  ;;  %v1652_v0 = vadd.f32 %v1620_v63, %v1588_v61  ;;  %v1686_v12 = vld [vmem:[%s3264_s24 + $0x18] sm:$0xff]  ;;  %v1552_v15 = vld [vmem:[#allocation2 + $0x20] sm:$0xff]  ;;  %v1553_v16 = vld [vmem:[#allocation2 + $0x28] sm:$0xff]  ;;  %v1653_v11 = vadd.f32 %v1621_v8, %v1589_v6  ;;  %v1654_v13 = vadd.f32 %v1622_v9, %v1590_v7 }
 0x1bc   : > { %v1623_v21 = vld [vmem:[%s3259_s18 + $0x20] sm:$0xff]  ;;  %v1624_v22 = vld [vmem:[%s3259_s18 + $0x28] sm:$0xff]  ;;  %v1591_v23 = vadd.f32 %v3385_v55, %v1552_v15  ;;  %v1592_v26 = vadd.f32 %v3385_v55, %v1553_v16  ;;  %v1554_v24 = vld [vmem:[#allocation2 + $0x30] sm:$0xff] }
 0x1bd   : > { %v3399_v17 = vadd.f32 %v1683_v1, %v1651_v5  ;;  %v3401_v18 = vadd.f32 %v1684_v2, %v1652_v0  ;;  %v3409_v25 = vadd.f32 %v1685_v10, %v1653_v11  ;;  %v3411_v27 = vadd.f32 %v1686_v12, %v1654_v13  ;;  %v1687_v28 = vld [vmem:[%s3264_s24 + $0x20] sm:$0xff]  ;;  %v1688_v14 = vld [vmem:[%s3264_s24 + $0x28] sm:$0xff]  ;;  %v1555_v33 = vld [vmem:[#allocation2 + $0x38] sm:$0xff] }
 0x1be   : > { %v1655_v31 = vadd.f32 %v1623_v21, %v1591_v23  ;;  %v1656_v19 = vadd.f32 %v1624_v22, %v1592_v26  ;;  %v1625_v34 = vld [vmem:[%s3259_s18 + $0x30] sm:$0xff]  ;;  %v1556_v35 = vld [vmem:[#allocation2 + $0x40] sm:$0xff]  ;;  %v1593_v20 = vadd.f32 %v3385_v55, %v1554_v24  ;;  %v1557_v39 = vld [vmem:[#allocation2 + $0x48] sm:$0xff]  ;;  %v1594_v51 = vadd.f32 %v3385_v55, %v1555_v33 }
 0x1bf   : > { %vm1747_vm0 = vcmp.ge.f32.partialorder %v3399_v17, 1.0  ;;  %vm1748_vm1 = vcmp.ge.f32.partialorder %v3401_v18, 1.0  ;;  %vm1749_vm2 = vcmp.ge.f32.partialorder %v3409_v25, 1.0  ;;  %vm1750_vm3 = vcmp.ge.f32.partialorder %v3411_v27, 1.0  ;;  %v1626_v46 = vld [vmem:[%s3259_s18 + $0x38] sm:$0xff]  ;;  %v1689_v37 = vld [vmem:[%s3264_s24 + $0x30] sm:$0xff] }
 0x1c0   : > { %v3416_v30 = vsel %vm1747_vm0, 1.0, %v3858_v29  ;;  %v3419_v32 = vsel %vm1748_vm1, 1.0, %v3858_v29  ;;  %v3428_v40 = vsel %vm1749_vm2, 1.0, %v3858_v29  ;;  %v3431_v41 = vsel %vm1750_vm3, 1.0, %v3858_v29  ;;  %v1558_v47 = vld [vmem:[#allocation2 + $0x50] sm:$0xff]  ;;  %v1627_v53 = vld [vmem:[%s3259_s18 + $0x40] sm:$0xff] }
 0x1c1   : > { %v2550_v36 = vpack.c.bf16 %v3419_v32, %v3416_v30  ;;  %v3433_v42 = vadd.f32 %v1687_v28, %v1655_v31  ;;  %v3435_v45 = vadd.f32 %v1688_v14, %v1656_v19  ;;  %v2553_v48 = vpack.c.bf16 %v3431_v41, %v3428_v40  ;;  %v1628_v54 = vld [vmem:[%s3259_s18 + $0x48] sm:$0xff]  ;;  %v1559_v57 = vld [vmem:[#allocation2 + $0x58] sm:$0xff]  ;;  %v1629_v59 = vld [vmem:[%s3259_s18 + $0x50] sm:$0xff] }
 0x1c2   : > { %v1657_v52 = vadd.f32 %v1625_v34, %v1593_v20  ;;  %v1595_v50 = vadd.f32 %v3385_v55, %v1556_v35  ;;  %v1690_v58 = vld [vmem:[%s3264_s24 + $0x38] sm:$0xff]  ;;  %v1596_v38 = vadd.f32 %v3385_v55, %v1557_v39  ;;  %v1597_v43 = vadd.f32 %v3385_v55, %v1558_v47  ;;  %v1560_v56 = vld [vmem:[#allocation2 + $0x60] sm:$0xff]  ;;  %v1692_v63 = vld [vmem:[%s3264_s24 + $0x48] sm:$0xff] }
 0x1c3   : > { %2551 = vst [vmem:[%s3274_s13] sm:$0xff] %v2550_v36   ;;  %vm1751_vm4 = vcmp.ge.f32.partialorder %v3433_v42, 1.0  ;;  %vm1752_vm5 = vcmp.ge.f32.partialorder %v3435_v45, 1.0  ;;  %2597 = vst [vmem:[%s3274_s13 + $0x8] sm:$0xff] %v2553_v48   ;;  %v1658_v60 = vadd.f32 %v1626_v46, %v1594_v51  ;;  %v1691_v62 = vld [vmem:[%s3264_s24 + $0x40] sm:$0xff]  ;;  %v1630_v1 = vld [vmem:[%s3259_s18 + $0x58] sm:$0xff]  ;;  %v1598_v5 = vadd.f32 %v3385_v55, %v1559_v57 }
 0x1c4   : > { %v3454_v49 = vsel %vm1751_vm4, 1.0, %v3858_v29  ;;  %v3457_v44 = vsel %vm1752_vm5, 1.0, %v3858_v29  ;;  %v3459_v61 = vadd.f32 %v1689_v37, %v1657_v52  ;;  %v1659_v3 = vadd.f32 %v1627_v53, %v1595_v50  ;;  %v1693_v0 = vld [vmem:[%s3264_s24 + $0x50] sm:$0xff]  ;;  %v1561_v6 = vld [vmem:[#allocation2 + $0x68] sm:$0xff]  ;;  %v1631_v7 = vld [vmem:[%s3259_s18 + $0x60] sm:$0xff] }
 0x1c5   : > { %v2556_v2 = vpack.c.bf16 %v3457_v44, %v3454_v49  ;;  %v1660_v4 = vadd.f32 %v1628_v54, %v1596_v38  ;;  %v3469_v8 = vadd.f32 %v1690_v58, %v1658_v60  ;;  %v1661_v9 = vadd.f32 %v1629_v59, %v1597_v43  ;;  %v1694_v10 = vld [vmem:[%s3264_s24 + $0x58] sm:$0xff]  ;;  %v1632_v23 = vld [vmem:[%s3259_s18 + $0x68] sm:$0xff]  ;;  %v1695_v14 = vld [vmem:[%s3264_s24 + $0x60] sm:$0xff] }
 0x1c6   : > { %vm1753_vm6 = vcmp.ge.f32.partialorder %v3459_v61, 1.0  ;;  %v1599_v12 = vadd.f32 %v3385_v55, %v1560_v56  ;;  %v3478_v16 = vadd.f32 %v1691_v62, %v1659_v3  ;;  %v1662_v13 = vadd.f32 %v1630_v1, %v1598_v5  ;;  %v1562_v31 = vld [vmem:[#allocation2 + $0x70] sm:$0xff]  ;;  %v1563_v19 = vld [vmem:[#allocation2 + $0x78] sm:$0xff]  ;;  %v1696_v36 = vld [vmem:[%s3264_s24 + $0x68] sm:$0xff] }
 0x1c7   : > { %2598 = vst [vmem:[%s3274_s13 + $0x10] sm:$0xff] %v2556_v2   ;;  %v3476_v15 = vsel %vm1753_vm6, 1.0, %v3858_v29  ;;  %v3480_v11 = vadd.f32 %v1692_v63, %v1660_v4  ;;  %vm1754_vm7 = vcmp.ge.f32.partialorder %v3469_v8, 1.0  ;;  %v3483_v21 = vadd.f32 %v1693_v0, %v1661_v9  ;;  %v1564_v20 = vld [vmem:[#allocation2 + $0x80] sm:$0xff]  ;;  %v1565_v39 = vld [vmem:[#allocation2 + $0x88] sm:$0xff]  ;;  %v1633_v48 = vld [vmem:[%s3259_s18 + $0x70] sm:$0xff] }
 0x1c8   : > { %v1600_v22 = vadd.f32 %v3385_v55, %v1561_v6  ;;  %v1663_v26 = vadd.f32 %v1631_v7, %v1599_v12  ;;  %v3488_v24 = vsel %vm1754_vm7, 1.0, %v3858_v29  ;;  %vm1755_vm8 = vcmp.ge.f32.partialorder %v3478_v16, 1.0  ;;  %v1634_v51 = vld [vmem:[%s3259_s18 + $0x78] sm:$0xff]  ;;  %v1566_v52 = vld [vmem:[#allocation2 + $0x90] sm:$0xff]  ;;  %v1635_v58 = vld [vmem:[%s3259_s18 + $0x80] sm:$0xff] }
 0x1c9   : > { %vm1756_vm9 = vcmp.ge.f32.partialorder %v3480_v11, 1.0  ;;  %v3492_v28 = vadd.f32 %v1694_v10, %v1662_v13  ;;  %v2559_v33 = vpack.c.bf16 %v3488_v24, %v3476_v15  ;;  %v3498_v34 = vsel %vm1755_vm8, 1.0, %v3858_v29  ;;  %v1636_v38 = vld [vmem:[%s3259_s18 + $0x88] sm:$0xff]  ;;  %v1697_v56 = vld [vmem:[%s3264_s24 + $0x70] sm:$0xff]  ;;  %v1698_v60 = vld [vmem:[%s3264_s24 + $0x78] sm:$0xff] }
 0x1ca   : > { %v3501_v35 = vsel %vm1756_vm9, 1.0, %v3858_v29  ;;  %vm1757_vm10 = vcmp.ge.f32.partialorder %v3483_v21, 1.0  ;;  %v1664_v47 = vadd.f32 %v1632_v23, %v1600_v22  ;;  %v3517_v53 = vadd.f32 %v1695_v14, %v1663_v26  ;;  %v1567_v1 = vld [vmem:[#allocation2 + $0x98] sm:$0xff]  ;;  %v1699_v4 = vld [vmem:[%s3264_s24 + $0x80] sm:$0xff]  ;;  %v1700_v5 = vld [vmem:[%s3264_s24 + $0x88] sm:$0xff] }
 0x1cb   : > { %v2562_v46 = vpack.c.bf16 %v3501_v35, %v3498_v34  ;;  %vm1758_vm11 = vcmp.ge.f32.partialorder %v3492_v28, 1.0  ;;  %v3509_v37 = vsel %vm1757_vm10, 1.0, %v3858_v29  ;;  %2599 = vst [vmem:[%s3274_s13 + $0x18] sm:$0xff] %v2559_v33   ;;  %v1601_v54 = vadd.f32 %v3385_v55, %v1562_v31  ;;  %v1637_v6 = vld [vmem:[%s3259_s18 + $0x90] sm:$0xff]  ;;  %v1638_v12 = vld [vmem:[%s3259_s18 + $0x98] sm:$0xff]  ;;  %v1568_v13 = vld [vmem:[#allocation2 + $0xa0] sm:$0xff] }
 0x1cc   : > { %v3515_v50 = vsel %vm1758_vm11, 1.0, %v3858_v29  ;;  %v1602_v57 = vadd.f32 %v3385_v55, %v1563_v19  ;;  %v3526_v59 = vadd.f32 %v1696_v36, %v1664_v47  ;;  %v1603_v62 = vadd.f32 %v3385_v55, %v1564_v20  ;;  %v1701_v20 = vld [vmem:[%s3264_s24 + $0x90] sm:$0xff]  ;;  %v1569_v47 = vld [vmem:[#allocation2 + $0xa8] sm:$0xff] }
 0x1cd   : > { %2600 = vst [vmem:[%s3274_s13 + $0x20] sm:$0xff] %v2562_v46   ;;  %v2565_v43 = vpack.c.bf16 %v3515_v50, %v3509_v37  ;;  %v1604_v63 = vadd.f32 %v3385_v55, %v1565_v39  ;;  %vm1759_vm12 = vcmp.ge.f32.partialorder %v3517_v53, 1.0  ;;  %v1665_v2 = vadd.f32 %v1633_v48, %v1601_v54  ;;  %v1702_v39 = vld [vmem:[%s3264_s24 + $0x98] sm:$0xff] }
 0x1ce   : > { %v1666_v3 = vadd.f32 %v1634_v51, %v1602_v57  ;;  %v1605_v0 = vadd.f32 %v3385_v55, %v1566_v52  ;;  %vm1760_vm13 = vcmp.ge.f32.partialorder %v3526_v59, 1.0  ;;  %v3540_v7 = vsel %vm1759_vm12, 1.0, %v3858_v29  ;;  %v1639_v51 = vld [vmem:[%s3259_s18 + $0xa0] sm:$0xff]  ;;  %v1570_v52 = vld [vmem:[#allocation2 + $0xb0] sm:$0xff] }
 0x1cf   : > { %2601 = vst [vmem:[%s3274_s13 + $0x28] sm:$0xff] %v2565_v43   ;;  %v1667_v9 = vadd.f32 %v1635_v58, %v1603_v62  ;;  %v1668_v10 = vadd.f32 %v1636_v38, %v1604_v63  ;;  %v3544_v22 = vsel %vm1760_vm13, 1.0, %v3858_v29  ;;  %v3546_v23 = vadd.f32 %v1697_v56, %v1665_v2  ;;  %v1571_v58 = vld [vmem:[#allocation2 + $0xb8] sm:$0xff]  ;;  %v1572_v38 = vld [vmem:[#allocation2 + $0xc0] sm:$0xff]  ;;  %v1640_v63 = vld [vmem:[%s3259_s18 + $0xa8] sm:$0xff] }
 0x1d0   : > { %v3548_v26 = vadd.f32 %v1698_v60, %v1666_v3  ;;  %v1606_v14 = vadd.f32 %v3385_v55, %v1567_v1  ;;  %v2568_v31 = vpack.c.bf16 %v3544_v22, %v3540_v7  ;;  %v1669_v36 = vadd.f32 %v1637_v6, %v1605_v0  ;;  %v1703_v1 = vld [vmem:[%s3264_s24 + $0xa0] sm:$0xff]  ;;  %v1641_v0 = vld [vmem:[%s3259_s18 + $0xb0] sm:$0xff]  ;;  %v1642_v6 = vld [vmem:[%s3259_s18 + $0xb8] sm:$0xff] }
 0x1d1   : > { %v3553_v19 = vadd.f32 %v1699_v4, %v1667_v9  ;;  %v3555_v33 = vadd.f32 %v1700_v5, %v1668_v10  ;;  %vm1761_vm14 = vcmp.ge.f32.partialorder %v3546_v23, 1.0  ;;  %v1607_v48 = vadd.f32 %v3385_v55, %v1568_v13  ;;  %v1573_v9 = vld [vmem:[#allocation2 + $0xc8] sm:$0xff] }
 0x1d2   : > { %vm1762_vm15 = vcmp.ge.f32.partialorder %v3548_v26, 1.0  ;;  %v1670_v46 = vadd.f32 %v1638_v12, %v1606_v14  ;;  %2602 = vst [vmem:[%s3274_s13 + $0x30] sm:$0xff] %v2568_v31   ;;  %v3565_v54 = vsel %vm1761_vm14, 1.0, %v3858_v29  ;;  %v3580_v62 = vadd.f32 %v1701_v20, %v1669_v36  ;;  %v1704_v10 = vld [vmem:[%s3264_s24 + $0xa8] sm:$0xff]  ;;  %v1643_v31 = vld [vmem:[%s3259_s18 + $0xc0] sm:$0xff] }
 0x1d3   : > { %3867 = vst [vmem:[#allocation4_spill] sm:$0xff] %v3555_v33  ;;  %v3568_v57 = vsel %vm1762_vm15, 1.0, %v3858_v29  ;;  %vm1763_vm0 = vcmp.ge.f32.partialorder %v3553_v19, 1.0  ;;  %vm1764_vm1 = vcmp.ge.f32.partialorder %v3555_v33, 1.0  ;;  %v1608_v4 = vadd.f32 %v3385_v55, %v1569_v47  ;;  %v1706_v47 = vld [vmem:[%s3264_s24 + $0xb8] sm:$0xff] }
 0x1d4   : > { %v2571_v43 = vpack.c.bf16 %v3568_v57, %v3565_v54  ;;  %v3575_v56 = vsel %vm1763_vm0, 1.0, %v3858_v29  ;;  %v3578_v60 = vsel %vm1764_vm1, 1.0, %v3858_v29  ;;  %3868 = vst [vmem:[#allocation5_spill] sm:$0xff] %v3580_v62  ;;  %v3586_v3 = vadd.f32 %v1702_v39, %v1670_v46  ;;  %v1705_v46 = vld [vmem:[%s3264_s24 + $0xb0] sm:$0xff] }
 0x1d5   : > { %v2574_v2 = vpack.c.bf16 %v3578_v60, %v3575_v56  ;;  %v1671_v5 = vadd.f32 %v1639_v51, %v1607_v48  ;;  %vm1765_vm2 = vcmp.ge.f32.partialorder %v3580_v62, 1.0  ;;  %v1609_v12 = vadd.f32 %v3385_v55, %v1570_v52  ;;  %v1644_v48 = vld [vmem:[%s3259_s18 + $0xc8] sm:$0xff] }
 0x1d6   : > { %3869 = vst [vmem:[#allocation6_spill] sm:$0xff] %v3586_v3  ;;  %2603 = vst [vmem:[%s3274_s13 + $0x38] sm:$0xff] %v2571_v43   ;;  %v1610_v13 = vadd.f32 %v3385_v55, %v1571_v58  ;;  %v1611_v14 = vadd.f32 %v3385_v55, %v1572_v38  ;;  %vm1766_vm3 = vcmp.ge.f32.partialorder %v3586_v3, 1.0  ;;  %v3601_v36 = vsel %vm1765_vm2, 1.0, %v3858_v29  ;;  %v1707_v43 = vld [vmem:[%s3264_s24 + $0xc0] sm:$0xff]  ;;  %v1575_v3 = vld [vmem:[#allocation2 + $0xd8] sm:$0xff] }
 0x1d7   : > { %2604 = vst [vmem:[%s3274_s13 + $0x40] sm:$0xff] %v2574_v2   ;;  %v1672_v20 = vadd.f32 %v1640_v63, %v1608_v4  ;;  %v3603_v39 = vadd.f32 %v1703_v1, %v1671_v5  ;;  %v3609_v51 = vsel %vm1766_vm3, 1.0, %v3858_v29  ;;  %v1673_v52 = vadd.f32 %v1641_v0, %v1609_v12  ;;  %v1574_v2 = vld [vmem:[#allocation2 + $0xd0] sm:$0xff]  ;;  %v1708_v5 = vld [vmem:[%s3264_s24 + $0xc8] sm:$0xff] }
 0x1d8   : > { %3871 = vst [vmem:[#allocation8_spill] sm:$0xff] %v3609_v51  ;;  %v1674_v58 = vadd.f32 %v1642_v6, %v1610_v13  ;;  %v1612_v38 = vadd.f32 %v3385_v55, %v1573_v9  ;;  %v2577_v63 = vpack.c.bf16 %v3609_v51, %v3601_v36  ;;  %v1675_v4 = vadd.f32 %v1643_v31, %v1611_v14  ;;  %v1645_v14 = vld [vmem:[%s3259_s18 + $0xd0] sm:$0xff]  ;;  %v1714_v51 = vld [vmem:[%s3264_s24 + $0xf8] sm:$0xff] }
 0x1d9   : > { %3870 = vst [vmem:[#allocation7_spill] sm:$0xff] %v3603_v39  ;;  %v3615_v1 = vadd.f32 %v1704_v10, %v1672_v20  ;;  %vm1767_vm4 = vcmp.ge.f32.partialorder %v3603_v39, 1.0  ;;  %v3622_v0 = vadd.f32 %v1705_v46, %v1673_v52  ;;  %v1613_v10 = vadd.f32 %v3385_v55, %v1574_v2  ;;  %v1646_v46 = vld [vmem:[%s3259_s18 + $0xd8] sm:$0xff] }
 0x1da   : > { %v3620_v62 = vsel %vm1767_vm4, 1.0, %v3858_v29  ;;  %v3624_v6 = vadd.f32 %v1706_v47, %v1674_v58  ;;  %v1676_v9 = vadd.f32 %v1644_v48, %v1612_v38  ;;  %2605 = vst [vmem:[%s3274_s13 + $0x48] sm:$0xff] %v2577_v63   ;;  %v3628_v12 = vadd.f32 %v1707_v43, %v1675_v4  ;;  %v1576_v47 = vld [vmem:[#allocation2 + $0xe0] sm:$0xff]  ;;  %v1577_v48 = vld [vmem:[#allocation2 + $0xe8] sm:$0xff]  ;;  %v1709_v38 = vld [vmem:[%s3264_s24 + $0xd0] sm:$0xff] }
 0x1db   : > { %3872 = vst [vmem:[#allocation9_spill] sm:$0xff] %v3615_v1  ;;  %3873 = vst [vmem:[#allocation10_spill] sm:$0xff] %v3620_v62  ;;  %vm1768_vm5 = vcmp.ge.f32.partialorder %v3615_v1, 1.0  ;;  %v1614_v13 = vadd.f32 %v3385_v55, %v1575_v3  ;;  %vm1769_vm6 = vcmp.ge.f32.partialorder %v3622_v0, 1.0  ;;  %v1578_v43 = vld [vmem:[#allocation2 + $0xf0] sm:$0xff]  ;;  %v1579_v2 = vld [vmem:[#allocation2 + $0xf8] sm:$0xff]  ;;  %v1615_v39 = vadd.f32 %v3385_v55, %v1576_v47 }
 0x1dc   : > { %3874 = vst [vmem:[#allocation11_spill] sm:$0xff] %v3622_v0  ;;  %3875 = vst [vmem:[#allocation12_spill] sm:$0xff] %v3624_v6  ;;  %v3634_v31 = vsel %vm1768_vm5, 1.0, %v3858_v29  ;;  %vm1770_vm7 = vcmp.ge.f32.partialorder %v3624_v6, 1.0  ;;  %v3638_v20 = vadd.f32 %v1708_v5, %v1676_v9  ;;  %v3644_v52 = vsel %vm1769_vm6, 1.0, %v3858_v29  ;;  %v1710_v9 = vld [vmem:[%s3264_s24 + $0xd8] sm:$0xff] }
 0x1dd   : > { %3876 = vst [vmem:[#allocation13_spill] sm:$0xff] %v3628_v12  ;;  %3877 = vst [vmem:[#allocation14_spill] sm:$0xff] %v3634_v31  ;;  %v2580_v3 = vpack.c.bf16 %v3634_v31, %v3620_v62  ;;  %v3647_v58 = vsel %vm1770_vm7, 1.0, %v3858_v29  ;;  %vm1771_vm8 = vcmp.ge.f32.partialorder %v3628_v12, 1.0  ;;  %v1677_v5 = vadd.f32 %v1645_v14, %v1613_v10  ;;  %v1647_v6 = vld [vmem:[%s3259_s18 + $0xe0] sm:$0xff]  ;;  %v1648_v12 = vld [vmem:[%s3259_s18 + $0xe8] sm:$0xff] }
 0x1de   : > { %3878 = vst [vmem:[#allocation15_spill] sm:$0xff] %v3638_v20  ;;  %3879 = vst [vmem:[#allocation16_spill] sm:$0xff] %v3644_v52  ;;  %v2583_v63 = vpack.c.bf16 %v3647_v58, %v3644_v52  ;;  %vm1772_vm9 = vcmp.ge.f32.partialorder %v3638_v20, 1.0  ;;  %v3655_v4 = vsel %vm1771_vm8, 1.0, %v3858_v29  ;;  %v1678_v1 = vadd.f32 %v1646_v46, %v1614_v13  ;;  %v1650_v52 = vld [vmem:[%s3259_s18 + $0xf8] sm:$0xff]  ;;  %v1712_v31 = vld [vmem:[%s3264_s24 + $0xe8] sm:$0xff] }
 0x1df   : > { %3880 = vst [vmem:[#allocation17_spill] sm:$0xff] %v3647_v58  ;;  %2606 = vst [vmem:[%s3274_s13 + $0x50] sm:$0xff] %v2580_v3   ;;  %v3662_v0 = vsel %vm1772_vm9, 1.0, %v3858_v29  ;;  %v1616_v20 = vadd.f32 %v3385_v55, %v1577_v48  ;;  %v1649_v58 = vld [vmem:[%s3259_s18 + $0xf0] sm:$0xff]  ;;  %v3671_v14 = vadd.f32 %v1709_v38, %v1677_v5  ;;  %v1711_v3 = vld [vmem:[%s3264_s24 + $0xe0] sm:$0xff]  ;;  %v1617_v29 = vadd.f32 %v3385_v55, %v1578_v43 }
 0x1e0   : > { %2607 = vst [vmem:[%s3274_s13 + $0x58] sm:$0xff] %v2583_v63   ;;  %v2586_v10 = vpack.c.bf16 %v3662_v0, %v3655_v4  ;;  %v1618_v13 = vadd.f32 %v3385_v55, %v1579_v2  ;;  %v3677_v46 = vadd.f32 %v1710_v9, %v1678_v1  ;;  %v1679_v47 = vadd.f32 %v1647_v6, %v1615_v39  ;;  %v1713_v48 = vld [vmem:[%s3264_s24 + $0xf0] sm:$0xff] }
 0x1e1   : > { %v1680_v62 = vadd.f32 %v1648_v12, %v1616_v20  ;;  %v2003_v33 = vsub.f32 1.0, %v3416_v30  ;;  %vm1773_vm10 = vcmp.ge.f32.partialorder %v3671_v14, 1.0  ;;  %v1681_v63 = vadd.f32 %v1649_v58, %v1617_v29 }
 0x1e2   : > { %2608 = vst [vmem:[%s3274_s13 + $0x60] sm:$0xff] %v2586_v10   ;;  %v1682_v38 = vadd.f32 %v1650_v52, %v1618_v13  ;;  %v2004_v5 = vsub.f32 1.0, %v3419_v32  ;;  %vm1774_vm11 = vcmp.ge.f32.partialorder %v3677_v46, 1.0  ;;  %v3881_v43 = vmov 0.0  }
 0x1e3   : > { %v3687_v55 = vsel %vm1773_vm10, 1.0, %v3881_v43  ;;  %v3689_v39 = vadd.f32 %v1711_v3, %v1679_v47  ;;  %v3691_v1 = vadd.f32 %v1712_v31, %v1680_v62  ;;  %v3694_v30 = vsel %vm1774_vm11, 1.0, %v3881_v43 }
 0x1e4   : > { %v3696_v6 = vadd.f32 %v1713_v48, %v1681_v63  ;;  %v3698_v29 = vadd.f32 %v1714_v51, %v1682_v38  ;;  %v2035_v32 = vmul.f32 %v2003_v33, %v3399_v17  ;;  %v2589_v12 = vpack.c.bf16 %v3694_v30, %v3687_v55  ;;  %v3883_v48 = vld [vmem:[#allocation8_spill] sm:$0xff]  ;;  %v3884_v63 = vld [vmem:[#allocation10_spill] sm:$0xff] }
 0x1e5   : > { %vm1775_vm12 = vcmp.ge.f32.partialorder %v3689_v39, 1.0  ;;  %vm1776_vm13 = vcmp.ge.f32.partialorder %v3691_v1, 1.0  ;;  %v2036_v62 = vmul.f32 %v2004_v5, %v3401_v18  ;;  %v2005_v51 = vsub.f32 1.0, %v3428_v40  ;;  %v3885_v38 = vld [vmem:[#allocation14_spill] sm:$0xff] }
 0x1e6   : > { %v3707_v31 = vsel %vm1775_vm12, 1.0, %v3881_v43  ;;  %v3710_v20 = vsel %vm1776_vm13, 1.0, %v3881_v43  ;;  %vm1777_vm14 = vcmp.ge.f32.partialorder %v3696_v6, 1.0  ;;  %vm1778_vm15 = vcmp.ge.f32.partialorder %v3698_v29, 1.0  ;;  %2067 = vst [vmem:[%s3269_s7] sm:$0xff] %v2035_v32  ;;  %2609 = vst [vmem:[%s3274_s13 + $0x68] sm:$0xff] %v2589_v12  }
 0x1e7   : > { %v2592_v17 = vpack.c.bf16 %v3710_v20, %v3707_v31  ;;  %v3719_v33 = vsel %vm1777_vm14, 1.0, %v3881_v43  ;;  %v3722_v18 = vsel %vm1778_vm15, 1.0, %v3881_v43  ;;  %2068 = vst [vmem:[%s3269_s7 + $0x8] sm:$0xff] %v2036_v62  ;;  %v2006_v58 = vsub.f32 1.0, %v3431_v41  ;;  %v3888_v43 = vld [vmem:[#allocation17_spill] sm:$0xff]  ;;  %v3889_v62 = vld [vmem:[#allocation6_spill] sm:$0xff] }
 0x1e8   : > { %v2595_v52 = vpack.c.bf16 %v3722_v18, %v3719_v33  ;;  %v2007_v2 = vsub.f32 1.0, %v3454_v49  ;;  %v2008_v9 = vsub.f32 1.0, %v3457_v44  ;;  %v2037_v10 = vmul.f32 %v2005_v51, %v3409_v25  ;;  %v3890_v51 = vld [vmem:[#allocation7_spill] sm:$0xff] }
 0x1e9   : > { %2610 = vst [vmem:[%s3274_s13 + $0x70] sm:$0xff] %v2592_v17   ;;  %v2009_v3 = vsub.f32 1.0, %v3476_v15  ;;  %v2010_v13 = vsub.f32 1.0, %v3488_v24  ;;  %v2011_v40 = vsub.f32 1.0, %v3498_v34  ;;  %v2038_v47 = vmul.f32 %v2006_v58, %v3411_v27  ;;  %v3891_v58 = vld [vmem:[#allocation9_spill] sm:$0xff] }
 0x1ea   : > { %2611 = vst [vmem:[%s3274_s13 + $0x78] sm:$0xff] %v2595_v52   ;;  %v2039_v41 = vmul.f32 %v2007_v2, %v3433_v42  ;;  %v2040_v49 = vmul.f32 %v2008_v9, %v3435_v45  ;;  %v2012_v44 = vsub.f32 1.0, %v3501_v35  ;;  %2069 = vst [vmem:[%s3269_s7 + $0x10] sm:$0xff] %v2037_v10  ;;  %v2013_v34 = vsub.f32 1.0, %v3509_v37  ;;  %v3892_v10 = vld [vmem:[#allocation11_spill] sm:$0xff] }
 0x1eb   : > { %v2041_v25 = vmul.f32 %v2009_v3, %v3459_v61  ;;  %v2042_v15 = vmul.f32 %v2010_v13, %v3469_v8  ;;  %v2043_v24 = vmul.f32 %v2011_v40, %v3478_v16  ;;  %2070 = vst [vmem:[%s3269_s7 + $0x18] sm:$0xff] %v2038_v47  ;;  %v2014_v42 = vsub.f32 1.0, %v3515_v50  ;;  %v3893_v13 = vld [vmem:[#allocation12_spill] sm:$0xff]  ;;  %v3894_v47 = vld [vmem:[#allocation13_spill] sm:$0xff] }
 0x1ec   : > { %2071 = vst [vmem:[%s3269_s7 + $0x20] sm:$0xff] %v2039_v41  ;;  %2072 = vst [vmem:[%s3269_s7 + $0x28] sm:$0xff] %v2040_v49  ;;  %v2044_v27 = vmul.f32 %v2012_v44, %v3480_v11  ;;  %v2015_v45 = vsub.f32 1.0, %v3540_v7  ;;  %v2016_v35 = vsub.f32 1.0, %v3544_v22  ;;  %v2045_v61 = vmul.f32 %v2013_v34, %v3483_v21  ;;  %v3895_v49 = vld [vmem:[#allocation15_spill] sm:$0xff] }
 0x1ed   : > { %2073 = vst [vmem:[%s3269_s7 + $0x30] sm:$0xff] %v2041_v25  ;;  %2074 = vst [vmem:[%s3269_s7 + $0x38] sm:$0xff] %v2042_v15  ;;  %v2017_v8 = vsub.f32 1.0, %v3565_v54  ;;  %v2018_v16 = vsub.f32 1.0, %v3568_v57  ;;  %v2019_v11 = vsub.f32 1.0, %v3575_v56  ;;  %v2046_v37 = vmul.f32 %v2014_v42, %v3492_v28  ;;  %v3882_v28 = vld [vmem:[#allocation4_spill] sm:$0xff] }
 0x1ee   : > { %2075 = vst [vmem:[%s3269_s7 + $0x40] sm:$0xff] %v2043_v24  ;;  %2076 = vst [vmem:[%s3269_s7 + $0x48] sm:$0xff] %v2044_v27  ;;  %v2047_v50 = vmul.f32 %v2015_v45, %v3517_v53  ;;  %v2048_v7 = vmul.f32 %v2016_v35, %v3526_v59  ;;  %v2020_v22 = vsub.f32 1.0, %v3578_v60  ;;  %v2021_v56 = vsub.f32 1.0, %v3601_v36 }
 0x1ef   : > { %2077 = vst [vmem:[%s3269_s7 + $0x50] sm:$0xff] %v2045_v61  ;;  %v2049_v21 = vmul.f32 %v2017_v8, %v3546_v23  ;;  %v2050_v54 = vmul.f32 %v2018_v16, %v3548_v26  ;;  %v2051_v57 = vmul.f32 %v2019_v11, %v3553_v19  ;;  %2078 = vst [vmem:[%s3269_s7 + $0x58] sm:$0xff] %v2046_v37  ;;  %v2022_v59 = vsub.f32 1.0, %v3883_v48  ;;  %v3886_v23 = vld [vmem:[#allocation5_spill] sm:$0xff]  ;;  %v3887_v19 = vld [vmem:[#allocation16_spill] sm:$0xff] }
 0x1f0   : > { %2079 = vst [vmem:[%s3269_s7 + $0x60] sm:$0xff] %v2047_v50  ;;  %2080 = vst [vmem:[%s3269_s7 + $0x68] sm:$0xff] %v2048_v7  ;;  %v2052_v53 = vmul.f32 %v2020_v22, %v3882_v28  ;;  %v2023_v60 = vsub.f32 1.0, %v3884_v63  ;;  %v2024_v5 = vsub.f32 1.0, %v3885_v38  ;;  %v2053_v26 = vmul.f32 %v2021_v56, %v3886_v23 }
 0x1f1   : > { %2081 = vst [vmem:[%s3269_s7 + $0x70] sm:$0xff] %v2049_v21  ;;  %2082 = vst [vmem:[%s3269_s7 + $0x78] sm:$0xff] %v2050_v54  ;;  %v2025_v36 = vsub.f32 1.0, %v3887_v19  ;;  %v2026_v32 = vsub.f32 1.0, %v3888_v43  ;;  %v2027_v12 = vsub.f32 1.0, %v3655_v4  ;;  %v2054_v17 = vmul.f32 %v2022_v59, %v3889_v62 }
 0x1f2   : > { %2083 = vst [vmem:[%s3269_s7 + $0x80] sm:$0xff] %v2051_v57  ;;  %2084 = vst [vmem:[%s3269_s7 + $0x88] sm:$0xff] %v2052_v53  ;;  %v2055_v52 = vmul.f32 %v2023_v60, %v3890_v51  ;;  %v2056_v2 = vmul.f32 %v2024_v5, %v3891_v58  ;;  %v2028_v9 = vsub.f32 1.0, %v3662_v0  ;;  %v2029_v41 = vsub.f32 1.0, %v3687_v55 }
 0x1f3   : > { %2085 = vst [vmem:[%s3269_s7 + $0x90] sm:$0xff] %v2053_v26  ;;  %v2057_v3 = vmul.f32 %v2025_v36, %v3892_v10  ;;  %v2058_v40 = vmul.f32 %v2026_v32, %v3893_v13  ;;  %v2059_v4 = vmul.f32 %v2027_v12, %v3894_v47  ;;  %2086 = vst [vmem:[%s3269_s7 + $0x98] sm:$0xff] %v2054_v17  ;;  %v2030_v25 = vsub.f32 1.0, %v3694_v30 }
 0x1f4   : > { %2087 = vst [vmem:[%s3269_s7 + $0xa0] sm:$0xff] %v2055_v52  ;;  %2088 = vst [vmem:[%s3269_s7 + $0xa8] sm:$0xff] %v2056_v2  ;;  %v2060_v44 = vmul.f32 %v2028_v9, %v3895_v49  ;;  %v2031_v0 = vsub.f32 1.0, %v3707_v31  ;;  %v2032_v15 = vsub.f32 1.0, %v3710_v20  ;;  %v2061_v55 = vmul.f32 %v2029_v41, %v3671_v14 }
 0x1f5   : > { %2089 = vst [vmem:[%s3269_s7 + $0xb0] sm:$0xff] %v2057_v3  ;;  %2090 = vst [vmem:[%s3269_s7 + $0xb8] sm:$0xff] %v2058_v40  ;;  %v2033_v24 = vsub.f32 1.0, %v3719_v33  ;;  %v2034_v34 = vsub.f32 1.0, %v3722_v18  ;;  %v2062_v30 = vmul.f32 %v2030_v25, %v3677_v46 }
 0x1f6   : > { %2091 = vst [vmem:[%s3269_s7 + $0xc0] sm:$0xff] %v2059_v4  ;;  %2092 = vst [vmem:[%s3269_s7 + $0xc8] sm:$0xff] %v2060_v44  ;;  %v2063_v31 = vmul.f32 %v2031_v0, %v3689_v39  ;;  %v2064_v27 = vmul.f32 %v2032_v15, %v3691_v1 }
 0x1f7   : > { %2093 = vst [vmem:[%s3269_s7 + $0xd0] sm:$0xff] %v2061_v55  ;;  %v2065_v20 = vmul.f32 %v2033_v24, %v3696_v6  ;;  %v2066_v42 = vmul.f32 %v2034_v34, %v3698_v29  ;;  %2094 = vst [vmem:[%s3269_s7 + $0xd8] sm:$0xff] %v2062_v30 }
 0x1f8   : > { %2095 = vst [vmem:[%s3269_s7 + $0xe0] sm:$0xff] %v2063_v31  ;;  %2096 = vst [vmem:[%s3269_s7 + $0xe8] sm:$0xff] %v2064_v27 }
 0x1f9   : > { %2097 = vst [vmem:[%s3269_s7 + $0xf0] sm:$0xff] %v2065_v20  ;;  %2098 = vst [vmem:[%s3269_s7 + $0xf8] sm:$0xff] %v2066_v42 }
 0x1fa PF: > { %s17_s27 = sadd.s32 1, %s3015_s27   ;;  %s3896_s21 = smov %s2995_s22 }
 0x1fb   : > { %p14_p0 = scmp.ge.s32.totalorder %s17_s27, 8   ;;  %s3897_s22 = smov %s3105_s10 }
 0x1fc   : > { %s3898_s23 = smov %s3007_s25  ;;  %s3899_s24 = smov %s3011_s26 }
 0x1fd   : > { %s3900_s25 = smov %s3903_s28  ;;  %s3901_s26 = smov %s3907_s29 }
 0x1fe   :  { %16 = sbr.rel (!%p14_p0) target bundleno = 7 (0x7), region = 139 }

// kernel: closed_call.85
= control target key start
LH: loop header
LB: loop body
LE: loop exit
PB: predicated region body
PF: predicated region fallthrough
CT: control target
= control target key end

     0   :  { %s2378_s18 = smov 0   ;;  %s2380_s19 = smov 0   ;;  %s3185_s0 = inlined_call_operand.vmem [shape: bf16[128,1152], index: 0, kind: input, shape index: {}]   ;;  %s3186_s1 = inlined_call_operand.vmem [shape: bf16[1152,256], index: 1, kind: input, shape index: {}]   ;;  %s3187_s2 = inlined_call_operand.vmem [shape: f32[1,256], index: 2, kind: input, shape index: {}]   ;;  %s3188_s3 = inlined_call_operand.vmem [shape: f32[128,256], index: 3, kind: input, shape index: {}]   ;;  %s3189_s4 = inlined_call_operand.vmem [shape: bf16[128,256], index: 4, kind: output, shape index: {0}]   ;;  %s3190_s5 = inlined_call_operand.vmem [shape: f32[128,256], index: 5, kind: output, shape index: {1}]  }
   0x1   :  { %s2382_s20 = smov 0   ;;  %s2384_s21 = smov 0  }
   0x2   :  { %s2386_s22 = smov 0  }
   0x3 LB: > { %s28_s23 = sadd.s32 1, %s2339_s21  ;;  %p51_p1 = scmp.ne.s32.totalorder %s2331_s19, %s2327_s18  ;;  %s2343_s22 = sphi %s2386_s22, %s16_s22   ;;  %s2339_s21 = sphi %s2384_s21, %s3224_s21   ;;  %s2335_s20 = sphi %s2382_s20, %s3223_s20   ;;  %s2331_s19 = sphi %s2380_s19, %s3222_s19   ;;  %s2327_s18 = sphi %s2378_s18, %s3221_s18  }
   0x4   : > { %p29_p0 = scmp.ge.s32.totalorder %s28_s23, 3  ;;  %p52_p2 = scmp.eq.s32.totalorder %s2343_s22, 0 }
   0x5   : > { %s44_s25 = sadd.s32 1, %s2331_s19  ;;  %p1941_p5 = scmp.ge.s32.totalorder %s2343_s22, 3 }
   0x6   : > { %s3226_s23 = smov (%p29_p0, %s28_s23), 0  ;;  %p53_p3 = por %p52_p2, %p51_p1 }
   0x7   : > { %s40_s24 = ssub.s32 %s2339_s21, %s3226_s23  ;;  %238 = sbr.rel (%p1941_p5) target bundleno = 37 (0x25), region = 24 }
   0x8   : > { %p42_p4 = scmp.eq.s32.totalorder %s40_s24, 0 }
   0xa   : > { %s2413_s26 = scalar_select %p42_p4, %s2331_s19, %s44_s25  }
   0xe   : > { %241 = sbr.rel (!%p53_p3) target bundleno = 37 (0x25), region = 28  ;;  %s243_s27 = sand.u32 (%p53_p3), 1, %s2331_s19  }
   0xf   : > { %s2106_s28 = smul.u32 (%p53_p3), 12, %s2339_s21 }
  0x10   : > { %s2156_s29 = smul.u32 (%p53_p3), 192, %s243_s27 }
  0x11   : > { %s2421_s7 = scalar_lea.vmem (%p53_p3), %s3185_s0, %s2106_s28 }
  0x12   : > { %v266_v0 = vld [vmem:[%s2421_s7] sm:$0xff] (%p53_p3)  ;;  %v270_v2 = vld [vmem:[%s2421_s7 + $0x48] sm:$0xff] (%p53_p3)  ;;  %s2426_s8 = scalar_lea.vmem (%p53_p3), [#allocation3], %s2156_s29  ;;  %v274_v4 = vld [vmem:[%s2421_s7 + $0x90] sm:$0xff] (%p53_p3) }
  0x13   : > { %v268_v1 = vld [vmem:[%s2421_s7 + $0x24] sm:$0xff] (%p53_p3)  ;;  %267 = vst [vmem:[%s2426_s8] sm:$0xff] (%p53_p3), %v266_v0  ;;  %271 = vst [vmem:[%s2426_s8 + $0x18] sm:$0xff] (%p53_p3), %v270_v2  ;;  %v272_v3 = vld [vmem:[%s2421_s7 + $0x6c] sm:$0xff] (%p53_p3) }
  0x14   : > { %269 = vst [vmem:[%s2426_s8 + $0xc] sm:$0xff] (%p53_p3), %v268_v1  ;;  %v276_v5 = vld [vmem:[%s2421_s7 + $0xb4] sm:$0xff] (%p53_p3)  ;;  %273 = vst [vmem:[%s2426_s8 + $0x24] sm:$0xff] (%p53_p3), %v272_v3  ;;  %v280_v7 = vld [vmem:[%s2421_s7 + $0xfc] sm:$0xff] (%p53_p3) }
  0x15   : > { %275 = vst [vmem:[%s2426_s8 + $0x30] sm:$0xff] %v274_v4  ;;  %277 = vst [vmem:[%s2426_s8 + $0x3c] sm:$0xff] %v276_v5  ;;  %v278_v6 = vld [vmem:[%s2421_s7 + $0xd8] sm:$0xff]  ;;  %v282_v8 = vld [vmem:[%s2421_s7 + $0x120] sm:$0xff] }
  0x16   : > { %279 = vst [vmem:[%s2426_s8 + $0x48] sm:$0xff] %v278_v6  ;;  %281 = vst [vmem:[%s2426_s8 + $0x54] sm:$0xff] %v280_v7  ;;  %v284_v9 = vld [vmem:[%s2421_s7 + $0x144] sm:$0xff]  ;;  %v288_v11 = vld [vmem:[%s2421_s7 + $0x18c] sm:$0xff] }
  0x17   : > { %283 = vst [vmem:[%s2426_s8 + $0x60] sm:$0xff] %v282_v8  ;;  %v286_v10 = vld [vmem:[%s2421_s7 + $0x168] sm:$0xff]  ;;  %285 = vst [vmem:[%s2426_s8 + $0x6c] sm:$0xff] %v284_v9  ;;  %v290_v12 = vld [vmem:[%s2421_s7 + $0x1b0] sm:$0xff] }
  0x18   : > { %287 = vst [vmem:[%s2426_s8 + $0x78] sm:$0xff] %v286_v10  ;;  %289 = vst [vmem:[%s2426_s8 + $0x84] sm:$0xff] %v288_v11  ;;  %v292_v13 = vld [vmem:[%s2421_s7 + $0x1d4] sm:$0xff]  ;;  %v296_v15 = vld [vmem:[%s2421_s7 + $0x21c] sm:$0xff] }
  0x19   : > { %v294_v14 = vld [vmem:[%s2421_s7 + $0x1f8] sm:$0xff]  ;;  %291 = vst [vmem:[%s2426_s8 + $0x90] sm:$0xff] %v290_v12  ;;  %293 = vst [vmem:[%s2426_s8 + $0x9c] sm:$0xff] %v292_v13  ;;  %v1943_v16 = vld [vmem:[%s2421_s7 + $0x8] sm:$0xf] }
  0x1a   : > { %295 = vst [vmem:[%s2426_s8 + $0xa8] sm:$0xff] %v294_v14  ;;  %v1945_v17 = vld [vmem:[%s2421_s7 + $0x2c] sm:$0xf]  ;;  %297 = vst [vmem:[%s2426_s8 + $0xb4] sm:$0xff] %v296_v15  ;;  %v1947_v18 = vld [vmem:[%s2421_s7 + $0x50] sm:$0xf] }
  0x1b   : > { %1944 = vst [vmem:[%s2426_s8 + $0x8] sm:$0xf] %v1943_v16  ;;  %1946 = vst [vmem:[%s2426_s8 + $0x14] sm:$0xf] %v1945_v17  ;;  %v1949_v19 = vld [vmem:[%s2421_s7 + $0x74] sm:$0xf] }
  0x1c   : > { %v1951_v20 = vld [vmem:[%s2421_s7 + $0x98] sm:$0xf]  ;;  %1948 = vst [vmem:[%s2426_s8 + $0x20] sm:$0xf] %v1947_v18  ;;  %1950 = vst [vmem:[%s2426_s8 + $0x2c] sm:$0xf] %v1949_v19 }
  0x1d   : > { %1952 = vst [vmem:[%s2426_s8 + $0x38] sm:$0xf] %v1951_v20  ;;  %v1953_v21 = vld [vmem:[%s2421_s7 + $0xbc] sm:$0xf]  ;;  %v1955_v22 = vld [vmem:[%s2421_s7 + $0xe0] sm:$0xf] }
  0x1e   : > { %v1957_v23 = vld [vmem:[%s2421_s7 + $0x104] sm:$0xf]  ;;  %1954 = vst [vmem:[%s2426_s8 + $0x44] sm:$0xf] %v1953_v21  ;;  %1956 = vst [vmem:[%s2426_s8 + $0x50] sm:$0xf] %v1955_v22 }
  0x1f   : > { %1958 = vst [vmem:[%s2426_s8 + $0x5c] sm:$0xf] %v1957_v23  ;;  %v1959_v24 = vld [vmem:[%s2421_s7 + $0x128] sm:$0xf]  ;;  %v1961_v25 = vld [vmem:[%s2421_s7 + $0x14c] sm:$0xf] }
  0x20   : > { %v1963_v26 = vld [vmem:[%s2421_s7 + $0x170] sm:$0xf]  ;;  %1960 = vst [vmem:[%s2426_s8 + $0x68] sm:$0xf] %v1959_v24  ;;  %1962 = vst [vmem:[%s2426_s8 + $0x74] sm:$0xf] %v1961_v25 }
  0x21   : > { %1964 = vst [vmem:[%s2426_s8 + $0x80] sm:$0xf] %v1963_v26  ;;  %v1965_v27 = vld [vmem:[%s2421_s7 + $0x194] sm:$0xf]  ;;  %v1967_v28 = vld [vmem:[%s2421_s7 + $0x1b8] sm:$0xf] }
  0x22   : > { %v1969_v29 = vld [vmem:[%s2421_s7 + $0x1dc] sm:$0xf]  ;;  %1966 = vst [vmem:[%s2426_s8 + $0x8c] sm:$0xf] %v1965_v27  ;;  %1968 = vst [vmem:[%s2426_s8 + $0x98] sm:$0xf] %v1967_v28 }
  0x23   : > { %1970 = vst [vmem:[%s2426_s8 + $0xa4] sm:$0xf] %v1969_v29  ;;  %v1971_v30 = vld [vmem:[%s2421_s7 + $0x200] sm:$0xf]  ;;  %v1973_v31 = vld [vmem:[%s2421_s7 + $0x224] sm:$0xf] }
  0x24   : > { %1972 = vst [vmem:[%s2426_s8 + $0xb0] sm:$0xf] %v1971_v30  ;;  %1974 = vst [vmem:[%s2426_s8 + $0xbc] sm:$0xf] %v1973_v31 }
  0x25 PF: > { %p1975_p6 = scmp.ge.s32.totalorder %s2343_s22, 1  ;;  %p356_p7 = scmp.lt.s32.totalorder %s2343_s22, 4 }
  0x27   : > { %p357_p8 = pnand %p1975_p6, %p356_p7 }
  0x28   : > { %s363_s9 = sand.u32 (!%p357_p8), 1, %s2327_s18   ;;  %s431_s10 = smul.u32 (!%p357_p8), 48, %s2335_s20 }
  0x29   : > { %360 = sbr.rel (%p357_p8) target bundleno = 471 (0x1d7), region = 58  ;;  %p1978_p10 = scmp.ne.s32.totalorder (!%p357_p8), %s2335_s20, 0 }
  0x2a   : > { %s2157_s11 = smul.u32 (!%p357_p8), 192, %s363_s9  ;;  %p433_p9 = scmp.lt.s32.totalorder (!%p357_p8), %s431_s10, 143 }
  0x2c   : > { %s2498_s16 = scalar_lea.vmem (!%p357_p8), [#allocation3], %s2157_s11 }
  0x30   : > { %s3228_s10 = smov (!%p433_p9, %s431_s10), 143  ;;  %488 = sbr.rel (%p1978_p10) target bundleno = 66 (0x42), region = 66 }
  0x31   : > { %s2107_s12 = sshll.u32 %s3228_s10, 3  ;;  %v2345_v32 = vmov (!%p1978_p10), 0.0  }
  0x32   : > { %s2496_s15 = scalar_lea.vmem %s3186_s1, %s2107_s12  ;;  %489 = vst [vmem:[#allocation2] sm:$0xff] (!%p1978_p10), %v2345_v32  ;;  %490 = vst [vmem:[#allocation2 + $0x8] sm:$0xff] (!%p1978_p10), %v2345_v32 }
  0x33   : > { %491 = vst [vmem:[#allocation2 + $0x10] sm:$0xff] (!%p1978_p10), %v2345_v32  ;;  %492 = vst [vmem:[#allocation2 + $0x18] sm:$0xff] (!%p1978_p10), %v2345_v32 }
  0x34   : > { %493 = vst [vmem:[#allocation2 + $0x20] sm:$0xff] (!%p1978_p10), %v2345_v32  ;;  %494 = vst [vmem:[#allocation2 + $0x28] sm:$0xff] (!%p1978_p10), %v2345_v32 }
  0x35   : > { %495 = vst [vmem:[#allocation2 + $0x30] sm:$0xff] (!%p1978_p10), %v2345_v32  ;;  %496 = vst [vmem:[#allocation2 + $0x38] sm:$0xff] (!%p1978_p10), %v2345_v32 }
  0x36   : > { %497 = vst [vmem:[#allocation2 + $0x40] sm:$0xff] (!%p1978_p10), %v2345_v32  ;;  %498 = vst [vmem:[#allocation2 + $0x48] sm:$0xff] (!%p1978_p10), %v2345_v32 }
  0x37   : > { %499 = vst [vmem:[#allocation2 + $0x50] sm:$0xff] %v2345_v32  ;;  %500 = vst [vmem:[#allocation2 + $0x58] sm:$0xff] %v2345_v32 }
  0x38   : > { %501 = vst [vmem:[#allocation2 + $0x60] sm:$0xff] %v2345_v32  ;;  %502 = vst [vmem:[#allocation2 + $0x68] sm:$0xff] %v2345_v32 }
  0x39   : > { %503 = vst [vmem:[#allocation2 + $0x70] sm:$0xff] %v2345_v32  ;;  %504 = vst [vmem:[#allocation2 + $0x78] sm:$0xff] %v2345_v32 }
  0x3a   : > { %505 = vst [vmem:[#allocation2 + $0x80] sm:$0xff] %v2345_v32  ;;  %506 = vst [vmem:[#allocation2 + $0x88] sm:$0xff] %v2345_v32 }
  0x3b   : > { %507 = vst [vmem:[#allocation2 + $0x90] sm:$0xff] %v2345_v32  ;;  %508 = vst [vmem:[#allocation2 + $0x98] sm:$0xff] %v2345_v32 }
  0x3c   : > { %509 = vst [vmem:[#allocation2 + $0xa0] sm:$0xff] %v2345_v32  ;;  %510 = vst [vmem:[#allocation2 + $0xa8] sm:$0xff] %v2345_v32 }
  0x3d   : > { %511 = vst [vmem:[#allocation2 + $0xb0] sm:$0xff] %v2345_v32  ;;  %512 = vst [vmem:[#allocation2 + $0xb8] sm:$0xff] %v2345_v32 }
  0x3e   : > { %513 = vst [vmem:[#allocation2 + $0xc0] sm:$0xff] %v2345_v32  ;;  %514 = vst [vmem:[#allocation2 + $0xc8] sm:$0xff] %v2345_v32 }
  0x3f   : > { %515 = vst [vmem:[#allocation2 + $0xd0] sm:$0xff] %v2345_v32  ;;  %516 = vst [vmem:[#allocation2 + $0xd8] sm:$0xff] %v2345_v32 }
  0x40   : > { %517 = vst [vmem:[#allocation2 + $0xe0] sm:$0xff] %v2345_v32  ;;  %518 = vst [vmem:[#allocation2 + $0xe8] sm:$0xff] %v2345_v32 }
  0x41   : > { %519 = vst [vmem:[#allocation2 + $0xf0] sm:$0xff] %v2345_v32  ;;  %520 = vst [vmem:[#allocation2 + $0xf8] sm:$0xff] %v2345_v32 }
  0x42 PF: > { %v2201_v33 = vld [vmem:[%s2496_s15 + $0x4] ss:$8 sps:$4 sm:$0xff]   ;;  %v2203_v34 = vld [vmem:[%s2496_s15] ss:$8 sps:$4 sm:$0xff]   ;;  %v2346_v35 = vmov 0   ;;  %p2051_p11 = scmp.ne.s32.totalorder %s2335_s20, 2 }
  0x43   : > { %1146 = vmatprep.mubr.bf16.mxu0 %v2346_v35  ;;  %1001 = vmatprep.subr.bf16.mxu1 %v2201_v33  ;;  %v2204_v36 = vld [vmem:[%s2496_s15 + $0x14] ss:$8 sps:$4 sm:$0xff]   ;;  %v2206_v37 = vld [vmem:[%s2496_s15 + $0x10] ss:$8 sps:$4 sm:$0xff]   ;;  %v2207_v38 = vld [vmem:[%s2496_s15 + $0x24] ss:$8 sps:$4 sm:$0xff]  }
  0x44   : > { %1002 = vmatpush1.bf16.msra.mxu1 %v2203_v34  ;;  %v2209_v39 = vld [vmem:[%s2496_s15 + $0x20] ss:$8 sps:$4 sm:$0xff]   ;;  %v2210_v40 = vld [vmem:[%s2496_s15 + $0x34] ss:$8 sps:$4 sm:$0xff]   ;;  %v2212_v41 = vld [vmem:[%s2496_s15 + $0x30] ss:$8 sps:$4 sm:$0xff]  }
  0x45   : > { %1003 = vmatprep.subr.bf16.mxu1 %v2204_v36  ;;  %v2225_v42 = vld [vmem:[%s2496_s15 + $0x104] ss:$8 sps:$4 sm:$0xff]   ;;  %v2227_v43 = vld [vmem:[%s2496_s15 + $0x100] ss:$8 sps:$4 sm:$0xff]   ;;  %v2231_v45 = vld [vmem:[%s2496_s15 + $0x114] ss:$8 sps:$4 sm:$0xff]  }
  0x46   : > { %v2213_v44 = vld [vmem:[%s2496_s15 + $0x44] ss:$8 sps:$4 sm:$0xff]   ;;  %1114 = vmatprep.subr.bf16.mxu0 %v2225_v42  ;;  %v2233_v46 = vld [vmem:[%s2496_s15 + $0x110] ss:$8 sps:$4 sm:$0xff]   ;;  %v2215_v47 = vld [vmem:[%s2496_s15 + $0x40] ss:$8 sps:$4 sm:$0xff]  }
  0x47   : > { %1115 = vmatpush1.bf16.msra.mxu0 %v2227_v43  ;;  %v2216_v48 = vld [vmem:[%s2496_s15 + $0x54] ss:$8 sps:$4 sm:$0xff]   ;;  %v2237_v49 = vld [vmem:[%s2496_s15 + $0x124] ss:$8 sps:$4 sm:$0xff]   ;;  %v2239_v50 = vld [vmem:[%s2496_s15 + $0x120] ss:$8 sps:$4 sm:$0xff]  }
  0x48   : > { %1004 = vmatpush1.bf16.msra.mxu1 %v2206_v37  ;;  %1116 = vmatprep.subr.bf16.mxu0 %v2231_v45  ;;  %v2218_v51 = vld [vmem:[%s2496_s15 + $0x50] ss:$8 sps:$4 sm:$0xff]   ;;  %v2243_v52 = vld [vmem:[%s2496_s15 + $0x134] ss:$8 sps:$4 sm:$0xff]   ;;  %v2219_v53 = vld [vmem:[%s2496_s15 + $0x64] ss:$8 sps:$4 sm:$0xff]  }
  0x49   : > { %1005 = vmatprep.subr.bf16.mxu1 %v2207_v38  ;;  %v2245_v54 = vld [vmem:[%s2496_s15 + $0x130] ss:$8 sps:$4 sm:$0xff]   ;;  %v2221_v55 = vld [vmem:[%s2496_s15 + $0x60] ss:$8 sps:$4 sm:$0xff]   ;;  %v2249_v56 = vld [vmem:[%s2496_s15 + $0x144] ss:$8 sps:$4 sm:$0xff]  }
  0x4a   : > { %v2222_v57 = vld [vmem:[%s2496_s15 + $0x74] ss:$8 sps:$4 sm:$0xff]   ;;  %v2251_v58 = vld [vmem:[%s2496_s15 + $0x140] ss:$8 sps:$4 sm:$0xff]   ;;  %v2224_v59 = vld [vmem:[%s2496_s15 + $0x70] ss:$8 sps:$4 sm:$0xff]  }
  0x4b   : > { %1117 = vmatpush1.bf16.msra.mxu0 %v2233_v46  ;;  %v2255_v60 = vld [vmem:[%s2496_s15 + $0x154] ss:$8 sps:$4 sm:$0xff]   ;;  %v2228_v61 = vld [vmem:[%s2496_s15 + $0x84] ss:$8 sps:$4 sm:$0xff]   ;;  %v2257_v62 = vld [vmem:[%s2496_s15 + $0x150] ss:$8 sps:$4 sm:$0xff]  }
  0x4c   : > { %1006 = vmatpush1.bf16.msra.mxu1 %v2209_v39  ;;  %1118 = vmatprep.subr.bf16.mxu0 %v2237_v49  ;;  %v2230_v63 = vld [vmem:[%s2496_s15 + $0x80] ss:$8 sps:$4 sm:$0xff]   ;;  %v2261_v0 = vld [vmem:[%s2496_s15 + $0x164] ss:$8 sps:$4 sm:$0xff]   ;;  %v2234_v1 = vld [vmem:[%s2496_s15 + $0x94] ss:$8 sps:$4 sm:$0xff]  }
  0x4d   : > { %1007 = vmatprep.subr.bf16.mxu1 %v2210_v40  ;;  %v2236_v2 = vld [vmem:[%s2496_s15 + $0x90] ss:$8 sps:$4 sm:$0xff]   ;;  %v2263_v3 = vld [vmem:[%s2496_s15 + $0x160] ss:$8 sps:$4 sm:$0xff]   ;;  %v2267_v5 = vld [vmem:[%s2496_s15 + $0x174] ss:$8 sps:$4 sm:$0xff]  }
  0x4e   : > { %v2276_v4 = vld [vmem:[%s2498_s16 + $0x4] ss:$12 sps:$4 sm:$0xff]   ;;  %v2242_v8 = vld [vmem:[%s2496_s15 + $0xa0] ss:$8 sps:$4 sm:$0xff]   ;;  %v2246_v9 = vld [vmem:[%s2496_s15 + $0xb4] ss:$8 sps:$4 sm:$0xff]  }
  0x4f   : > { %1119 = vmatpush1.bf16.msra.mxu0 %v2239_v50  ;;  %v2240_v6 = vld [vmem:[%s2496_s15 + $0xa4] ss:$8 sps:$4 sm:$0xff]   ;;  %1033 = vmatprep.mubr.bf16.mxu1 %v2276_v4  ;;  %v2269_v7 = vld [vmem:[%s2496_s15 + $0x170] ss:$8 sps:$4 sm:$0xff]   ;;  %v2273_v10 = vld [vmem:[%s2498_s16 + $0x8] ss:$12 sps:$4 sm:$0xff]  }
  0x50   : > { %1008 = vmatpush1.bf16.msra.mxu1 %v2212_v41  ;;  %1120 = vmatprep.subr.bf16.mxu0 %v2243_v52  ;;  %v2248_v11 = vld [vmem:[%s2496_s15 + $0xb0] ss:$8 sps:$4 sm:$0xff]   ;;  %v2252_v12 = vld [vmem:[%s2496_s15 + $0xc4] ss:$8 sps:$4 sm:$0xff]   ;;  %v2254_v13 = vld [vmem:[%s2496_s15 + $0xc0] ss:$8 sps:$4 sm:$0xff]  }
  0x51   : > { %1009 = vmatprep.subr.bf16.mxu1 %v2213_v44  ;;  %v2258_v14 = vld [vmem:[%s2496_s15 + $0xd4] ss:$8 sps:$4 sm:$0xff]   ;;  %v2277_v15 = vld [vmem:[%s2498_s16 + $0x20] ss:$12 sps:$4 sm:$0xff]   ;;  %v2260_v16 = vld [vmem:[%s2496_s15 + $0xd0] ss:$8 sps:$4 sm:$0xff]  }
  0x52   : > { %v2264_v17 = vld [vmem:[%s2496_s15 + $0xe4] ss:$8 sps:$4 sm:$0xff]   ;;  %v2266_v18 = vld [vmem:[%s2496_s15 + $0xe0] ss:$8 sps:$4 sm:$0xff]   ;;  %v2270_v19 = vld [vmem:[%s2496_s15 + $0xf4] ss:$8 sps:$4 sm:$0xff]  }
  0x53   : > { %1121 = vmatpush1.bf16.msra.mxu0 %v2245_v54  ;;  %v2281_v20 = vld [vmem:[%s2498_s16 + $0x38] ss:$12 sps:$4 sm:$0xff]   ;;  %v2274_v22 = vld [vmem:[%s2498_s16] ss:$12 sps:$4 sm:$0xff]   ;;  %v2278_v23 = vld [vmem:[%s2498_s16 + $0x1c] ss:$12 sps:$4 sm:$0xff]  }
  0x54   : > { %1010 = vmatpush1.bf16.msra.mxu1 %v2215_v47  ;;  %1122 = vmatprep.subr.bf16.mxu0 %v2249_v56  ;;  %v2272_v21 = vld [vmem:[%s2496_s15 + $0xf0] ss:$8 sps:$4 sm:$0xff]   ;;  %v2282_v26 = vld [vmem:[%s2498_s16 + $0x34] ss:$12 sps:$4 sm:$0xff]   ;;  %v2294_v36 = vld [vmem:[%s2498_s16 + $0x7c] ss:$12 sps:$4 sm:$0xff]  }
  0x55   : > { %1011 = vmatprep.subr.bf16.mxu1 %v2216_v48  ;;  %v2285_v24 = vld [vmem:[%s2498_s16 + $0x50] ss:$12 sps:$4 sm:$0xff]   ;;  %v2280_v25 = vld [vmem:[%s2498_s16 + $0x18] ss:$12 sps:$4 sm:$0xff]   ;;  %v2289_v27 = vld [vmem:[%s2498_s16 + $0x68] ss:$12 sps:$4 sm:$0xff]  }
  0x56   : > { %v2284_v28 = vld [vmem:[%s2498_s16 + $0x30] ss:$12 sps:$4 sm:$0xff]   ;;  %v2286_v29 = vld [vmem:[%s2498_s16 + $0x4c] ss:$12 sps:$4 sm:$0xff]   ;;  %v2288_v31 = vld [vmem:[%s2498_s16 + $0x48] ss:$12 sps:$4 sm:$0xff]  }
  0x57   : > { %1123 = vmatpush1.bf16.msra.mxu0 %v2251_v58  ;;  %v2293_v30 = vld [vmem:[%s2498_s16 + $0x80] ss:$12 sps:$4 sm:$0xff]   ;;  %v2290_v32 = vld [vmem:[%s2498_s16 + $0x64] ss:$12 sps:$4 sm:$0xff]   ;;  %v2304_v42 = vld [vmem:[%s2498_s16 + $0xa8] ss:$12 sps:$4 sm:$0xff]  }
  0x58   : > { %1012 = vmatpush1.bf16.msra.mxu1 %v2218_v51  ;;  %1124 = vmatprep.subr.bf16.mxu0 %v2255_v60  ;;  %v2297_v33 = vld [vmem:[%s2498_s16 + $0x98] ss:$12 sps:$4 sm:$0xff]   ;;  %v2292_v34 = vld [vmem:[%s2498_s16 + $0x60] ss:$12 sps:$4 sm:$0xff]   ;;  %v2301_v37 = vld [vmem:[%s2498_s16 + $0xb0] ss:$12 sps:$4 sm:$0xff]  }
  0x59   : > { %1013 = vmatprep.subr.bf16.mxu1 %v2219_v53  ;;  %v2296_v38 = vld [vmem:[%s2498_s16 + $0x78] ss:$12 sps:$4 sm:$0xff]   ;;  %v2298_v39 = vld [vmem:[%s2498_s16 + $0x94] ss:$12 sps:$4 sm:$0xff]   ;;  %v2300_v40 = vld [vmem:[%s2498_s16 + $0x90] ss:$12 sps:$4 sm:$0xff]  }
  0x5a   : > { %v2302_v41 = vld [vmem:[%s2498_s16 + $0xac] ss:$12 sps:$4 sm:$0xff]   ;;  %v521_v54 = vld [vmem:[#allocation2] sm:$0xff]  ;;  %v523_v60 = vld [vmem:[#allocation2 + $0x10] sm:$0xff] }
  0x5b   : > { %1125 = vmatpush1.bf16.msra.mxu0 %v2257_v62 }
  0x5c   : > { %1014 = vmatpush1.bf16.msra.mxu1 %v2221_v55  ;;  %1126 = vmatprep.subr.bf16.mxu0 %v2261_v0  ;;  %v524_v0 = vld [vmem:[#allocation2 + $0x18] sm:$0xff] }
  0x5d   : > { %1015 = vmatprep.subr.bf16.mxu1 %v2222_v57  ;;  %v522_v57 = vld [vmem:[#allocation2 + $0x8] sm:$0xff] }
  0x5f   : > { %1127 = vmatpush1.bf16.msra.mxu0 %v2263_v3 }
  0x60   : > { %1016 = vmatpush1.bf16.msra.mxu1 %v2224_v59  ;;  %1128 = vmatprep.subr.bf16.mxu0 %v2267_v5 }
  0x61   : > { %1017 = vmatprep.subr.bf16.mxu1 %v2228_v61 }
  0x63   : > { %1129 = vmatpush1.bf16.msra.mxu0 %v2269_v7 }
  0x64   : > { %1018 = vmatpush1.bf16.msra.mxu1 %v2230_v63 }
  0x65   : > { %1019 = vmatprep.subr.bf16.mxu1 %v2234_v1 }
  0x66   : > { %1147 = vmatmul.mubr.bf16.vlgmr.msra.gmra.mrb[0].mxu0 %v2273_v10  ;;  %v525_v10 = vld [vmem:[#allocation2 + $0x20] sm:$0xff] }
  0x67   : > { %1156 = vmatprep.mubr.bf16.mxu0 %v2346_v35 }
  0x68   : > { %1020 = vmatpush1.bf16.msra.mxu1 %v2236_v2 }
  0x69   : > { %1021 = vmatprep.subr.bf16.mxu1 %v2240_v6 }
  0x6c   : > { %1022 = vmatpush1.bf16.msra.mxu1 %v2242_v8 }
  0x6d   : > { %1023 = vmatprep.subr.bf16.mxu1 %v2246_v9 }
  0x6e   : > { %1157 = vmatmul.mubr.bf16.gmra.mrb[4].mxu0 %v2277_v15 }
  0x6f   : > { %1166 = vmatprep.mubr.bf16.mxu0 %v2346_v35 }
  0x70   : > { %1024 = vmatpush1.bf16.msra.mxu1 %v2248_v11 }
  0x71   : > { %1025 = vmatprep.subr.bf16.mxu1 %v2252_v12 }
  0x74   : > { %1026 = vmatpush1.bf16.msra.mxu1 %v2254_v13  ;;  %v526_v13 = vld [vmem:[#allocation2 + $0x28] sm:$0xff] }
  0x75   : > { %1027 = vmatprep.subr.bf16.mxu1 %v2258_v14 }
  0x76   : > { %1167 = vmatmul.mubr.bf16.gmra.mrb[8].mxu0 %v2281_v20  ;;  %v528_v20 = vld [vmem:[#allocation2 + $0x38] sm:$0xff] }
  0x77   : > { %1176 = vmatprep.mubr.bf16.mxu0 %v2346_v35 }
  0x78   : > { %1028 = vmatpush1.bf16.msra.mxu1 %v2260_v16  ;;  %v527_v16 = vld [vmem:[#allocation2 + $0x30] sm:$0xff] }
  0x79   : > { %1029 = vmatprep.subr.bf16.mxu1 %v2264_v17 }
  0x7c   : > { %1030 = vmatpush1.bf16.msra.mxu1 %v2266_v18 }
  0x7d   : > { %1031 = vmatprep.subr.bf16.mxu1 %v2270_v19 }
  0x7e   : > { %1177 = vmatmul.mubr.bf16.gmra.mrb[12].mxu0 %v2285_v24 }
  0x7f   : > { %1186 = vmatprep.mubr.bf16.mxu0 %v2346_v35 }
  0x80   : > { %1032 = vmatpush1.bf16.msra.mxu1 %v2272_v21 }
  0x83   : > { %1034 = vmatmul.mubr.bf16.vlgmr.msra.gmra.mrb[0].mxu1 %v2274_v22 }
  0x84   : > { %1043 = vmatprep.mubr.bf16.mxu1 %v2278_v23 }
  0x86   : > { %1187 = vmatmul.mubr.bf16.gmra.mrb[16].mxu0 %v2289_v27 }
  0x87   : > { %1196 = vmatprep.mubr.bf16.mxu0 %v2346_v35 }
  0x8b   : > { %1044 = vmatmul.mubr.bf16.gmra.mrb[4].mxu1 %v2280_v25 }
  0x8c   : > { %1053 = vmatprep.mubr.bf16.mxu1 %v2282_v26 }
  0x8e   : > { %1197 = vmatmul.mubr.bf16.gmra.mrb[20].mxu0 %v2293_v30  ;;  %v529_v30 = vld [vmem:[#allocation2 + $0x40] sm:$0xff] }
  0x8f   : > { %1206 = vmatprep.mubr.bf16.mxu0 %v2346_v35 }
  0x93   : > { %1054 = vmatmul.mubr.bf16.gmra.mrb[8].mxu1 %v2284_v28 }
  0x94   : > { %1063 = vmatprep.mubr.bf16.mxu1 %v2286_v29 }
  0x96   : > { %1207 = vmatmul.mubr.bf16.gmra.mrb[24].mxu0 %v2297_v33  ;;  %v530_v33 = vld [vmem:[#allocation2 + $0x48] sm:$0xff] }
  0x97   : > { %1216 = vmatprep.mubr.bf16.mxu0 %v2346_v35 }
  0x9b   : > { %1064 = vmatmul.mubr.bf16.gmra.mrb[12].mxu1 %v2288_v31 }
  0x9c   : > { %1073 = vmatprep.mubr.bf16.mxu1 %v2290_v32 }
  0x9e   : > { %1217 = vmatmul.mubr.bf16.gmra.mrb[28].mxu0 %v2301_v37  ;;  %v531_v37 = vld [vmem:[#allocation2 + $0x50] sm:$0xff] }
  0xa3   : > { %1074 = vmatmul.mubr.bf16.gmra.mrb[16].mxu1 %v2292_v34 }
  0xa4   : > { %1083 = vmatprep.mubr.bf16.mxu1 %v2294_v36 }
  0xab   : > { %1084 = vmatmul.mubr.bf16.gmra.mrb[20].mxu1 %v2296_v38 }
  0xac   : > { %1093 = vmatprep.mubr.bf16.mxu1 %v2298_v39 }
  0xb3   : > { %1094 = vmatmul.mubr.bf16.gmra.mrb[24].mxu1 %v2300_v40 }
  0xb4   : > { %1103 = vmatprep.mubr.bf16.mxu1 %v2302_v41  ;;  %v532_v41 = vld [vmem:[#allocation2 + $0x58] sm:$0xff] }
  0xbb   : > { %1104 = vmatmul.mubr.bf16.gmra.mrb[28].mxu1 %v2304_v42 }
 0x139   : > { %v1148_v43 = vpop.f32.mrb[0].mxu0 }
 0x13a   : > { %v1150_v44 = vpop.f32.mrb[1].mxu0 }
 0x13b   : > { %v1152_v45 = vpop.f32.mrb[2].mxu0 }
 0x13c   : > { %v1154_v46 = vpop.f32.mrb[3].mxu0 }
 0x141   : > { %v1158_v35 = vpop.f32.mrb[4].mxu0 }
 0x142   : > { %v1160_v47 = vpop.f32.mrb[5].mxu0 }
 0x143   : > { %v1162_v48 = vpop.f32.mrb[6].mxu0 }
 0x144   : > { %v1164_v49 = vpop.f32.mrb[7].mxu0 }
 0x149   : > { %v1168_v50 = vpop.f32.mrb[8].mxu0 }
 0x14a   : > { %v1170_v51 = vpop.f32.mrb[9].mxu0 }
 0x14b   : > { %v1172_v52 = vpop.f32.mrb[10].mxu0 }
 0x14c   : > { %v2581_v53 = vpop.f32.mrb[11].mxu0 }
 0x151   : > { %v1178_v2 = vpop.f32.mrb[12].mxu0 }
 0x152   : > { %v1180_v5 = vpop.f32.mrb[13].mxu0 }
 0x153   : > { %v2583_v7 = vpop.f32.mrb[14].mxu0 }
 0x154   : > { %v2585_v9 = vpop.f32.mrb[15].mxu0 }
 0x156   : > { %v1035_v55 = vpop.f32.mrb[0].mxu1 }
 0x157   : > { %v1149_v56 = vadd.f32 %v1148_v43, %v1035_v55  ;;  %v1037_v58 = vpop.f32.mrb[1].mxu1 }
 0x158   : > { %v1151_v59 = vadd.f32 %v1150_v44, %v1037_v58  ;;  %v1039_v61 = vpop.f32.mrb[2].mxu1 }
 0x159   : > { %v1227_v62 = vadd.f32 %v1149_v56, %v521_v54  ;;  %v1153_v63 = vadd.f32 %v1152_v45, %v1039_v61  ;;  %v1041_v1 = vpop.f32.mrb[3].mxu1  ;;  %v1188_v22 = vpop.f32.mrb[16].mxu0  ;;  %v534_v54 = vld [vmem:[#allocation2 + $0x68] sm:$0xff] }
 0x15a   : > { %v1228_v3 = vadd.f32 %v1151_v59, %v522_v57  ;;  %v1155_v4 = vadd.f32 %v1154_v46, %v1041_v1  ;;  %v1190_v25 = vpop.f32.mrb[17].mxu0  ;;  %v535_v57 = vld [vmem:[#allocation2 + $0x70] sm:$0xff] }
 0x15b   : > { %1259 = vst [vmem:[#allocation2] sm:$0xff] %v1227_v62  ;;  %v1229_v6 = vadd.f32 %v1153_v63, %v523_v60  ;;  %v2587_v27 = vpop.f32.mrb[18].mxu0  ;;  %v536_v60 = vld [vmem:[#allocation2 + $0x78] sm:$0xff] }
 0x15c   : > { %1260 = vst [vmem:[#allocation2 + $0x8] sm:$0xff] %v1228_v3  ;;  %v1230_v8 = vadd.f32 %v1155_v4, %v524_v0  ;;  %v2589_v29 = vpop.f32.mrb[19].mxu0 }
 0x15d   : > { %1261 = vst [vmem:[#allocation2 + $0x10] sm:$0xff] %v1229_v6 }
 0x15e   : > { %1262 = vst [vmem:[#allocation2 + $0x18] sm:$0xff] %v1230_v8  ;;  %v1045_v11 = vpop.f32.mrb[4].mxu1 }
 0x15f   : > { %v1159_v12 = vadd.f32 %v1158_v35, %v1045_v11  ;;  %v1047_v14 = vpop.f32.mrb[5].mxu1  ;;  %v538_v11 = vld [vmem:[#allocation2 + $0x88] sm:$0xff] }
 0x160   : > { %v1161_v15 = vadd.f32 %v1160_v47, %v1047_v14  ;;  %v1049_v17 = vpop.f32.mrb[6].mxu1 }
 0x161   : > { %v1231_v18 = vadd.f32 %v1159_v12, %v525_v10  ;;  %v1163_v19 = vadd.f32 %v1162_v48, %v1049_v17  ;;  %v1051_v21 = vpop.f32.mrb[7].mxu1  ;;  %v1198_v43 = vpop.f32.mrb[20].mxu0 }
 0x162   : > { %v1232_v23 = vadd.f32 %v1161_v15, %v526_v13  ;;  %v1165_v24 = vadd.f32 %v1164_v49, %v1051_v21  ;;  %v1200_v46 = vpop.f32.mrb[21].mxu0  ;;  %v539_v13 = vld [vmem:[#allocation2 + $0x90] sm:$0xff] }
 0x163   : > { %1263 = vst [vmem:[#allocation2 + $0x20] sm:$0xff] %v1231_v18  ;;  %v1233_v26 = vadd.f32 %v1163_v19, %v527_v16  ;;  %v2592_v47 = vpop.f32.mrb[22].mxu0  ;;  %v540_v16 = vld [vmem:[#allocation2 + $0x98] sm:$0xff] }
 0x164   : > { %1264 = vst [vmem:[#allocation2 + $0x28] sm:$0xff] %v1232_v23  ;;  %v1234_v28 = vadd.f32 %v1165_v24, %v528_v20  ;;  %v2594_v49 = vpop.f32.mrb[23].mxu0 }
 0x165   : > { %1265 = vst [vmem:[#allocation2 + $0x30] sm:$0xff] %v1233_v26 }
 0x166   : > { %1266 = vst [vmem:[#allocation2 + $0x38] sm:$0xff] %v1234_v28  ;;  %v1055_v31 = vpop.f32.mrb[8].mxu1 }
 0x167   : > { %v1169_v32 = vadd.f32 %v1168_v50, %v1055_v31  ;;  %v1057_v34 = vpop.f32.mrb[9].mxu1  ;;  %v533_v50 = vld [vmem:[#allocation2 + $0x60] sm:$0xff]  ;;  %v542_v31 = vld [vmem:[#allocation2 + $0xa8] sm:$0xff] }
 0x168   : > { %v1171_v36 = vadd.f32 %v1170_v51, %v1057_v34  ;;  %v1059_v38 = vpop.f32.mrb[10].mxu1 }
 0x169   : > { %v1235_v39 = vadd.f32 %v1169_v32, %v529_v30  ;;  %v1173_v40 = vadd.f32 %v1172_v52, %v1059_v38  ;;  %v1061_v42 = vpop.f32.mrb[11].mxu1  ;;  %v1208_v62 = vpop.f32.mrb[24].mxu0 }
 0x16a   : > { %v1236_v44 = vadd.f32 %v1171_v36, %v530_v33  ;;  %v1175_v45 = vadd.f32 %v2581_v53, %v1061_v42  ;;  %v1210_v1 = vpop.f32.mrb[25].mxu0  ;;  %v543_v33 = vld [vmem:[#allocation2 + $0xb0] sm:$0xff] }
 0x16b   : > { %1267 = vst [vmem:[#allocation2 + $0x40] sm:$0xff] %v1235_v39  ;;  %v1237_v35 = vadd.f32 %v1173_v40, %v531_v37  ;;  %v1212_v4 = vpop.f32.mrb[26].mxu0  ;;  %v544_v37 = vld [vmem:[#allocation2 + $0xb8] sm:$0xff] }
 0x16c   : > { %1268 = vst [vmem:[#allocation2 + $0x48] sm:$0xff] %v1236_v44  ;;  %v1238_v48 = vadd.f32 %v1175_v45, %v532_v41  ;;  %v1214_v6 = vpop.f32.mrb[27].mxu0 }
 0x16d   : > { %1269 = vst [vmem:[#allocation2 + $0x50] sm:$0xff] %v1237_v35 }
 0x16e   : > { %1270 = vst [vmem:[#allocation2 + $0x58] sm:$0xff] %v1238_v48  ;;  %v1065_v51 = vpop.f32.mrb[12].mxu1 }
 0x16f   : > { %v1179_v52 = vadd.f32 %v1178_v2, %v1065_v51  ;;  %v1067_v55 = vpop.f32.mrb[13].mxu1 }
 0x170   : > { %v1181_v56 = vadd.f32 %v1180_v5, %v1067_v55  ;;  %v1069_v58 = vpop.f32.mrb[14].mxu1  ;;  %v537_v5 = vld [vmem:[#allocation2 + $0x80] sm:$0xff] }
 0x171   : > { %v1239_v53 = vadd.f32 %v1179_v52, %v533_v50  ;;  %v1183_v59 = vadd.f32 %v2583_v7, %v1069_v58  ;;  %v1071_v61 = vpop.f32.mrb[15].mxu1  ;;  %v1218_v18 = vpop.f32.mrb[28].mxu0  ;;  %v547_v50 = vld [vmem:[#allocation2 + $0xd0] sm:$0xff] }
 0x172   : > { %v1240_v63 = vadd.f32 %v1181_v56, %v534_v54  ;;  %v1185_v0 = vadd.f32 %v2585_v9, %v1071_v61  ;;  %v1220_v21 = vpop.f32.mrb[29].mxu0  ;;  %v548_v54 = vld [vmem:[#allocation2 + $0xd8] sm:$0xff]  ;;  %v550_v61 = vld [vmem:[#allocation2 + $0xe8] sm:$0xff] }
 0x173   : > { %1271 = vst [vmem:[#allocation2 + $0x60] sm:$0xff] %v1239_v53  ;;  %v1241_v3 = vadd.f32 %v1183_v59, %v535_v57  ;;  %v1222_v24 = vpop.f32.mrb[30].mxu0  ;;  %v549_v53 = vld [vmem:[#allocation2 + $0xe0] sm:$0xff] }
 0x174   : > { %1272 = vst [vmem:[#allocation2 + $0x68] sm:$0xff] %v1240_v63  ;;  %v1242_v2 = vadd.f32 %v1185_v0, %v536_v60  ;;  %v1224_v26 = vpop.f32.mrb[31].mxu0  ;;  %v551_v0 = vld [vmem:[#allocation2 + $0xf0] sm:$0xff] }
 0x175   : > { %1273 = vst [vmem:[#allocation2 + $0x70] sm:$0xff] %v1241_v3 }
 0x176   : > { %1274 = vst [vmem:[#allocation2 + $0x78] sm:$0xff] %v1242_v2  ;;  %v1075_v8 = vpop.f32.mrb[16].mxu1  ;;  %v552_v2 = vld [vmem:[#allocation2 + $0xf8] sm:$0xff] }
 0x177   : > { %v1189_v10 = vadd.f32 %v1188_v22, %v1075_v8  ;;  %v1077_v7 = vpop.f32.mrb[17].mxu1 }
 0x178   : > { %v1191_v12 = vadd.f32 %v1190_v25, %v1077_v7  ;;  %v1079_v14 = vpop.f32.mrb[18].mxu1  ;;  %v541_v25 = vld [vmem:[#allocation2 + $0xa0] sm:$0xff] }
 0x179   : > { %v1243_v15 = vadd.f32 %v1189_v10, %v537_v5  ;;  %v1193_v9 = vadd.f32 %v2587_v27, %v1079_v14  ;;  %v1081_v17 = vpop.f32.mrb[19].mxu1 }
 0x17a   : > { %v1244_v19 = vadd.f32 %v1191_v12, %v538_v11  ;;  %v1195_v20 = vadd.f32 %v2589_v29, %v1081_v17 }
 0x17b   : > { %1275 = vst [vmem:[#allocation2 + $0x80] sm:$0xff] %v1243_v15  ;;  %v1245_v23 = vadd.f32 %v1193_v9, %v539_v13 }
 0x17c   : > { %1276 = vst [vmem:[#allocation2 + $0x88] sm:$0xff] %v1244_v19  ;;  %v1246_v22 = vadd.f32 %v1195_v20, %v540_v16 }
 0x17d   : > { %1277 = vst [vmem:[#allocation2 + $0x90] sm:$0xff] %v1245_v23 }
 0x17e   : > { %1278 = vst [vmem:[#allocation2 + $0x98] sm:$0xff] %v1246_v22  ;;  %v1085_v28 = vpop.f32.mrb[20].mxu1 }
 0x17f   : > { %v1199_v30 = vadd.f32 %v1198_v43, %v1085_v28  ;;  %v1087_v27 = vpop.f32.mrb[21].mxu1  ;;  %v545_v43 = vld [vmem:[#allocation2 + $0xc0] sm:$0xff] }
 0x180   : > { %v1201_v32 = vadd.f32 %v1200_v46, %v1087_v27  ;;  %v1089_v34 = vpop.f32.mrb[22].mxu1  ;;  %v546_v46 = vld [vmem:[#allocation2 + $0xc8] sm:$0xff] }
 0x181   : > { %v1247_v36 = vadd.f32 %v1199_v30, %v541_v25  ;;  %v1203_v29 = vadd.f32 %v2592_v47, %v1089_v34  ;;  %v1091_v38 = vpop.f32.mrb[23].mxu1 }
 0x182   : > { %v1248_v39 = vadd.f32 %v1201_v32, %v542_v31  ;;  %v1205_v40 = vadd.f32 %v2594_v49, %v1091_v38 }
 0x183   : > { %1279 = vst [vmem:[#allocation2 + $0xa0] sm:$0xff] %v1247_v36  ;;  %v1249_v41 = vadd.f32 %v1203_v29, %v543_v33 }
 0x184   : > { %1280 = vst [vmem:[#allocation2 + $0xa8] sm:$0xff] %v1248_v39  ;;  %v1250_v42 = vadd.f32 %v1205_v40, %v544_v37 }
 0x185   : > { %1281 = vst [vmem:[#allocation2 + $0xb0] sm:$0xff] %v1249_v41 }
 0x186   : > { %1282 = vst [vmem:[#allocation2 + $0xb8] sm:$0xff] %v1250_v42  ;;  %v1095_v44 = vpop.f32.mrb[24].mxu1 }
 0x187   : > { %v1209_v45 = vadd.f32 %v1208_v62, %v1095_v44  ;;  %v1097_v35 = vpop.f32.mrb[25].mxu1 }
 0x188   : > { %v1211_v48 = vadd.f32 %v1210_v1, %v1097_v35  ;;  %v1099_v51 = vpop.f32.mrb[26].mxu1 }
 0x189   : > { %v1251_v47 = vadd.f32 %v1209_v45, %v545_v43  ;;  %v1213_v52 = vadd.f32 %v1212_v4, %v1099_v51  ;;  %v1101_v55 = vpop.f32.mrb[27].mxu1 }
 0x18a   : > { %v1252_v56 = vadd.f32 %v1211_v48, %v546_v46  ;;  %v1215_v49 = vadd.f32 %v1214_v6, %v1101_v55 }
 0x18b   : > { %1283 = vst [vmem:[#allocation2 + $0xc0] sm:$0xff] %v1251_v47  ;;  %v1253_v57 = vadd.f32 %v1213_v52, %v547_v50 }
 0x18c   : > { %1284 = vst [vmem:[#allocation2 + $0xc8] sm:$0xff] %v1252_v56  ;;  %v1254_v58 = vadd.f32 %v1215_v49, %v548_v54 }
 0x18d   : > { %1285 = vst [vmem:[#allocation2 + $0xd0] sm:$0xff] %v1253_v57 }
 0x18e   : > { %1286 = vst [vmem:[#allocation2 + $0xd8] sm:$0xff] %v1254_v58  ;;  %v1105_v59 = vpop.f32.mrb[28].mxu1 }
 0x18f   : > { %v1219_v60 = vadd.f32 %v1218_v18, %v1105_v59  ;;  %v1107_v62 = vpop.f32.mrb[29].mxu1 }
 0x190   : > { %v1221_v63 = vadd.f32 %v1220_v21, %v1107_v62  ;;  %v1109_v1 = vpop.f32.mrb[30].mxu1  ;;  %1294 = sbr.rel (%p2051_p11) target bundleno = 471 (0x1d7), region = 70 }
 0x191   : > { %v1255_v3 = vadd.f32 %v1219_v60, %v549_v53  ;;  %v1223_v4 = vadd.f32 %v1222_v24, %v1109_v1  ;;  %v1111_v5 = vpop.f32.mrb[31].mxu1 }
 0x192   : > { %v1256_v8 = vadd.f32 %v1221_v63, %v550_v61  ;;  %v1225_v6 = vadd.f32 %v1224_v26, %v1111_v5 }
 0x193   : > { %1287 = vst [vmem:[#allocation2 + $0xe0] sm:$0xff] %v1255_v3  ;;  %v1257_v10 = vadd.f32 %v1223_v4, %v551_v0 }
 0x194   : > { %1288 = vst [vmem:[#allocation2 + $0xe8] sm:$0xff] %v1256_v8  ;;  %v1258_v11 = vadd.f32 %v1225_v6, %v552_v2 }
 0x195   : > { %1289 = vst [vmem:[#allocation2 + $0xf0] sm:$0xff] %v1257_v10 }
 0x196   : > { %1290 = vst [vmem:[#allocation2 + $0xf8] sm:$0xff] %v1258_v11 }
 0x197   : > { %v1329_v7 = vlaneseq  ;;  %v1327_v13 = vld [vmem:[%s3187_s2] sm:$0x3]  ;;  %v1296_v15 = vld [vmem:[#allocation2 + $0x8] sm:$0xff]  ;;  %v1297_v19 = vld [vmem:[#allocation2 + $0x10] sm:$0xff]  ;;  %v3191_v47 = vmov 0.0  }
 0x198   : > { %v1295_v14 = vld [vmem:[#allocation2] sm:$0xff]  ;;  %v1372_v18 = vld [vmem:[%s3188_s3 + $0x8] sm:$0xff]  ;;  %v1298_v20 = vld [vmem:[#allocation2 + $0x18] sm:$0xff] }
 0x199   : > { %v1330_v12 = vshrl.u32 %v1329_v7, 7  ;;  %v1371_v17 = vld [vmem:[%s3188_s3] sm:$0xff]  ;;  %v1300_v22 = vld [vmem:[#allocation2 + $0x28] sm:$0xff]  ;;  %v1301_v26 = vld [vmem:[#allocation2 + $0x30] sm:$0xff] }
 0x19a   : > { %v1299_v21 = vld [vmem:[#allocation2 + $0x20] sm:$0xff]  ;;  %v1302_v25 = vld [vmem:[#allocation2 + $0x38] sm:$0xff]  ;;  %v1373_v28 = vld [vmem:[%s3188_s3 + $0x10] sm:$0xff] }
 0x19b   : > { %v1331_v9 = vsub.s32 0, %v1330_v12  ;;  %v1335_v16 = vsub.s32 1, %v1330_v12  ;;  %v1374_v30 = vld [vmem:[%s3188_s3 + $0x18] sm:$0xff]  ;;  %v1375_v31 = vld [vmem:[%s3188_s3 + $0x20] sm:$0xff]  ;;  %v1376_v36 = vld [vmem:[%s3188_s3 + $0x28] sm:$0xff] }
 0x19c   : > { %v1377_v29 = vld [vmem:[%s3188_s3 + $0x30] sm:$0xff]  ;;  %v1378_v37 = vld [vmem:[%s3188_s3 + $0x38] sm:$0xff]  ;;  %v1303_v51 = vld [vmem:[#allocation2 + $0x40] sm:$0xff] }
 0x19d   : > { %v2612_v23 = vrot.slane %v1327_v13, %v1331_v9  ;;  %v2614_v24 = vrot.slane %v1327_v13, %v1335_v16  ;;  %v1304_v49 = vld [vmem:[#allocation2 + $0x48] sm:$0xff]  ;;  %v1379_v57 = vld [vmem:[%s3188_s3 + $0x40] sm:$0xff]  ;;  %v1305_v60 = vld [vmem:[#allocation2 + $0x50] sm:$0xff] }
 0x19e   : > { %v1380_v59 = vld [vmem:[%s3188_s3 + $0x48] sm:$0xff]  ;;  %v1306_v61 = vld [vmem:[#allocation2 + $0x58] sm:$0xff]  ;;  %v1307_v62 = vld [vmem:[#allocation2 + $0x60] sm:$0xff] }
 0x19f   : > { %v1339_v27 = vadd.f32 %v2612_v23, %v1295_v14  ;;  %v1340_v32 = vadd.f32 %v2614_v24, %v1296_v15  ;;  %v1341_v33 = vadd.f32 %v2612_v23, %v1297_v19  ;;  %v1342_v34 = vadd.f32 %v2614_v24, %v1298_v20  ;;  %v1308_v1 = vld [vmem:[#allocation2 + $0x68] sm:$0xff]  ;;  %v1309_v3 = vld [vmem:[#allocation2 + $0x70] sm:$0xff]  ;;  %v1382_v10 = vld [vmem:[%s3188_s3 + $0x58] sm:$0xff] }
 0x1a0   : > { %v1343_v38 = vadd.f32 %v2612_v23, %v1299_v21  ;;  %v1344_v39 = vadd.f32 %v2614_v24, %v1300_v22  ;;  %v1345_v40 = vadd.f32 %v2612_v23, %v1301_v26  ;;  %v1346_v41 = vadd.f32 %v2614_v24, %v1302_v25  ;;  %v1381_v6 = vld [vmem:[%s3188_s3 + $0x50] sm:$0xff]  ;;  %v1310_v11 = vld [vmem:[#allocation2 + $0x78] sm:$0xff]  ;;  %v1383_v15 = vld [vmem:[%s3188_s3 + $0x60] sm:$0xff] }
 0x1a1   : > { %v2642_v42 = vadd.f32 %v1371_v17, %v1339_v27  ;;  %v2644_v43 = vadd.f32 %v1372_v18, %v1340_v32  ;;  %v2646_v44 = vadd.f32 %v1373_v28, %v1341_v33  ;;  %v2648_v45 = vadd.f32 %v1374_v30, %v1342_v34  ;;  %v1384_v9 = vld [vmem:[%s3188_s3 + $0x68] sm:$0xff]  ;;  %v1385_v16 = vld [vmem:[%s3188_s3 + $0x70] sm:$0xff]  ;;  %v1386_v32 = vld [vmem:[%s3188_s3 + $0x78] sm:$0xff] }
 0x1a2   : > { %v2650_v46 = vadd.f32 %v1375_v31, %v1343_v38  ;;  %v2652_v35 = vadd.f32 %v1376_v36, %v1344_v39  ;;  %v2654_v48 = vadd.f32 %v1377_v29, %v1345_v40  ;;  %v2656_v50 = vadd.f32 %v1378_v37, %v1346_v41  ;;  %v1311_v33 = vld [vmem:[#allocation2 + $0x80] sm:$0xff]  ;;  %v1312_v37 = vld [vmem:[#allocation2 + $0x88] sm:$0xff]  ;;  %v1313_v38 = vld [vmem:[#allocation2 + $0x90] sm:$0xff] }
 0x1a3   : > { %vm1435_vm0 = vcmp.ge.f32.partialorder %v2642_v42, 1.0  ;;  %vm1436_vm1 = vcmp.ge.f32.partialorder %v2644_v43, 1.0  ;;  %vm1437_vm2 = vcmp.ge.f32.partialorder %v2646_v44, 1.0  ;;  %vm1438_vm3 = vcmp.ge.f32.partialorder %v2648_v45, 1.0 }
 0x1a4   : > { %v2663_v52 = vsel %vm1435_vm0, 1.0, %v3191_v47  ;;  %v2666_v54 = vsel %vm1436_vm1, 1.0, %v3191_v47  ;;  %v2669_v55 = vsel %vm1437_vm2, 1.0, %v3191_v47  ;;  %v2672_v56 = vsel %vm1438_vm3, 1.0, %v3191_v47 }
 0x1a5   : > { %v2108_v58 = vpack.c.bf16 %v2666_v54, %v2663_v52  ;;  %v2109_v53 = vpack.c.bf16 %v2672_v56, %v2669_v55  ;;  %vm1439_vm4 = vcmp.ge.f32.partialorder %v2650_v46, 1.0  ;;  %vm1440_vm5 = vcmp.ge.f32.partialorder %v2652_v35, 1.0 }
 0x1a6   : > { %v2687_v63 = vsel %vm1439_vm4, 1.0, %v3191_v47  ;;  %v2690_v0 = vsel %vm1440_vm5, 1.0, %v3191_v47  ;;  %vm1441_vm6 = vcmp.ge.f32.partialorder %v2654_v48, 1.0  ;;  %vm1442_vm7 = vcmp.ge.f32.partialorder %v2656_v50, 1.0 }
 0x1a7   : > { %1627 = vst [vmem:[%s3189_s4] sm:$0xff] %v2108_v58  ;;  %1628 = vst [vmem:[%s3189_s4 + $0x8] sm:$0xff] %v2109_v53  ;;  %v2110_v4 = vpack.c.bf16 %v2690_v0, %v2687_v63  ;;  %v2703_v2 = vsel %vm1441_vm6, 1.0, %v3191_v47  ;;  %v2706_v5 = vsel %vm1442_vm7, 1.0, %v3191_v47  ;;  %v1347_v8 = vadd.f32 %v2612_v23, %v1303_v51  ;;  %v1387_v51 = vld [vmem:[%s3188_s3 + $0x80] sm:$0xff] }
 0x1a8   : > { %v2111_v7 = vpack.c.bf16 %v2706_v5, %v2703_v2  ;;  %v1348_v12 = vadd.f32 %v2614_v24, %v1304_v49  ;;  %v1349_v13 = vadd.f32 %v2612_v23, %v1305_v60  ;;  %v1350_v14 = vadd.f32 %v2614_v24, %v1306_v61  ;;  %v1314_v49 = vld [vmem:[#allocation2 + $0x98] sm:$0xff]  ;;  %v1388_v60 = vld [vmem:[%s3188_s3 + $0x88] sm:$0xff]  ;;  %v1389_v61 = vld [vmem:[%s3188_s3 + $0x90] sm:$0xff] }
 0x1a9   : > { %1629 = vst [vmem:[%s3189_s4 + $0x10] sm:$0xff] %v2110_v4  ;;  %v2732_v17 = vadd.f32 %v1379_v57, %v1347_v8  ;;  %v1351_v18 = vadd.f32 %v2612_v23, %v1307_v62  ;;  %v1352_v19 = vadd.f32 %v2614_v24, %v1308_v1  ;;  %v1353_v20 = vadd.f32 %v2612_v23, %v1309_v3  ;;  %v1315_v57 = vld [vmem:[#allocation2 + $0xa0] sm:$0xff]  ;;  %v1316_v62 = vld [vmem:[#allocation2 + $0xa8] sm:$0xff] }
 0x1aa   : > { %1630 = vst [vmem:[%s3189_s4 + $0x18] sm:$0xff] %v2111_v7  ;;  %v2740_v21 = vadd.f32 %v1380_v59, %v1348_v12  ;;  %v2742_v22 = vadd.f32 %v1381_v6, %v1349_v13  ;;  %v2744_v26 = vadd.f32 %v1382_v10, %v1350_v14  ;;  %v1354_v25 = vadd.f32 %v2614_v24, %v1310_v11  ;;  %v1390_v6 = vld [vmem:[%s3188_s3 + $0x98] sm:$0xff]  ;;  %v1391_v10 = vld [vmem:[%s3188_s3 + $0xa0] sm:$0xff]  ;;  %v1392_v13 = vld [vmem:[%s3188_s3 + $0xa8] sm:$0xff] }
 0x1ab   : > { %vm1443_vm8 = vcmp.ge.f32.partialorder %v2732_v17, 1.0  ;;  %v2748_v28 = vadd.f32 %v1383_v15, %v1351_v18  ;;  %v2750_v30 = vadd.f32 %v1384_v9, %v1352_v19  ;;  %v2752_v31 = vadd.f32 %v1385_v16, %v1353_v20 }
 0x1ac   : > { %vm1444_vm9 = vcmp.ge.f32.partialorder %v2740_v21, 1.0  ;;  %v2756_v27 = vsel %vm1443_vm8, 1.0, %v3191_v47  ;;  %vm1445_vm10 = vcmp.ge.f32.partialorder %v2742_v22, 1.0  ;;  %vm1446_vm11 = vcmp.ge.f32.partialorder %v2744_v26, 1.0 }
 0x1ad   : > { %v2764_v34 = vsel %vm1444_vm9, 1.0, %v3191_v47  ;;  %v2767_v36 = vsel %vm1445_vm10, 1.0, %v3191_v47  ;;  %v2770_v29 = vsel %vm1446_vm11, 1.0, %v3191_v47  ;;  %vm1447_vm12 = vcmp.ge.f32.partialorder %v2748_v28, 1.0 }
 0x1ae   : > { %v2112_v39 = vpack.c.bf16 %v2764_v34, %v2756_v27  ;;  %v2113_v40 = vpack.c.bf16 %v2770_v29, %v2767_v36  ;;  %vm1448_vm13 = vcmp.ge.f32.partialorder %v2750_v30, 1.0  ;;  %v2779_v41 = vsel %vm1447_vm12, 1.0, %v3191_v47 }
 0x1af   : > { %v2785_v58 = vsel %vm1448_vm13, 1.0, %v3191_v47  ;;  %v2787_v53 = vadd.f32 %v1386_v32, %v1354_v25  ;;  %vm1449_vm14 = vcmp.ge.f32.partialorder %v2752_v31, 1.0  ;;  %v1355_v59 = vadd.f32 %v2612_v23, %v1311_v33  ;;  %v1317_v25 = vld [vmem:[#allocation2 + $0xb0] sm:$0xff]  ;;  %v1318_v32 = vld [vmem:[#allocation2 + $0xb8] sm:$0xff] }
 0x1b0   : > { %1631 = vst [vmem:[%s3189_s4 + $0x20] sm:$0xff] %v2112_v39  ;;  %1632 = vst [vmem:[%s3189_s4 + $0x28] sm:$0xff] %v2113_v40  ;;  %v2114_v1 = vpack.c.bf16 %v2785_v58, %v2779_v41  ;;  %v2806_v3 = vsel %vm1449_vm14, 1.0, %v3191_v47  ;;  %v1356_v4 = vadd.f32 %v2614_v24, %v1312_v37  ;;  %v1357_v8 = vadd.f32 %v2612_v23, %v1313_v38  ;;  %v1393_v38 = vld [vmem:[%s3188_s3 + $0xb0] sm:$0xff]  ;;  %v1394_v39 = vld [vmem:[%s3188_s3 + $0xb8] sm:$0xff] }
 0x1b1   : > { %vm1450_vm15 = vcmp.ge.f32.partialorder %v2787_v53, 1.0  ;;  %v2817_v11 = vadd.f32 %v1387_v51, %v1355_v59  ;;  %v1358_v7 = vadd.f32 %v2614_v24, %v1314_v49  ;;  %v1359_v12 = vadd.f32 %v2612_v23, %v1315_v57  ;;  %v1319_v40 = vld [vmem:[#allocation2 + $0xc0] sm:$0xff]  ;;  %v1320_v57 = vld [vmem:[#allocation2 + $0xc8] sm:$0xff]  ;;  %v1321_v59 = vld [vmem:[#allocation2 + $0xd0] sm:$0xff] }
 0x1b2   : > { %1633 = vst [vmem:[%s3189_s4 + $0x30] sm:$0xff] %v2114_v1  ;;  %v2828_v14 = vsel %vm1450_vm15, 1.0, %v3191_v47  ;;  %v2830_v15 = vadd.f32 %v1388_v60, %v1356_v4  ;;  %v2832_v9 = vadd.f32 %v1389_v61, %v1357_v8  ;;  %v1360_v16 = vadd.f32 %v2614_v24, %v1316_v62  ;;  %v1395_v1 = vld [vmem:[%s3188_s3 + $0xc0] sm:$0xff]  ;;  %v1322_v4 = vld [vmem:[#allocation2 + $0xd8] sm:$0xff] }
 0x1b3   : > { %v2115_v18 = vpack.c.bf16 %v2828_v14, %v2806_v3  ;;  %vm1451_vm0 = vcmp.ge.f32.partialorder %v2817_v11, 1.0  ;;  %v2838_v19 = vadd.f32 %v1390_v6, %v1358_v7  ;;  %v2840_v20 = vadd.f32 %v1391_v10, %v1359_v12  ;;  %v1323_v8 = vld [vmem:[#allocation2 + $0xe0] sm:$0xff] }
 0x1b4   : > { %3202 = vst [vmem:[#allocation4_spill] sm:$0xff] %v2830_v15  ;;  %3203 = vst [vmem:[#allocation5_spill] sm:$0xff] %v2832_v9  ;;  %vm1452_vm1 = vcmp.ge.f32.partialorder %v2830_v15, 1.0  ;;  %v2844_v33 = vsel %vm1451_vm0, 1.0, %v3191_v47  ;;  %vm1453_vm2 = vcmp.ge.f32.partialorder %v2832_v9, 1.0  ;;  %v2847_v37 = vadd.f32 %v1392_v13, %v1360_v16  ;;  %v1396_v13 = vld [vmem:[%s3188_s3 + $0xc8] sm:$0xff] }
 0x1b5   : > { %3204 = vst [vmem:[#allocation6_spill] sm:$0xff] %v2838_v19  ;;  %3205 = vst [vmem:[#allocation7_spill] sm:$0xff] %v2840_v20  ;;  %v2859_v51 = vsel %vm1452_vm1, 1.0, %v3191_v47  ;;  %vm1454_vm3 = vcmp.ge.f32.partialorder %v2838_v19, 1.0  ;;  %v2863_v49 = vsel %vm1453_vm2, 1.0, %v3191_v47  ;;  %vm1455_vm4 = vcmp.ge.f32.partialorder %v2840_v20, 1.0 }
 0x1b6   : > { %3206 = vst [vmem:[#allocation8_spill] sm:$0xff] %v2847_v37  ;;  %1634 = vst [vmem:[%s3189_s4 + $0x38] sm:$0xff] %v2115_v18  ;;  %v2116_v60 = vpack.c.bf16 %v2859_v51, %v2844_v33  ;;  %v2869_v61 = vsel %vm1454_vm3, 1.0, %v3191_v47  ;;  %vm1456_vm5 = vcmp.ge.f32.partialorder %v2847_v37, 1.0  ;;  %v2873_v62 = vsel %vm1455_vm4, 1.0, %v3191_v47  ;;  %v1397_v16 = vld [vmem:[%s3188_s3 + $0xd0] sm:$0xff] }
 0x1b7   : > { %v2117_v6 = vpack.c.bf16 %v2869_v61, %v2863_v49  ;;  %v2881_v10 = vsel %vm1456_vm5, 1.0, %v3191_v47  ;;  %v1361_v7 = vadd.f32 %v2612_v23, %v1317_v25  ;;  %v1362_v12 = vadd.f32 %v2614_v24, %v1318_v32  ;;  %v1324_v18 = vld [vmem:[#allocation2 + $0xe8] sm:$0xff]  ;;  %v1398_v20 = vld [vmem:[%s3188_s3 + $0xd8] sm:$0xff]  ;;  %v1399_v19 = vld [vmem:[%s3188_s3 + $0xe0] sm:$0xff] }
 0x1b8   : > { %3207 = vst [vmem:[#allocation9_spill] sm:$0xff] %v2881_v10  ;;  %1635 = vst [vmem:[%s3189_s4 + $0x40] sm:$0xff] %v2116_v60  ;;  %v2118_v47 = vpack.c.bf16 %v2881_v10, %v2873_v62  ;;  %v1363_v25 = vadd.f32 %v2612_v23, %v1319_v40  ;;  %v1364_v32 = vadd.f32 %v2614_v24, %v1320_v57 }
 0x1b9   : > { %v1365_v37 = vadd.f32 %v2612_v23, %v1321_v59  ;;  %1636 = vst [vmem:[%s3189_s4 + $0x48] sm:$0xff] %v2117_v6  ;;  %v2908_v60 = vadd.f32 %v1393_v38, %v1361_v7  ;;  %v2910_v10 = vadd.f32 %v1394_v39, %v1362_v12  ;;  %v1366_v40 = vadd.f32 %v2614_v24, %v1322_v4  ;;  %v1400_v39 = vld [vmem:[%s3188_s3 + $0xe8] sm:$0xff]  ;;  %v1326_v7 = vld [vmem:[#allocation2 + $0xf8] sm:$0xff] }
 0x1ba   : > { %v1367_v57 = vadd.f32 %v2612_v23, %v1323_v8  ;;  %1637 = vst [vmem:[%s3189_s4 + $0x50] sm:$0xff] %v2118_v47  ;;  %v2917_v59 = vadd.f32 %v1395_v1, %v1363_v25  ;;  %v2919_v9 = vadd.f32 %v1396_v13, %v1364_v32  ;;  %v1368_v6 = vadd.f32 %v2614_v24, %v1324_v18  ;;  %v1325_v8 = vld [vmem:[#allocation2 + $0xf0] sm:$0xff]  ;;  %v1402_v32 = vld [vmem:[%s3188_s3 + $0xf8] sm:$0xff] }
 0x1bb   : > { %v2921_v15 = vadd.f32 %v1397_v16, %v1365_v37  ;;  %vm1457_vm6 = vcmp.ge.f32.partialorder %v2908_v60, 1.0  ;;  %vm1458_vm7 = vcmp.ge.f32.partialorder %v2910_v10, 1.0  ;;  %v2926_v38 = vadd.f32 %v1398_v20, %v1366_v40  ;;  %v1401_v25 = vld [vmem:[%s3188_s3 + $0xf0] sm:$0xff] }
 0x1bc   : > { %v2931_v4 = vadd.f32 %v1399_v19, %v1367_v57  ;;  %v3210_v47 = vmov 0.0   ;;  %vm1459_vm8 = vcmp.ge.f32.partialorder %v2917_v59, 1.0  ;;  %vm1460_vm9 = vcmp.ge.f32.partialorder %v2919_v9, 1.0 }
 0x1bd   : > { %3208 = vst [vmem:[#allocation10_spill] sm:$0xff] %v2926_v38  ;;  %v2934_v1 = vsel %vm1457_vm6, 1.0, %v3210_v47  ;;  %v2937_v37 = vsel %vm1458_vm7, 1.0, %v3210_v47  ;;  %v2944_v12 = vsel %vm1459_vm8, 1.0, %v3210_v47  ;;  %v2947_v19 = vsel %vm1460_vm9, 1.0, %v3210_v47 }
 0x1be   : > { %3209 = vst [vmem:[#allocation11_spill] sm:$0xff] %v2931_v4  ;;  %v2119_v20 = vpack.c.bf16 %v2937_v37, %v2934_v1  ;;  %vm1461_vm10 = vcmp.ge.f32.partialorder %v2921_v15, 1.0  ;;  %v2120_v13 = vpack.c.bf16 %v2947_v19, %v2944_v12  ;;  %vm1462_vm11 = vcmp.ge.f32.partialorder %v2926_v38, 1.0 }
 0x1bf   : > { %v2954_v16 = vsel %vm1461_vm10, 1.0, %v3210_v47  ;;  %v2956_v18 = vadd.f32 %v1400_v39, %v1368_v6  ;;  %v2968_v40 = vsel %vm1462_vm11, 1.0, %v3210_v47  ;;  %vm1463_vm12 = vcmp.ge.f32.partialorder %v2931_v4, 1.0 }
 0x1c0   : > { %1638 = vst [vmem:[%s3189_s4 + $0x58] sm:$0xff] %v2119_v20  ;;  %v1369_v57 = vadd.f32 %v2612_v23, %v1325_v8  ;;  %v1370_v6 = vadd.f32 %v2614_v24, %v1326_v7  ;;  %1639 = vst [vmem:[%s3189_s4 + $0x60] sm:$0xff] %v2120_v13  ;;  %v2121_v39 = vpack.c.bf16 %v2968_v40, %v2954_v16  ;;  %v2980_v20 = vsel %vm1463_vm12, 1.0, %v3210_v47 }
 0x1c1   : > { %3211 = vst [vmem:[#allocation12_spill] sm:$0xff] %v2956_v18  ;;  %vm1464_vm13 = vcmp.ge.f32.partialorder %v2956_v18, 1.0  ;;  %v1643_v38 = vsub.f32 1.0, %v2663_v52  ;;  %v1644_v8 = vsub.f32 1.0, %v2666_v54  ;;  %v1645_v52 = vsub.f32 1.0, %v2669_v55 }
 0x1c2   : > { %v2984_v4 = vsel %vm1464_vm13, 1.0, %v3210_v47  ;;  %v2986_v23 = vadd.f32 %v1401_v25, %v1369_v57  ;;  %v2988_v24 = vadd.f32 %v1402_v32, %v1370_v6  ;;  %1640 = vst [vmem:[%s3189_s4 + $0x68] sm:$0xff] %v2121_v39  ;;  %v1646_v18 = vsub.f32 1.0, %v2672_v56  ;;  %v3213_v39 = vld [vmem:[#allocation5_spill] sm:$0xff] }
 0x1c3   : > { %v2122_v7 = vpack.c.bf16 %v2984_v4, %v2980_v20  ;;  %v1675_v13 = vmul.f32 %v1643_v38, %v2642_v42  ;;  %v1676_v25 = vmul.f32 %v1644_v8, %v2644_v43  ;;  %v1647_v54 = vsub.f32 1.0, %v2687_v63 }
 0x1c4   : > { %vm1465_vm14 = vcmp.ge.f32.partialorder %v2986_v23, 1.0  ;;  %vm1466_vm15 = vcmp.ge.f32.partialorder %v2988_v24, 1.0  ;;  %v1677_v55 = vmul.f32 %v1645_v52, %v2646_v44  ;;  %v1678_v43 = vmul.f32 %v1646_v18, %v2648_v45 }
 0x1c5   : > { %1641 = vst [vmem:[%s3189_s4 + $0x70] sm:$0xff] %v2122_v7  ;;  %v3007_v32 = vsel %vm1465_vm14, 1.0, %v3210_v47  ;;  %v3010_v42 = vsel %vm1466_vm15, 1.0, %v3210_v47  ;;  %1707 = vst [vmem:[%s3190_s5] sm:$0xff] %v1675_v13  ;;  %v1679_v63 = vmul.f32 %v1647_v54, %v2650_v46  ;;  %v1648_v38 = vsub.f32 1.0, %v2690_v0  ;;  %v3216_v7 = vld [vmem:[#allocation9_spill] sm:$0xff]  ;;  %v3217_v54 = vld [vmem:[#allocation8_spill] sm:$0xff] }
 0x1c6   : > { %v2123_v56 = vpack.c.bf16 %v3010_v42, %v3007_v32  ;;  %1708 = vst [vmem:[%s3190_s5 + $0x8] sm:$0xff] %v1676_v25  ;;  %v1649_v47 = vsub.f32 1.0, %v2703_v2  ;;  %1709 = vst [vmem:[%s3190_s5 + $0x10] sm:$0xff] %v1677_v55  ;;  %v1650_v44 = vsub.f32 1.0, %v2706_v5  ;;  %v1651_v45 = vsub.f32 1.0, %v2756_v27 }
 0x1c7   : > { %1710 = vst [vmem:[%s3190_s5 + $0x18] sm:$0xff] %v1678_v43  ;;  %v1652_v18 = vsub.f32 1.0, %v2764_v34  ;;  %v1653_v46 = vsub.f32 1.0, %v2767_v36  ;;  %1711 = vst [vmem:[%s3190_s5 + $0x20] sm:$0xff] %v1679_v63  ;;  %v1680_v0 = vmul.f32 %v1648_v38, %v2652_v35  ;;  %v1654_v5 = vsub.f32 1.0, %v2770_v29  ;;  %v3219_v38 = vld [vmem:[#allocation11_spill] sm:$0xff] }
 0x1c8   : > { %1642 = vst [vmem:[%s3189_s4 + $0x78] sm:$0xff] %v2123_v56  ;;  %v1681_v2 = vmul.f32 %v1649_v47, %v2654_v48  ;;  %v1655_v27 = vsub.f32 1.0, %v2779_v41  ;;  %v1682_v34 = vmul.f32 %v1650_v44, %v2656_v50  ;;  %v1683_v36 = vmul.f32 %v1651_v45, %v2732_v17 }
 0x1c9   : > { %v1684_v57 = vmul.f32 %v1652_v18, %v2740_v21  ;;  %v1685_v6 = vmul.f32 %v1653_v46, %v2742_v22  ;;  %1712 = vst [vmem:[%s3190_s5 + $0x28] sm:$0xff] %v1680_v0  ;;  %v1686_v35 = vmul.f32 %v1654_v5, %v2744_v26  ;;  %v1656_v50 = vsub.f32 1.0, %v2785_v58 }
 0x1ca   : > { %1713 = vst [vmem:[%s3190_s5 + $0x30] sm:$0xff] %v1681_v2  ;;  %v1687_v48 = vmul.f32 %v1655_v27, %v2748_v28  ;;  %v1657_v17 = vsub.f32 1.0, %v2806_v3  ;;  %1714 = vst [vmem:[%s3190_s5 + $0x38] sm:$0xff] %v1682_v34  ;;  %v1658_v21 = vsub.f32 1.0, %v2828_v14  ;;  %v1659_v22 = vsub.f32 1.0, %v2844_v33 }
 0x1cb   : > { %1715 = vst [vmem:[%s3190_s5 + $0x40] sm:$0xff] %v1683_v36  ;;  %1716 = vst [vmem:[%s3190_s5 + $0x48] sm:$0xff] %v1684_v57  ;;  %v1660_v26 = vsub.f32 1.0, %v2859_v51  ;;  %v1661_v28 = vsub.f32 1.0, %v2863_v49  ;;  %v1688_v29 = vmul.f32 %v1656_v50, %v2750_v30  ;;  %v1662_v58 = vsub.f32 1.0, %v2869_v61  ;;  %v3212_v51 = vld [vmem:[#allocation4_spill] sm:$0xff] }
 0x1cc   : > { %1717 = vst [vmem:[%s3190_s5 + $0x50] sm:$0xff] %v1685_v6  ;;  %1718 = vst [vmem:[%s3190_s5 + $0x58] sm:$0xff] %v1686_v35  ;;  %v1689_v41 = vmul.f32 %v1657_v17, %v2752_v31  ;;  %v1663_v3 = vsub.f32 1.0, %v2873_v62  ;;  %v1690_v14 = vmul.f32 %v1658_v21, %v2787_v53  ;;  %v1691_v33 = vmul.f32 %v1659_v22, %v2817_v11  ;;  %v3214_v30 = vld [vmem:[#allocation6_spill] sm:$0xff]  ;;  %v3215_v61 = vld [vmem:[#allocation7_spill] sm:$0xff] }
 0x1cd   : > { %1719 = vst [vmem:[%s3190_s5 + $0x60] sm:$0xff] %v1687_v48  ;;  %v1692_v49 = vmul.f32 %v1660_v26, %v3212_v51  ;;  %v1693_v8 = vmul.f32 %v1661_v28, %v3213_v39  ;;  %1720 = vst [vmem:[%s3190_s5 + $0x68] sm:$0xff] %v1688_v29  ;;  %v1694_v31 = vmul.f32 %v1662_v58, %v3214_v30  ;;  %v1664_v53 = vsub.f32 1.0, %v3216_v7 }
 0x1ce   : > { %1721 = vst [vmem:[%s3190_s5 + $0x70] sm:$0xff] %v1689_v41  ;;  %v1695_v62 = vmul.f32 %v1663_v3, %v3215_v61  ;;  %v1665_v11 = vsub.f32 1.0, %v2934_v1  ;;  %1722 = vst [vmem:[%s3190_s5 + $0x78] sm:$0xff] %v1690_v14  ;;  %v1666_v13 = vsub.f32 1.0, %v2937_v37  ;;  %v1667_v1 = vsub.f32 1.0, %v2944_v12 }
 0x1cf   : > { %1723 = vst [vmem:[%s3190_s5 + $0x80] sm:$0xff] %v1691_v33  ;;  %1724 = vst [vmem:[%s3190_s5 + $0x88] sm:$0xff] %v1692_v49  ;;  %v1668_v52 = vsub.f32 1.0, %v2947_v19  ;;  %v1669_v25 = vsub.f32 1.0, %v2954_v16  ;;  %v1696_v55 = vmul.f32 %v1664_v53, %v3217_v54  ;;  %v1670_v37 = vsub.f32 1.0, %v2968_v40 }
 0x1d0   : > { %1725 = vst [vmem:[%s3190_s5 + $0x90] sm:$0xff] %v1693_v8  ;;  %1726 = vst [vmem:[%s3190_s5 + $0x98] sm:$0xff] %v1694_v31  ;;  %v1697_v43 = vmul.f32 %v1665_v11, %v2908_v60  ;;  %v1671_v12 = vsub.f32 1.0, %v2980_v20  ;;  %v1698_v19 = vmul.f32 %v1666_v13, %v2910_v10  ;;  %v1699_v16 = vmul.f32 %v1667_v1, %v2917_v59  ;;  %v3218_v60 = vld [vmem:[#allocation10_spill] sm:$0xff] }
 0x1d1   : > { %1727 = vst [vmem:[%s3190_s5 + $0xa0] sm:$0xff] %v1695_v62  ;;  %v1700_v56 = vmul.f32 %v1668_v52, %v2919_v9  ;;  %v1701_v63 = vmul.f32 %v1669_v25, %v2921_v15  ;;  %1728 = vst [vmem:[%s3190_s5 + $0xa8] sm:$0xff] %v1696_v55  ;;  %v1702_v40 = vmul.f32 %v1670_v37, %v3218_v60  ;;  %v1672_v10 = vsub.f32 1.0, %v2984_v4  ;;  %v3220_v9 = vld [vmem:[#allocation12_spill] sm:$0xff] }
 0x1d2   : > { %1729 = vst [vmem:[%s3190_s5 + $0xb0] sm:$0xff] %v1697_v43  ;;  %v1703_v20 = vmul.f32 %v1671_v12, %v3219_v38  ;;  %v1673_v59 = vsub.f32 1.0, %v3007_v32  ;;  %1730 = vst [vmem:[%s3190_s5 + $0xb8] sm:$0xff] %v1698_v19  ;;  %v1674_v15 = vsub.f32 1.0, %v3010_v42 }
 0x1d3   : > { %1731 = vst [vmem:[%s3190_s5 + $0xc0] sm:$0xff] %v1699_v16  ;;  %1732 = vst [vmem:[%s3190_s5 + $0xc8] sm:$0xff] %v1700_v56  ;;  %v1704_v4 = vmul.f32 %v1672_v10, %v3220_v9 }
 0x1d4   : > { %1733 = vst [vmem:[%s3190_s5 + $0xd0] sm:$0xff] %v1701_v63  ;;  %1734 = vst [vmem:[%s3190_s5 + $0xd8] sm:$0xff] %v1702_v40  ;;  %v1705_v32 = vmul.f32 %v1673_v59, %v2986_v23  ;;  %v1706_v47 = vmul.f32 %v1674_v15, %v2988_v24 }
 0x1d5   : > { %1735 = vst [vmem:[%s3190_s5 + $0xe0] sm:$0xff] %v1703_v20  ;;  %1736 = vst [vmem:[%s3190_s5 + $0xe8] sm:$0xff] %v1704_v4 }
 0x1d6   : > { %1737 = vst [vmem:[%s3190_s5 + $0xf0] sm:$0xff] %v1705_v32  ;;  %1738 = vst [vmem:[%s3190_s5 + $0xf8] sm:$0xff] %v1706_v47 }
 0x1d7 PF: > { %s16_s22 = sadd.s32 1, %s2343_s22   ;;  %s3221_s18 = smov %s2331_s19 }
 0x1d8   : > { %p13_p12 = scmp.ge.s32.totalorder %s16_s22, 5   ;;  %s3222_s19 = smov %s2413_s26 }
 0x1d9   : > { %s3223_s20 = smov %s2339_s21  ;;  %s3224_s21 = smov %s3226_s23 }
 0x1da   :  { %15 = sbr.rel (!%p13_p12) target bundleno = 3 (0x3), region = 132 }

// kernel: closed_call.86
= control target key start
LH: loop header
LB: loop body
LE: loop exit
PB: predicated region body
PF: predicated region fallthrough
CT: control target
= control target key end

     0   :  { %v608_v1 = vmov 0   ;;  %v457_v25 = vlaneseq  ;;  %s844_s1 = inlined_call_operand.vmem [shape: bf16[128,256], index: 1, kind: input, shape index: {}]   ;;  %s845_s0 = inlined_call_operand.vmem [shape: bf16[128,128], index: 0, kind: input, shape index: {}]   ;;  %s846_s2 = inlined_call_operand.vmem [shape: f32[1,256], index: 2, kind: input, shape index: {}]   ;;  %s847_s3 = inlined_call_operand.vmem [shape: f32[128,256], index: 3, kind: output, shape index: {}]  }
   0x1   :  { %v576_v0 = vld [vmem:[%s844_s1 + $0x4] ss:$8 sps:$4 sm:$0xff]   ;;  %275 = vmatprep.mubr.bf16.mxu0 %v608_v1  ;;  %315 = vmatprep.mubr.bf16.mxu1 %v608_v1  ;;  %v578_v2 = vld [vmem:[%s844_s1] ss:$8 sps:$4 sm:$0xff]   ;;  %v579_v3 = vld [vmem:[%s844_s1 + $0x14] ss:$8 sps:$4 sm:$0xff]  }
   0x2   :  { %243 = vmatprep.subr.bf16.mxu0 %v576_v0  ;;  %559 = vmatprep.subr.bf16.mxu1 %v576_v0  ;;  %v581_v4 = vld [vmem:[%s844_s1 + $0x10] ss:$8 sps:$4 sm:$0xff]   ;;  %v582_v5 = vld [vmem:[%s844_s1 + $0x24] ss:$8 sps:$4 sm:$0xff]   ;;  %v584_v6 = vld [vmem:[%s844_s1 + $0x20] ss:$8 sps:$4 sm:$0xff]  }
   0x3   :  { %244 = vmatpush1.bf16.msra.mxu0 %v578_v2  ;;  %567 = vmatpush1.bf16.msra.mxu1 %v578_v2  ;;  %v585_v7 = vld [vmem:[%s844_s1 + $0x34] ss:$8 sps:$4 sm:$0xff]   ;;  %v587_v8 = vld [vmem:[%s844_s1 + $0x30] ss:$8 sps:$4 sm:$0xff]   ;;  %v588_v9 = vld [vmem:[%s844_s1 + $0x44] ss:$8 sps:$4 sm:$0xff]  }
   0x4   :  { %245 = vmatprep.subr.bf16.mxu0 %v579_v3  ;;  %560 = vmatprep.subr.bf16.mxu1 %v579_v3  ;;  %v590_v10 = vld [vmem:[%s844_s1 + $0x40] ss:$8 sps:$4 sm:$0xff]   ;;  %v591_v11 = vld [vmem:[%s844_s1 + $0x54] ss:$8 sps:$4 sm:$0xff]   ;;  %v593_v12 = vld [vmem:[%s844_s1 + $0x50] ss:$8 sps:$4 sm:$0xff]  }
   0x5   :  { %v594_v13 = vld [vmem:[%s844_s1 + $0x64] ss:$8 sps:$4 sm:$0xff]   ;;  %v596_v14 = vld [vmem:[%s844_s1 + $0x60] ss:$8 sps:$4 sm:$0xff]   ;;  %v597_v15 = vld [vmem:[%s844_s1 + $0x74] ss:$8 sps:$4 sm:$0xff]  }
   0x6   :  { %v599_v16 = vld [vmem:[%s844_s1 + $0x70] ss:$8 sps:$4 sm:$0xff]   ;;  %v600_v17 = vld [vmem:[%s845_s0] sm:$0xff]   ;;  %v602_v19 = vld [vmem:[%s845_s0 + $0x8] sm:$0xff]   ;;  %v458_v26 = vshrl.u32 %v457_v25, 7 }
   0x7   :  { %246 = vmatpush1.bf16.msra.mxu0 %v581_v4  ;;  %568 = vmatpush1.bf16.msra.mxu1 %v581_v4  ;;  %v601_v18 = vld [vmem:[%s845_s0 + $0x20] sm:$0xff]   ;;  %v603_v20 = vld [vmem:[%s845_s0 + $0x28] sm:$0xff]   ;;  %v604_v21 = vld [vmem:[%s845_s0 + $0x10] sm:$0xff]  }
   0x8   :  { %247 = vmatprep.subr.bf16.mxu0 %v582_v5  ;;  %561 = vmatprep.subr.bf16.mxu1 %v582_v5  ;;  %v605_v22 = vld [vmem:[%s845_s0 + $0x30] sm:$0xff]   ;;  %v606_v23 = vld [vmem:[%s845_s0 + $0x18] sm:$0xff]   ;;  %v459_v27 = vsub.s32 0, %v458_v26  ;;  %v455_v28 = vld [vmem:[%s846_s2] sm:$0x3]  ;;  %v463_v29 = vsub.s32 1, %v458_v26 }
   0x9   :  { %v607_v24 = vld [vmem:[%s845_s0 + $0x38] sm:$0xff]  }
   0xa   :  { %v712_v30 = vrot.slane %v455_v28, %v459_v27  ;;  %v714_v31 = vrot.slane %v455_v28, %v463_v29 }
   0xb   :  { %248 = vmatpush1.bf16.msra.mxu0 %v584_v6  ;;  %569 = vmatpush1.bf16.msra.mxu1 %v584_v6 }
   0xc   :  { %249 = vmatprep.subr.bf16.mxu0 %v585_v7  ;;  %562 = vmatprep.subr.bf16.mxu1 %v585_v7 }
   0xf   :  { %250 = vmatpush1.bf16.msra.mxu0 %v587_v8  ;;  %570 = vmatpush1.bf16.msra.mxu1 %v587_v8 }
  0x10   :  { %251 = vmatprep.subr.bf16.mxu0 %v588_v9  ;;  %563 = vmatprep.subr.bf16.mxu1 %v588_v9 }
  0x13   :  { %252 = vmatpush1.bf16.msra.mxu0 %v590_v10  ;;  %571 = vmatpush1.bf16.msra.mxu1 %v590_v10 }
  0x14   :  { %253 = vmatprep.subr.bf16.mxu0 %v591_v11  ;;  %564 = vmatprep.subr.bf16.mxu1 %v591_v11 }
  0x17   :  { %254 = vmatpush1.bf16.msra.mxu0 %v593_v12  ;;  %572 = vmatpush1.bf16.msra.mxu1 %v593_v12 }
  0x18   :  { %255 = vmatprep.subr.bf16.mxu0 %v594_v13  ;;  %565 = vmatprep.subr.bf16.mxu1 %v594_v13 }
  0x1b   :  { %256 = vmatpush1.bf16.msra.mxu0 %v596_v14  ;;  %573 = vmatpush1.bf16.msra.mxu1 %v596_v14 }
  0x1c   :  { %257 = vmatprep.subr.bf16.mxu0 %v597_v15  ;;  %566 = vmatprep.subr.bf16.mxu1 %v597_v15 }
  0x1f   :  { %258 = vmatpush1.bf16.msra.mxu0 %v599_v16  ;;  %574 = vmatpush1.bf16.msra.mxu1 %v599_v16 }
  0x22   :  { %276 = vmatmul.mubr.bf16.vlgmr.msra.gmra.mrb[0].mxu0 %v600_v17  ;;  %316 = vmatmul.mubr.bf16.vlgmr.msra.gmra.mrb[0].mxu1 %v601_v18 }
  0x23   :  { %285 = vmatprep.mubr.bf16.mxu0 %v608_v1  ;;  %325 = vmatprep.mubr.bf16.mxu1 %v608_v1 }
  0x2a   :  { %286 = vmatmul.mubr.bf16.gmra.mrb[4].mxu0 %v602_v19  ;;  %326 = vmatmul.mubr.bf16.gmra.mrb[4].mxu1 %v603_v20 }
  0x2b   :  { %295 = vmatprep.mubr.bf16.mxu0 %v608_v1  ;;  %335 = vmatprep.mubr.bf16.mxu1 %v608_v1 }
  0x32   :  { %296 = vmatmul.mubr.bf16.gmra.mrb[8].mxu0 %v604_v21  ;;  %336 = vmatmul.mubr.bf16.gmra.mrb[8].mxu1 %v605_v22 }
  0x33   :  { %305 = vmatprep.mubr.bf16.mxu0 %v608_v1  ;;  %345 = vmatprep.mubr.bf16.mxu1 %v608_v1 }
  0x3a   :  { %306 = vmatmul.mubr.bf16.gmra.mrb[12].mxu0 %v606_v23  ;;  %346 = vmatmul.mubr.bf16.gmra.mrb[12].mxu1 %v607_v24 }
  0xf5   :  { %v277_v32 = vpop.f32.mrb[0].mxu0  ;;  %v317_v33 = vpop.f32.mrb[0].mxu1 }
  0xf6   :  { %v467_v34 = vadd.f32 %v712_v30, %v277_v32  ;;  %v483_v35 = vadd.f32 %v712_v30, %v317_v33  ;;  %v279_v36 = vpop.f32.mrb[1].mxu0  ;;  %v319_v37 = vpop.f32.mrb[1].mxu1 }
  0xf7   :  { %v468_v38 = vadd.f32 %v714_v31, %v279_v36  ;;  %v484_v39 = vadd.f32 %v714_v31, %v319_v37  ;;  %v281_v40 = vpop.f32.mrb[2].mxu0  ;;  %v321_v41 = vpop.f32.mrb[2].mxu1 }
  0xf8   :  { %499 = vst [vmem:[%s847_s3] sm:$0xff] %v467_v34  ;;  %515 = vst [vmem:[%s847_s3 + $0x80] sm:$0xff] %v483_v35  ;;  %v469_v42 = vadd.f32 %v712_v30, %v281_v40  ;;  %v485_v43 = vadd.f32 %v712_v30, %v321_v41  ;;  %v283_v44 = vpop.f32.mrb[3].mxu0  ;;  %v323_v45 = vpop.f32.mrb[3].mxu1 }
  0xf9   :  { %500 = vst [vmem:[%s847_s3 + $0x8] sm:$0xff] %v468_v38  ;;  %516 = vst [vmem:[%s847_s3 + $0x88] sm:$0xff] %v484_v39  ;;  %v470_v46 = vadd.f32 %v714_v31, %v283_v44  ;;  %v486_v47 = vadd.f32 %v714_v31, %v323_v45 }
  0xfa   :  { %501 = vst [vmem:[%s847_s3 + $0x10] sm:$0xff] %v469_v42  ;;  %517 = vst [vmem:[%s847_s3 + $0x90] sm:$0xff] %v485_v43 }
  0xfb   :  { %502 = vst [vmem:[%s847_s3 + $0x18] sm:$0xff] %v470_v46  ;;  %518 = vst [vmem:[%s847_s3 + $0x98] sm:$0xff] %v486_v47 }
  0xfd   :  { %v287_v48 = vpop.f32.mrb[4].mxu0  ;;  %v327_v49 = vpop.f32.mrb[4].mxu1 }
  0xfe   :  { %v471_v50 = vadd.f32 %v712_v30, %v287_v48  ;;  %v487_v51 = vadd.f32 %v712_v30, %v327_v49  ;;  %v289_v52 = vpop.f32.mrb[5].mxu0  ;;  %v329_v53 = vpop.f32.mrb[5].mxu1 }
  0xff   :  { %v472_v54 = vadd.f32 %v714_v31, %v289_v52  ;;  %v488_v55 = vadd.f32 %v714_v31, %v329_v53  ;;  %v291_v56 = vpop.f32.mrb[6].mxu0  ;;  %v331_v57 = vpop.f32.mrb[6].mxu1 }
 0x100   :  { %503 = vst [vmem:[%s847_s3 + $0x20] sm:$0xff] %v471_v50  ;;  %519 = vst [vmem:[%s847_s3 + $0xa0] sm:$0xff] %v487_v51  ;;  %v473_v58 = vadd.f32 %v712_v30, %v291_v56  ;;  %v489_v59 = vadd.f32 %v712_v30, %v331_v57  ;;  %v293_v60 = vpop.f32.mrb[7].mxu0  ;;  %v333_v61 = vpop.f32.mrb[7].mxu1 }
 0x101   :  { %504 = vst [vmem:[%s847_s3 + $0x28] sm:$0xff] %v472_v54  ;;  %520 = vst [vmem:[%s847_s3 + $0xa8] sm:$0xff] %v488_v55  ;;  %v474_v62 = vadd.f32 %v714_v31, %v293_v60  ;;  %v490_v63 = vadd.f32 %v714_v31, %v333_v61 }
 0x102   :  { %505 = vst [vmem:[%s847_s3 + $0x30] sm:$0xff] %v473_v58  ;;  %521 = vst [vmem:[%s847_s3 + $0xb0] sm:$0xff] %v489_v59 }
 0x103   :  { %506 = vst [vmem:[%s847_s3 + $0x38] sm:$0xff] %v474_v62  ;;  %522 = vst [vmem:[%s847_s3 + $0xb8] sm:$0xff] %v490_v63 }
 0x105   :  { %v297_v0 = vpop.f32.mrb[8].mxu0  ;;  %v337_v1 = vpop.f32.mrb[8].mxu1 }
 0x106   :  { %v475_v2 = vadd.f32 %v712_v30, %v297_v0  ;;  %v491_v3 = vadd.f32 %v712_v30, %v337_v1  ;;  %v299_v4 = vpop.f32.mrb[9].mxu0  ;;  %v339_v5 = vpop.f32.mrb[9].mxu1 }
 0x107   :  { %v476_v6 = vadd.f32 %v714_v31, %v299_v4  ;;  %v492_v7 = vadd.f32 %v714_v31, %v339_v5  ;;  %v301_v8 = vpop.f32.mrb[10].mxu0  ;;  %v341_v9 = vpop.f32.mrb[10].mxu1 }
 0x108   :  { %507 = vst [vmem:[%s847_s3 + $0x40] sm:$0xff] %v475_v2  ;;  %523 = vst [vmem:[%s847_s3 + $0xc0] sm:$0xff] %v491_v3  ;;  %v477_v10 = vadd.f32 %v712_v30, %v301_v8  ;;  %v493_v11 = vadd.f32 %v712_v30, %v341_v9  ;;  %v303_v12 = vpop.f32.mrb[11].mxu0  ;;  %v343_v13 = vpop.f32.mrb[11].mxu1 }
 0x109   :  { %508 = vst [vmem:[%s847_s3 + $0x48] sm:$0xff] %v476_v6  ;;  %524 = vst [vmem:[%s847_s3 + $0xc8] sm:$0xff] %v492_v7  ;;  %v478_v14 = vadd.f32 %v714_v31, %v303_v12  ;;  %v494_v15 = vadd.f32 %v714_v31, %v343_v13 }
 0x10a   :  { %509 = vst [vmem:[%s847_s3 + $0x50] sm:$0xff] %v477_v10  ;;  %525 = vst [vmem:[%s847_s3 + $0xd0] sm:$0xff] %v493_v11 }
 0x10b   :  { %510 = vst [vmem:[%s847_s3 + $0x58] sm:$0xff] %v478_v14  ;;  %526 = vst [vmem:[%s847_s3 + $0xd8] sm:$0xff] %v494_v15 }
 0x10d   :  { %v307_v16 = vpop.f32.mrb[12].mxu0  ;;  %v347_v17 = vpop.f32.mrb[12].mxu1 }
 0x10e   :  { %v479_v18 = vadd.f32 %v712_v30, %v307_v16  ;;  %v495_v19 = vadd.f32 %v712_v30, %v347_v17  ;;  %v309_v20 = vpop.f32.mrb[13].mxu0  ;;  %v349_v21 = vpop.f32.mrb[13].mxu1 }
 0x10f   :  { %v480_v22 = vadd.f32 %v714_v31, %v309_v20  ;;  %v496_v23 = vadd.f32 %v714_v31, %v349_v21  ;;  %v311_v24 = vpop.f32.mrb[14].mxu0  ;;  %v351_v25 = vpop.f32.mrb[14].mxu1 }
 0x110   :  { %511 = vst [vmem:[%s847_s3 + $0x60] sm:$0xff] %v479_v18  ;;  %527 = vst [vmem:[%s847_s3 + $0xe0] sm:$0xff] %v495_v19  ;;  %v481_v26 = vadd.f32 %v712_v30, %v311_v24  ;;  %v497_v27 = vadd.f32 %v712_v30, %v351_v25  ;;  %v313_v28 = vpop.f32.mrb[15].mxu0  ;;  %v353_v29 = vpop.f32.mrb[15].mxu1 }
 0x111   :  { %512 = vst [vmem:[%s847_s3 + $0x68] sm:$0xff] %v480_v22  ;;  %528 = vst [vmem:[%s847_s3 + $0xe8] sm:$0xff] %v496_v23  ;;  %v482_v32 = vadd.f32 %v714_v31, %v313_v28  ;;  %v498_v33 = vadd.f32 %v714_v31, %v353_v29 }
 0x112   :  { %513 = vst [vmem:[%s847_s3 + $0x70] sm:$0xff] %v481_v26  ;;  %529 = vst [vmem:[%s847_s3 + $0xf0] sm:$0xff] %v497_v27 }
 0x113   :  { %514 = vst [vmem:[%s847_s3 + $0x78] sm:$0xff] %v482_v32  ;;  %530 = vst [vmem:[%s847_s3 + $0xf8] sm:$0xff] %v498_v33 }

// kernel: closed_call.87
= control target key start
LH: loop header
LB: loop body
LE: loop exit
PB: predicated region body
PF: predicated region fallthrough
CT: control target
= control target key end

     0   :  { %s2537_s21 = smov 0   ;;  %s2539_s22 = smov 0   ;;  %s3440_s0 = inlined_call_operand.vmem [shape: bf16[128,2304], index: 0, kind: input, shape index: {}]   ;;  %s3441_s1 = inlined_call_operand.vmem [shape: bf16[2304,256], index: 1, kind: input, shape index: {}]   ;;  %s3442_s2 = inlined_call_operand.vmem [shape: f32[1,256], index: 2, kind: input, shape index: {}]   ;;  %s3443_s3 = inlined_call_operand.vmem [shape: f32[128,256], index: 3, kind: input, shape index: {}]   ;;  %s3444_s4 = inlined_call_operand.vmem [shape: f32[128,256], index: 4, kind: input, shape index: {}]   ;;  %s3445_s5 = inlined_call_operand.vmem [shape: bf16[128,256], index: 5, kind: output, shape index: {0}]   ;;  %s3446_s6 = inlined_call_operand.vmem [shape: f32[128,256], index: 6, kind: output, shape index: {1}]  }
   0x1   :  { %s2541_s23 = smov 0   ;;  %s2543_s24 = smov 0  }
   0x2   :  { %s2545_s25 = smov 0  }
   0x3 LB: > { %s29_s26 = sadd.s32 1, %s2493_s24  ;;  %p52_p1 = scmp.ne.s32.totalorder %s2485_s22, %s2481_s21  ;;  %s2497_s25 = sphi %s2545_s25, %s17_s25   ;;  %s2493_s24 = sphi %s2543_s24, %s3486_s24   ;;  %s2489_s23 = sphi %s2541_s23, %s3485_s23   ;;  %s2485_s22 = sphi %s2539_s22, %s3484_s22   ;;  %s2481_s21 = sphi %s2537_s21, %s3483_s21  }
   0x4   : > { %p30_p0 = scmp.ge.s32.totalorder %s29_s26, 6  ;;  %p53_p2 = scmp.eq.s32.totalorder %s2497_s25, 0 }
   0x5   : > { %s45_s28 = sadd.s32 1, %s2485_s22  ;;  %p2095_p5 = scmp.ge.s32.totalorder %s2497_s25, 6 }
   0x6   : > { %s3488_s26 = smov (%p30_p0, %s29_s26), 0  ;;  %p54_p3 = por %p53_p2, %p52_p1 }
   0x7   : > { %s41_s27 = ssub.s32 %s2493_s24, %s3488_s26  ;;  %282 = sbr.rel (%p2095_p5) target bundleno = 37 (0x25), region = 28 }
   0x8   : > { %p43_p4 = scmp.eq.s32.totalorder %s41_s27, 0 }
   0xa   : > { %s2572_s29 = scalar_select %p43_p4, %s2485_s22, %s45_s28  }
   0xe   : > { %285 = sbr.rel (!%p54_p3) target bundleno = 37 (0x25), region = 32  ;;  %s287_s30 = sand.u32 (%p54_p3), 1, %s2485_s22  }
   0xf   : > { %s2260_s7 = smul.u32 (%p54_p3), 12, %s2493_s24 }
  0x10   : > { %s2310_s8 = smul.u32 (%p54_p3), 192, %s287_s30 }
  0x11   : > { %s2580_s11 = scalar_lea.vmem (%p54_p3), %s3440_s0, %s2260_s7 }
  0x12   : > { %v310_v0 = vld [vmem:[%s2580_s11] sm:$0xff] (%p54_p3)  ;;  %v312_v1 = vld [vmem:[%s2580_s11 + $0x48] sm:$0xff] (%p54_p3)  ;;  %v314_v2 = vld [vmem:[%s2580_s11 + $0x90] sm:$0xff] (%p54_p3)  ;;  %s2585_s12 = scalar_lea.vmem (%p54_p3), [#allocation3], %s2310_s8 }
  0x13   : > { %311 = vst [vmem:[%s2585_s12] sm:$0xff] (%p54_p3), %v310_v0  ;;  %313 = vst [vmem:[%s2585_s12 + $0xc] sm:$0xff] (%p54_p3), %v312_v1  ;;  %v316_v3 = vld [vmem:[%s2580_s11 + $0xd8] sm:$0xff] (%p54_p3)  ;;  %v318_v4 = vld [vmem:[%s2580_s11 + $0x120] sm:$0xff] (%p54_p3) }
  0x14   : > { %315 = vst [vmem:[%s2585_s12 + $0x18] sm:$0xff] (%p54_p3), %v314_v2  ;;  %v320_v5 = vld [vmem:[%s2580_s11 + $0x168] sm:$0xff] (%p54_p3)  ;;  %317 = vst [vmem:[%s2585_s12 + $0x24] sm:$0xff] (%p54_p3), %v316_v3  ;;  %v322_v6 = vld [vmem:[%s2580_s11 + $0x1b0] sm:$0xff] (%p54_p3) }
  0x15   : > { %319 = vst [vmem:[%s2585_s12 + $0x30] sm:$0xff] %v318_v4  ;;  %321 = vst [vmem:[%s2585_s12 + $0x3c] sm:$0xff] %v320_v5  ;;  %v324_v7 = vld [vmem:[%s2580_s11 + $0x1f8] sm:$0xff]  ;;  %v326_v8 = vld [vmem:[%s2580_s11 + $0x240] sm:$0xff] }
  0x16   : > { %323 = vst [vmem:[%s2585_s12 + $0x48] sm:$0xff] %v322_v6  ;;  %325 = vst [vmem:[%s2585_s12 + $0x54] sm:$0xff] %v324_v7  ;;  %v328_v9 = vld [vmem:[%s2580_s11 + $0x288] sm:$0xff]  ;;  %v330_v10 = vld [vmem:[%s2580_s11 + $0x2d0] sm:$0xff] }
  0x17   : > { %327 = vst [vmem:[%s2585_s12 + $0x60] sm:$0xff] %v326_v8  ;;  %v332_v11 = vld [vmem:[%s2580_s11 + $0x318] sm:$0xff]  ;;  %329 = vst [vmem:[%s2585_s12 + $0x6c] sm:$0xff] %v328_v9  ;;  %v334_v12 = vld [vmem:[%s2580_s11 + $0x360] sm:$0xff] }
  0x18   : > { %331 = vst [vmem:[%s2585_s12 + $0x78] sm:$0xff] %v330_v10  ;;  %333 = vst [vmem:[%s2585_s12 + $0x84] sm:$0xff] %v332_v11  ;;  %v336_v13 = vld [vmem:[%s2580_s11 + $0x3a8] sm:$0xff]  ;;  %v338_v14 = vld [vmem:[%s2580_s11 + $0x3f0] sm:$0xff] }
  0x19   : > { %335 = vst [vmem:[%s2585_s12 + $0x90] sm:$0xff] %v334_v12  ;;  %337 = vst [vmem:[%s2585_s12 + $0x9c] sm:$0xff] %v336_v13  ;;  %v340_v15 = vld [vmem:[%s2580_s11 + $0x438] sm:$0xff]  ;;  %v2097_v16 = vld [vmem:[%s2580_s11 + $0x8] sm:$0xf] }
  0x1a   : > { %339 = vst [vmem:[%s2585_s12 + $0xa8] sm:$0xff] %v338_v14  ;;  %v2099_v17 = vld [vmem:[%s2580_s11 + $0x50] sm:$0xf]  ;;  %341 = vst [vmem:[%s2585_s12 + $0xb4] sm:$0xff] %v340_v15  ;;  %v2101_v18 = vld [vmem:[%s2580_s11 + $0x98] sm:$0xf] }
  0x1b   : > { %2098 = vst [vmem:[%s2585_s12 + $0x8] sm:$0xf] %v2097_v16  ;;  %2100 = vst [vmem:[%s2585_s12 + $0x14] sm:$0xf] %v2099_v17  ;;  %v2103_v19 = vld [vmem:[%s2580_s11 + $0xe0] sm:$0xf] }
  0x1c   : > { %v2105_v20 = vld [vmem:[%s2580_s11 + $0x128] sm:$0xf]  ;;  %2102 = vst [vmem:[%s2585_s12 + $0x20] sm:$0xf] %v2101_v18  ;;  %2104 = vst [vmem:[%s2585_s12 + $0x2c] sm:$0xf] %v2103_v19 }
  0x1d   : > { %2106 = vst [vmem:[%s2585_s12 + $0x38] sm:$0xf] %v2105_v20  ;;  %v2107_v21 = vld [vmem:[%s2580_s11 + $0x170] sm:$0xf]  ;;  %v2109_v22 = vld [vmem:[%s2580_s11 + $0x1b8] sm:$0xf] }
  0x1e   : > { %v2111_v23 = vld [vmem:[%s2580_s11 + $0x200] sm:$0xf]  ;;  %2108 = vst [vmem:[%s2585_s12 + $0x44] sm:$0xf] %v2107_v21  ;;  %2110 = vst [vmem:[%s2585_s12 + $0x50] sm:$0xf] %v2109_v22 }
  0x1f   : > { %2112 = vst [vmem:[%s2585_s12 + $0x5c] sm:$0xf] %v2111_v23  ;;  %v2113_v24 = vld [vmem:[%s2580_s11 + $0x248] sm:$0xf]  ;;  %v2115_v25 = vld [vmem:[%s2580_s11 + $0x290] sm:$0xf] }
  0x20   : > { %v2117_v26 = vld [vmem:[%s2580_s11 + $0x2d8] sm:$0xf]  ;;  %2114 = vst [vmem:[%s2585_s12 + $0x68] sm:$0xf] %v2113_v24  ;;  %2116 = vst [vmem:[%s2585_s12 + $0x74] sm:$0xf] %v2115_v25 }
  0x21   : > { %2118 = vst [vmem:[%s2585_s12 + $0x80] sm:$0xf] %v2117_v26  ;;  %v2119_v27 = vld [vmem:[%s2580_s11 + $0x320] sm:$0xf]  ;;  %v2121_v28 = vld [vmem:[%s2580_s11 + $0x368] sm:$0xf] }
  0x22   : > { %v2123_v29 = vld [vmem:[%s2580_s11 + $0x3b0] sm:$0xf]  ;;  %2120 = vst [vmem:[%s2585_s12 + $0x8c] sm:$0xf] %v2119_v27  ;;  %2122 = vst [vmem:[%s2585_s12 + $0x98] sm:$0xf] %v2121_v28 }
  0x23   : > { %2124 = vst [vmem:[%s2585_s12 + $0xa4] sm:$0xf] %v2123_v29  ;;  %v2125_v30 = vld [vmem:[%s2580_s11 + $0x3f8] sm:$0xf]  ;;  %v2127_v31 = vld [vmem:[%s2580_s11 + $0x440] sm:$0xf] }
  0x24   : > { %2126 = vst [vmem:[%s2585_s12 + $0xb0] sm:$0xf] %v2125_v30  ;;  %2128 = vst [vmem:[%s2585_s12 + $0xbc] sm:$0xf] %v2127_v31 }
  0x25 PF: > { %p2129_p6 = scmp.ge.s32.totalorder %s2497_s25, 1  ;;  %p400_p7 = scmp.lt.s32.totalorder %s2497_s25, 7 }
  0x27   : > { %p401_p8 = pnand %p2129_p6, %p400_p7 }
  0x28   : > { %s407_s13 = sand.u32 (!%p401_p8), 1, %s2481_s21   ;;  %s487_s14 = smul.u32 (!%p401_p8), 48, %s2489_s23 }
  0x29   : > { %404 = sbr.rel (%p401_p8) target bundleno = 479 (0x1df), region = 62  ;;  %p2132_p10 = scmp.ne.s32.totalorder (!%p401_p8), %s2489_s23, 0 }
  0x2a   : > { %s2311_s15 = smul.u32 (!%p401_p8), 192, %s407_s13  ;;  %p489_p9 = scmp.lt.s32.totalorder (!%p401_p8), %s487_s14, 287 }
  0x2c   : > { %s2657_s20 = scalar_lea.vmem (!%p401_p8), [#allocation3], %s2311_s15 }
  0x30   : > { %s3490_s14 = smov (!%p489_p9, %s487_s14), 287  ;;  %556 = sbr.rel (%p2132_p10) target bundleno = 66 (0x42), region = 70 }
  0x31   : > { %s2261_s16 = sshll.u32 %s3490_s14, 3  ;;  %v2499_v32 = vmov (!%p2132_p10), 0.0  }
  0x32   : > { %s2655_s19 = scalar_lea.vmem %s3441_s1, %s2261_s16  ;;  %557 = vst [vmem:[#allocation2] sm:$0xff] (!%p2132_p10), %v2499_v32  ;;  %558 = vst [vmem:[#allocation2 + $0x8] sm:$0xff] (!%p2132_p10), %v2499_v32 }
  0x33   : > { %559 = vst [vmem:[#allocation2 + $0x10] sm:$0xff] (!%p2132_p10), %v2499_v32  ;;  %560 = vst [vmem:[#allocation2 + $0x18] sm:$0xff] (!%p2132_p10), %v2499_v32 }
  0x34   : > { %561 = vst [vmem:[#allocation2 + $0x20] sm:$0xff] (!%p2132_p10), %v2499_v32  ;;  %562 = vst [vmem:[#allocation2 + $0x28] sm:$0xff] (!%p2132_p10), %v2499_v32 }
  0x35   : > { %563 = vst [vmem:[#allocation2 + $0x30] sm:$0xff] (!%p2132_p10), %v2499_v32  ;;  %564 = vst [vmem:[#allocation2 + $0x38] sm:$0xff] (!%p2132_p10), %v2499_v32 }
  0x36   : > { %565 = vst [vmem:[#allocation2 + $0x40] sm:$0xff] (!%p2132_p10), %v2499_v32  ;;  %566 = vst [vmem:[#allocation2 + $0x48] sm:$0xff] (!%p2132_p10), %v2499_v32 }
  0x37   : > { %567 = vst [vmem:[#allocation2 + $0x50] sm:$0xff] %v2499_v32  ;;  %568 = vst [vmem:[#allocation2 + $0x58] sm:$0xff] %v2499_v32 }
  0x38   : > { %569 = vst [vmem:[#allocation2 + $0x60] sm:$0xff] %v2499_v32  ;;  %570 = vst [vmem:[#allocation2 + $0x68] sm:$0xff] %v2499_v32 }
  0x39   : > { %571 = vst [vmem:[#allocation2 + $0x70] sm:$0xff] %v2499_v32  ;;  %572 = vst [vmem:[#allocation2 + $0x78] sm:$0xff] %v2499_v32 }
  0x3a   : > { %573 = vst [vmem:[#allocation2 + $0x80] sm:$0xff] %v2499_v32  ;;  %574 = vst [vmem:[#allocation2 + $0x88] sm:$0xff] %v2499_v32 }
  0x3b   : > { %575 = vst [vmem:[#allocation2 + $0x90] sm:$0xff] %v2499_v32  ;;  %576 = vst [vmem:[#allocation2 + $0x98] sm:$0xff] %v2499_v32 }
  0x3c   : > { %577 = vst [vmem:[#allocation2 + $0xa0] sm:$0xff] %v2499_v32  ;;  %578 = vst [vmem:[#allocation2 + $0xa8] sm:$0xff] %v2499_v32 }
  0x3d   : > { %579 = vst [vmem:[#allocation2 + $0xb0] sm:$0xff] %v2499_v32  ;;  %580 = vst [vmem:[#allocation2 + $0xb8] sm:$0xff] %v2499_v32 }
  0x3e   : > { %581 = vst [vmem:[#allocation2 + $0xc0] sm:$0xff] %v2499_v32  ;;  %582 = vst [vmem:[#allocation2 + $0xc8] sm:$0xff] %v2499_v32 }
  0x3f   : > { %583 = vst [vmem:[#allocation2 + $0xd0] sm:$0xff] %v2499_v32  ;;  %584 = vst [vmem:[#allocation2 + $0xd8] sm:$0xff] %v2499_v32 }
  0x40   : > { %585 = vst [vmem:[#allocation2 + $0xe0] sm:$0xff] %v2499_v32  ;;  %586 = vst [vmem:[#allocation2 + $0xe8] sm:$0xff] %v2499_v32 }
  0x41   : > { %587 = vst [vmem:[#allocation2 + $0xf0] sm:$0xff] %v2499_v32  ;;  %588 = vst [vmem:[#allocation2 + $0xf8] sm:$0xff] %v2499_v32 }
  0x42 PF: > { %v2355_v33 = vld [vmem:[%s2655_s19 + $0x4] ss:$8 sps:$4 sm:$0xff]   ;;  %v2357_v34 = vld [vmem:[%s2655_s19] ss:$8 sps:$4 sm:$0xff]   ;;  %v2500_v35 = vmov 0   ;;  %p2205_p11 = scmp.ne.s32.totalorder %s2489_s23, 5 }
  0x43   : > { %1214 = vmatprep.mubr.bf16.mxu0 %v2500_v35  ;;  %1069 = vmatprep.subr.bf16.mxu1 %v2355_v33  ;;  %v2358_v36 = vld [vmem:[%s2655_s19 + $0x14] ss:$8 sps:$4 sm:$0xff]   ;;  %v2360_v37 = vld [vmem:[%s2655_s19 + $0x10] ss:$8 sps:$4 sm:$0xff]   ;;  %v2361_v38 = vld [vmem:[%s2655_s19 + $0x24] ss:$8 sps:$4 sm:$0xff]  }
  0x44   : > { %1070 = vmatpush1.bf16.msra.mxu1 %v2357_v34  ;;  %v2363_v39 = vld [vmem:[%s2655_s19 + $0x20] ss:$8 sps:$4 sm:$0xff]   ;;  %v2364_v40 = vld [vmem:[%s2655_s19 + $0x34] ss:$8 sps:$4 sm:$0xff]   ;;  %v2366_v41 = vld [vmem:[%s2655_s19 + $0x30] ss:$8 sps:$4 sm:$0xff]  }
  0x45   : > { %1071 = vmatprep.subr.bf16.mxu1 %v2358_v36  ;;  %v2379_v42 = vld [vmem:[%s2655_s19 + $0x104] ss:$8 sps:$4 sm:$0xff]   ;;  %v2381_v43 = vld [vmem:[%s2655_s19 + $0x100] ss:$8 sps:$4 sm:$0xff]   ;;  %v2385_v45 = vld [vmem:[%s2655_s19 + $0x114] ss:$8 sps:$4 sm:$0xff]  }
  0x46   : > { %v2367_v44 = vld [vmem:[%s2655_s19 + $0x44] ss:$8 sps:$4 sm:$0xff]   ;;  %1182 = vmatprep.subr.bf16.mxu0 %v2379_v42  ;;  %v2387_v46 = vld [vmem:[%s2655_s19 + $0x110] ss:$8 sps:$4 sm:$0xff]   ;;  %v2369_v47 = vld [vmem:[%s2655_s19 + $0x40] ss:$8 sps:$4 sm:$0xff]  }
  0x47   : > { %1183 = vmatpush1.bf16.msra.mxu0 %v2381_v43  ;;  %v2370_v48 = vld [vmem:[%s2655_s19 + $0x54] ss:$8 sps:$4 sm:$0xff]   ;;  %v2391_v49 = vld [vmem:[%s2655_s19 + $0x124] ss:$8 sps:$4 sm:$0xff]   ;;  %v2393_v50 = vld [vmem:[%s2655_s19 + $0x120] ss:$8 sps:$4 sm:$0xff]  }
  0x48   : > { %1072 = vmatpush1.bf16.msra.mxu1 %v2360_v37  ;;  %1184 = vmatprep.subr.bf16.mxu0 %v2385_v45  ;;  %v2372_v51 = vld [vmem:[%s2655_s19 + $0x50] ss:$8 sps:$4 sm:$0xff]   ;;  %v2397_v52 = vld [vmem:[%s2655_s19 + $0x134] ss:$8 sps:$4 sm:$0xff]   ;;  %v2373_v53 = vld [vmem:[%s2655_s19 + $0x64] ss:$8 sps:$4 sm:$0xff]  }
  0x49   : > { %1073 = vmatprep.subr.bf16.mxu1 %v2361_v38  ;;  %v2399_v54 = vld [vmem:[%s2655_s19 + $0x130] ss:$8 sps:$4 sm:$0xff]   ;;  %v2375_v55 = vld [vmem:[%s2655_s19 + $0x60] ss:$8 sps:$4 sm:$0xff]   ;;  %v2403_v56 = vld [vmem:[%s2655_s19 + $0x144] ss:$8 sps:$4 sm:$0xff]  }
  0x4a   : > { %v2376_v57 = vld [vmem:[%s2655_s19 + $0x74] ss:$8 sps:$4 sm:$0xff]   ;;  %v2405_v58 = vld [vmem:[%s2655_s19 + $0x140] ss:$8 sps:$4 sm:$0xff]   ;;  %v2378_v59 = vld [vmem:[%s2655_s19 + $0x70] ss:$8 sps:$4 sm:$0xff]  }
  0x4b   : > { %1185 = vmatpush1.bf16.msra.mxu0 %v2387_v46  ;;  %v2409_v60 = vld [vmem:[%s2655_s19 + $0x154] ss:$8 sps:$4 sm:$0xff]   ;;  %v2382_v61 = vld [vmem:[%s2655_s19 + $0x84] ss:$8 sps:$4 sm:$0xff]   ;;  %v2411_v62 = vld [vmem:[%s2655_s19 + $0x150] ss:$8 sps:$4 sm:$0xff]  }
  0x4c   : > { %1074 = vmatpush1.bf16.msra.mxu1 %v2363_v39  ;;  %1186 = vmatprep.subr.bf16.mxu0 %v2391_v49  ;;  %v2384_v63 = vld [vmem:[%s2655_s19 + $0x80] ss:$8 sps:$4 sm:$0xff]   ;;  %v2415_v0 = vld [vmem:[%s2655_s19 + $0x164] ss:$8 sps:$4 sm:$0xff]   ;;  %v2388_v1 = vld [vmem:[%s2655_s19 + $0x94] ss:$8 sps:$4 sm:$0xff]  }
  0x4d   : > { %1075 = vmatprep.subr.bf16.mxu1 %v2364_v40  ;;  %v2390_v2 = vld [vmem:[%s2655_s19 + $0x90] ss:$8 sps:$4 sm:$0xff]   ;;  %v2417_v3 = vld [vmem:[%s2655_s19 + $0x160] ss:$8 sps:$4 sm:$0xff]   ;;  %v2421_v5 = vld [vmem:[%s2655_s19 + $0x174] ss:$8 sps:$4 sm:$0xff]  }
  0x4e   : > { %v2430_v4 = vld [vmem:[%s2657_s20 + $0x4] ss:$12 sps:$4 sm:$0xff]   ;;  %v2396_v8 = vld [vmem:[%s2655_s19 + $0xa0] ss:$8 sps:$4 sm:$0xff]   ;;  %v2400_v9 = vld [vmem:[%s2655_s19 + $0xb4] ss:$8 sps:$4 sm:$0xff]  }
  0x4f   : > { %1187 = vmatpush1.bf16.msra.mxu0 %v2393_v50  ;;  %v2394_v6 = vld [vmem:[%s2655_s19 + $0xa4] ss:$8 sps:$4 sm:$0xff]   ;;  %1101 = vmatprep.mubr.bf16.mxu1 %v2430_v4  ;;  %v2423_v7 = vld [vmem:[%s2655_s19 + $0x170] ss:$8 sps:$4 sm:$0xff]   ;;  %v2427_v10 = vld [vmem:[%s2657_s20 + $0x8] ss:$12 sps:$4 sm:$0xff]  }
  0x50   : > { %1076 = vmatpush1.bf16.msra.mxu1 %v2366_v41  ;;  %1188 = vmatprep.subr.bf16.mxu0 %v2397_v52  ;;  %v2402_v11 = vld [vmem:[%s2655_s19 + $0xb0] ss:$8 sps:$4 sm:$0xff]   ;;  %v2406_v12 = vld [vmem:[%s2655_s19 + $0xc4] ss:$8 sps:$4 sm:$0xff]   ;;  %v2408_v13 = vld [vmem:[%s2655_s19 + $0xc0] ss:$8 sps:$4 sm:$0xff]  }
  0x51   : > { %1077 = vmatprep.subr.bf16.mxu1 %v2367_v44  ;;  %v2412_v14 = vld [vmem:[%s2655_s19 + $0xd4] ss:$8 sps:$4 sm:$0xff]   ;;  %v2431_v15 = vld [vmem:[%s2657_s20 + $0x20] ss:$12 sps:$4 sm:$0xff]   ;;  %v2414_v16 = vld [vmem:[%s2655_s19 + $0xd0] ss:$8 sps:$4 sm:$0xff]  }
  0x52   : > { %v2418_v17 = vld [vmem:[%s2655_s19 + $0xe4] ss:$8 sps:$4 sm:$0xff]   ;;  %v2420_v18 = vld [vmem:[%s2655_s19 + $0xe0] ss:$8 sps:$4 sm:$0xff]   ;;  %v2424_v19 = vld [vmem:[%s2655_s19 + $0xf4] ss:$8 sps:$4 sm:$0xff]  }
  0x53   : > { %1189 = vmatpush1.bf16.msra.mxu0 %v2399_v54  ;;  %v2435_v20 = vld [vmem:[%s2657_s20 + $0x38] ss:$12 sps:$4 sm:$0xff]   ;;  %v2428_v22 = vld [vmem:[%s2657_s20] ss:$12 sps:$4 sm:$0xff]   ;;  %v2432_v23 = vld [vmem:[%s2657_s20 + $0x1c] ss:$12 sps:$4 sm:$0xff]  }
  0x54   : > { %1078 = vmatpush1.bf16.msra.mxu1 %v2369_v47  ;;  %1190 = vmatprep.subr.bf16.mxu0 %v2403_v56  ;;  %v2426_v21 = vld [vmem:[%s2655_s19 + $0xf0] ss:$8 sps:$4 sm:$0xff]   ;;  %v2436_v26 = vld [vmem:[%s2657_s20 + $0x34] ss:$12 sps:$4 sm:$0xff]   ;;  %v2448_v36 = vld [vmem:[%s2657_s20 + $0x7c] ss:$12 sps:$4 sm:$0xff]  }
  0x55   : > { %1079 = vmatprep.subr.bf16.mxu1 %v2370_v48  ;;  %v2439_v24 = vld [vmem:[%s2657_s20 + $0x50] ss:$12 sps:$4 sm:$0xff]   ;;  %v2434_v25 = vld [vmem:[%s2657_s20 + $0x18] ss:$12 sps:$4 sm:$0xff]   ;;  %v2443_v27 = vld [vmem:[%s2657_s20 + $0x68] ss:$12 sps:$4 sm:$0xff]  }
  0x56   : > { %v2438_v28 = vld [vmem:[%s2657_s20 + $0x30] ss:$12 sps:$4 sm:$0xff]   ;;  %v2440_v29 = vld [vmem:[%s2657_s20 + $0x4c] ss:$12 sps:$4 sm:$0xff]   ;;  %v2442_v31 = vld [vmem:[%s2657_s20 + $0x48] ss:$12 sps:$4 sm:$0xff]  }
  0x57   : > { %1191 = vmatpush1.bf16.msra.mxu0 %v2405_v58  ;;  %v2447_v30 = vld [vmem:[%s2657_s20 + $0x80] ss:$12 sps:$4 sm:$0xff]   ;;  %v2444_v32 = vld [vmem:[%s2657_s20 + $0x64] ss:$12 sps:$4 sm:$0xff]   ;;  %v2458_v42 = vld [vmem:[%s2657_s20 + $0xa8] ss:$12 sps:$4 sm:$0xff]  }
  0x58   : > { %1080 = vmatpush1.bf16.msra.mxu1 %v2372_v51  ;;  %1192 = vmatprep.subr.bf16.mxu0 %v2409_v60  ;;  %v2451_v33 = vld [vmem:[%s2657_s20 + $0x98] ss:$12 sps:$4 sm:$0xff]   ;;  %v2446_v34 = vld [vmem:[%s2657_s20 + $0x60] ss:$12 sps:$4 sm:$0xff]   ;;  %v2455_v37 = vld [vmem:[%s2657_s20 + $0xb0] ss:$12 sps:$4 sm:$0xff]  }
  0x59   : > { %1081 = vmatprep.subr.bf16.mxu1 %v2373_v53  ;;  %v2450_v38 = vld [vmem:[%s2657_s20 + $0x78] ss:$12 sps:$4 sm:$0xff]   ;;  %v2452_v39 = vld [vmem:[%s2657_s20 + $0x94] ss:$12 sps:$4 sm:$0xff]   ;;  %v2454_v40 = vld [vmem:[%s2657_s20 + $0x90] ss:$12 sps:$4 sm:$0xff]  }
  0x5a   : > { %v2456_v41 = vld [vmem:[%s2657_s20 + $0xac] ss:$12 sps:$4 sm:$0xff]   ;;  %v589_v54 = vld [vmem:[#allocation2] sm:$0xff]  ;;  %v591_v60 = vld [vmem:[#allocation2 + $0x10] sm:$0xff] }
  0x5b   : > { %1193 = vmatpush1.bf16.msra.mxu0 %v2411_v62 }
  0x5c   : > { %1082 = vmatpush1.bf16.msra.mxu1 %v2375_v55  ;;  %1194 = vmatprep.subr.bf16.mxu0 %v2415_v0  ;;  %v592_v0 = vld [vmem:[#allocation2 + $0x18] sm:$0xff] }
  0x5d   : > { %1083 = vmatprep.subr.bf16.mxu1 %v2376_v57  ;;  %v590_v57 = vld [vmem:[#allocation2 + $0x8] sm:$0xff] }
  0x5f   : > { %1195 = vmatpush1.bf16.msra.mxu0 %v2417_v3 }
  0x60   : > { %1084 = vmatpush1.bf16.msra.mxu1 %v2378_v59  ;;  %1196 = vmatprep.subr.bf16.mxu0 %v2421_v5 }
  0x61   : > { %1085 = vmatprep.subr.bf16.mxu1 %v2382_v61 }
  0x63   : > { %1197 = vmatpush1.bf16.msra.mxu0 %v2423_v7 }
  0x64   : > { %1086 = vmatpush1.bf16.msra.mxu1 %v2384_v63 }
  0x65   : > { %1087 = vmatprep.subr.bf16.mxu1 %v2388_v1 }
  0x66   : > { %1215 = vmatmul.mubr.bf16.vlgmr.msra.gmra.mrb[0].mxu0 %v2427_v10  ;;  %v593_v10 = vld [vmem:[#allocation2 + $0x20] sm:$0xff] }
  0x67   : > { %1224 = vmatprep.mubr.bf16.mxu0 %v2500_v35 }
  0x68   : > { %1088 = vmatpush1.bf16.msra.mxu1 %v2390_v2 }
  0x69   : > { %1089 = vmatprep.subr.bf16.mxu1 %v2394_v6 }
  0x6c   : > { %1090 = vmatpush1.bf16.msra.mxu1 %v2396_v8 }
  0x6d   : > { %1091 = vmatprep.subr.bf16.mxu1 %v2400_v9 }
  0x6e   : > { %1225 = vmatmul.mubr.bf16.gmra.mrb[4].mxu0 %v2431_v15 }
  0x6f   : > { %1234 = vmatprep.mubr.bf16.mxu0 %v2500_v35 }
  0x70   : > { %1092 = vmatpush1.bf16.msra.mxu1 %v2402_v11 }
  0x71   : > { %1093 = vmatprep.subr.bf16.mxu1 %v2406_v12 }
  0x74   : > { %1094 = vmatpush1.bf16.msra.mxu1 %v2408_v13  ;;  %v594_v13 = vld [vmem:[#allocation2 + $0x28] sm:$0xff] }
  0x75   : > { %1095 = vmatprep.subr.bf16.mxu1 %v2412_v14 }
  0x76   : > { %1235 = vmatmul.mubr.bf16.gmra.mrb[8].mxu0 %v2435_v20  ;;  %v596_v20 = vld [vmem:[#allocation2 + $0x38] sm:$0xff] }
  0x77   : > { %1244 = vmatprep.mubr.bf16.mxu0 %v2500_v35 }
  0x78   : > { %1096 = vmatpush1.bf16.msra.mxu1 %v2414_v16  ;;  %v595_v16 = vld [vmem:[#allocation2 + $0x30] sm:$0xff] }
  0x79   : > { %1097 = vmatprep.subr.bf16.mxu1 %v2418_v17 }
  0x7c   : > { %1098 = vmatpush1.bf16.msra.mxu1 %v2420_v18 }
  0x7d   : > { %1099 = vmatprep.subr.bf16.mxu1 %v2424_v19 }
  0x7e   : > { %1245 = vmatmul.mubr.bf16.gmra.mrb[12].mxu0 %v2439_v24 }
  0x7f   : > { %1254 = vmatprep.mubr.bf16.mxu0 %v2500_v35 }
  0x80   : > { %1100 = vmatpush1.bf16.msra.mxu1 %v2426_v21 }
  0x83   : > { %1102 = vmatmul.mubr.bf16.vlgmr.msra.gmra.mrb[0].mxu1 %v2428_v22 }
  0x84   : > { %1111 = vmatprep.mubr.bf16.mxu1 %v2432_v23 }
  0x86   : > { %1255 = vmatmul.mubr.bf16.gmra.mrb[16].mxu0 %v2443_v27 }
  0x87   : > { %1264 = vmatprep.mubr.bf16.mxu0 %v2500_v35 }
  0x8b   : > { %1112 = vmatmul.mubr.bf16.gmra.mrb[4].mxu1 %v2434_v25 }
  0x8c   : > { %1121 = vmatprep.mubr.bf16.mxu1 %v2436_v26 }
  0x8e   : > { %1265 = vmatmul.mubr.bf16.gmra.mrb[20].mxu0 %v2447_v30  ;;  %v597_v30 = vld [vmem:[#allocation2 + $0x40] sm:$0xff] }
  0x8f   : > { %1274 = vmatprep.mubr.bf16.mxu0 %v2500_v35 }
  0x93   : > { %1122 = vmatmul.mubr.bf16.gmra.mrb[8].mxu1 %v2438_v28 }
  0x94   : > { %1131 = vmatprep.mubr.bf16.mxu1 %v2440_v29 }
  0x96   : > { %1275 = vmatmul.mubr.bf16.gmra.mrb[24].mxu0 %v2451_v33  ;;  %v598_v33 = vld [vmem:[#allocation2 + $0x48] sm:$0xff] }
  0x97   : > { %1284 = vmatprep.mubr.bf16.mxu0 %v2500_v35 }
  0x9b   : > { %1132 = vmatmul.mubr.bf16.gmra.mrb[12].mxu1 %v2442_v31 }
  0x9c   : > { %1141 = vmatprep.mubr.bf16.mxu1 %v2444_v32 }
  0x9e   : > { %1285 = vmatmul.mubr.bf16.gmra.mrb[28].mxu0 %v2455_v37  ;;  %v599_v37 = vld [vmem:[#allocation2 + $0x50] sm:$0xff] }
  0xa3   : > { %1142 = vmatmul.mubr.bf16.gmra.mrb[16].mxu1 %v2446_v34 }
  0xa4   : > { %1151 = vmatprep.mubr.bf16.mxu1 %v2448_v36 }
  0xab   : > { %1152 = vmatmul.mubr.bf16.gmra.mrb[20].mxu1 %v2450_v38 }
  0xac   : > { %1161 = vmatprep.mubr.bf16.mxu1 %v2452_v39 }
  0xb3   : > { %1162 = vmatmul.mubr.bf16.gmra.mrb[24].mxu1 %v2454_v40 }
  0xb4   : > { %1171 = vmatprep.mubr.bf16.mxu1 %v2456_v41  ;;  %v600_v41 = vld [vmem:[#allocation2 + $0x58] sm:$0xff] }
  0xbb   : > { %1172 = vmatmul.mubr.bf16.gmra.mrb[28].mxu1 %v2458_v42 }
 0x139   : > { %v1216_v43 = vpop.f32.mrb[0].mxu0 }
 0x13a   : > { %v1218_v44 = vpop.f32.mrb[1].mxu0 }
 0x13b   : > { %v1220_v45 = vpop.f32.mrb[2].mxu0 }
 0x13c   : > { %v1222_v46 = vpop.f32.mrb[3].mxu0 }
 0x141   : > { %v1226_v35 = vpop.f32.mrb[4].mxu0 }
 0x142   : > { %v1228_v47 = vpop.f32.mrb[5].mxu0 }
 0x143   : > { %v1230_v48 = vpop.f32.mrb[6].mxu0 }
 0x144   : > { %v1232_v49 = vpop.f32.mrb[7].mxu0 }
 0x149   : > { %v1236_v50 = vpop.f32.mrb[8].mxu0 }
 0x14a   : > { %v1238_v51 = vpop.f32.mrb[9].mxu0 }
 0x14b   : > { %v1240_v52 = vpop.f32.mrb[10].mxu0 }
 0x14c   : > { %v2740_v53 = vpop.f32.mrb[11].mxu0 }
 0x151   : > { %v1246_v2 = vpop.f32.mrb[12].mxu0 }
 0x152   : > { %v1248_v5 = vpop.f32.mrb[13].mxu0 }
 0x153   : > { %v2742_v7 = vpop.f32.mrb[14].mxu0 }
 0x154   : > { %v2744_v9 = vpop.f32.mrb[15].mxu0 }
 0x156   : > { %v1103_v55 = vpop.f32.mrb[0].mxu1 }
 0x157   : > { %v1217_v56 = vadd.f32 %v1216_v43, %v1103_v55  ;;  %v1105_v58 = vpop.f32.mrb[1].mxu1 }
 0x158   : > { %v1219_v59 = vadd.f32 %v1218_v44, %v1105_v58  ;;  %v1107_v61 = vpop.f32.mrb[2].mxu1 }
 0x159   : > { %v1295_v62 = vadd.f32 %v1217_v56, %v589_v54  ;;  %v1221_v63 = vadd.f32 %v1220_v45, %v1107_v61  ;;  %v1109_v1 = vpop.f32.mrb[3].mxu1  ;;  %v1256_v22 = vpop.f32.mrb[16].mxu0  ;;  %v602_v54 = vld [vmem:[#allocation2 + $0x68] sm:$0xff] }
 0x15a   : > { %v1296_v3 = vadd.f32 %v1219_v59, %v590_v57  ;;  %v1223_v4 = vadd.f32 %v1222_v46, %v1109_v1  ;;  %v1258_v25 = vpop.f32.mrb[17].mxu0  ;;  %v603_v57 = vld [vmem:[#allocation2 + $0x70] sm:$0xff] }
 0x15b   : > { %1327 = vst [vmem:[#allocation2] sm:$0xff] %v1295_v62  ;;  %v1297_v6 = vadd.f32 %v1221_v63, %v591_v60  ;;  %v2746_v27 = vpop.f32.mrb[18].mxu0  ;;  %v604_v60 = vld [vmem:[#allocation2 + $0x78] sm:$0xff] }
 0x15c   : > { %1328 = vst [vmem:[#allocation2 + $0x8] sm:$0xff] %v1296_v3  ;;  %v1298_v8 = vadd.f32 %v1223_v4, %v592_v0  ;;  %v2748_v29 = vpop.f32.mrb[19].mxu0 }
 0x15d   : > { %1329 = vst [vmem:[#allocation2 + $0x10] sm:$0xff] %v1297_v6 }
 0x15e   : > { %1330 = vst [vmem:[#allocation2 + $0x18] sm:$0xff] %v1298_v8  ;;  %v1113_v11 = vpop.f32.mrb[4].mxu1 }
 0x15f   : > { %v1227_v12 = vadd.f32 %v1226_v35, %v1113_v11  ;;  %v1115_v14 = vpop.f32.mrb[5].mxu1  ;;  %v606_v11 = vld [vmem:[#allocation2 + $0x88] sm:$0xff] }
 0x160   : > { %v1229_v15 = vadd.f32 %v1228_v47, %v1115_v14  ;;  %v1117_v17 = vpop.f32.mrb[6].mxu1 }
 0x161   : > { %v1299_v18 = vadd.f32 %v1227_v12, %v593_v10  ;;  %v1231_v19 = vadd.f32 %v1230_v48, %v1117_v17  ;;  %v1119_v21 = vpop.f32.mrb[7].mxu1  ;;  %v1266_v43 = vpop.f32.mrb[20].mxu0 }
 0x162   : > { %v1300_v23 = vadd.f32 %v1229_v15, %v594_v13  ;;  %v1233_v24 = vadd.f32 %v1232_v49, %v1119_v21  ;;  %v1268_v46 = vpop.f32.mrb[21].mxu0  ;;  %v607_v13 = vld [vmem:[#allocation2 + $0x90] sm:$0xff] }
 0x163   : > { %1331 = vst [vmem:[#allocation2 + $0x20] sm:$0xff] %v1299_v18  ;;  %v1301_v26 = vadd.f32 %v1231_v19, %v595_v16  ;;  %v2751_v47 = vpop.f32.mrb[22].mxu0  ;;  %v608_v16 = vld [vmem:[#allocation2 + $0x98] sm:$0xff] }
 0x164   : > { %1332 = vst [vmem:[#allocation2 + $0x28] sm:$0xff] %v1300_v23  ;;  %v1302_v28 = vadd.f32 %v1233_v24, %v596_v20  ;;  %v2753_v49 = vpop.f32.mrb[23].mxu0 }
 0x165   : > { %1333 = vst [vmem:[#allocation2 + $0x30] sm:$0xff] %v1301_v26 }
 0x166   : > { %1334 = vst [vmem:[#allocation2 + $0x38] sm:$0xff] %v1302_v28  ;;  %v1123_v31 = vpop.f32.mrb[8].mxu1 }
 0x167   : > { %v1237_v32 = vadd.f32 %v1236_v50, %v1123_v31  ;;  %v1125_v34 = vpop.f32.mrb[9].mxu1  ;;  %v601_v50 = vld [vmem:[#allocation2 + $0x60] sm:$0xff]  ;;  %v610_v31 = vld [vmem:[#allocation2 + $0xa8] sm:$0xff] }
 0x168   : > { %v1239_v36 = vadd.f32 %v1238_v51, %v1125_v34  ;;  %v1127_v38 = vpop.f32.mrb[10].mxu1 }
 0x169   : > { %v1303_v39 = vadd.f32 %v1237_v32, %v597_v30  ;;  %v1241_v40 = vadd.f32 %v1240_v52, %v1127_v38  ;;  %v1129_v42 = vpop.f32.mrb[11].mxu1  ;;  %v1276_v62 = vpop.f32.mrb[24].mxu0 }
 0x16a   : > { %v1304_v44 = vadd.f32 %v1239_v36, %v598_v33  ;;  %v1243_v45 = vadd.f32 %v2740_v53, %v1129_v42  ;;  %v1278_v1 = vpop.f32.mrb[25].mxu0  ;;  %v611_v33 = vld [vmem:[#allocation2 + $0xb0] sm:$0xff] }
 0x16b   : > { %1335 = vst [vmem:[#allocation2 + $0x40] sm:$0xff] %v1303_v39  ;;  %v1305_v35 = vadd.f32 %v1241_v40, %v599_v37  ;;  %v1280_v4 = vpop.f32.mrb[26].mxu0  ;;  %v612_v37 = vld [vmem:[#allocation2 + $0xb8] sm:$0xff] }
 0x16c   : > { %1336 = vst [vmem:[#allocation2 + $0x48] sm:$0xff] %v1304_v44  ;;  %v1306_v48 = vadd.f32 %v1243_v45, %v600_v41  ;;  %v1282_v6 = vpop.f32.mrb[27].mxu0 }
 0x16d   : > { %1337 = vst [vmem:[#allocation2 + $0x50] sm:$0xff] %v1305_v35 }
 0x16e   : > { %1338 = vst [vmem:[#allocation2 + $0x58] sm:$0xff] %v1306_v48  ;;  %v1133_v51 = vpop.f32.mrb[12].mxu1 }
 0x16f   : > { %v1247_v52 = vadd.f32 %v1246_v2, %v1133_v51  ;;  %v1135_v55 = vpop.f32.mrb[13].mxu1 }
 0x170   : > { %v1249_v56 = vadd.f32 %v1248_v5, %v1135_v55  ;;  %v1137_v58 = vpop.f32.mrb[14].mxu1  ;;  %v605_v5 = vld [vmem:[#allocation2 + $0x80] sm:$0xff] }
 0x171   : > { %v1307_v53 = vadd.f32 %v1247_v52, %v601_v50  ;;  %v1251_v59 = vadd.f32 %v2742_v7, %v1137_v58  ;;  %v1139_v61 = vpop.f32.mrb[15].mxu1  ;;  %v1286_v18 = vpop.f32.mrb[28].mxu0  ;;  %v615_v50 = vld [vmem:[#allocation2 + $0xd0] sm:$0xff] }
 0x172   : > { %v1308_v63 = vadd.f32 %v1249_v56, %v602_v54  ;;  %v1253_v0 = vadd.f32 %v2744_v9, %v1139_v61  ;;  %v1288_v21 = vpop.f32.mrb[29].mxu0  ;;  %v616_v54 = vld [vmem:[#allocation2 + $0xd8] sm:$0xff]  ;;  %v618_v61 = vld [vmem:[#allocation2 + $0xe8] sm:$0xff] }
 0x173   : > { %1339 = vst [vmem:[#allocation2 + $0x60] sm:$0xff] %v1307_v53  ;;  %v1309_v3 = vadd.f32 %v1251_v59, %v603_v57  ;;  %v1290_v24 = vpop.f32.mrb[30].mxu0  ;;  %v617_v53 = vld [vmem:[#allocation2 + $0xe0] sm:$0xff] }
 0x174   : > { %1340 = vst [vmem:[#allocation2 + $0x68] sm:$0xff] %v1308_v63  ;;  %v1310_v2 = vadd.f32 %v1253_v0, %v604_v60  ;;  %v1292_v26 = vpop.f32.mrb[31].mxu0  ;;  %v619_v0 = vld [vmem:[#allocation2 + $0xf0] sm:$0xff] }
 0x175   : > { %1341 = vst [vmem:[#allocation2 + $0x70] sm:$0xff] %v1309_v3 }
 0x176   : > { %1342 = vst [vmem:[#allocation2 + $0x78] sm:$0xff] %v1310_v2  ;;  %v1143_v8 = vpop.f32.mrb[16].mxu1  ;;  %v620_v2 = vld [vmem:[#allocation2 + $0xf8] sm:$0xff] }
 0x177   : > { %v1257_v10 = vadd.f32 %v1256_v22, %v1143_v8  ;;  %v1145_v7 = vpop.f32.mrb[17].mxu1 }
 0x178   : > { %v1259_v12 = vadd.f32 %v1258_v25, %v1145_v7  ;;  %v1147_v14 = vpop.f32.mrb[18].mxu1  ;;  %v609_v25 = vld [vmem:[#allocation2 + $0xa0] sm:$0xff] }
 0x179   : > { %v1311_v15 = vadd.f32 %v1257_v10, %v605_v5  ;;  %v1261_v9 = vadd.f32 %v2746_v27, %v1147_v14  ;;  %v1149_v17 = vpop.f32.mrb[19].mxu1 }
 0x17a   : > { %v1312_v19 = vadd.f32 %v1259_v12, %v606_v11  ;;  %v1263_v20 = vadd.f32 %v2748_v29, %v1149_v17 }
 0x17b   : > { %1343 = vst [vmem:[#allocation2 + $0x80] sm:$0xff] %v1311_v15  ;;  %v1313_v23 = vadd.f32 %v1261_v9, %v607_v13 }
 0x17c   : > { %1344 = vst [vmem:[#allocation2 + $0x88] sm:$0xff] %v1312_v19  ;;  %v1314_v22 = vadd.f32 %v1263_v20, %v608_v16 }
 0x17d   : > { %1345 = vst [vmem:[#allocation2 + $0x90] sm:$0xff] %v1313_v23 }
 0x17e   : > { %1346 = vst [vmem:[#allocation2 + $0x98] sm:$0xff] %v1314_v22  ;;  %v1153_v28 = vpop.f32.mrb[20].mxu1 }
 0x17f   : > { %v1267_v30 = vadd.f32 %v1266_v43, %v1153_v28  ;;  %v1155_v27 = vpop.f32.mrb[21].mxu1  ;;  %v613_v43 = vld [vmem:[#allocation2 + $0xc0] sm:$0xff] }
 0x180   : > { %v1269_v32 = vadd.f32 %v1268_v46, %v1155_v27  ;;  %v1157_v34 = vpop.f32.mrb[22].mxu1  ;;  %v614_v46 = vld [vmem:[#allocation2 + $0xc8] sm:$0xff] }
 0x181   : > { %v1315_v36 = vadd.f32 %v1267_v30, %v609_v25  ;;  %v1271_v29 = vadd.f32 %v2751_v47, %v1157_v34  ;;  %v1159_v38 = vpop.f32.mrb[23].mxu1 }
 0x182   : > { %v1316_v39 = vadd.f32 %v1269_v32, %v610_v31  ;;  %v1273_v40 = vadd.f32 %v2753_v49, %v1159_v38 }
 0x183   : > { %1347 = vst [vmem:[#allocation2 + $0xa0] sm:$0xff] %v1315_v36  ;;  %v1317_v41 = vadd.f32 %v1271_v29, %v611_v33 }
 0x184   : > { %1348 = vst [vmem:[#allocation2 + $0xa8] sm:$0xff] %v1316_v39  ;;  %v1318_v42 = vadd.f32 %v1273_v40, %v612_v37 }
 0x185   : > { %1349 = vst [vmem:[#allocation2 + $0xb0] sm:$0xff] %v1317_v41 }
 0x186   : > { %1350 = vst [vmem:[#allocation2 + $0xb8] sm:$0xff] %v1318_v42  ;;  %v1163_v44 = vpop.f32.mrb[24].mxu1 }
 0x187   : > { %v1277_v45 = vadd.f32 %v1276_v62, %v1163_v44  ;;  %v1165_v35 = vpop.f32.mrb[25].mxu1 }
 0x188   : > { %v1279_v48 = vadd.f32 %v1278_v1, %v1165_v35  ;;  %v1167_v51 = vpop.f32.mrb[26].mxu1 }
 0x189   : > { %v1319_v47 = vadd.f32 %v1277_v45, %v613_v43  ;;  %v1281_v52 = vadd.f32 %v1280_v4, %v1167_v51  ;;  %v1169_v55 = vpop.f32.mrb[27].mxu1 }
 0x18a   : > { %v1320_v56 = vadd.f32 %v1279_v48, %v614_v46  ;;  %v1283_v49 = vadd.f32 %v1282_v6, %v1169_v55 }
 0x18b   : > { %1351 = vst [vmem:[#allocation2 + $0xc0] sm:$0xff] %v1319_v47  ;;  %v1321_v57 = vadd.f32 %v1281_v52, %v615_v50 }
 0x18c   : > { %1352 = vst [vmem:[#allocation2 + $0xc8] sm:$0xff] %v1320_v56  ;;  %v1322_v58 = vadd.f32 %v1283_v49, %v616_v54 }
 0x18d   : > { %1353 = vst [vmem:[#allocation2 + $0xd0] sm:$0xff] %v1321_v57 }
 0x18e   : > { %1354 = vst [vmem:[#allocation2 + $0xd8] sm:$0xff] %v1322_v58  ;;  %v1173_v59 = vpop.f32.mrb[28].mxu1 }
 0x18f   : > { %v1287_v60 = vadd.f32 %v1286_v18, %v1173_v59  ;;  %v1175_v62 = vpop.f32.mrb[29].mxu1 }
 0x190   : > { %v1289_v63 = vadd.f32 %v1288_v21, %v1175_v62  ;;  %v1177_v1 = vpop.f32.mrb[30].mxu1  ;;  %1362 = sbr.rel (%p2205_p11) target bundleno = 479 (0x1df), region = 74 }
 0x191   : > { %v1323_v3 = vadd.f32 %v1287_v60, %v617_v53  ;;  %v1291_v4 = vadd.f32 %v1290_v24, %v1177_v1  ;;  %v1179_v5 = vpop.f32.mrb[31].mxu1 }
 0x192   : > { %v1324_v8 = vadd.f32 %v1289_v63, %v618_v61  ;;  %v1293_v6 = vadd.f32 %v1292_v26, %v1179_v5 }
 0x193   : > { %1355 = vst [vmem:[#allocation2 + $0xe0] sm:$0xff] %v1323_v3  ;;  %v1325_v10 = vadd.f32 %v1291_v4, %v619_v0 }
 0x194   : > { %1356 = vst [vmem:[#allocation2 + $0xe8] sm:$0xff] %v1324_v8  ;;  %v1326_v11 = vadd.f32 %v1293_v6, %v620_v2 }
 0x195   : > { %1357 = vst [vmem:[#allocation2 + $0xf0] sm:$0xff] %v1325_v10 }
 0x196   : > { %1358 = vst [vmem:[#allocation2 + $0xf8] sm:$0xff] %v1326_v11 }
 0x197   : > { %v1397_v7 = vlaneseq  ;;  %v1395_v13 = vld [vmem:[%s3442_s2] sm:$0x3]  ;;  %v1364_v15 = vld [vmem:[#allocation2 + $0x8] sm:$0xff]  ;;  %v1365_v19 = vld [vmem:[#allocation2 + $0x10] sm:$0xff]  ;;  %v3450_v3 = vmov 0.0  }
 0x198   : > { %v1363_v14 = vld [vmem:[#allocation2] sm:$0xff]  ;;  %v1440_v18 = vld [vmem:[%s3443_s3 + $0x8] sm:$0xff]  ;;  %v1366_v20 = vld [vmem:[#allocation2 + $0x18] sm:$0xff] }
 0x199   : > { %v1398_v12 = vshrl.u32 %v1397_v7, 7  ;;  %v1439_v17 = vld [vmem:[%s3443_s3] sm:$0xff]  ;;  %v1368_v22 = vld [vmem:[#allocation2 + $0x28] sm:$0xff]  ;;  %v1369_v26 = vld [vmem:[#allocation2 + $0x30] sm:$0xff] }
 0x19a   : > { %v1367_v21 = vld [vmem:[#allocation2 + $0x20] sm:$0xff]  ;;  %v1370_v25 = vld [vmem:[#allocation2 + $0x38] sm:$0xff]  ;;  %v1504_v30 = vld [vmem:[%s3444_s4 + $0x8] sm:$0xff] }
 0x19b   : > { %v1399_v9 = vsub.s32 0, %v1398_v12  ;;  %v1403_v16 = vsub.s32 1, %v1398_v12  ;;  %v1503_v28 = vld [vmem:[%s3444_s4] sm:$0xff]  ;;  %v1441_v31 = vld [vmem:[%s3443_s3 + $0x10] sm:$0xff]  ;;  %v1442_v27 = vld [vmem:[%s3443_s3 + $0x18] sm:$0xff] }
 0x19c   : > { %v1443_v32 = vld [vmem:[%s3443_s3 + $0x20] sm:$0xff]  ;;  %v1444_v37 = vld [vmem:[%s3443_s3 + $0x28] sm:$0xff]  ;;  %v1445_v38 = vld [vmem:[%s3443_s3 + $0x30] sm:$0xff] }
 0x19d   : > { %v2771_v23 = vrot.slane %v1395_v13, %v1399_v9  ;;  %v2773_v24 = vrot.slane %v1395_v13, %v1403_v16  ;;  %v1446_v39 = vld [vmem:[%s3443_s3 + $0x38] sm:$0xff]  ;;  %v1505_v40 = vld [vmem:[%s3444_s4 + $0x10] sm:$0xff]  ;;  %v1507_v44 = vld [vmem:[%s3444_s4 + $0x20] sm:$0xff] }
 0x19e   : > { %v1506_v41 = vld [vmem:[%s3444_s4 + $0x18] sm:$0xff]  ;;  %v1508_v47 = vld [vmem:[%s3444_s4 + $0x28] sm:$0xff]  ;;  %v1509_v52 = vld [vmem:[%s3444_s4 + $0x30] sm:$0xff] }
 0x19f   : > { %v1407_v33 = vadd.f32 %v2771_v23, %v1363_v14  ;;  %v1408_v34 = vadd.f32 %v2773_v24, %v1364_v15  ;;  %v1409_v36 = vadd.f32 %v2771_v23, %v1365_v19  ;;  %v1410_v29 = vadd.f32 %v2773_v24, %v1366_v20  ;;  %v1510_v54 = vld [vmem:[%s3444_s4 + $0x38] sm:$0xff]  ;;  %v1371_v1 = vld [vmem:[#allocation2 + $0x40] sm:$0xff]  ;;  %v1372_v6 = vld [vmem:[#allocation2 + $0x48] sm:$0xff] }
 0x1a0   : > { %v1411_v42 = vadd.f32 %v2771_v23, %v1367_v21  ;;  %v1412_v43 = vadd.f32 %v2773_v24, %v1368_v22  ;;  %v1413_v45 = vadd.f32 %v2771_v23, %v1369_v26  ;;  %v1414_v46 = vadd.f32 %v2773_v24, %v1370_v25  ;;  %v1447_v10 = vld [vmem:[%s3443_s3 + $0x40] sm:$0xff]  ;;  %v1448_v12 = vld [vmem:[%s3443_s3 + $0x48] sm:$0xff]  ;;  %v1373_v13 = vld [vmem:[#allocation2 + $0x50] sm:$0xff] }
 0x1a1   : > { %v1471_v35 = vadd.f32 %v1439_v17, %v1407_v33  ;;  %v1472_v48 = vadd.f32 %v1440_v18, %v1408_v34  ;;  %v1473_v50 = vadd.f32 %v1441_v31, %v1409_v36  ;;  %v1474_v51 = vadd.f32 %v1442_v27, %v1410_v29  ;;  %v1374_v14 = vld [vmem:[#allocation2 + $0x58] sm:$0xff]  ;;  %v1375_v15 = vld [vmem:[#allocation2 + $0x60] sm:$0xff]  ;;  %v1376_v18 = vld [vmem:[#allocation2 + $0x68] sm:$0xff] }
 0x1a2   : > { %v1475_v55 = vadd.f32 %v1443_v32, %v1411_v42  ;;  %v1476_v56 = vadd.f32 %v1444_v37, %v1412_v43  ;;  %v1477_v49 = vadd.f32 %v1445_v38, %v1413_v45  ;;  %v1478_v57 = vadd.f32 %v1446_v39, %v1414_v46  ;;  %v1511_v17 = vld [vmem:[%s3444_s4 + $0x40] sm:$0xff]  ;;  %v1377_v19 = vld [vmem:[#allocation2 + $0x70] sm:$0xff]  ;;  %v1512_v25 = vld [vmem:[%s3444_s4 + $0x48] sm:$0xff] }
 0x1a3   : > { %v2825_v58 = vadd.f32 %v1503_v28, %v1471_v35  ;;  %v2827_v53 = vadd.f32 %v1504_v30, %v1472_v48  ;;  %v2829_v59 = vadd.f32 %v1505_v40, %v1473_v50  ;;  %v2831_v60 = vadd.f32 %v1506_v41, %v1474_v51  ;;  %v1449_v28 = vld [vmem:[%s3443_s3 + $0x50] sm:$0xff]  ;;  %v1450_v30 = vld [vmem:[%s3443_s3 + $0x58] sm:$0xff]  ;;  %v1451_v36 = vld [vmem:[%s3443_s3 + $0x60] sm:$0xff] }
 0x1a4   : > { %v2833_v61 = vadd.f32 %v1507_v44, %v1475_v55  ;;  %v2835_v62 = vadd.f32 %v1508_v47, %v1476_v56  ;;  %v2837_v63 = vadd.f32 %v1509_v52, %v1477_v49  ;;  %v2839_v0 = vadd.f32 %v1510_v54, %v1478_v57  ;;  %v1378_v31 = vld [vmem:[#allocation2 + $0x78] sm:$0xff]  ;;  %v1452_v29 = vld [vmem:[%s3443_s3 + $0x68] sm:$0xff]  ;;  %v1453_v37 = vld [vmem:[%s3443_s3 + $0x70] sm:$0xff] }
 0x1a5   : > { %vm1567_vm0 = vcmp.ge.f32.partialorder %v2825_v58, 1.0  ;;  %vm1568_vm1 = vcmp.ge.f32.partialorder %v2827_v53, 1.0  ;;  %vm1569_vm2 = vcmp.ge.f32.partialorder %v2829_v59, 1.0  ;;  %vm1570_vm3 = vcmp.ge.f32.partialorder %v2831_v60, 1.0  ;;  %v1513_v39 = vld [vmem:[%s3444_s4 + $0x50] sm:$0xff]  ;;  %v1514_v40 = vld [vmem:[%s3444_s4 + $0x58] sm:$0xff] }
 0x1a6   : > { %v2846_v4 = vsel %vm1567_vm0, 1.0, %v3450_v3  ;;  %v2849_v2 = vsel %vm1568_vm1, 1.0, %v3450_v3  ;;  %v2852_v5 = vsel %vm1569_vm2, 1.0, %v3450_v3  ;;  %v2855_v8 = vsel %vm1570_vm3, 1.0, %v3450_v3  ;;  %v1454_v44 = vld [vmem:[%s3443_s3 + $0x78] sm:$0xff]  ;;  %v1515_v48 = vld [vmem:[%s3444_s4 + $0x60] sm:$0xff] }
 0x1a7   : > { %v2262_v11 = vpack.c.bf16 %v2849_v2, %v2846_v4  ;;  %v2263_v7 = vpack.c.bf16 %v2855_v8, %v2852_v5  ;;  %vm1571_vm4 = vcmp.ge.f32.partialorder %v2833_v61, 1.0  ;;  %vm1572_vm5 = vcmp.ge.f32.partialorder %v2835_v62, 1.0  ;;  %v1516_v50 = vld [vmem:[%s3444_s4 + $0x68] sm:$0xff]  ;;  %v1517_v47 = vld [vmem:[%s3444_s4 + $0x70] sm:$0xff] }
 0x1a8   : > { %v2870_v9 = vsel %vm1571_vm4, 1.0, %v3450_v3  ;;  %v2873_v16 = vsel %vm1572_vm5, 1.0, %v3450_v3  ;;  %vm1573_vm6 = vcmp.ge.f32.partialorder %v2837_v63, 1.0  ;;  %vm1574_vm7 = vcmp.ge.f32.partialorder %v2839_v0, 1.0 }
 0x1a9   : > { %1759 = vst [vmem:[%s3445_s5] sm:$0xff] %v2262_v11  ;;  %1760 = vst [vmem:[%s3445_s5 + $0x8] sm:$0xff] %v2263_v7  ;;  %v2264_v20 = vpack.c.bf16 %v2873_v16, %v2870_v9  ;;  %v2889_v21 = vsel %vm1573_vm6, 1.0, %v3450_v3  ;;  %v2892_v22 = vsel %vm1574_vm7, 1.0, %v3450_v3  ;;  %v1415_v26 = vadd.f32 %v2771_v23, %v1371_v1  ;;  %v1518_v7 = vld [vmem:[%s3444_s4 + $0x78] sm:$0xff] }
 0x1aa   : > { %v2265_v27 = vpack.c.bf16 %v2892_v22, %v2889_v21  ;;  %v1416_v32 = vadd.f32 %v2773_v24, %v1372_v6  ;;  %v1417_v33 = vadd.f32 %v2771_v23, %v1373_v13  ;;  %v1418_v34 = vadd.f32 %v2773_v24, %v1374_v14  ;;  %v1379_v14 = vld [vmem:[#allocation2 + $0x80] sm:$0xff] }
 0x1ab   : > { %1761 = vst [vmem:[%s3445_s5 + $0x10] sm:$0xff] %v2264_v20  ;;  %v1479_v38 = vadd.f32 %v1447_v10, %v1415_v26  ;;  %v1419_v41 = vadd.f32 %v2771_v23, %v1375_v15  ;;  %v1420_v42 = vadd.f32 %v2773_v24, %v1376_v18  ;;  %v1421_v43 = vadd.f32 %v2771_v23, %v1377_v19  ;;  %v1380_v15 = vld [vmem:[#allocation2 + $0x88] sm:$0xff]  ;;  %v1455_v20 = vld [vmem:[%s3443_s3 + $0x80] sm:$0xff]  ;;  %v1381_v26 = vld [vmem:[#allocation2 + $0x90] sm:$0xff] }
 0x1ac   : > { %1762 = vst [vmem:[%s3445_s5 + $0x18] sm:$0xff] %v2265_v27  ;;  %v1480_v45 = vadd.f32 %v1448_v12, %v1416_v32  ;;  %v1481_v46 = vadd.f32 %v1449_v28, %v1417_v33  ;;  %v1482_v35 = vadd.f32 %v1450_v30, %v1418_v34  ;;  %v1422_v51 = vadd.f32 %v2773_v24, %v1378_v31  ;;  %v1456_v31 = vld [vmem:[%s3443_s3 + $0x88] sm:$0xff]  ;;  %v1382_v27 = vld [vmem:[#allocation2 + $0x98] sm:$0xff]  ;;  %v1383_v32 = vld [vmem:[#allocation2 + $0xa0] sm:$0xff] }
 0x1ad   : > { %v2946_v52 = vadd.f32 %v1511_v17, %v1479_v38  ;;  %v1483_v54 = vadd.f32 %v1451_v36, %v1419_v41  ;;  %v1484_v55 = vadd.f32 %v1452_v29, %v1420_v42  ;;  %v1485_v56 = vadd.f32 %v1453_v37, %v1421_v43  ;;  %v1519_v29 = vld [vmem:[%s3444_s4 + $0x80] sm:$0xff]  ;;  %v1457_v37 = vld [vmem:[%s3443_s3 + $0x90] sm:$0xff]  ;;  %v1384_v38 = vld [vmem:[#allocation2 + $0xa8] sm:$0xff] }
 0x1ae   : > { %v2948_v49 = vadd.f32 %v1512_v25, %v1480_v45  ;;  %v2950_v57 = vadd.f32 %v1513_v39, %v1481_v46  ;;  %v2952_v1 = vadd.f32 %v1514_v40, %v1482_v35  ;;  %v1486_v6 = vadd.f32 %v1454_v44, %v1422_v51  ;;  %v1520_v42 = vld [vmem:[%s3444_s4 + $0x88] sm:$0xff]  ;;  %v1458_v44 = vld [vmem:[%s3443_s3 + $0x98] sm:$0xff]  ;;  %v1459_v45 = vld [vmem:[%s3443_s3 + $0xa0] sm:$0xff] }
 0x1af   : > { %vm1575_vm8 = vcmp.ge.f32.partialorder %v2946_v52, 1.0  ;;  %v2955_v10 = vadd.f32 %v1515_v48, %v1483_v54  ;;  %v2957_v11 = vadd.f32 %v1516_v50, %v1484_v55  ;;  %v2962_v12 = vadd.f32 %v1517_v47, %v1485_v56  ;;  %v1521_v48 = vld [vmem:[%s3444_s4 + $0x90] sm:$0xff]  ;;  %v1460_v51 = vld [vmem:[%s3443_s3 + $0xa8] sm:$0xff] }
 0x1b0   : > { %vm1576_vm9 = vcmp.ge.f32.partialorder %v2948_v49, 1.0  ;;  %v2966_v13 = vsel %vm1575_vm8, 1.0, %v3450_v3  ;;  %vm1577_vm10 = vcmp.ge.f32.partialorder %v2950_v57, 1.0  ;;  %vm1578_vm11 = vcmp.ge.f32.partialorder %v2952_v1, 1.0  ;;  %v1385_v47 = vld [vmem:[#allocation2 + $0xb0] sm:$0xff] }
 0x1b1   : > { %v2971_v17 = vsel %vm1576_vm9, 1.0, %v3450_v3  ;;  %v2974_v18 = vsel %vm1577_vm10, 1.0, %v3450_v3  ;;  %v2977_v19 = vsel %vm1578_vm11, 1.0, %v3450_v3  ;;  %vm1579_vm12 = vcmp.ge.f32.partialorder %v2955_v10, 1.0 }
 0x1b2   : > { %v2266_v25 = vpack.c.bf16 %v2971_v17, %v2966_v13  ;;  %v2267_v28 = vpack.c.bf16 %v2977_v19, %v2974_v18  ;;  %vm1580_vm13 = vcmp.ge.f32.partialorder %v2957_v11, 1.0  ;;  %v2989_v30 = vsel %vm1579_vm12, 1.0, %v3450_v3 }
 0x1b3   : > { %v2995_v33 = vsel %vm1580_vm13, 1.0, %v3450_v3  ;;  %v2997_v34 = vadd.f32 %v1518_v7, %v1486_v6  ;;  %vm1581_vm14 = vcmp.ge.f32.partialorder %v2962_v12, 1.0  ;;  %v1423_v36 = vadd.f32 %v2771_v23, %v1379_v14  ;;  %v1522_v6 = vld [vmem:[%s3444_s4 + $0x98] sm:$0xff]  ;;  %v1523_v14 = vld [vmem:[%s3444_s4 + $0xa0] sm:$0xff] }
 0x1b4   : > { %1763 = vst [vmem:[%s3445_s5 + $0x20] sm:$0xff] %v2266_v25  ;;  %1764 = vst [vmem:[%s3445_s5 + $0x28] sm:$0xff] %v2267_v28  ;;  %v2268_v39 = vpack.c.bf16 %v2995_v33, %v2989_v30  ;;  %v3016_v40 = vsel %vm1581_vm14, 1.0, %v3450_v3  ;;  %v1424_v41 = vadd.f32 %v2773_v24, %v1380_v15  ;;  %v1425_v43 = vadd.f32 %v2771_v23, %v1381_v26  ;;  %v1386_v15 = vld [vmem:[#allocation2 + $0xb8] sm:$0xff] }
 0x1b5   : > { %vm1582_vm15 = vcmp.ge.f32.partialorder %v2997_v34, 1.0  ;;  %v1487_v46 = vadd.f32 %v1455_v20, %v1423_v36  ;;  %v1426_v35 = vadd.f32 %v2773_v24, %v1382_v27  ;;  %v1427_v50 = vadd.f32 %v2771_v23, %v1383_v32 }
 0x1b6   : > { %1765 = vst [vmem:[%s3445_s5 + $0x30] sm:$0xff] %v2268_v39  ;;  %v3042_v54 = vsel %vm1582_vm15, 1.0, %v3450_v3  ;;  %v1488_v55 = vadd.f32 %v1456_v31, %v1424_v41  ;;  %v1489_v56 = vadd.f32 %v1457_v37, %v1425_v43  ;;  %v1428_v7 = vadd.f32 %v2773_v24, %v1384_v38  ;;  %v1524_v31 = vld [vmem:[%s3444_s4 + $0xa8] sm:$0xff]  ;;  %v1461_v41 = vld [vmem:[%s3443_s3 + $0xb0] sm:$0xff] }
 0x1b7   : > { %v2269_v20 = vpack.c.bf16 %v3042_v54, %v3016_v40  ;;  %v3053_v26 = vadd.f32 %v1519_v29, %v1487_v46  ;;  %v1490_v25 = vadd.f32 %v1458_v44, %v1426_v35  ;;  %v1491_v28 = vadd.f32 %v1459_v45, %v1427_v50  ;;  %v1525_v45 = vld [vmem:[%s3444_s4 + $0xb0] sm:$0xff]  ;;  %v1526_v46 = vld [vmem:[%s3444_s4 + $0xb8] sm:$0xff]  ;;  %v1387_v35 = vld [vmem:[#allocation2 + $0xc0] sm:$0xff] }
 0x1b8   : > { %v3058_v27 = vadd.f32 %v1520_v42, %v1488_v55  ;;  %v3060_v32 = vadd.f32 %v1521_v48, %v1489_v56  ;;  %v1492_v36 = vadd.f32 %v1460_v51, %v1428_v7  ;;  %v1429_v37 = vadd.f32 %v2771_v23, %v1385_v47  ;;  %v1462_v42 = vld [vmem:[%s3443_s3 + $0xb8] sm:$0xff]  ;;  %v1388_v51 = vld [vmem:[#allocation2 + $0xc8] sm:$0xff]  ;;  %v1389_v47 = vld [vmem:[#allocation2 + $0xd0] sm:$0xff] }
 0x1b9   : > { %1766 = vst [vmem:[%s3445_s5 + $0x38] sm:$0xff] %v2269_v20  ;;  %vm1583_vm0 = vcmp.ge.f32.partialorder %v3053_v26, 1.0  ;;  %v3067_v29 = vadd.f32 %v1522_v6, %v1490_v25  ;;  %v3069_v38 = vadd.f32 %v1523_v14, %v1491_v28  ;;  %v1430_v39 = vadd.f32 %v2773_v24, %v1386_v15  ;;  %v1463_v7 = vld [vmem:[%s3443_s3 + $0xc0] sm:$0xff]  ;;  %v1390_v14 = vld [vmem:[#allocation2 + $0xd8] sm:$0xff] }
 0x1ba   : > { %3460 = vst [vmem:[#allocation4_spill] sm:$0xff] %v3060_v32  ;;  %vm1584_vm1 = vcmp.ge.f32.partialorder %v3058_v27, 1.0  ;;  %v3080_v43 = vsel %vm1583_vm0, 1.0, %v3450_v3  ;;  %vm1585_vm2 = vcmp.ge.f32.partialorder %v3060_v32, 1.0  ;;  %v3083_v44 = vadd.f32 %v1524_v31, %v1492_v36  ;;  %v1391_v15 = vld [vmem:[#allocation2 + $0xe0] sm:$0xff]  ;;  %v1464_v36 = vld [vmem:[%s3443_s3 + $0xc8] sm:$0xff] }
 0x1bb   : > { %3461 = vst [vmem:[#allocation5_spill] sm:$0xff] %v3067_v29  ;;  %3462 = vst [vmem:[#allocation6_spill] sm:$0xff] %v3069_v38  ;;  %v3092_v48 = vsel %vm1584_vm1, 1.0, %v3450_v3  ;;  %vm1586_vm3 = vcmp.ge.f32.partialorder %v3067_v29, 1.0  ;;  %v3096_v50 = vsel %vm1585_vm2, 1.0, %v3450_v3  ;;  %vm1587_vm4 = vcmp.ge.f32.partialorder %v3069_v38, 1.0 }
 0x1bc   : > { %3463 = vst [vmem:[#allocation7_spill] sm:$0xff] %v3083_v44  ;;  %v2270_v55 = vpack.c.bf16 %v3092_v48, %v3080_v43  ;;  %v3102_v56 = vsel %vm1586_vm3, 1.0, %v3450_v3  ;;  %vm1588_vm5 = vcmp.ge.f32.partialorder %v3083_v44, 1.0  ;;  %v3106_v6 = vsel %vm1587_vm4, 1.0, %v3450_v3  ;;  %v1465_v44 = vld [vmem:[%s3443_s3 + $0xd0] sm:$0xff]  ;;  %v1392_v38 = vld [vmem:[#allocation2 + $0xe8] sm:$0xff] }
 0x1bd   : > { %3464 = vst [vmem:[#allocation8_spill] sm:$0xff] %v3106_v6  ;;  %v2271_v20 = vpack.c.bf16 %v3102_v56, %v3096_v50  ;;  %v3114_v25 = vsel %vm1588_vm5, 1.0, %v3450_v3  ;;  %v1493_v28 = vadd.f32 %v1461_v41, %v1429_v37  ;;  %v1494_v31 = vadd.f32 %v1462_v42, %v1430_v39  ;;  %v1466_v41 = vld [vmem:[%s3443_s3 + $0xd8] sm:$0xff]  ;;  %v1467_v42 = vld [vmem:[%s3443_s3 + $0xe0] sm:$0xff] }
 0x1be   : > { %3465 = vst [vmem:[#allocation9_spill] sm:$0xff] %v3114_v25  ;;  %1767 = vst [vmem:[%s3445_s5 + $0x40] sm:$0xff] %v2270_v55  ;;  %v2272_v29 = vpack.c.bf16 %v3114_v25, %v3106_v6  ;;  %v1431_v3 = vadd.f32 %v2771_v23, %v1387_v35  ;;  %v1432_v37 = vadd.f32 %v2773_v24, %v1388_v51  ;;  %v1527_v35 = vld [vmem:[%s3444_s4 + $0xc0] sm:$0xff]  ;;  %v1528_v51 = vld [vmem:[%s3444_s4 + $0xc8] sm:$0xff] }
 0x1bf   : > { %v1433_v39 = vadd.f32 %v2771_v23, %v1389_v47  ;;  %1768 = vst [vmem:[%s3445_s5 + $0x48] sm:$0xff] %v2271_v20  ;;  %v3139_v55 = vadd.f32 %v1525_v45, %v1493_v28  ;;  %v3141_v32 = vadd.f32 %v1526_v46, %v1494_v31  ;;  %v1434_v47 = vadd.f32 %v2773_v24, %v1390_v14  ;;  %v1529_v28 = vld [vmem:[%s3444_s4 + $0xd0] sm:$0xff]  ;;  %v1530_v31 = vld [vmem:[%s3444_s4 + $0xd8] sm:$0xff]  ;;  %v1468_v14 = vld [vmem:[%s3443_s3 + $0xe8] sm:$0xff] }
 0x1c0   : > { %v1435_v25 = vadd.f32 %v2771_v23, %v1391_v15  ;;  %1769 = vst [vmem:[%s3445_s5 + $0x50] sm:$0xff] %v2272_v29  ;;  %v1495_v45 = vadd.f32 %v1463_v7, %v1431_v3  ;;  %v1496_v20 = vadd.f32 %v1464_v36, %v1432_v37  ;;  %v1436_v6 = vadd.f32 %v2773_v24, %v1392_v38  ;;  %v1393_v7 = vld [vmem:[#allocation2 + $0xf0] sm:$0xff] }
 0x1c1   : > { %3466 = vst [vmem:[#allocation10_spill] sm:$0xff] %v3141_v32  ;;  %v1497_v46 = vadd.f32 %v1465_v44, %v1433_v39  ;;  %vm1589_vm6 = vcmp.ge.f32.partialorder %v3139_v55, 1.0  ;;  %vm1590_vm7 = vcmp.ge.f32.partialorder %v3141_v32, 1.0  ;;  %v1498_v3 = vadd.f32 %v1466_v41, %v1434_v47  ;;  %v1531_v44 = vld [vmem:[%s3444_s4 + $0xe0] sm:$0xff]  ;;  %v1532_v47 = vld [vmem:[%s3444_s4 + $0xe8] sm:$0xff] }
 0x1c2   : > { %v1499_v29 = vadd.f32 %v1467_v42, %v1435_v25  ;;  %v3467_v15 = vmov 0.0   ;;  %v3175_v37 = vadd.f32 %v1527_v35, %v1495_v45  ;;  %v3177_v39 = vadd.f32 %v1528_v51, %v1496_v20  ;;  %v1394_v51 = vld [vmem:[#allocation2 + $0xf8] sm:$0xff]  ;;  %v1469_v20 = vld [vmem:[%s3443_s3 + $0xf0] sm:$0xff] }
 0x1c3   : > { %v3170_v36 = vsel %vm1589_vm6, 1.0, %v3467_v15  ;;  %v3173_v38 = vsel %vm1590_vm7, 1.0, %v3467_v15  ;;  %v3181_v41 = vadd.f32 %v1529_v28, %v1497_v46  ;;  %v3183_v25 = vadd.f32 %v1530_v31, %v1498_v3  ;;  %v1533_v3 = vld [vmem:[%s3444_s4 + $0xf0] sm:$0xff] }
 0x1c4   : > { %v2273_v32 = vpack.c.bf16 %v3173_v38, %v3170_v36  ;;  %v1500_v42 = vadd.f32 %v1468_v14, %v1436_v6  ;;  %vm1591_vm8 = vcmp.ge.f32.partialorder %v3175_v37, 1.0  ;;  %vm1592_vm9 = vcmp.ge.f32.partialorder %v3177_v39, 1.0  ;;  %v1470_v14 = vld [vmem:[%s3443_s3 + $0xf8] sm:$0xff] }
 0x1c5   : > { %3468 = vst [vmem:[#allocation11_spill] sm:$0xff] %v3181_v41  ;;  %3469 = vst [vmem:[#allocation12_spill] sm:$0xff] %v3183_v25  ;;  %v3190_v35 = vadd.f32 %v1531_v44, %v1499_v29  ;;  %v1437_v45 = vadd.f32 %v2771_v23, %v1393_v7  ;;  %v3200_v6 = vsel %vm1591_vm8, 1.0, %v3467_v15  ;;  %v3203_v46 = vsel %vm1592_vm9, 1.0, %v3467_v15 }
 0x1c6   : > { %1770 = vst [vmem:[%s3445_s5 + $0x58] sm:$0xff] %v2273_v32  ;;  %vm1593_vm10 = vcmp.ge.f32.partialorder %v3181_v41, 1.0  ;;  %vm1594_vm11 = vcmp.ge.f32.partialorder %v3183_v25, 1.0  ;;  %v2274_v23 = vpack.c.bf16 %v3203_v46, %v3200_v6  ;;  %v3215_v32 = vadd.f32 %v1532_v47, %v1500_v42  ;;  %v1534_v47 = vld [vmem:[%s3444_s4 + $0xf8] sm:$0xff] }
 0x1c7   : > { %3470 = vst [vmem:[#allocation13_spill] sm:$0xff] %v3190_v35  ;;  %v3210_v28 = vsel %vm1593_vm10, 1.0, %v3467_v15  ;;  %v3213_v31 = vsel %vm1594_vm11, 1.0, %v3467_v15  ;;  %vm1595_vm12 = vcmp.ge.f32.partialorder %v3190_v35, 1.0  ;;  %v1438_v44 = vadd.f32 %v2773_v24, %v1394_v51 }
 0x1c8   : > { %3471 = vst [vmem:[#allocation14_spill] sm:$0xff] %v3215_v32  ;;  %v2275_v29 = vpack.c.bf16 %v3213_v31, %v3210_v28  ;;  %v1501_v7 = vadd.f32 %v1469_v20, %v1437_v45  ;;  %1771 = vst [vmem:[%s3445_s5 + $0x60] sm:$0xff] %v2274_v23  ;;  %vm1596_vm13 = vcmp.ge.f32.partialorder %v3215_v32, 1.0  ;;  %v3232_v42 = vsel %vm1595_vm12, 1.0, %v3467_v15 }
 0x1c9   : > { %v1775_v25 = vsub.f32 1.0, %v2846_v4  ;;  %v1776_v35 = vsub.f32 1.0, %v2849_v2  ;;  %v3243_v24 = vsel %vm1596_vm13, 1.0, %v3467_v15  ;;  %v1502_v51 = vadd.f32 %v1470_v14, %v1438_v44 }
 0x1ca   : > { %1772 = vst [vmem:[%s3445_s5 + $0x68] sm:$0xff] %v2275_v29  ;;  %v3245_v45 = vadd.f32 %v1533_v3, %v1501_v7  ;;  %v1777_v20 = vsub.f32 1.0, %v2852_v5  ;;  %v2276_v23 = vpack.c.bf16 %v3243_v24, %v3232_v42  ;;  %v1778_v2 = vsub.f32 1.0, %v2855_v8  ;;  %v3475_v7 = vld [vmem:[#allocation5_spill] sm:$0xff] }
 0x1cb   : > { %v1807_v32 = vmul.f32 %v1775_v25, %v2825_v58  ;;  %v1808_v4 = vmul.f32 %v1776_v35, %v2827_v53  ;;  %v3253_v41 = vadd.f32 %v1534_v47, %v1502_v51  ;;  %v1779_v14 = vsub.f32 1.0, %v2870_v9  ;;  %v3476_v51 = vld [vmem:[#allocation6_spill] sm:$0xff] }
 0x1cc   : > { %vm1597_vm14 = vcmp.ge.f32.partialorder %v3245_v45, 1.0  ;;  %v1809_v29 = vmul.f32 %v1777_v20, %v2829_v59  ;;  %1773 = vst [vmem:[%s3445_s5 + $0x70] sm:$0xff] %v2276_v23  ;;  %v1810_v58 = vmul.f32 %v1778_v2, %v2831_v60  ;;  %v1780_v53 = vsub.f32 1.0, %v2873_v16  ;;  %v3477_v23 = vld [vmem:[#allocation7_spill] sm:$0xff] }
 0x1cd   : > { %v3262_v5 = vsel %vm1597_vm14, 1.0, %v3467_v15  ;;  %1839 = vst [vmem:[%s3446_s6] sm:$0xff] %v1807_v32  ;;  %1840 = vst [vmem:[%s3446_s6 + $0x8] sm:$0xff] %v1808_v4  ;;  %v1781_v59 = vsub.f32 1.0, %v2889_v21  ;;  %vm1598_vm15 = vcmp.ge.f32.partialorder %v3253_v41, 1.0  ;;  %v1811_v8 = vmul.f32 %v1779_v14, %v2833_v61 }
 0x1ce   : > { %1841 = vst [vmem:[%s3446_s6 + $0x10] sm:$0xff] %v1809_v29  ;;  %v1782_v9 = vsub.f32 1.0, %v2892_v22  ;;  %v1783_v25 = vsub.f32 1.0, %v2966_v13  ;;  %v3281_v35 = vsel %vm1598_vm15, 1.0, %v3467_v15  ;;  %1842 = vst [vmem:[%s3446_s6 + $0x18] sm:$0xff] %v1810_v58  ;;  %v1812_v60 = vmul.f32 %v1780_v53, %v2835_v62  ;;  %v3479_v58 = vld [vmem:[#allocation11_spill] sm:$0xff] }
 0x1cf   : > { %v1813_v16 = vmul.f32 %v1781_v59, %v2837_v63  ;;  %v1784_v21 = vsub.f32 1.0, %v2971_v17  ;;  %v2277_v61 = vpack.c.bf16 %v3281_v35, %v3262_v5  ;;  %1843 = vst [vmem:[%s3446_s6 + $0x20] sm:$0xff] %v1811_v8  ;;  %v1785_v15 = vsub.f32 1.0, %v2974_v18  ;;  %v3481_v59 = vld [vmem:[#allocation13_spill] sm:$0xff] }
 0x1d0   : > { %v1814_v22 = vmul.f32 %v1782_v9, %v2839_v0  ;;  %v1815_v13 = vmul.f32 %v1783_v25, %v2946_v52  ;;  %1844 = vst [vmem:[%s3446_s6 + $0x28] sm:$0xff] %v1812_v60  ;;  %v1786_v63 = vsub.f32 1.0, %v2977_v19  ;;  %v1787_v17 = vsub.f32 1.0, %v2989_v30  ;;  %v3482_v9 = vld [vmem:[#allocation14_spill] sm:$0xff] }
 0x1d1   : > { %1845 = vst [vmem:[%s3446_s6 + $0x30] sm:$0xff] %v1813_v16  ;;  %v1816_v62 = vmul.f32 %v1784_v21, %v2948_v49  ;;  %v1788_v0 = vsub.f32 1.0, %v2995_v33  ;;  %1774 = vst [vmem:[%s3445_s5 + $0x78] sm:$0xff] %v2277_v61  ;;  %v1817_v52 = vmul.f32 %v1785_v15, %v2950_v57  ;;  %v1789_v49 = vsub.f32 1.0, %v3016_v40 }
 0x1d2   : > { %1846 = vst [vmem:[%s3446_s6 + $0x38] sm:$0xff] %v1814_v22  ;;  %1847 = vst [vmem:[%s3446_s6 + $0x40] sm:$0xff] %v1815_v13  ;;  %v1790_v18 = vsub.f32 1.0, %v3042_v54  ;;  %v1791_v19 = vsub.f32 1.0, %v3080_v43  ;;  %v1818_v30 = vmul.f32 %v1786_v63, %v2952_v1  ;;  %v1819_v33 = vmul.f32 %v1787_v17, %v2955_v10 }
 0x1d3   : > { %1848 = vst [vmem:[%s3446_s6 + $0x48] sm:$0xff] %v1816_v62  ;;  %v1820_v32 = vmul.f32 %v1788_v0, %v2957_v11  ;;  %v1792_v3 = vsub.f32 1.0, %v3092_v48  ;;  %1849 = vst [vmem:[%s3446_s6 + $0x50] sm:$0xff] %v1817_v52  ;;  %v1821_v57 = vmul.f32 %v1789_v49, %v2962_v12  ;;  %v1793_v43 = vsub.f32 1.0, %v3096_v50  ;;  %v3472_v11 = vld [vmem:[#allocation8_spill] sm:$0xff] }
 0x1d4   : > { %v1822_v40 = vmul.f32 %v1790_v18, %v2997_v34  ;;  %v1823_v54 = vmul.f32 %v1791_v19, %v3053_v26  ;;  %1850 = vst [vmem:[%s3446_s6 + $0x58] sm:$0xff] %v1818_v30  ;;  %1851 = vst [vmem:[%s3446_s6 + $0x60] sm:$0xff] %v1819_v33  ;;  %v1794_v10 = vsub.f32 1.0, %v3102_v56  ;;  %v1795_v12 = vsub.f32 1.0, %v3472_v11  ;;  %v3473_v34 = vld [vmem:[#allocation9_spill] sm:$0xff]  ;;  %v3474_v48 = vld [vmem:[#allocation4_spill] sm:$0xff] }
 0x1d5   : > { %1852 = vst [vmem:[%s3446_s6 + $0x68] sm:$0xff] %v1820_v32  ;;  %v1824_v1 = vmul.f32 %v1792_v3, %v3058_v27  ;;  %v1796_v26 = vsub.f32 1.0, %v3473_v34  ;;  %1853 = vst [vmem:[%s3446_s6 + $0x70] sm:$0xff] %v1821_v57  ;;  %v1825_v27 = vmul.f32 %v1793_v43, %v3474_v48  ;;  %v1797_v50 = vsub.f32 1.0, %v3170_v36 }
 0x1d6   : > { %1854 = vst [vmem:[%s3446_s6 + $0x78] sm:$0xff] %v1822_v40  ;;  %1855 = vst [vmem:[%s3446_s6 + $0x80] sm:$0xff] %v1823_v54  ;;  %v1798_v56 = vsub.f32 1.0, %v3173_v38  ;;  %v1799_v44 = vsub.f32 1.0, %v3200_v6  ;;  %v1826_v47 = vmul.f32 %v1794_v10, %v3475_v7  ;;  %v1827_v20 = vmul.f32 %v1795_v12, %v3476_v51  ;;  %v3478_v38 = vld [vmem:[#allocation10_spill] sm:$0xff] }
 0x1d7   : > { %1856 = vst [vmem:[%s3446_s6 + $0x88] sm:$0xff] %v1824_v1  ;;  %v1828_v4 = vmul.f32 %v1796_v26, %v3477_v23  ;;  %v1800_v2 = vsub.f32 1.0, %v3203_v46  ;;  %1857 = vst [vmem:[%s3446_s6 + $0x90] sm:$0xff] %v1825_v27  ;;  %v1829_v36 = vmul.f32 %v1797_v50, %v3139_v55  ;;  %v1801_v14 = vsub.f32 1.0, %v3210_v28 }
 0x1d8   : > { %v1830_v6 = vmul.f32 %v1798_v56, %v3478_v38  ;;  %v1831_v29 = vmul.f32 %v1799_v44, %v3175_v37  ;;  %1858 = vst [vmem:[%s3446_s6 + $0x98] sm:$0xff] %v1826_v47  ;;  %1859 = vst [vmem:[%s3446_s6 + $0xa0] sm:$0xff] %v1827_v20  ;;  %v1802_v46 = vsub.f32 1.0, %v3213_v31  ;;  %v1803_v37 = vsub.f32 1.0, %v3232_v42 }
 0x1d9   : > { %1860 = vst [vmem:[%s3446_s6 + $0xa8] sm:$0xff] %v1828_v4  ;;  %v1832_v55 = vmul.f32 %v1800_v2, %v3177_v39  ;;  %v1804_v28 = vsub.f32 1.0, %v3243_v24  ;;  %1861 = vst [vmem:[%s3446_s6 + $0xb0] sm:$0xff] %v1829_v36  ;;  %v1833_v39 = vmul.f32 %v1801_v14, %v3479_v58  ;;  %v1805_v31 = vsub.f32 1.0, %v3262_v5  ;;  %v3480_v24 = vld [vmem:[#allocation12_spill] sm:$0xff] }
 0x1da   : > { %1862 = vst [vmem:[%s3446_s6 + $0xb8] sm:$0xff] %v1830_v6  ;;  %1863 = vst [vmem:[%s3446_s6 + $0xc0] sm:$0xff] %v1831_v29  ;;  %v1806_v42 = vsub.f32 1.0, %v3281_v35  ;;  %v1834_v53 = vmul.f32 %v1802_v46, %v3480_v24  ;;  %v1835_v8 = vmul.f32 %v1803_v37, %v3481_v59 }
 0x1db   : > { %1864 = vst [vmem:[%s3446_s6 + $0xc8] sm:$0xff] %v1832_v55  ;;  %v1836_v25 = vmul.f32 %v1804_v28, %v3482_v9  ;;  %1865 = vst [vmem:[%s3446_s6 + $0xd0] sm:$0xff] %v1833_v39  ;;  %v1837_v60 = vmul.f32 %v1805_v31, %v3245_v45 }
 0x1dc   : > { %v1838_v5 = vmul.f32 %v1806_v42, %v3253_v41  ;;  %1866 = vst [vmem:[%s3446_s6 + $0xd8] sm:$0xff] %v1834_v53  ;;  %1867 = vst [vmem:[%s3446_s6 + $0xe0] sm:$0xff] %v1835_v8 }
 0x1dd   : > { %1868 = vst [vmem:[%s3446_s6 + $0xe8] sm:$0xff] %v1836_v25  ;;  %1869 = vst [vmem:[%s3446_s6 + $0xf0] sm:$0xff] %v1837_v60 }
 0x1de   : > { %1870 = vst [vmem:[%s3446_s6 + $0xf8] sm:$0xff] %v1838_v5 }
 0x1df PF: > { %s17_s25 = sadd.s32 1, %s2497_s25   ;;  %s3483_s21 = smov %s2485_s22 }
 0x1e0   : > { %p14_p12 = scmp.ge.s32.totalorder %s17_s25, 8   ;;  %s3484_s22 = smov %s2572_s29 }
 0x1e1   : > { %s3485_s23 = smov %s2493_s24  ;;  %s3486_s24 = smov %s3488_s26 }
 0x1e2   :  { %16 = sbr.rel (!%p14_p12) target bundleno = 3 (0x3), region = 139 }

// kernel: closed_call.88
= control target key start
LH: loop header
LB: loop body
LE: loop exit
PB: predicated region body
PF: predicated region fallthrough
CT: control target
= control target key end

     0   :  { %s2220_s18 = smov 0   ;;  %s2222_s19 = smov 0   ;;  %s2640_s0 = inlined_call_operand.vmem [shape: bf16[32,2304], index: 0, kind: input, shape index: {}]   ;;  %s2641_s1 = inlined_call_operand.vmem [shape: bf16[2304,512], index: 1, kind: input, shape index: {}]   ;;  %s2642_s2 = inlined_call_operand.vmem [shape: f32[1,512], index: 2, kind: input, shape index: {}]   ;;  %s2643_s3 = inlined_call_operand.vmem [shape: f32[32,512], index: 3, kind: input, shape index: {}]   ;;  %s2644_s4 = inlined_call_operand.vmem [shape: bf16[32,512], index: 4, kind: output, shape index: {0}]   ;;  %s2645_s5 = inlined_call_operand.vmem [shape: f32[32,512], index: 5, kind: output, shape index: {1}]  }
   0x1   :  { %s2224_s20 = smov 0   ;;  %s2226_s21 = smov 0  }
   0x2   :  { %s2228_s22 = smov 0  }
   0x3 LB: > { %s28_s23 = sadd.s32 1, %s2181_s21  ;;  %p51_p1 = scmp.ne.s32.totalorder %s2173_s19, %s2169_s18  ;;  %s2185_s22 = sphi %s2228_s22, %s16_s22   ;;  %s2181_s21 = sphi %s2226_s21, %s2649_s21   ;;  %s2177_s20 = sphi %s2224_s20, %s2648_s20   ;;  %s2173_s19 = sphi %s2222_s19, %s2647_s19   ;;  %s2169_s18 = sphi %s2220_s18, %s2646_s18  }
   0x4   : > { %p29_p0 = scmp.ge.s32.totalorder %s28_s23, 6  ;;  %p52_p2 = scmp.eq.s32.totalorder %s2185_s22, 0 }
   0x5   : > { %s44_s25 = sadd.s32 1, %s2173_s19  ;;  %p1777_p5 = scmp.ge.s32.totalorder %s2185_s22, 6 }
   0x6   : > { %s2651_s23 = smov (%p29_p0, %s28_s23), 0  ;;  %p53_p3 = por %p52_p2, %p51_p1 }
   0x7   : > { %s40_s24 = ssub.s32 %s2181_s21, %s2651_s23  ;;  %238 = sbr.rel (%p1777_p5) target bundleno = 23 (0x17), region = 24 }
   0x8   : > { %p42_p4 = scmp.eq.s32.totalorder %s40_s24, 0 }
   0xa   : > { %s2255_s26 = scalar_select %p42_p4, %s2173_s19, %s44_s25  }
   0xe   : > { %241 = sbr.rel (!%p53_p3) target bundleno = 23 (0x17), region = 28  ;;  %s243_s27 = sand.u32 (%p53_p3), 1, %s2173_s19  }
   0xf   : > { %s1924_s28 = smul.u32 (%p53_p3), 12, %s2181_s21 }
  0x10   : > { %s1950_s29 = smul.u32 (%p53_p3), 48, %s243_s27 }
  0x11   : > { %s251_s7 = scalar_lea.vmem (%p53_p3), %s2640_s0, %s1924_s28 }
  0x12   : > { %v266_v0 = vld [vmem:[%s251_s7] sm:$0xff] (%p53_p3)  ;;  %v268_v1 = vld [vmem:[%s251_s7 + $0x48] sm:$0xff] (%p53_p3)  ;;  %v270_v2 = vld [vmem:[%s251_s7 + $0x90] sm:$0xff] (%p53_p3)  ;;  %s245_s8 = scalar_lea.vmem (%p53_p3), [#allocation3], %s1950_s29 }
  0x13   : > { %267 = vst [vmem:[%s245_s8] sm:$0xff] (%p53_p3), %v266_v0  ;;  %269 = vst [vmem:[%s245_s8 + $0xc] sm:$0xff] (%p53_p3), %v268_v1  ;;  %v272_v3 = vld [vmem:[%s251_s7 + $0xd8] sm:$0xff] (%p53_p3)  ;;  %v1779_v4 = vld [vmem:[%s251_s7 + $0x8] sm:$0xf] (%p53_p3) }
  0x14   : > { %271 = vst [vmem:[%s245_s8 + $0x18] sm:$0xff] (%p53_p3), %v270_v2  ;;  %v1781_v5 = vld [vmem:[%s251_s7 + $0x50] sm:$0xf] (%p53_p3)  ;;  %273 = vst [vmem:[%s245_s8 + $0x24] sm:$0xff] (%p53_p3), %v272_v3  ;;  %v1783_v6 = vld [vmem:[%s251_s7 + $0x98] sm:$0xf] (%p53_p3) }
  0x15   : > { %1780 = vst [vmem:[%s245_s8 + $0x8] sm:$0xf] %v1779_v4  ;;  %1782 = vst [vmem:[%s245_s8 + $0x14] sm:$0xf] %v1781_v5  ;;  %v1785_v7 = vld [vmem:[%s251_s7 + $0xe0] sm:$0xf] }
  0x16   : > { %1784 = vst [vmem:[%s245_s8 + $0x20] sm:$0xf] %v1783_v6  ;;  %1786 = vst [vmem:[%s245_s8 + $0x2c] sm:$0xf] %v1785_v7 }
  0x17 PF: > { %p1787_p6 = scmp.ge.s32.totalorder %s2185_s22, 1  ;;  %p308_p7 = scmp.lt.s32.totalorder %s2185_s22, 7 }
  0x19   : > { %p309_p8 = pnand %p1787_p6, %p308_p7 }
  0x1a   : > { %s315_s9 = sand.u32 (!%p309_p8), 1, %s2169_s18   ;;  %s383_s10 = smul.u32 (!%p309_p8), 48, %s2177_s20 }
  0x1b   : > { %312 = sbr.rel (%p309_p8) target bundleno = 395 (0x18b), region = 58  ;;  %p1790_p10 = scmp.ne.s32.totalorder (!%p309_p8), %s2177_s20, 0 }
  0x1c   : > { %s1951_s11 = smul.u32 (!%p309_p8), 48, %s315_s9  ;;  %p385_p9 = scmp.lt.s32.totalorder (!%p309_p8), %s383_s10, 287 }
  0x1e   : > { %s2272_s16 = scalar_lea.vmem (!%p309_p8), [#allocation3], %s1951_s11 }
  0x22   : > { %s2653_s10 = smov (!%p385_p9, %s383_s10), 287  ;;  %440 = sbr.rel (%p1790_p10) target bundleno = 44 (0x2c), region = 66 }
  0x23   : > { %s1925_s12 = sshll.u32 %s2653_s10, 4  ;;  %v2187_v8 = vmov (!%p1790_p10), 0.0  }
  0x24   : > { %s2270_s15 = scalar_lea.vmem %s2641_s1, %s1925_s12  ;;  %441 = vst [vmem:[#allocation2] sm:$0xff] (!%p1790_p10), %v2187_v8  ;;  %442 = vst [vmem:[#allocation2 + $0x8] sm:$0xff] (!%p1790_p10), %v2187_v8 }
  0x25   : > { %443 = vst [vmem:[#allocation2 + $0x10] sm:$0xff] (!%p1790_p10), %v2187_v8  ;;  %444 = vst [vmem:[#allocation2 + $0x18] sm:$0xff] (!%p1790_p10), %v2187_v8 }
  0x26   : > { %445 = vst [vmem:[#allocation2 + $0x20] sm:$0xff] (!%p1790_p10), %v2187_v8  ;;  %446 = vst [vmem:[#allocation2 + $0x28] sm:$0xff] (!%p1790_p10), %v2187_v8 }
  0x27   : > { %447 = vst [vmem:[#allocation2 + $0x30] sm:$0xff] (!%p1790_p10), %v2187_v8  ;;  %448 = vst [vmem:[#allocation2 + $0x38] sm:$0xff] (!%p1790_p10), %v2187_v8 }
  0x28   : > { %449 = vst [vmem:[#allocation2 + $0x40] sm:$0xff] (!%p1790_p10), %v2187_v8  ;;  %450 = vst [vmem:[#allocation2 + $0x48] sm:$0xff] (!%p1790_p10), %v2187_v8 }
  0x29   : > { %451 = vst [vmem:[#allocation2 + $0x50] sm:$0xff] %v2187_v8  ;;  %452 = vst [vmem:[#allocation2 + $0x58] sm:$0xff] %v2187_v8 }
  0x2a   : > { %453 = vst [vmem:[#allocation2 + $0x60] sm:$0xff] %v2187_v8  ;;  %454 = vst [vmem:[#allocation2 + $0x68] sm:$0xff] %v2187_v8 }
  0x2b   : > { %455 = vst [vmem:[#allocation2 + $0x70] sm:$0xff] %v2187_v8  ;;  %456 = vst [vmem:[#allocation2 + $0x78] sm:$0xff] %v2187_v8 }
  0x2c PF: > { %v1995_v9 = vld [vmem:[%s2270_s15 + $0x4] ss:$16 sps:$4 sm:$0xff]   ;;  %v1997_v10 = vld [vmem:[%s2270_s15 + $0xc] ss:$16 sps:$4 sm:$0xff]   ;;  %v1999_v11 = vld [vmem:[%s2270_s15] ss:$16 sps:$4 sm:$0xff]  }
  0x2d   : > { %1089 = vmatprep.subr.bf16.mxu0 %v1995_v9  ;;  %v2000_v12 = vld [vmem:[%s2270_s15 + $0x8] ss:$16 sps:$4 sm:$0xff]   ;;  %1195 = vmatprep.subr.bf16.mxu1 %v1997_v10  ;;  %v2001_v13 = vld [vmem:[%s2270_s15 + $0x24] ss:$16 sps:$4 sm:$0xff]   ;;  %v2003_v14 = vld [vmem:[%s2270_s15 + $0x2c] ss:$16 sps:$4 sm:$0xff]  }
  0x2e   : > { %1090 = vmatpush1.bf16.msra.mxu0 %v1999_v11  ;;  %1196 = vmatpush1.bf16.msra.mxu1 %v2000_v12  ;;  %v2005_v15 = vld [vmem:[%s2270_s15 + $0x20] ss:$16 sps:$4 sm:$0xff]   ;;  %v2006_v16 = vld [vmem:[%s2270_s15 + $0x28] ss:$16 sps:$4 sm:$0xff]   ;;  %v2007_v17 = vld [vmem:[%s2270_s15 + $0x44] ss:$16 sps:$4 sm:$0xff]  }
  0x2f   : > { %1091 = vmatprep.subr.bf16.mxu0 %v2001_v13  ;;  %1197 = vmatprep.subr.bf16.mxu1 %v2003_v14  ;;  %v2009_v18 = vld [vmem:[%s2270_s15 + $0x4c] ss:$16 sps:$4 sm:$0xff]   ;;  %v2011_v19 = vld [vmem:[%s2270_s15 + $0x40] ss:$16 sps:$4 sm:$0xff]   ;;  %v2012_v20 = vld [vmem:[%s2270_s15 + $0x48] ss:$16 sps:$4 sm:$0xff]  }
  0x30   : > { %v2013_v21 = vld [vmem:[%s2270_s15 + $0x64] ss:$16 sps:$4 sm:$0xff]   ;;  %v2015_v22 = vld [vmem:[%s2270_s15 + $0x6c] ss:$16 sps:$4 sm:$0xff]   ;;  %v2017_v23 = vld [vmem:[%s2270_s15 + $0x60] ss:$16 sps:$4 sm:$0xff]  }
  0x31   : > { %v2018_v24 = vld [vmem:[%s2270_s15 + $0x68] ss:$16 sps:$4 sm:$0xff]   ;;  %v2019_v25 = vld [vmem:[%s2270_s15 + $0x84] ss:$16 sps:$4 sm:$0xff]   ;;  %v2021_v26 = vld [vmem:[%s2270_s15 + $0x8c] ss:$16 sps:$4 sm:$0xff]  }
  0x32   : > { %1092 = vmatpush1.bf16.msra.mxu0 %v2005_v15  ;;  %1198 = vmatpush1.bf16.msra.mxu1 %v2006_v16  ;;  %v2023_v27 = vld [vmem:[%s2270_s15 + $0x80] ss:$16 sps:$4 sm:$0xff]   ;;  %v2024_v28 = vld [vmem:[%s2270_s15 + $0x88] ss:$16 sps:$4 sm:$0xff]   ;;  %v2025_v29 = vld [vmem:[%s2270_s15 + $0xa4] ss:$16 sps:$4 sm:$0xff]  }
  0x33   : > { %1093 = vmatprep.subr.bf16.mxu0 %v2007_v17  ;;  %1199 = vmatprep.subr.bf16.mxu1 %v2009_v18  ;;  %v2027_v30 = vld [vmem:[%s2270_s15 + $0xac] ss:$16 sps:$4 sm:$0xff]   ;;  %v2029_v31 = vld [vmem:[%s2270_s15 + $0xa0] ss:$16 sps:$4 sm:$0xff]   ;;  %v2030_v32 = vld [vmem:[%s2270_s15 + $0xa8] ss:$16 sps:$4 sm:$0xff]  }
  0x34   : > { %v2031_v33 = vld [vmem:[%s2270_s15 + $0xc4] ss:$16 sps:$4 sm:$0xff]   ;;  %v2033_v34 = vld [vmem:[%s2270_s15 + $0xcc] ss:$16 sps:$4 sm:$0xff]   ;;  %v2035_v35 = vld [vmem:[%s2270_s15 + $0xc0] ss:$16 sps:$4 sm:$0xff]  }
  0x35   : > { %v2036_v36 = vld [vmem:[%s2270_s15 + $0xc8] ss:$16 sps:$4 sm:$0xff]   ;;  %v2037_v37 = vld [vmem:[%s2270_s15 + $0xe4] ss:$16 sps:$4 sm:$0xff]   ;;  %v2039_v38 = vld [vmem:[%s2270_s15 + $0xec] ss:$16 sps:$4 sm:$0xff]  }
  0x36   : > { %1094 = vmatpush1.bf16.msra.mxu0 %v2011_v19  ;;  %1200 = vmatpush1.bf16.msra.mxu1 %v2012_v20  ;;  %v2041_v39 = vld [vmem:[%s2270_s15 + $0xe0] ss:$16 sps:$4 sm:$0xff]   ;;  %v2042_v40 = vld [vmem:[%s2270_s15 + $0xe8] ss:$16 sps:$4 sm:$0xff]   ;;  %v2043_v41 = vld [vmem:[%s2270_s15 + $0x104] ss:$16 sps:$4 sm:$0xff]  }
  0x37   : > { %1095 = vmatprep.subr.bf16.mxu0 %v2013_v21  ;;  %1201 = vmatprep.subr.bf16.mxu1 %v2015_v22  ;;  %v2045_v42 = vld [vmem:[%s2270_s15 + $0x10c] ss:$16 sps:$4 sm:$0xff]   ;;  %v2047_v43 = vld [vmem:[%s2270_s15 + $0x100] ss:$16 sps:$4 sm:$0xff]   ;;  %v2048_v44 = vld [vmem:[%s2270_s15 + $0x108] ss:$16 sps:$4 sm:$0xff]  }
  0x38   : > { %v2049_v45 = vld [vmem:[%s2270_s15 + $0x124] ss:$16 sps:$4 sm:$0xff]   ;;  %v2051_v46 = vld [vmem:[%s2270_s15 + $0x12c] ss:$16 sps:$4 sm:$0xff]   ;;  %v2053_v47 = vld [vmem:[%s2270_s15 + $0x120] ss:$16 sps:$4 sm:$0xff]  }
  0x39   : > { %v2054_v48 = vld [vmem:[%s2270_s15 + $0x128] ss:$16 sps:$4 sm:$0xff]   ;;  %v2055_v49 = vld [vmem:[%s2270_s15 + $0x144] ss:$16 sps:$4 sm:$0xff]   ;;  %v2057_v50 = vld [vmem:[%s2270_s15 + $0x14c] ss:$16 sps:$4 sm:$0xff]  }
  0x3a   : > { %1096 = vmatpush1.bf16.msra.mxu0 %v2017_v23  ;;  %1202 = vmatpush1.bf16.msra.mxu1 %v2018_v24  ;;  %v2059_v51 = vld [vmem:[%s2270_s15 + $0x140] ss:$16 sps:$4 sm:$0xff]   ;;  %v2060_v52 = vld [vmem:[%s2270_s15 + $0x148] ss:$16 sps:$4 sm:$0xff]   ;;  %v2061_v53 = vld [vmem:[%s2270_s15 + $0x164] ss:$16 sps:$4 sm:$0xff]  }
  0x3b   : > { %1097 = vmatprep.subr.bf16.mxu0 %v2019_v25  ;;  %1203 = vmatprep.subr.bf16.mxu1 %v2021_v26  ;;  %v2063_v54 = vld [vmem:[%s2270_s15 + $0x16c] ss:$16 sps:$4 sm:$0xff]   ;;  %v2065_v55 = vld [vmem:[%s2270_s15 + $0x160] ss:$16 sps:$4 sm:$0xff]   ;;  %v2066_v56 = vld [vmem:[%s2270_s15 + $0x168] ss:$16 sps:$4 sm:$0xff]  }
  0x3c   : > { %v2093_v57 = vld [vmem:[%s2272_s16 + $0x4] ss:$12 sps:$4 sm:$0xff]   ;;  %v2069_v59 = vld [vmem:[%s2270_s15 + $0x18c] ss:$16 sps:$4 sm:$0xff]   ;;  %v2072_v61 = vld [vmem:[%s2270_s15 + $0x188] ss:$16 sps:$4 sm:$0xff]  }
  0x3d   : > { %v2067_v58 = vld [vmem:[%s2270_s15 + $0x184] ss:$16 sps:$4 sm:$0xff]   ;;  %1121 = vmatprep.mubr.bf16.mxu0 %v2093_v57  ;;  %1227 = vmatprep.mubr.bf16.mxu1 %v2093_v57  ;;  %v2071_v60 = vld [vmem:[%s2270_s15 + $0x180] ss:$16 sps:$4 sm:$0xff]   ;;  %v2075_v63 = vld [vmem:[%s2270_s15 + $0x1ac] ss:$16 sps:$4 sm:$0xff]  }
  0x3e   : > { %1098 = vmatpush1.bf16.msra.mxu0 %v2023_v27  ;;  %1204 = vmatpush1.bf16.msra.mxu1 %v2024_v28  ;;  %v2073_v62 = vld [vmem:[%s2270_s15 + $0x1a4] ss:$16 sps:$4 sm:$0xff]   ;;  %v2077_v0 = vld [vmem:[%s2270_s15 + $0x1a0] ss:$16 sps:$4 sm:$0xff]   ;;  %v2078_v1 = vld [vmem:[%s2270_s15 + $0x1a8] ss:$16 sps:$4 sm:$0xff]  }
  0x3f   : > { %1099 = vmatprep.subr.bf16.mxu0 %v2025_v29  ;;  %1205 = vmatprep.subr.bf16.mxu1 %v2027_v30  ;;  %v2079_v2 = vld [vmem:[%s2270_s15 + $0x1c4] ss:$16 sps:$4 sm:$0xff]   ;;  %v2081_v3 = vld [vmem:[%s2270_s15 + $0x1cc] ss:$16 sps:$4 sm:$0xff]   ;;  %v2083_v4 = vld [vmem:[%s2270_s15 + $0x1c0] ss:$16 sps:$4 sm:$0xff]  }
  0x40   : > { %v2084_v5 = vld [vmem:[%s2270_s15 + $0x1c8] ss:$16 sps:$4 sm:$0xff]   ;;  %v2085_v6 = vld [vmem:[%s2270_s15 + $0x1e4] ss:$16 sps:$4 sm:$0xff]   ;;  %v2087_v7 = vld [vmem:[%s2270_s15 + $0x1ec] ss:$16 sps:$4 sm:$0xff]  }
  0x41   : > { %v2089_v8 = vld [vmem:[%s2270_s15 + $0x1e0] ss:$16 sps:$4 sm:$0xff]   ;;  %v2090_v9 = vld [vmem:[%s2270_s15 + $0x1e8] ss:$16 sps:$4 sm:$0xff]   ;;  %v2096_v10 = vld [vmem:[%s2270_s15 + $0x204] ss:$16 sps:$4 sm:$0xff]  }
  0x42   : > { %1100 = vmatpush1.bf16.msra.mxu0 %v2029_v31  ;;  %1206 = vmatpush1.bf16.msra.mxu1 %v2030_v32  ;;  %v2099_v11 = vld [vmem:[%s2270_s15 + $0x20c] ss:$16 sps:$4 sm:$0xff]   ;;  %v2094_v13 = vld [vmem:[%s2270_s15 + $0x200] ss:$16 sps:$4 sm:$0xff]   ;;  %v2097_v14 = vld [vmem:[%s2270_s15 + $0x208] ss:$16 sps:$4 sm:$0xff]  }
  0x43   : > { %1101 = vmatprep.subr.bf16.mxu0 %v2031_v33  ;;  %1207 = vmatprep.subr.bf16.mxu1 %v2033_v34  ;;  %v2091_v12 = vld [vmem:[%s2272_s16] ss:$12 sps:$4 sm:$0xff]   ;;  %v2102_v15 = vld [vmem:[%s2270_s15 + $0x224] ss:$16 sps:$4 sm:$0xff]   ;;  %v2130_v17 = vld [vmem:[%s2272_s16 + $0x1c] ss:$12 sps:$4 sm:$0xff]  }
  0x44   : > { %v2105_v16 = vld [vmem:[%s2270_s15 + $0x22c] ss:$16 sps:$4 sm:$0xff]   ;;  %v2100_v18 = vld [vmem:[%s2270_s15 + $0x220] ss:$16 sps:$4 sm:$0xff]   ;;  %v2103_v19 = vld [vmem:[%s2270_s15 + $0x228] ss:$16 sps:$4 sm:$0xff]  }
  0x45   : > { %v2108_v20 = vld [vmem:[%s2270_s15 + $0x244] ss:$16 sps:$4 sm:$0xff]   ;;  %v2111_v21 = vld [vmem:[%s2270_s15 + $0x24c] ss:$16 sps:$4 sm:$0xff]   ;;  %v2106_v23 = vld [vmem:[%s2270_s15 + $0x240] ss:$16 sps:$4 sm:$0xff]  }
  0x46   : > { %1102 = vmatpush1.bf16.msra.mxu0 %v2035_v35  ;;  %1208 = vmatpush1.bf16.msra.mxu1 %v2036_v36  ;;  %v2132_v22 = vld [vmem:[%s2272_s16 + $0x18] ss:$12 sps:$4 sm:$0xff]   ;;  %v2117_v26 = vld [vmem:[%s2270_s15 + $0x26c] ss:$16 sps:$4 sm:$0xff]   ;;  %v2112_v27 = vld [vmem:[%s2270_s15 + $0x260] ss:$16 sps:$4 sm:$0xff]  }
  0x47   : > { %1103 = vmatprep.subr.bf16.mxu0 %v2037_v37  ;;  %1209 = vmatprep.subr.bf16.mxu1 %v2039_v38  ;;  %v2109_v24 = vld [vmem:[%s2270_s15 + $0x248] ss:$16 sps:$4 sm:$0xff]   ;;  %v2114_v25 = vld [vmem:[%s2270_s15 + $0x264] ss:$16 sps:$4 sm:$0xff]   ;;  %v2123_v30 = vld [vmem:[%s2270_s15 + $0x28c] ss:$16 sps:$4 sm:$0xff]  }
  0x48   : > { %v2115_v28 = vld [vmem:[%s2270_s15 + $0x268] ss:$16 sps:$4 sm:$0xff]   ;;  %v2120_v29 = vld [vmem:[%s2270_s15 + $0x284] ss:$16 sps:$4 sm:$0xff]   ;;  %v2188_v31 = vmov 0   ;;  %p1893_p11 = scmp.ne.s32.totalorder %s2177_s20, 5 }
  0x49   : > { %v2118_v32 = vld [vmem:[%s2270_s15 + $0x280] ss:$16 sps:$4 sm:$0xff]   ;;  %v2121_v33 = vld [vmem:[%s2270_s15 + $0x288] ss:$16 sps:$4 sm:$0xff]   ;;  %v2126_v34 = vld [vmem:[%s2270_s15 + $0x2a4] ss:$16 sps:$4 sm:$0xff]  }
  0x4a   : > { %1104 = vmatpush1.bf16.msra.mxu0 %v2041_v39  ;;  %1210 = vmatpush1.bf16.msra.mxu1 %v2042_v40  ;;  %v2129_v35 = vld [vmem:[%s2270_s15 + $0x2ac] ss:$16 sps:$4 sm:$0xff]   ;;  %v2124_v36 = vld [vmem:[%s2270_s15 + $0x2a0] ss:$16 sps:$4 sm:$0xff]   ;;  %v2127_v37 = vld [vmem:[%s2270_s15 + $0x2a8] ss:$16 sps:$4 sm:$0xff]  }
  0x4b   : > { %1105 = vmatprep.subr.bf16.mxu0 %v2043_v41  ;;  %1211 = vmatprep.subr.bf16.mxu1 %v2045_v42  ;;  %v2135_v38 = vld [vmem:[%s2270_s15 + $0x2c4] ss:$16 sps:$4 sm:$0xff]   ;;  %v2138_v39 = vld [vmem:[%s2270_s15 + $0x2cc] ss:$16 sps:$4 sm:$0xff]   ;;  %v2133_v40 = vld [vmem:[%s2270_s15 + $0x2c0] ss:$16 sps:$4 sm:$0xff]  }
  0x4c   : > { %v2136_v41 = vld [vmem:[%s2270_s15 + $0x2c8] ss:$16 sps:$4 sm:$0xff]   ;;  %v2141_v42 = vld [vmem:[%s2270_s15 + $0x2e4] ss:$16 sps:$4 sm:$0xff]  }
  0x4e   : > { %1106 = vmatpush1.bf16.msra.mxu0 %v2047_v43  ;;  %1212 = vmatpush1.bf16.msra.mxu1 %v2048_v44  ;;  %v2144_v43 = vld [vmem:[%s2270_s15 + $0x2ec] ss:$16 sps:$4 sm:$0xff]   ;;  %v2139_v44 = vld [vmem:[%s2270_s15 + $0x2e0] ss:$16 sps:$4 sm:$0xff]  }
  0x4f   : > { %1107 = vmatprep.subr.bf16.mxu0 %v2049_v45  ;;  %1213 = vmatprep.subr.bf16.mxu1 %v2051_v46  ;;  %v2142_v45 = vld [vmem:[%s2270_s15 + $0x2e8] ss:$16 sps:$4 sm:$0xff]  }
  0x50   : > { %v2145_v46 = vld [vmem:[%s2272_s16 + $0x8] ss:$12 sps:$4 sm:$0xff]  }
  0x52   : > { %1108 = vmatpush1.bf16.msra.mxu0 %v2053_v47  ;;  %1214 = vmatpush1.bf16.msra.mxu1 %v2054_v48  ;;  %v2146_v47 = vld [vmem:[%s2272_s16 + $0x20] ss:$12 sps:$4 sm:$0xff]  }
  0x53   : > { %1109 = vmatprep.subr.bf16.mxu0 %v2055_v49  ;;  %1215 = vmatprep.subr.bf16.mxu1 %v2057_v50  ;;  %v457_v48 = vld [vmem:[#allocation2] sm:$0xff]  ;;  %v459_v49 = vld [vmem:[#allocation2 + $0x10] sm:$0xff]  ;;  %v458_v50 = vld [vmem:[#allocation2 + $0x8] sm:$0xff] }
  0x56   : > { %1110 = vmatpush1.bf16.msra.mxu0 %v2059_v51  ;;  %1216 = vmatpush1.bf16.msra.mxu1 %v2060_v52  ;;  %v460_v51 = vld [vmem:[#allocation2 + $0x18] sm:$0xff] }
  0x57   : > { %1111 = vmatprep.subr.bf16.mxu0 %v2061_v53  ;;  %1217 = vmatprep.subr.bf16.mxu1 %v2063_v54  ;;  %v461_v54 = vld [vmem:[#allocation2 + $0x20] sm:$0xff] }
  0x5a   : > { %1112 = vmatpush1.bf16.msra.mxu0 %v2065_v55  ;;  %1218 = vmatpush1.bf16.msra.mxu1 %v2066_v56  ;;  %v463_v55 = vld [vmem:[#allocation2 + $0x30] sm:$0xff] }
  0x5b   : > { %1113 = vmatprep.subr.bf16.mxu0 %v2067_v58  ;;  %1219 = vmatprep.subr.bf16.mxu1 %v2069_v59 }
  0x5e   : > { %1114 = vmatpush1.bf16.msra.mxu0 %v2071_v60  ;;  %1220 = vmatpush1.bf16.msra.mxu1 %v2072_v61  ;;  %v462_v60 = vld [vmem:[#allocation2 + $0x28] sm:$0xff]  ;;  %v464_v61 = vld [vmem:[#allocation2 + $0x38] sm:$0xff] }
  0x5f   : > { %1115 = vmatprep.subr.bf16.mxu0 %v2073_v62  ;;  %1221 = vmatprep.subr.bf16.mxu1 %v2075_v63 }
  0x62   : > { %1116 = vmatpush1.bf16.msra.mxu0 %v2077_v0  ;;  %1222 = vmatpush1.bf16.msra.mxu1 %v2078_v1 }
  0x63   : > { %1117 = vmatprep.subr.bf16.mxu0 %v2079_v2  ;;  %1223 = vmatprep.subr.bf16.mxu1 %v2081_v3 }
  0x66   : > { %1118 = vmatpush1.bf16.msra.mxu0 %v2083_v4  ;;  %1224 = vmatpush1.bf16.msra.mxu1 %v2084_v5 }
  0x67   : > { %1119 = vmatprep.subr.bf16.mxu0 %v2085_v6  ;;  %1225 = vmatprep.subr.bf16.mxu1 %v2087_v7 }
  0x6a   : > { %1120 = vmatpush1.bf16.msra.mxu0 %v2089_v8  ;;  %1226 = vmatpush1.bf16.msra.mxu1 %v2090_v9  ;;  %v465_v8 = vld [vmem:[#allocation2 + $0x40] sm:$0xff]  ;;  %v467_v9 = vld [vmem:[#allocation2 + $0x50] sm:$0xff] }
  0x6b   : > { %1142 = vmatprep.subr.bf16.mxu0 %v2096_v10  ;;  %1248 = vmatprep.subr.bf16.mxu1 %v2099_v11  ;;  %v466_v10 = vld [vmem:[#allocation2 + $0x48] sm:$0xff]  ;;  %v468_v11 = vld [vmem:[#allocation2 + $0x58] sm:$0xff] }
  0x6d   : > { %1122 = vmatmul.mubr.bf16.vlgmr.msra.gmra.mrb[0].mxu0 %v2091_v12  ;;  %1228 = vmatmul.mubr.bf16.vlgmr.msra.gmra.mrb[0].mxu1 %v2091_v12 }
  0x6e   : > { %1143 = vmatpush1.bf16.msra.mxu0 %v2094_v13  ;;  %1249 = vmatpush1.bf16.msra.mxu1 %v2097_v14  ;;  %v469_v14 = vld [vmem:[#allocation2 + $0x60] sm:$0xff] }
  0x6f   : > { %1144 = vmatprep.subr.bf16.mxu0 %v2102_v15  ;;  %1250 = vmatprep.subr.bf16.mxu1 %v2105_v16  ;;  %v471_v15 = vld [vmem:[#allocation2 + $0x70] sm:$0xff] }
  0x70   : > { %1131 = vmatprep.mubr.bf16.mxu0 %v2130_v17  ;;  %1237 = vmatprep.mubr.bf16.mxu1 %v2130_v17 }
  0x72   : > { %1145 = vmatpush1.bf16.msra.mxu0 %v2100_v18  ;;  %1251 = vmatpush1.bf16.msra.mxu1 %v2103_v19 }
  0x73   : > { %1146 = vmatprep.subr.bf16.mxu0 %v2108_v20  ;;  %1252 = vmatprep.subr.bf16.mxu1 %v2111_v21  ;;  %v470_v20 = vld [vmem:[#allocation2 + $0x68] sm:$0xff]  ;;  %v472_v21 = vld [vmem:[#allocation2 + $0x78] sm:$0xff] }
  0x75   : > { %1132 = vmatmul.mubr.bf16.gmra.mrb[4].mxu0 %v2132_v22  ;;  %1238 = vmatmul.mubr.bf16.gmra.mrb[4].mxu1 %v2132_v22 }
  0x76   : > { %1147 = vmatpush1.bf16.msra.mxu0 %v2106_v23  ;;  %1253 = vmatpush1.bf16.msra.mxu1 %v2109_v24 }
  0x77   : > { %1148 = vmatprep.subr.bf16.mxu0 %v2114_v25  ;;  %1254 = vmatprep.subr.bf16.mxu1 %v2117_v26 }
  0x78   : > { %1174 = vmatprep.mubr.bf16.mxu0 %v2188_v31  ;;  %1280 = vmatprep.mubr.bf16.mxu1 %v2188_v31 }
  0x7a   : > { %1149 = vmatpush1.bf16.msra.mxu0 %v2112_v27  ;;  %1255 = vmatpush1.bf16.msra.mxu1 %v2115_v28 }
  0x7b   : > { %1150 = vmatprep.subr.bf16.mxu0 %v2120_v29  ;;  %1256 = vmatprep.subr.bf16.mxu1 %v2123_v30 }
  0x7e   : > { %1151 = vmatpush1.bf16.msra.mxu0 %v2118_v32  ;;  %1257 = vmatpush1.bf16.msra.mxu1 %v2121_v33  ;;  %v1355_v32 = vlaneseq (!%p1893_p11) }
  0x7f   : > { %1152 = vmatprep.subr.bf16.mxu0 %v2126_v34  ;;  %1258 = vmatprep.subr.bf16.mxu1 %v2129_v35  ;;  %v1353_v34 = vld [vmem:[%s2642_s2] sm:$0xf] (!%p1893_p11) }
  0x80   : > { %v1356_v33 = vshrl.u32 (!%p1893_p11), %v1355_v32, 7 }
  0x82   : > { %1153 = vmatpush1.bf16.msra.mxu0 %v2124_v36  ;;  %1259 = vmatpush1.bf16.msra.mxu1 %v2127_v37  ;;  %v1357_v37 = vsub.s32 (!%p1893_p11), 0, %v1356_v33 }
  0x83   : > { %1154 = vmatprep.subr.bf16.mxu0 %v2135_v38  ;;  %1260 = vmatprep.subr.bf16.mxu1 %v2138_v39  ;;  %v1361_v38 = vsub.s32 (!%p1893_p11), 1, %v1356_v33  ;;  %v1365_v39 = vsub.s32 (!%p1893_p11), 2, %v1356_v33 }
  0x86   : > { %1155 = vmatpush1.bf16.msra.mxu0 %v2133_v40  ;;  %1261 = vmatpush1.bf16.msra.mxu1 %v2136_v41  ;;  %v1369_v40 = vsub.s32 (!%p1893_p11), 3, %v1356_v33  ;;  %v1391_v41 = vld [vmem:[%s2643_s3] sm:$0xff] (!%p1893_p11)  ;;  %v1401_v33 = vld [vmem:[%s2643_s3 + $0x50] sm:$0xff] (!%p1893_p11) }
  0x87   : > { %1156 = vmatprep.subr.bf16.mxu0 %v2141_v42  ;;  %1262 = vmatprep.subr.bf16.mxu1 %v2144_v43  ;;  %v1392_v42 = vld [vmem:[%s2643_s3 + $0x8] sm:$0xff] (!%p1893_p11) }
  0x8a   : > { %1157 = vmatpush1.bf16.msra.mxu0 %v2139_v44  ;;  %1263 = vmatpush1.bf16.msra.mxu1 %v2142_v45 }
  0x8d   : > { %1175 = vmatmul.mubr.bf16.vlgmr.msra.gmra.mrb[0].mxu0 %v2145_v46  ;;  %1281 = vmatmul.mubr.bf16.vlgmr.msra.gmra.mrb[0].mxu1 %v2145_v46  ;;  %v2387_v46 = vrot.slane (!%p1893_p11), %v1353_v34, %v1357_v37 }
  0x8e   : > { %1184 = vmatprep.mubr.bf16.mxu0 %v2188_v31  ;;  %1290 = vmatprep.mubr.bf16.mxu1 %v2188_v31 }
  0x95   : > { %1185 = vmatmul.mubr.bf16.gmra.mrb[4].mxu0 %v2146_v47  ;;  %1291 = vmatmul.mubr.bf16.gmra.mrb[4].mxu1 %v2146_v47  ;;  %v2389_v47 = vrot.slane (!%p1893_p11), %v1353_v34, %v1361_v38 }
 0x160   : > { %v1176_v52 = vpop.f32.mrb[0].mxu0  ;;  %v1282_v53 = vpop.f32.mrb[0].mxu1 }
 0x161   : > { %v1301_v56 = vadd.f32 %v1176_v52, %v457_v48  ;;  %v1303_v57 = vadd.f32 %v1282_v53, %v459_v49  ;;  %v1178_v58 = vpop.f32.mrb[1].mxu0  ;;  %v1284_v59 = vpop.f32.mrb[1].mxu1  ;;  %v2391_v48 = vrot.slane (!%p1893_p11), %v1353_v34, %v1365_v39  ;;  %v2393_v49 = vrot.slane (!%p1893_p11), %v1353_v34, %v1369_v40  ;;  %v1393_v53 = vld [vmem:[%s2643_s3 + $0x10] sm:$0xff] (!%p1893_p11)  ;;  %v1402_v34 = vld [vmem:[%s2643_s3 + $0x58] sm:$0xff] (!%p1893_p11)  ;;  %v1403_v40 = vld [vmem:[%s2643_s3 + $0x60] sm:$0xff] (!%p1893_p11) }
 0x162   : > { %v1302_v62 = vadd.f32 %v1178_v58, %v458_v50  ;;  %v1304_v63 = vadd.f32 %v1284_v59, %v460_v51  ;;  %v1180_v0 = vpop.f32.mrb[2].mxu0  ;;  %v1286_v1 = vpop.f32.mrb[2].mxu1 }
 0x163   : > { %1317 = vst [vmem:[#allocation2] sm:$0xff] %v1301_v56  ;;  %1319 = vst [vmem:[#allocation2 + $0x10] sm:$0xff] %v1303_v57  ;;  %v1305_v2 = vadd.f32 %v1180_v0, %v461_v54  ;;  %v1307_v3 = vadd.f32 %v1286_v1, %v463_v55  ;;  %v1182_v4 = vpop.f32.mrb[3].mxu0  ;;  %v1288_v5 = vpop.f32.mrb[3].mxu1  ;;  %v1394_v54 = vld [vmem:[%s2643_s3 + $0x18] sm:$0xff] (!%p1893_p11)  ;;  %v1395_v55 = vld [vmem:[%s2643_s3 + $0x20] sm:$0xff] (!%p1893_p11) }
 0x164   : > { %1318 = vst [vmem:[#allocation2 + $0x8] sm:$0xff] %v1302_v62  ;;  %1320 = vst [vmem:[#allocation2 + $0x18] sm:$0xff] %v1304_v63  ;;  %v1306_v6 = vadd.f32 %v1182_v4, %v462_v60  ;;  %v1308_v7 = vadd.f32 %v1288_v5, %v464_v61  ;;  %v1396_v60 = vld [vmem:[%s2643_s3 + $0x28] sm:$0xff] (!%p1893_p11)  ;;  %v1397_v61 = vld [vmem:[%s2643_s3 + $0x30] sm:$0xff] (!%p1893_p11) }
 0x165   : > { %1321 = vst [vmem:[#allocation2 + $0x20] sm:$0xff] %v1305_v2  ;;  %1323 = vst [vmem:[#allocation2 + $0x30] sm:$0xff] %v1307_v3  ;;  %v1398_v62 = vld [vmem:[%s2643_s3 + $0x38] sm:$0xff] (!%p1893_p11) }
 0x166   : > { %1322 = vst [vmem:[#allocation2 + $0x28] sm:$0xff] %v1306_v6  ;;  %1324 = vst [vmem:[#allocation2 + $0x38] sm:$0xff] %v1308_v7 }
 0x168   : > { %v1186_v12 = vpop.f32.mrb[4].mxu0  ;;  %v1292_v13 = vpop.f32.mrb[4].mxu1  ;;  %1336 = sbr.rel (%p1893_p11) target bundleno = 395 (0x18b), region = 70 }
 0x169   : > { %v1309_v16 = vadd.f32 %v1186_v12, %v465_v8  ;;  %v1311_v17 = vadd.f32 %v1292_v13, %v467_v9  ;;  %v1188_v18 = vpop.f32.mrb[5].mxu0  ;;  %v1294_v19 = vpop.f32.mrb[5].mxu1  ;;  %v2189_v12 = vmov (!%p1893_p11), 0.0  }
 0x16a   : > { %v1310_v22 = vadd.f32 %v1188_v18, %v466_v10  ;;  %v1312_v23 = vadd.f32 %v1294_v19, %v468_v11  ;;  %v1190_v24 = vpop.f32.mrb[6].mxu0  ;;  %v1296_v25 = vpop.f32.mrb[6].mxu1  ;;  %v1337_v35 = vld [vmem:[#allocation2] sm:$0xff] (!%p1893_p11)  ;;  %v1339_v43 = vld [vmem:[#allocation2 + $0x10] sm:$0xff] (!%p1893_p11) }
 0x16b   : > { %1325 = vst [vmem:[#allocation2 + $0x40] sm:$0xff] %v1309_v16  ;;  %1327 = vst [vmem:[#allocation2 + $0x50] sm:$0xff] %v1311_v17  ;;  %v1313_v26 = vadd.f32 %v1190_v24, %v469_v14  ;;  %v1315_v27 = vadd.f32 %v1296_v25, %v471_v15  ;;  %v1192_v28 = vpop.f32.mrb[7].mxu0  ;;  %v1298_v29 = vpop.f32.mrb[7].mxu1  ;;  %v1338_v36 = vld [vmem:[#allocation2 + $0x8] sm:$0xff] (!%p1893_p11)  ;;  %v1340_v44 = vld [vmem:[#allocation2 + $0x18] sm:$0xff] (!%p1893_p11)  ;;  %v1375_v56 = vadd.f32 (!%p1893_p11), %v2387_v46, %v1337_v35 }
 0x16c   : > { %1326 = vst [vmem:[#allocation2 + $0x48] sm:$0xff] %v1310_v22  ;;  %1328 = vst [vmem:[#allocation2 + $0x58] sm:$0xff] %v1312_v23  ;;  %v1314_v30 = vadd.f32 %v1192_v28, %v470_v20  ;;  %v1316_v31 = vadd.f32 %v1298_v29, %v472_v21  ;;  %v1341_v45 = vld [vmem:[#allocation2 + $0x20] sm:$0xff] (!%p1893_p11)  ;;  %v1343_v51 = vld [vmem:[#allocation2 + $0x30] sm:$0xff] (!%p1893_p11)  ;;  %v1376_v57 = vadd.f32 (!%p1893_p11), %v2389_v47, %v1338_v36 }
 0x16d   : > { %1329 = vst [vmem:[#allocation2 + $0x60] sm:$0xff] %v1313_v26  ;;  %1331 = vst [vmem:[#allocation2 + $0x70] sm:$0xff] %v1315_v27  ;;  %v1342_v50 = vld [vmem:[#allocation2 + $0x28] sm:$0xff] (!%p1893_p11)  ;;  %v1344_v52 = vld [vmem:[#allocation2 + $0x38] sm:$0xff] (!%p1893_p11)  ;;  %v1377_v58 = vadd.f32 (!%p1893_p11), %v2391_v48, %v1339_v43  ;;  %v1378_v59 = vadd.f32 (!%p1893_p11), %v2393_v49, %v1340_v44  ;;  %v1379_v63 = vadd.f32 (!%p1893_p11), %v2387_v46, %v1341_v45 }
 0x16e   : > { %1330 = vst [vmem:[#allocation2 + $0x68] sm:$0xff] %v1314_v30  ;;  %1332 = vst [vmem:[#allocation2 + $0x78] sm:$0xff] %v1316_v31  ;;  %v1380_v0 = vadd.f32 (!%p1893_p11), %v2389_v47, %v1342_v50  ;;  %v1381_v1 = vadd.f32 (!%p1893_p11), %v2391_v48, %v1343_v51  ;;  %v1382_v2 = vadd.f32 (!%p1893_p11), %v2393_v49, %v1344_v52  ;;  %v1399_v18 = vld [vmem:[%s2643_s3 + $0x40] sm:$0xff] (!%p1893_p11)  ;;  %v1400_v21 = vld [vmem:[%s2643_s3 + $0x48] sm:$0xff] (!%p1893_p11) }
 0x16f   : > { %v2421_v3 = vadd.f32 %v1391_v41, %v1375_v56  ;;  %v2423_v4 = vadd.f32 %v1392_v42, %v1376_v57  ;;  %v2425_v5 = vadd.f32 %v1393_v53, %v1377_v58  ;;  %v2427_v6 = vadd.f32 %v1394_v54, %v1378_v59  ;;  %v1404_v41 = vld [vmem:[%s2643_s3 + $0x68] sm:$0xff]  ;;  %v1405_v42 = vld [vmem:[%s2643_s3 + $0x70] sm:$0xff] }
 0x170   : > { %v2429_v7 = vadd.f32 %v1395_v55, %v1379_v63  ;;  %v2431_v8 = vadd.f32 %v1396_v60, %v1380_v0  ;;  %v2433_v9 = vadd.f32 %v1397_v61, %v1381_v1  ;;  %v2435_v10 = vadd.f32 %v1398_v62, %v1382_v2 }
 0x171   : > { %vm1423_vm0 = vcmp.ge.f32.partialorder %v2421_v3, 1.0  ;;  %vm1424_vm1 = vcmp.ge.f32.partialorder %v2423_v4, 1.0  ;;  %vm1425_vm2 = vcmp.ge.f32.partialorder %v2425_v5, 1.0  ;;  %vm1426_vm3 = vcmp.ge.f32.partialorder %v2427_v6, 1.0 }
 0x172   : > { %v1345_v11 = vld [vmem:[#allocation2 + $0x40] sm:$0xff]  ;;  %v2442_v13 = vsel %vm1423_vm0, 1.0, %v2189_v12  ;;  %v2445_v14 = vsel %vm1424_vm1, 1.0, %v2189_v12  ;;  %v2448_v15 = vsel %vm1425_vm2, 1.0, %v2189_v12  ;;  %v2451_v16 = vsel %vm1426_vm3, 1.0, %v2189_v12  ;;  %v1347_v22 = vld [vmem:[#allocation2 + $0x50] sm:$0xff] }
 0x173   : > { %v1346_v17 = vld [vmem:[#allocation2 + $0x48] sm:$0xff]  ;;  %v1926_v19 = vpack.c.bf16 %v2445_v14, %v2442_v13  ;;  %v1927_v20 = vpack.c.bf16 %v2451_v16, %v2448_v15  ;;  %vm1427_vm4 = vcmp.ge.f32.partialorder %v2429_v7, 1.0  ;;  %vm1428_vm5 = vcmp.ge.f32.partialorder %v2431_v8, 1.0  ;;  %v1348_v23 = vld [vmem:[#allocation2 + $0x58] sm:$0xff] }
 0x174   : > { %v1349_v24 = vld [vmem:[#allocation2 + $0x60] sm:$0xff]  ;;  %v2466_v25 = vsel %vm1427_vm4, 1.0, %v2189_v12  ;;  %v2469_v26 = vsel %vm1428_vm5, 1.0, %v2189_v12  ;;  %vm1429_vm6 = vcmp.ge.f32.partialorder %v2433_v9, 1.0  ;;  %vm1430_vm7 = vcmp.ge.f32.partialorder %v2435_v10, 1.0  ;;  %v1351_v28 = vld [vmem:[#allocation2 + $0x70] sm:$0xff] }
 0x175   : > { %v1350_v27 = vld [vmem:[#allocation2 + $0x68] sm:$0xff]  ;;  %1519 = vst [vmem:[%s2644_s4] sm:$0xff] %v1926_v19  ;;  %1520 = vst [vmem:[%s2644_s4 + $0x8] sm:$0xff] %v1927_v20  ;;  %v1928_v29 = vpack.c.bf16 %v2469_v26, %v2466_v25  ;;  %v2482_v30 = vsel %vm1429_vm6, 1.0, %v2189_v12  ;;  %v2485_v31 = vsel %vm1430_vm7, 1.0, %v2189_v12  ;;  %v1383_v32 = vadd.f32 %v2387_v46, %v1345_v11  ;;  %v1352_v35 = vld [vmem:[#allocation2 + $0x78] sm:$0xff] }
 0x176   : > { %v1929_v36 = vpack.c.bf16 %v2485_v31, %v2482_v30  ;;  %v1384_v37 = vadd.f32 %v2389_v47, %v1346_v17  ;;  %v1385_v38 = vadd.f32 %v2391_v48, %v1347_v22  ;;  %v1386_v39 = vadd.f32 %v2393_v49, %v1348_v23 }
 0x177   : > { %1521 = vst [vmem:[%s2644_s4 + $0x10] sm:$0xff] %v1928_v29  ;;  %v2511_v43 = vadd.f32 %v1399_v18, %v1383_v32  ;;  %v1387_v44 = vadd.f32 %v2387_v46, %v1349_v24  ;;  %v1388_v45 = vadd.f32 %v2389_v47, %v1350_v27  ;;  %v1389_v50 = vadd.f32 %v2391_v48, %v1351_v28  ;;  %v1406_v48 = vld [vmem:[%s2643_s3 + $0x78] sm:$0xff] }
 0x178   : > { %1522 = vst [vmem:[%s2644_s4 + $0x18] sm:$0xff] %v1929_v36  ;;  %v1416_v51 = vadd.f32 %v1400_v21, %v1384_v37  ;;  %v2519_v52 = vadd.f32 %v1401_v33, %v1385_v38  ;;  %v2521_v53 = vadd.f32 %v1402_v34, %v1386_v39  ;;  %v1390_v54 = vadd.f32 %v2393_v49, %v1352_v35 }
 0x179   : > { %vm1431_vm8 = vcmp.ge.f32.partialorder %v2511_v43, 1.0  ;;  %v1419_v55 = vadd.f32 %v1403_v40, %v1387_v44  ;;  %v2525_v56 = vadd.f32 %v1404_v41, %v1388_v45  ;;  %v2527_v46 = vadd.f32 %v1405_v42, %v1389_v50 }
 0x17a   : > { %vm1432_vm9 = vcmp.ge.f32.partialorder %v1416_v51, 1.0  ;;  %v1902_v47 = vsel %vm1431_vm8, 1.0, %v2189_v12  ;;  %vm1433_vm10 = vcmp.ge.f32.partialorder %v2519_v52, 1.0  ;;  %vm1434_vm11 = vcmp.ge.f32.partialorder %v2521_v53, 1.0 }
 0x17b   : > { %v1903_v49 = vsel %vm1432_vm9, 1.0, %v2189_v12  ;;  %v1904_v57 = vsel %vm1433_vm10, 1.0, %v2189_v12  ;;  %v1905_v58 = vsel %vm1434_vm11, 1.0, %v2189_v12  ;;  %vm1435_vm12 = vcmp.ge.f32.partialorder %v1419_v55, 1.0 }
 0x17c   : > { %v1930_v59 = vpack.c.bf16 %v1903_v49, %v1902_v47  ;;  %v1931_v60 = vpack.c.bf16 %v1905_v58, %v1904_v57  ;;  %vm1436_vm13 = vcmp.ge.f32.partialorder %v2525_v56, 1.0  ;;  %v1906_v61 = vsel %vm1435_vm12, 1.0, %v2189_v12 }
 0x17d   : > { %v1907_v62 = vsel %vm1436_vm13, 1.0, %v2189_v12  ;;  %v1422_v63 = vadd.f32 %v1406_v48, %v1390_v54  ;;  %vm1437_vm14 = vcmp.ge.f32.partialorder %v2527_v46, 1.0  ;;  %v1527_v0 = vsub.f32 1.0, %v2442_v13 }
 0x17e   : > { %1523 = vst [vmem:[%s2644_s4 + $0x20] sm:$0xff] %v1930_v59  ;;  %1524 = vst [vmem:[%s2644_s4 + $0x28] sm:$0xff] %v1931_v60  ;;  %v1932_v1 = vpack.c.bf16 %v1907_v62, %v1906_v61  ;;  %v1908_v2 = vsel %vm1437_vm14, 1.0, %v2189_v12  ;;  %v1528_v11 = vsub.f32 1.0, %v2445_v14  ;;  %v1529_v17 = vsub.f32 1.0, %v2448_v15 }
 0x17f   : > { %vm1438_vm15 = vcmp.ge.f32.partialorder %v1422_v63, 1.0  ;;  %v1543_v18 = vmul.f32 %v1527_v0, %v2421_v3  ;;  %v1530_v13 = vsub.f32 1.0, %v2451_v16  ;;  %v1531_v19 = vsub.f32 1.0, %v2466_v25 }
 0x180   : > { %1525 = vst [vmem:[%s2644_s4 + $0x30] sm:$0xff] %v1932_v1  ;;  %v1909_v20 = vsel %vm1438_vm15, 1.0, %v2189_v12  ;;  %v1544_v21 = vmul.f32 %v1528_v11, %v2423_v4  ;;  %v1545_v22 = vmul.f32 %v1529_v17, %v2425_v5  ;;  %v1532_v14 = vsub.f32 1.0, %v2469_v26 }
 0x181   : > { %v1933_v15 = vpack.c.bf16 %v1909_v20, %v1908_v2  ;;  %1559 = vst [vmem:[%s2645_s5] sm:$0xff] %v1543_v18  ;;  %v1546_v3 = vmul.f32 %v1530_v13, %v2427_v6  ;;  %v1547_v16 = vmul.f32 %v1531_v19, %v2429_v7  ;;  %v1533_v23 = vsub.f32 1.0, %v2482_v30 }
 0x182   : > { %1560 = vst [vmem:[%s2645_s5 + $0x8] sm:$0xff] %v1544_v21  ;;  %1561 = vst [vmem:[%s2645_s5 + $0x10] sm:$0xff] %v1545_v22  ;;  %v1548_v4 = vmul.f32 %v1532_v14, %v2431_v8  ;;  %v1534_v5 = vsub.f32 1.0, %v2485_v31  ;;  %v1535_v12 = vsub.f32 1.0, %v1902_v47  ;;  %v1536_v24 = vsub.f32 1.0, %v1903_v49 }
 0x183   : > { %1526 = vst [vmem:[%s2644_s4 + $0x38] sm:$0xff] %v1933_v15  ;;  %1562 = vst [vmem:[%s2645_s5 + $0x18] sm:$0xff] %v1546_v3  ;;  %v1549_v6 = vmul.f32 %v1533_v23, %v2433_v9  ;;  %v1537_v7 = vsub.f32 1.0, %v1904_v57  ;;  %v1538_v8 = vsub.f32 1.0, %v1905_v58  ;;  %v1539_v25 = vsub.f32 1.0, %v1906_v61 }
 0x184   : > { %1563 = vst [vmem:[%s2645_s5 + $0x20] sm:$0xff] %v1547_v16  ;;  %1564 = vst [vmem:[%s2645_s5 + $0x28] sm:$0xff] %v1548_v4  ;;  %v1550_v26 = vmul.f32 %v1534_v5, %v2435_v10  ;;  %v1551_v27 = vmul.f32 %v1535_v12, %v2511_v43  ;;  %v1552_v28 = vmul.f32 %v1536_v24, %v1416_v51  ;;  %v1540_v29 = vsub.f32 1.0, %v1907_v62 }
 0x185   : > { %1565 = vst [vmem:[%s2645_s5 + $0x30] sm:$0xff] %v1549_v6  ;;  %v1553_v30 = vmul.f32 %v1537_v7, %v2519_v52  ;;  %v1554_v9 = vmul.f32 %v1538_v8, %v2521_v53  ;;  %v1555_v31 = vmul.f32 %v1539_v25, %v1419_v55  ;;  %v1541_v32 = vsub.f32 1.0, %v1908_v2 }
 0x186   : > { %1566 = vst [vmem:[%s2645_s5 + $0x38] sm:$0xff] %v1550_v26  ;;  %1567 = vst [vmem:[%s2645_s5 + $0x40] sm:$0xff] %v1551_v27  ;;  %v1556_v10 = vmul.f32 %v1540_v29, %v2525_v56  ;;  %v1542_v33 = vsub.f32 1.0, %v1909_v20 }
 0x187   : > { %1568 = vst [vmem:[%s2645_s5 + $0x48] sm:$0xff] %v1552_v28  ;;  %1569 = vst [vmem:[%s2645_s5 + $0x50] sm:$0xff] %v1553_v30  ;;  %v1557_v34 = vmul.f32 %v1541_v32, %v2527_v46 }
 0x188   : > { %1570 = vst [vmem:[%s2645_s5 + $0x58] sm:$0xff] %v1554_v9  ;;  %1571 = vst [vmem:[%s2645_s5 + $0x60] sm:$0xff] %v1555_v31  ;;  %v1558_v35 = vmul.f32 %v1542_v33, %v1422_v63 }
 0x189   : > { %1572 = vst [vmem:[%s2645_s5 + $0x68] sm:$0xff] %v1556_v10  ;;  %1573 = vst [vmem:[%s2645_s5 + $0x70] sm:$0xff] %v1557_v34 }
 0x18a   : > { %1574 = vst [vmem:[%s2645_s5 + $0x78] sm:$0xff] %v1558_v35 }
 0x18b PF: > { %s16_s22 = sadd.s32 1, %s2185_s22   ;;  %s2646_s18 = smov %s2173_s19 }
 0x18c   : > { %p13_p12 = scmp.ge.s32.totalorder %s16_s22, 8   ;;  %s2647_s19 = smov %s2255_s26 }
 0x18d   : > { %s2648_s20 = smov %s2181_s21  ;;  %s2649_s21 = smov %s2651_s23 }
 0x18e   :  { %15 = sbr.rel (!%p13_p12) target bundleno = 3 (0x3), region = 132 }

// kernel: closed_call.89
= control target key start
LH: loop header
LB: loop body
LE: loop exit
PB: predicated region body
PF: predicated region fallthrough
CT: control target
= control target key end

     0   :  { %s1118_s1 = inlined_call_operand.vmem [shape: bf16[256,512], index: 1, kind: input, shape index: {}]   ;;  %s1119_s0 = inlined_call_operand.vmem [shape: bf16[32,256], index: 0, kind: input, shape index: {}]   ;;  %s1120_s2 = inlined_call_operand.vmem [shape: f32[1,512], index: 2, kind: input, shape index: {}]   ;;  %s1121_s3 = inlined_call_operand.vmem [shape: f32[32,512], index: 3, kind: output, shape index: {}]  }
   0x1   :  { %v741_v0 = vld [vmem:[%s1118_s1 + $0x4] ss:$16 sps:$4 sm:$0xff]   ;;  %v743_v1 = vld [vmem:[%s1118_s1 + $0xc] ss:$16 sps:$4 sm:$0xff]   ;;  %v745_v2 = vld [vmem:[%s1118_s1] ss:$16 sps:$4 sm:$0xff]  }
   0x2   :  { %458 = vmatprep.subr.bf16.mxu0 %v741_v0  ;;  %v746_v3 = vld [vmem:[%s1118_s1 + $0x8] ss:$16 sps:$4 sm:$0xff]   ;;  %511 = vmatprep.subr.bf16.mxu1 %v743_v1  ;;  %v747_v4 = vld [vmem:[%s1118_s1 + $0x24] ss:$16 sps:$4 sm:$0xff]   ;;  %v749_v5 = vld [vmem:[%s1118_s1 + $0x2c] ss:$16 sps:$4 sm:$0xff]  }
   0x3   :  { %459 = vmatpush1.bf16.msra.mxu0 %v745_v2  ;;  %512 = vmatpush1.bf16.msra.mxu1 %v746_v3  ;;  %v751_v6 = vld [vmem:[%s1118_s1 + $0x20] ss:$16 sps:$4 sm:$0xff]   ;;  %v752_v7 = vld [vmem:[%s1118_s1 + $0x28] ss:$16 sps:$4 sm:$0xff]   ;;  %v753_v8 = vld [vmem:[%s1118_s1 + $0x44] ss:$16 sps:$4 sm:$0xff]  }
   0x4   :  { %460 = vmatprep.subr.bf16.mxu0 %v747_v4  ;;  %513 = vmatprep.subr.bf16.mxu1 %v749_v5  ;;  %v755_v9 = vld [vmem:[%s1118_s1 + $0x4c] ss:$16 sps:$4 sm:$0xff]   ;;  %v757_v10 = vld [vmem:[%s1118_s1 + $0x40] ss:$16 sps:$4 sm:$0xff]   ;;  %v758_v11 = vld [vmem:[%s1118_s1 + $0x48] ss:$16 sps:$4 sm:$0xff]   ;;  %v617_v4 = vlaneseq }
   0x5   :  { %v759_v12 = vld [vmem:[%s1118_s1 + $0x64] ss:$16 sps:$4 sm:$0xff]   ;;  %v761_v13 = vld [vmem:[%s1118_s1 + $0x6c] ss:$16 sps:$4 sm:$0xff]   ;;  %v763_v14 = vld [vmem:[%s1118_s1 + $0x60] ss:$16 sps:$4 sm:$0xff]  }
   0x6   :  { %v764_v15 = vld [vmem:[%s1118_s1 + $0x68] ss:$16 sps:$4 sm:$0xff]   ;;  %v765_v16 = vld [vmem:[%s1118_s1 + $0x84] ss:$16 sps:$4 sm:$0xff]   ;;  %v767_v17 = vld [vmem:[%s1118_s1 + $0x8c] ss:$16 sps:$4 sm:$0xff]  }
   0x7   :  { %461 = vmatpush1.bf16.msra.mxu0 %v751_v6  ;;  %514 = vmatpush1.bf16.msra.mxu1 %v752_v7  ;;  %v769_v18 = vld [vmem:[%s1118_s1 + $0x80] ss:$16 sps:$4 sm:$0xff]   ;;  %v770_v19 = vld [vmem:[%s1118_s1 + $0x88] ss:$16 sps:$4 sm:$0xff]   ;;  %v771_v20 = vld [vmem:[%s1118_s1 + $0xa4] ss:$16 sps:$4 sm:$0xff]  }
   0x8   :  { %462 = vmatprep.subr.bf16.mxu0 %v753_v8  ;;  %515 = vmatprep.subr.bf16.mxu1 %v755_v9  ;;  %v773_v21 = vld [vmem:[%s1118_s1 + $0xac] ss:$16 sps:$4 sm:$0xff]   ;;  %v775_v22 = vld [vmem:[%s1118_s1 + $0xa0] ss:$16 sps:$4 sm:$0xff]   ;;  %v776_v23 = vld [vmem:[%s1118_s1 + $0xa8] ss:$16 sps:$4 sm:$0xff]  }
   0x9   :  { %v777_v24 = vld [vmem:[%s1118_s1 + $0xc4] ss:$16 sps:$4 sm:$0xff]   ;;  %v779_v25 = vld [vmem:[%s1118_s1 + $0xcc] ss:$16 sps:$4 sm:$0xff]   ;;  %v781_v26 = vld [vmem:[%s1118_s1 + $0xc0] ss:$16 sps:$4 sm:$0xff]  }
   0xa   :  { %v782_v27 = vld [vmem:[%s1118_s1 + $0xc8] ss:$16 sps:$4 sm:$0xff]   ;;  %v783_v28 = vld [vmem:[%s1118_s1 + $0xe4] ss:$16 sps:$4 sm:$0xff]   ;;  %v785_v29 = vld [vmem:[%s1118_s1 + $0xec] ss:$16 sps:$4 sm:$0xff]  }
   0xb   :  { %463 = vmatpush1.bf16.msra.mxu0 %v757_v10  ;;  %516 = vmatpush1.bf16.msra.mxu1 %v758_v11  ;;  %v787_v30 = vld [vmem:[%s1118_s1 + $0xe0] ss:$16 sps:$4 sm:$0xff]   ;;  %v788_v31 = vld [vmem:[%s1118_s1 + $0xe8] ss:$16 sps:$4 sm:$0xff]   ;;  %v789_v32 = vld [vmem:[%s1118_s1 + $0x104] ss:$16 sps:$4 sm:$0xff]  }
   0xc   :  { %464 = vmatprep.subr.bf16.mxu0 %v759_v12  ;;  %517 = vmatprep.subr.bf16.mxu1 %v761_v13  ;;  %v791_v33 = vld [vmem:[%s1118_s1 + $0x10c] ss:$16 sps:$4 sm:$0xff]   ;;  %v793_v34 = vld [vmem:[%s1118_s1 + $0x100] ss:$16 sps:$4 sm:$0xff]   ;;  %v794_v35 = vld [vmem:[%s1118_s1 + $0x108] ss:$16 sps:$4 sm:$0xff]  }
   0xd   :  { %v795_v36 = vld [vmem:[%s1118_s1 + $0x124] ss:$16 sps:$4 sm:$0xff]   ;;  %v797_v37 = vld [vmem:[%s1118_s1 + $0x12c] ss:$16 sps:$4 sm:$0xff]   ;;  %v799_v38 = vld [vmem:[%s1118_s1 + $0x120] ss:$16 sps:$4 sm:$0xff]  }
   0xe   :  { %v800_v39 = vld [vmem:[%s1118_s1 + $0x128] ss:$16 sps:$4 sm:$0xff]   ;;  %v801_v40 = vld [vmem:[%s1118_s1 + $0x144] ss:$16 sps:$4 sm:$0xff]   ;;  %v803_v41 = vld [vmem:[%s1118_s1 + $0x14c] ss:$16 sps:$4 sm:$0xff]  }
   0xf   :  { %465 = vmatpush1.bf16.msra.mxu0 %v763_v14  ;;  %518 = vmatpush1.bf16.msra.mxu1 %v764_v15  ;;  %v805_v42 = vld [vmem:[%s1118_s1 + $0x140] ss:$16 sps:$4 sm:$0xff]   ;;  %v806_v43 = vld [vmem:[%s1118_s1 + $0x148] ss:$16 sps:$4 sm:$0xff]   ;;  %v807_v44 = vld [vmem:[%s1118_s1 + $0x164] ss:$16 sps:$4 sm:$0xff]  }
  0x10   :  { %466 = vmatprep.subr.bf16.mxu0 %v765_v16  ;;  %519 = vmatprep.subr.bf16.mxu1 %v767_v17  ;;  %v809_v45 = vld [vmem:[%s1118_s1 + $0x16c] ss:$16 sps:$4 sm:$0xff]   ;;  %v811_v46 = vld [vmem:[%s1118_s1 + $0x160] ss:$16 sps:$4 sm:$0xff]   ;;  %v812_v48 = vld [vmem:[%s1118_s1 + $0x168] ss:$16 sps:$4 sm:$0xff]  }
  0x11   :  { %v839_v47 = vld [vmem:[%s1119_s0 + $0x4] ss:$8 sps:$4 sm:$0xff]   ;;  %v817_v51 = vld [vmem:[%s1118_s1 + $0x180] ss:$16 sps:$4 sm:$0xff]   ;;  %v818_v52 = vld [vmem:[%s1118_s1 + $0x188] ss:$16 sps:$4 sm:$0xff]  }
  0x12   :  { %v813_v49 = vld [vmem:[%s1118_s1 + $0x184] ss:$16 sps:$4 sm:$0xff]   ;;  %v815_v50 = vld [vmem:[%s1118_s1 + $0x18c] ss:$16 sps:$4 sm:$0xff]   ;;  %490 = vmatprep.mubr.bf16.mxu0 %v839_v47  ;;  %543 = vmatprep.mubr.bf16.mxu1 %v839_v47  ;;  %v823_v55 = vld [vmem:[%s1118_s1 + $0x1a0] ss:$16 sps:$4 sm:$0xff]  }
  0x13   :  { %467 = vmatpush1.bf16.msra.mxu0 %v769_v18  ;;  %520 = vmatpush1.bf16.msra.mxu1 %v770_v19  ;;  %v819_v53 = vld [vmem:[%s1118_s1 + $0x1a4] ss:$16 sps:$4 sm:$0xff]   ;;  %v821_v54 = vld [vmem:[%s1118_s1 + $0x1ac] ss:$16 sps:$4 sm:$0xff]   ;;  %v824_v56 = vld [vmem:[%s1118_s1 + $0x1a8] ss:$16 sps:$4 sm:$0xff]  }
  0x14   :  { %468 = vmatprep.subr.bf16.mxu0 %v771_v20  ;;  %521 = vmatprep.subr.bf16.mxu1 %v773_v21  ;;  %v825_v57 = vld [vmem:[%s1118_s1 + $0x1c4] ss:$16 sps:$4 sm:$0xff]   ;;  %v827_v58 = vld [vmem:[%s1118_s1 + $0x1cc] ss:$16 sps:$4 sm:$0xff]   ;;  %v829_v59 = vld [vmem:[%s1118_s1 + $0x1c0] ss:$16 sps:$4 sm:$0xff]  }
  0x15   :  { %v830_v60 = vld [vmem:[%s1118_s1 + $0x1c8] ss:$16 sps:$4 sm:$0xff]   ;;  %v831_v61 = vld [vmem:[%s1118_s1 + $0x1e4] ss:$16 sps:$4 sm:$0xff]   ;;  %v833_v62 = vld [vmem:[%s1118_s1 + $0x1ec] ss:$16 sps:$4 sm:$0xff]  }
  0x16   :  { %v835_v63 = vld [vmem:[%s1118_s1 + $0x1e0] ss:$16 sps:$4 sm:$0xff]   ;;  %v836_v0 = vld [vmem:[%s1118_s1 + $0x1e8] ss:$16 sps:$4 sm:$0xff]   ;;  %v840_v2 = vld [vmem:[%s1119_s0 + $0x14] ss:$8 sps:$4 sm:$0xff]  }
  0x17   :  { %469 = vmatpush1.bf16.msra.mxu0 %v775_v22  ;;  %522 = vmatpush1.bf16.msra.mxu1 %v776_v23  ;;  %v837_v1 = vld [vmem:[%s1119_s0] ss:$8 sps:$4 sm:$0xff]   ;;  %v842_v3 = vld [vmem:[%s1119_s0 + $0x10] ss:$8 sps:$4 sm:$0xff]   ;;  %v618_v5 = vshrl.u32 %v617_v4, 7 }
  0x18   :  { %470 = vmatprep.subr.bf16.mxu0 %v777_v24  ;;  %523 = vmatprep.subr.bf16.mxu1 %v779_v25  ;;  %v615_v8 = vld [vmem:[%s1120_s2] sm:$0xf] }
  0x19   :  { %v619_v6 = vsub.s32 0, %v618_v5  ;;  %v627_v7 = vsub.s32 2, %v618_v5  ;;  %v623_v9 = vsub.s32 1, %v618_v5  ;;  %v631_v10 = vsub.s32 3, %v618_v5 }
  0x1b   :  { %471 = vmatpush1.bf16.msra.mxu0 %v781_v26  ;;  %524 = vmatpush1.bf16.msra.mxu1 %v782_v27  ;;  %v620_v11 = vrot.slane %v615_v8, %v619_v6  ;;  %v628_v12 = vrot.slane %v615_v8, %v627_v7  ;;  %v624_v13 = vrot.slane %v615_v8, %v623_v9 }
  0x1c   :  { %472 = vmatprep.subr.bf16.mxu0 %v783_v28  ;;  %525 = vmatprep.subr.bf16.mxu1 %v785_v29  ;;  %v632_v14 = vrot.slane %v615_v8, %v631_v10 }
  0x1f   :  { %473 = vmatpush1.bf16.msra.mxu0 %v787_v30  ;;  %526 = vmatpush1.bf16.msra.mxu1 %v788_v31 }
  0x20   :  { %474 = vmatprep.subr.bf16.mxu0 %v789_v32  ;;  %527 = vmatprep.subr.bf16.mxu1 %v791_v33 }
  0x23   :  { %475 = vmatpush1.bf16.msra.mxu0 %v793_v34  ;;  %528 = vmatpush1.bf16.msra.mxu1 %v794_v35 }
  0x24   :  { %476 = vmatprep.subr.bf16.mxu0 %v795_v36  ;;  %529 = vmatprep.subr.bf16.mxu1 %v797_v37 }
  0x27   :  { %477 = vmatpush1.bf16.msra.mxu0 %v799_v38  ;;  %530 = vmatpush1.bf16.msra.mxu1 %v800_v39 }
  0x28   :  { %478 = vmatprep.subr.bf16.mxu0 %v801_v40  ;;  %531 = vmatprep.subr.bf16.mxu1 %v803_v41 }
  0x2b   :  { %479 = vmatpush1.bf16.msra.mxu0 %v805_v42  ;;  %532 = vmatpush1.bf16.msra.mxu1 %v806_v43 }
  0x2c   :  { %480 = vmatprep.subr.bf16.mxu0 %v807_v44  ;;  %533 = vmatprep.subr.bf16.mxu1 %v809_v45 }
  0x2f   :  { %481 = vmatpush1.bf16.msra.mxu0 %v811_v46  ;;  %534 = vmatpush1.bf16.msra.mxu1 %v812_v48 }
  0x30   :  { %482 = vmatprep.subr.bf16.mxu0 %v813_v49  ;;  %535 = vmatprep.subr.bf16.mxu1 %v815_v50 }
  0x33   :  { %483 = vmatpush1.bf16.msra.mxu0 %v817_v51  ;;  %536 = vmatpush1.bf16.msra.mxu1 %v818_v52 }
  0x34   :  { %484 = vmatprep.subr.bf16.mxu0 %v819_v53  ;;  %537 = vmatprep.subr.bf16.mxu1 %v821_v54 }
  0x37   :  { %485 = vmatpush1.bf16.msra.mxu0 %v823_v55  ;;  %538 = vmatpush1.bf16.msra.mxu1 %v824_v56 }
  0x38   :  { %486 = vmatprep.subr.bf16.mxu0 %v825_v57  ;;  %539 = vmatprep.subr.bf16.mxu1 %v827_v58 }
  0x3b   :  { %487 = vmatpush1.bf16.msra.mxu0 %v829_v59  ;;  %540 = vmatpush1.bf16.msra.mxu1 %v830_v60 }
  0x3c   :  { %488 = vmatprep.subr.bf16.mxu0 %v831_v61  ;;  %541 = vmatprep.subr.bf16.mxu1 %v833_v62 }
  0x3f   :  { %489 = vmatpush1.bf16.msra.mxu0 %v835_v63  ;;  %542 = vmatpush1.bf16.msra.mxu1 %v836_v0 }
  0x42   :  { %491 = vmatmul.mubr.bf16.vlgmr.msra.gmra.mrb[0].mxu0 %v837_v1  ;;  %544 = vmatmul.mubr.bf16.vlgmr.msra.gmra.mrb[0].mxu1 %v837_v1 }
  0x43   :  { %500 = vmatprep.mubr.bf16.mxu0 %v840_v2  ;;  %553 = vmatprep.mubr.bf16.mxu1 %v840_v2 }
  0x4a   :  { %501 = vmatmul.mubr.bf16.gmra.mrb[4].mxu0 %v842_v3  ;;  %554 = vmatmul.mubr.bf16.gmra.mrb[4].mxu1 %v842_v3 }
 0x115   :  { %v492_v15 = vpop.f32.mrb[0].mxu0  ;;  %v545_v16 = vpop.f32.mrb[0].mxu1 }
 0x116   :  { %v637_v17 = vadd.f32 %v620_v11, %v492_v15  ;;  %v639_v18 = vadd.f32 %v628_v12, %v545_v16  ;;  %v494_v19 = vpop.f32.mrb[1].mxu0  ;;  %v547_v20 = vpop.f32.mrb[1].mxu1 }
 0x117   :  { %v638_v21 = vadd.f32 %v624_v13, %v494_v19  ;;  %v640_v22 = vadd.f32 %v632_v14, %v547_v20  ;;  %v496_v23 = vpop.f32.mrb[2].mxu0  ;;  %v549_v24 = vpop.f32.mrb[2].mxu1 }
 0x118   :  { %653 = vst [vmem:[%s1121_s3] sm:$0xff] %v637_v17  ;;  %655 = vst [vmem:[%s1121_s3 + $0x10] sm:$0xff] %v639_v18  ;;  %v641_v25 = vadd.f32 %v620_v11, %v496_v23  ;;  %v643_v26 = vadd.f32 %v628_v12, %v549_v24  ;;  %v498_v27 = vpop.f32.mrb[3].mxu0  ;;  %v551_v28 = vpop.f32.mrb[3].mxu1 }
 0x119   :  { %654 = vst [vmem:[%s1121_s3 + $0x8] sm:$0xff] %v638_v21  ;;  %656 = vst [vmem:[%s1121_s3 + $0x18] sm:$0xff] %v640_v22  ;;  %v642_v29 = vadd.f32 %v624_v13, %v498_v27  ;;  %v644_v30 = vadd.f32 %v632_v14, %v551_v28 }
 0x11a   :  { %657 = vst [vmem:[%s1121_s3 + $0x20] sm:$0xff] %v641_v25  ;;  %659 = vst [vmem:[%s1121_s3 + $0x30] sm:$0xff] %v643_v26 }
 0x11b   :  { %658 = vst [vmem:[%s1121_s3 + $0x28] sm:$0xff] %v642_v29  ;;  %660 = vst [vmem:[%s1121_s3 + $0x38] sm:$0xff] %v644_v30 }
 0x11d   :  { %v502_v31 = vpop.f32.mrb[4].mxu0  ;;  %v555_v32 = vpop.f32.mrb[4].mxu1 }
 0x11e   :  { %v645_v33 = vadd.f32 %v620_v11, %v502_v31  ;;  %v647_v34 = vadd.f32 %v628_v12, %v555_v32  ;;  %v504_v35 = vpop.f32.mrb[5].mxu0  ;;  %v557_v36 = vpop.f32.mrb[5].mxu1 }
 0x11f   :  { %v646_v37 = vadd.f32 %v624_v13, %v504_v35  ;;  %v648_v38 = vadd.f32 %v632_v14, %v557_v36  ;;  %v506_v39 = vpop.f32.mrb[6].mxu0  ;;  %v559_v40 = vpop.f32.mrb[6].mxu1 }
 0x120   :  { %661 = vst [vmem:[%s1121_s3 + $0x40] sm:$0xff] %v645_v33  ;;  %663 = vst [vmem:[%s1121_s3 + $0x50] sm:$0xff] %v647_v34  ;;  %v649_v41 = vadd.f32 %v620_v11, %v506_v39  ;;  %v651_v42 = vadd.f32 %v628_v12, %v559_v40  ;;  %v508_v43 = vpop.f32.mrb[7].mxu0  ;;  %v561_v44 = vpop.f32.mrb[7].mxu1 }
 0x121   :  { %662 = vst [vmem:[%s1121_s3 + $0x48] sm:$0xff] %v646_v37  ;;  %664 = vst [vmem:[%s1121_s3 + $0x58] sm:$0xff] %v648_v38  ;;  %v650_v45 = vadd.f32 %v624_v13, %v508_v43  ;;  %v652_v46 = vadd.f32 %v632_v14, %v561_v44 }
 0x122   :  { %665 = vst [vmem:[%s1121_s3 + $0x60] sm:$0xff] %v649_v41  ;;  %667 = vst [vmem:[%s1121_s3 + $0x70] sm:$0xff] %v651_v42 }
 0x123   :  { %666 = vst [vmem:[%s1121_s3 + $0x68] sm:$0xff] %v650_v45  ;;  %668 = vst [vmem:[%s1121_s3 + $0x78] sm:$0xff] %v652_v46 }

// kernel: closed_call.90
= control target key start
LH: loop header
LB: loop body
LE: loop exit
PB: predicated region body
PF: predicated region fallthrough
CT: control target
= control target key end

     0   :  { %s2611_s21 = smov 0   ;;  %s2613_s22 = smov 0   ;;  %s3113_s0 = inlined_call_operand.vmem [shape: bf16[32,4608], index: 0, kind: input, shape index: {}]   ;;  %s3114_s1 = inlined_call_operand.vmem [shape: bf16[4608,512], index: 1, kind: input, shape index: {}]   ;;  %s3115_s2 = inlined_call_operand.vmem [shape: f32[1,512], index: 2, kind: input, shape index: {}]   ;;  %s3116_s3 = inlined_call_operand.vmem [shape: f32[32,512], index: 3, kind: input, shape index: {}]   ;;  %s3117_s4 = inlined_call_operand.vmem [shape: f32[32,512], index: 4, kind: input, shape index: {}]   ;;  %s3118_s5 = inlined_call_operand.vmem [shape: bf16[32,512], index: 5, kind: output, shape index: {0}]   ;;  %s3119_s6 = inlined_call_operand.vmem [shape: f32[32,512], index: 6, kind: output, shape index: {1}]  }
   0x1   :  { %s2615_s23 = smov 0   ;;  %s2617_s24 = smov 0  }
   0x2   :  { %s2619_s25 = smov 0  }
   0x3 LB: > { %s29_s26 = sadd.s32 1, %s2568_s24  ;;  %p52_p1 = scmp.ne.s32.totalorder %s2560_s22, %s2556_s21  ;;  %s2572_s25 = sphi %s2619_s25, %s17_s25   ;;  %s2568_s24 = sphi %s2617_s24, %s3123_s24   ;;  %s2564_s23 = sphi %s2615_s23, %s3122_s23   ;;  %s2560_s22 = sphi %s2613_s22, %s3121_s22   ;;  %s2556_s21 = sphi %s2611_s21, %s3120_s21  }
   0x4   : > { %p30_p0 = scmp.ge.s32.totalorder %s29_s26, 9  ;;  %p53_p2 = scmp.eq.s32.totalorder %s2572_s25, 0 }
   0x5   : > { %s45_s28 = sadd.s32 1, %s2560_s22  ;;  %p2085_p5 = scmp.ge.s32.totalorder %s2572_s25, 9 }
   0x6   : > { %s3125_s26 = smov (%p30_p0, %s29_s26), 0  ;;  %p54_p3 = por %p53_p2, %p52_p1 }
   0x7   : > { %s41_s27 = ssub.s32 %s2568_s24, %s3125_s26  ;;  %282 = sbr.rel (%p2085_p5) target bundleno = 22 (0x16), region = 28 }
   0x8   : > { %p43_p4 = scmp.eq.s32.totalorder %s41_s27, 0 }
   0xa   : > { %s2646_s29 = scalar_select %p43_p4, %s2560_s22, %s45_s28  }
   0xe   : > { %285 = sbr.rel (!%p54_p3) target bundleno = 22 (0x16), region = 32  ;;  %s287_s30 = sand.u32 (%p54_p3), 1, %s2560_s22  }
   0xf   : > { %s2262_s7 = sshll.u32 (%p54_p3), %s2568_s24, 4  ;;  %s2086_s8 = sshll.u32 (%p54_p3), %s287_s30, 6 }
  0x10   : > { %s295_s11 = scalar_lea.vmem (%p54_p3), %s3113_s0, %s2262_s7  ;;  %s289_s12 = scalar_lea.vmem (%p54_p3), [#allocation3], %s2086_s8 }
  0x11   : > { %v308_v0 = vld [vmem:[%s295_s11] sm:$0xff] (%p54_p3)  ;;  %v310_v1 = vld [vmem:[%s295_s11 + $0x8] sm:$0xff] (%p54_p3)  ;;  %v312_v2 = vld [vmem:[%s295_s11 + $0x90] sm:$0xff] (%p54_p3) }
  0x12   : > { %309 = vst [vmem:[%s289_s12] sm:$0xff] (%p54_p3), %v308_v0  ;;  %311 = vst [vmem:[%s289_s12 + $0x8] sm:$0xff] (%p54_p3), %v310_v1  ;;  %v314_v3 = vld [vmem:[%s295_s11 + $0x98] sm:$0xff] (%p54_p3)  ;;  %v316_v4 = vld [vmem:[%s295_s11 + $0x120] sm:$0xff] (%p54_p3) }
  0x13   : > { %313 = vst [vmem:[%s289_s12 + $0x10] sm:$0xff] (%p54_p3), %v312_v2  ;;  %v318_v5 = vld [vmem:[%s295_s11 + $0x128] sm:$0xff] (%p54_p3)  ;;  %315 = vst [vmem:[%s289_s12 + $0x18] sm:$0xff] (%p54_p3), %v314_v3  ;;  %v320_v6 = vld [vmem:[%s295_s11 + $0x1b0] sm:$0xff] (%p54_p3) }
  0x14   : > { %317 = vst [vmem:[%s289_s12 + $0x20] sm:$0xff] (%p54_p3), %v316_v4  ;;  %319 = vst [vmem:[%s289_s12 + $0x28] sm:$0xff] (%p54_p3), %v318_v5  ;;  %v322_v7 = vld [vmem:[%s295_s11 + $0x1b8] sm:$0xff] (%p54_p3) }
  0x15   : > { %321 = vst [vmem:[%s289_s12 + $0x30] sm:$0xff] %v320_v6  ;;  %323 = vst [vmem:[%s289_s12 + $0x38] sm:$0xff] %v322_v7 }
  0x16 PF: > { %p2089_p6 = scmp.ge.s32.totalorder %s2572_s25, 1  ;;  %p343_p7 = scmp.lt.s32.totalorder %s2572_s25, 10 }
  0x18   : > { %p344_p8 = pnand %p2089_p6, %p343_p7 }
  0x19   : > { %s350_s13 = sand.u32 (!%p344_p8), 1, %s2556_s21   ;;  %s2091_s14 = sshll.u32 (!%p344_p8), %s2564_s23, 6 }
  0x1a   : > { %347 = sbr.rel (%p344_p8) target bundleno = 430 (0x1ae), region = 59  ;;  %s2090_s15 = sshll.u32 (!%p344_p8), %s350_s13, 6 }
  0x1b   : > { %p432_p9 = scmp.lt.s32.totalorder (!%p344_p8), %s2091_s14, 575  ;;  %s2663_s20 = scalar_lea.vmem (!%p344_p8), [#allocation3], %s2090_s15 }
  0x1c   : > { %p2094_p10 = scmp.ne.s32.totalorder (!%p344_p8), %s2564_s23, 0 }
  0x21   : > { %s3127_s14 = smov (!%p432_p9, %s2091_s14), 575  ;;  %498 = sbr.rel (%p2094_p10) target bundleno = 43 (0x2b), region = 67 }
  0x22   : > { %s2263_s16 = sshll.u32 %s3127_s14, 4  ;;  %v2574_v8 = vmov (!%p2094_p10), 0.0  }
  0x23   : > { %s2661_s19 = scalar_lea.vmem %s3114_s1, %s2263_s16  ;;  %499 = vst [vmem:[#allocation2] sm:$0xff] (!%p2094_p10), %v2574_v8  ;;  %500 = vst [vmem:[#allocation2 + $0x8] sm:$0xff] (!%p2094_p10), %v2574_v8 }
  0x24   : > { %501 = vst [vmem:[#allocation2 + $0x10] sm:$0xff] (!%p2094_p10), %v2574_v8  ;;  %502 = vst [vmem:[#allocation2 + $0x18] sm:$0xff] (!%p2094_p10), %v2574_v8 }
  0x25   : > { %503 = vst [vmem:[#allocation2 + $0x20] sm:$0xff] (!%p2094_p10), %v2574_v8  ;;  %504 = vst [vmem:[#allocation2 + $0x28] sm:$0xff] (!%p2094_p10), %v2574_v8 }
  0x26   : > { %505 = vst [vmem:[#allocation2 + $0x30] sm:$0xff] (!%p2094_p10), %v2574_v8  ;;  %506 = vst [vmem:[#allocation2 + $0x38] sm:$0xff] (!%p2094_p10), %v2574_v8 }
  0x27   : > { %507 = vst [vmem:[#allocation2 + $0x40] sm:$0xff] (!%p2094_p10), %v2574_v8  ;;  %508 = vst [vmem:[#allocation2 + $0x48] sm:$0xff] (!%p2094_p10), %v2574_v8 }
  0x28   : > { %509 = vst [vmem:[#allocation2 + $0x50] sm:$0xff] %v2574_v8  ;;  %510 = vst [vmem:[#allocation2 + $0x58] sm:$0xff] %v2574_v8 }
  0x29   : > { %511 = vst [vmem:[#allocation2 + $0x60] sm:$0xff] %v2574_v8  ;;  %512 = vst [vmem:[#allocation2 + $0x68] sm:$0xff] %v2574_v8 }
  0x2a   : > { %513 = vst [vmem:[#allocation2 + $0x70] sm:$0xff] %v2574_v8  ;;  %514 = vst [vmem:[#allocation2 + $0x78] sm:$0xff] %v2574_v8 }
  0x2b PF: > { %v2330_v9 = vld [vmem:[%s2661_s19 + $0x4] ss:$16 sps:$4 sm:$0xff]   ;;  %v2332_v10 = vld [vmem:[%s2661_s19 + $0xc] ss:$16 sps:$4 sm:$0xff]   ;;  %v2334_v11 = vld [vmem:[%s2661_s19] ss:$16 sps:$4 sm:$0xff]  }
  0x2c   : > { %1347 = vmatprep.subr.bf16.mxu0 %v2330_v9  ;;  %v2335_v12 = vld [vmem:[%s2661_s19 + $0x8] ss:$16 sps:$4 sm:$0xff]   ;;  %1453 = vmatprep.subr.bf16.mxu1 %v2332_v10  ;;  %v2336_v13 = vld [vmem:[%s2661_s19 + $0x24] ss:$16 sps:$4 sm:$0xff]   ;;  %v2338_v14 = vld [vmem:[%s2661_s19 + $0x2c] ss:$16 sps:$4 sm:$0xff]  }
  0x2d   : > { %1348 = vmatpush1.bf16.msra.mxu0 %v2334_v11  ;;  %1454 = vmatpush1.bf16.msra.mxu1 %v2335_v12  ;;  %v2340_v15 = vld [vmem:[%s2661_s19 + $0x20] ss:$16 sps:$4 sm:$0xff]   ;;  %v2341_v16 = vld [vmem:[%s2661_s19 + $0x28] ss:$16 sps:$4 sm:$0xff]   ;;  %v2342_v17 = vld [vmem:[%s2661_s19 + $0x44] ss:$16 sps:$4 sm:$0xff]  }
  0x2e   : > { %1349 = vmatprep.subr.bf16.mxu0 %v2336_v13  ;;  %1455 = vmatprep.subr.bf16.mxu1 %v2338_v14  ;;  %v2344_v18 = vld [vmem:[%s2661_s19 + $0x4c] ss:$16 sps:$4 sm:$0xff]   ;;  %v2346_v19 = vld [vmem:[%s2661_s19 + $0x40] ss:$16 sps:$4 sm:$0xff]   ;;  %v2347_v20 = vld [vmem:[%s2661_s19 + $0x48] ss:$16 sps:$4 sm:$0xff]  }
  0x2f   : > { %v2348_v21 = vld [vmem:[%s2661_s19 + $0x64] ss:$16 sps:$4 sm:$0xff]   ;;  %v2350_v22 = vld [vmem:[%s2661_s19 + $0x6c] ss:$16 sps:$4 sm:$0xff]   ;;  %v2352_v23 = vld [vmem:[%s2661_s19 + $0x60] ss:$16 sps:$4 sm:$0xff]  }
  0x30   : > { %v2353_v24 = vld [vmem:[%s2661_s19 + $0x68] ss:$16 sps:$4 sm:$0xff]   ;;  %v2354_v25 = vld [vmem:[%s2661_s19 + $0x84] ss:$16 sps:$4 sm:$0xff]   ;;  %v2356_v26 = vld [vmem:[%s2661_s19 + $0x8c] ss:$16 sps:$4 sm:$0xff]  }
  0x31   : > { %1350 = vmatpush1.bf16.msra.mxu0 %v2340_v15  ;;  %1456 = vmatpush1.bf16.msra.mxu1 %v2341_v16  ;;  %v2358_v27 = vld [vmem:[%s2661_s19 + $0x80] ss:$16 sps:$4 sm:$0xff]   ;;  %v2359_v28 = vld [vmem:[%s2661_s19 + $0x88] ss:$16 sps:$4 sm:$0xff]   ;;  %v2360_v29 = vld [vmem:[%s2661_s19 + $0xa4] ss:$16 sps:$4 sm:$0xff]  }
  0x32   : > { %1351 = vmatprep.subr.bf16.mxu0 %v2342_v17  ;;  %1457 = vmatprep.subr.bf16.mxu1 %v2344_v18  ;;  %v2362_v30 = vld [vmem:[%s2661_s19 + $0xac] ss:$16 sps:$4 sm:$0xff]   ;;  %v2364_v31 = vld [vmem:[%s2661_s19 + $0xa0] ss:$16 sps:$4 sm:$0xff]   ;;  %v2365_v32 = vld [vmem:[%s2661_s19 + $0xa8] ss:$16 sps:$4 sm:$0xff]  }
  0x33   : > { %v2366_v33 = vld [vmem:[%s2661_s19 + $0xc4] ss:$16 sps:$4 sm:$0xff]   ;;  %v2368_v34 = vld [vmem:[%s2661_s19 + $0xcc] ss:$16 sps:$4 sm:$0xff]   ;;  %v2370_v35 = vld [vmem:[%s2661_s19 + $0xc0] ss:$16 sps:$4 sm:$0xff]  }
  0x34   : > { %v2371_v36 = vld [vmem:[%s2661_s19 + $0xc8] ss:$16 sps:$4 sm:$0xff]   ;;  %v2372_v37 = vld [vmem:[%s2661_s19 + $0xe4] ss:$16 sps:$4 sm:$0xff]   ;;  %v2374_v38 = vld [vmem:[%s2661_s19 + $0xec] ss:$16 sps:$4 sm:$0xff]  }
  0x35   : > { %1352 = vmatpush1.bf16.msra.mxu0 %v2346_v19  ;;  %1458 = vmatpush1.bf16.msra.mxu1 %v2347_v20  ;;  %v2376_v39 = vld [vmem:[%s2661_s19 + $0xe0] ss:$16 sps:$4 sm:$0xff]   ;;  %v2377_v40 = vld [vmem:[%s2661_s19 + $0xe8] ss:$16 sps:$4 sm:$0xff]   ;;  %v2378_v41 = vld [vmem:[%s2661_s19 + $0x104] ss:$16 sps:$4 sm:$0xff]  }
  0x36   : > { %1353 = vmatprep.subr.bf16.mxu0 %v2348_v21  ;;  %1459 = vmatprep.subr.bf16.mxu1 %v2350_v22  ;;  %v2380_v42 = vld [vmem:[%s2661_s19 + $0x10c] ss:$16 sps:$4 sm:$0xff]   ;;  %v2382_v43 = vld [vmem:[%s2661_s19 + $0x100] ss:$16 sps:$4 sm:$0xff]   ;;  %v2383_v44 = vld [vmem:[%s2661_s19 + $0x108] ss:$16 sps:$4 sm:$0xff]  }
  0x37   : > { %v2384_v45 = vld [vmem:[%s2661_s19 + $0x124] ss:$16 sps:$4 sm:$0xff]   ;;  %v2386_v46 = vld [vmem:[%s2661_s19 + $0x12c] ss:$16 sps:$4 sm:$0xff]   ;;  %v2388_v47 = vld [vmem:[%s2661_s19 + $0x120] ss:$16 sps:$4 sm:$0xff]  }
  0x38   : > { %v2389_v48 = vld [vmem:[%s2661_s19 + $0x128] ss:$16 sps:$4 sm:$0xff]   ;;  %v2390_v49 = vld [vmem:[%s2661_s19 + $0x144] ss:$16 sps:$4 sm:$0xff]   ;;  %v2392_v50 = vld [vmem:[%s2661_s19 + $0x14c] ss:$16 sps:$4 sm:$0xff]  }
  0x39   : > { %1354 = vmatpush1.bf16.msra.mxu0 %v2352_v23  ;;  %1460 = vmatpush1.bf16.msra.mxu1 %v2353_v24  ;;  %v2394_v51 = vld [vmem:[%s2661_s19 + $0x140] ss:$16 sps:$4 sm:$0xff]   ;;  %v2395_v52 = vld [vmem:[%s2661_s19 + $0x148] ss:$16 sps:$4 sm:$0xff]   ;;  %v2396_v53 = vld [vmem:[%s2661_s19 + $0x164] ss:$16 sps:$4 sm:$0xff]  }
  0x3a   : > { %1355 = vmatprep.subr.bf16.mxu0 %v2354_v25  ;;  %1461 = vmatprep.subr.bf16.mxu1 %v2356_v26  ;;  %v2398_v54 = vld [vmem:[%s2661_s19 + $0x16c] ss:$16 sps:$4 sm:$0xff]   ;;  %v2400_v55 = vld [vmem:[%s2661_s19 + $0x160] ss:$16 sps:$4 sm:$0xff]   ;;  %v2401_v56 = vld [vmem:[%s2661_s19 + $0x168] ss:$16 sps:$4 sm:$0xff]  }
  0x3b   : > { %v2428_v57 = vld [vmem:[%s2663_s20 + $0x4] ss:$16 sps:$4 sm:$0xff]   ;;  %v2404_v59 = vld [vmem:[%s2661_s19 + $0x18c] ss:$16 sps:$4 sm:$0xff]   ;;  %v2406_v60 = vld [vmem:[%s2661_s19 + $0x180] ss:$16 sps:$4 sm:$0xff]  }
  0x3c   : > { %v2402_v58 = vld [vmem:[%s2661_s19 + $0x184] ss:$16 sps:$4 sm:$0xff]   ;;  %1379 = vmatprep.mubr.bf16.mxu0 %v2428_v57  ;;  %1485 = vmatprep.mubr.bf16.mxu1 %v2428_v57  ;;  %v2407_v61 = vld [vmem:[%s2661_s19 + $0x188] ss:$16 sps:$4 sm:$0xff]   ;;  %v2410_v63 = vld [vmem:[%s2661_s19 + $0x1ac] ss:$16 sps:$4 sm:$0xff]  }
  0x3d   : > { %1356 = vmatpush1.bf16.msra.mxu0 %v2358_v27  ;;  %1462 = vmatpush1.bf16.msra.mxu1 %v2359_v28  ;;  %v2408_v62 = vld [vmem:[%s2661_s19 + $0x1a4] ss:$16 sps:$4 sm:$0xff]   ;;  %v2412_v0 = vld [vmem:[%s2661_s19 + $0x1a0] ss:$16 sps:$4 sm:$0xff]   ;;  %v2413_v1 = vld [vmem:[%s2661_s19 + $0x1a8] ss:$16 sps:$4 sm:$0xff]  }
  0x3e   : > { %1357 = vmatprep.subr.bf16.mxu0 %v2360_v29  ;;  %1463 = vmatprep.subr.bf16.mxu1 %v2362_v30  ;;  %v2414_v2 = vld [vmem:[%s2661_s19 + $0x1c4] ss:$16 sps:$4 sm:$0xff]   ;;  %v2416_v3 = vld [vmem:[%s2661_s19 + $0x1cc] ss:$16 sps:$4 sm:$0xff]   ;;  %v2418_v4 = vld [vmem:[%s2661_s19 + $0x1c0] ss:$16 sps:$4 sm:$0xff]  }
  0x3f   : > { %v2419_v5 = vld [vmem:[%s2661_s19 + $0x1c8] ss:$16 sps:$4 sm:$0xff]   ;;  %v2420_v6 = vld [vmem:[%s2661_s19 + $0x1e4] ss:$16 sps:$4 sm:$0xff]   ;;  %v2422_v7 = vld [vmem:[%s2661_s19 + $0x1ec] ss:$16 sps:$4 sm:$0xff]  }
  0x40   : > { %v2424_v8 = vld [vmem:[%s2661_s19 + $0x1e0] ss:$16 sps:$4 sm:$0xff]   ;;  %v2425_v9 = vld [vmem:[%s2661_s19 + $0x1e8] ss:$16 sps:$4 sm:$0xff]   ;;  %v2431_v10 = vld [vmem:[%s2661_s19 + $0x204] ss:$16 sps:$4 sm:$0xff]  }
  0x41   : > { %1358 = vmatpush1.bf16.msra.mxu0 %v2364_v31  ;;  %1464 = vmatpush1.bf16.msra.mxu1 %v2365_v32  ;;  %v2434_v11 = vld [vmem:[%s2661_s19 + $0x20c] ss:$16 sps:$4 sm:$0xff]   ;;  %v2426_v12 = vld [vmem:[%s2663_s20] ss:$16 sps:$4 sm:$0xff]   ;;  %v2432_v14 = vld [vmem:[%s2661_s19 + $0x208] ss:$16 sps:$4 sm:$0xff]  }
  0x42   : > { %1359 = vmatprep.subr.bf16.mxu0 %v2366_v33  ;;  %1465 = vmatprep.subr.bf16.mxu1 %v2368_v34  ;;  %v2429_v13 = vld [vmem:[%s2661_s19 + $0x200] ss:$16 sps:$4 sm:$0xff]   ;;  %v2437_v15 = vld [vmem:[%s2661_s19 + $0x224] ss:$16 sps:$4 sm:$0xff]   ;;  %v2440_v16 = vld [vmem:[%s2661_s19 + $0x22c] ss:$16 sps:$4 sm:$0xff]  }
  0x43   : > { %v2435_v17 = vld [vmem:[%s2661_s19 + $0x220] ss:$16 sps:$4 sm:$0xff]   ;;  %v2438_v18 = vld [vmem:[%s2661_s19 + $0x228] ss:$16 sps:$4 sm:$0xff]   ;;  %v2443_v19 = vld [vmem:[%s2661_s19 + $0x244] ss:$16 sps:$4 sm:$0xff]  }
  0x44   : > { %v2446_v20 = vld [vmem:[%s2661_s19 + $0x24c] ss:$16 sps:$4 sm:$0xff]   ;;  %v2441_v21 = vld [vmem:[%s2661_s19 + $0x240] ss:$16 sps:$4 sm:$0xff]   ;;  %v2444_v22 = vld [vmem:[%s2661_s19 + $0x248] ss:$16 sps:$4 sm:$0xff]  }
  0x45   : > { %1360 = vmatpush1.bf16.msra.mxu0 %v2370_v35  ;;  %1466 = vmatpush1.bf16.msra.mxu1 %v2371_v36  ;;  %v2449_v23 = vld [vmem:[%s2661_s19 + $0x264] ss:$16 sps:$4 sm:$0xff]   ;;  %v2452_v24 = vld [vmem:[%s2661_s19 + $0x26c] ss:$16 sps:$4 sm:$0xff]   ;;  %v2447_v25 = vld [vmem:[%s2661_s19 + $0x260] ss:$16 sps:$4 sm:$0xff]  }
  0x46   : > { %1361 = vmatprep.subr.bf16.mxu0 %v2372_v37  ;;  %1467 = vmatprep.subr.bf16.mxu1 %v2374_v38  ;;  %v2450_v26 = vld [vmem:[%s2661_s19 + $0x268] ss:$16 sps:$4 sm:$0xff]   ;;  %v2455_v27 = vld [vmem:[%s2661_s19 + $0x284] ss:$16 sps:$4 sm:$0xff]   ;;  %v2458_v28 = vld [vmem:[%s2661_s19 + $0x28c] ss:$16 sps:$4 sm:$0xff]  }
  0x47   : > { %v2453_v29 = vld [vmem:[%s2661_s19 + $0x280] ss:$16 sps:$4 sm:$0xff]   ;;  %v2456_v30 = vld [vmem:[%s2661_s19 + $0x288] ss:$16 sps:$4 sm:$0xff]   ;;  %v2461_v31 = vld [vmem:[%s2661_s19 + $0x2a4] ss:$16 sps:$4 sm:$0xff]  }
  0x48   : > { %v2464_v32 = vld [vmem:[%s2661_s19 + $0x2ac] ss:$16 sps:$4 sm:$0xff]   ;;  %v2459_v33 = vld [vmem:[%s2661_s19 + $0x2a0] ss:$16 sps:$4 sm:$0xff]   ;;  %v2513_v34 = vld [vmem:[%s2663_s20 + $0x24] ss:$16 sps:$4 sm:$0xff]  }
  0x49   : > { %1362 = vmatpush1.bf16.msra.mxu0 %v2376_v39  ;;  %1468 = vmatpush1.bf16.msra.mxu1 %v2377_v40  ;;  %v2462_v35 = vld [vmem:[%s2661_s19 + $0x2a8] ss:$16 sps:$4 sm:$0xff]   ;;  %v2515_v36 = vld [vmem:[%s2663_s20 + $0x20] ss:$16 sps:$4 sm:$0xff]   ;;  %v2467_v37 = vld [vmem:[%s2661_s19 + $0x2c4] ss:$16 sps:$4 sm:$0xff]  }
  0x4a   : > { %1363 = vmatprep.subr.bf16.mxu0 %v2378_v41  ;;  %1469 = vmatprep.subr.bf16.mxu1 %v2380_v42  ;;  %v2470_v38 = vld [vmem:[%s2661_s19 + $0x2cc] ss:$16 sps:$4 sm:$0xff]   ;;  %v2465_v39 = vld [vmem:[%s2661_s19 + $0x2c0] ss:$16 sps:$4 sm:$0xff]   ;;  %v2468_v40 = vld [vmem:[%s2661_s19 + $0x2c8] ss:$16 sps:$4 sm:$0xff]  }
  0x4b   : > { %v2473_v41 = vld [vmem:[%s2661_s19 + $0x2e4] ss:$16 sps:$4 sm:$0xff]   ;;  %v2476_v42 = vld [vmem:[%s2661_s19 + $0x2ec] ss:$16 sps:$4 sm:$0xff]   ;;  %v2492_v57 = vld [vmem:[%s2661_s19 + $0x348] ss:$16 sps:$4 sm:$0xff]  }
  0x4c   : > { %p2231_p11 = scmp.ne.s32.totalorder %s2564_s23, 8 }
  0x4d   : > { %1364 = vmatpush1.bf16.msra.mxu0 %v2382_v43  ;;  %1470 = vmatpush1.bf16.msra.mxu1 %v2383_v44  ;;  %v2530_v43 = vld [vmem:[%s2663_s20 + $0xc] ss:$16 sps:$4 sm:$0xff]   ;;  %v2471_v44 = vld [vmem:[%s2661_s19 + $0x2e0] ss:$16 sps:$4 sm:$0xff]  }
  0x4e   : > { %1365 = vmatprep.subr.bf16.mxu0 %v2384_v45  ;;  %1471 = vmatprep.subr.bf16.mxu1 %v2386_v46  ;;  %v2474_v45 = vld [vmem:[%s2661_s19 + $0x2e8] ss:$16 sps:$4 sm:$0xff]   ;;  %v2479_v46 = vld [vmem:[%s2661_s19 + $0x304] ss:$16 sps:$4 sm:$0xff]  }
  0x51   : > { %1366 = vmatpush1.bf16.msra.mxu0 %v2388_v47  ;;  %1472 = vmatpush1.bf16.msra.mxu1 %v2389_v48  ;;  %v2482_v47 = vld [vmem:[%s2661_s19 + $0x30c] ss:$16 sps:$4 sm:$0xff]   ;;  %v2477_v48 = vld [vmem:[%s2661_s19 + $0x300] ss:$16 sps:$4 sm:$0xff]  }
  0x52   : > { %1367 = vmatprep.subr.bf16.mxu0 %v2390_v49  ;;  %1473 = vmatprep.subr.bf16.mxu1 %v2392_v50  ;;  %v2480_v49 = vld [vmem:[%s2661_s19 + $0x308] ss:$16 sps:$4 sm:$0xff]   ;;  %v2485_v50 = vld [vmem:[%s2661_s19 + $0x324] ss:$16 sps:$4 sm:$0xff]  }
  0x55   : > { %1368 = vmatpush1.bf16.msra.mxu0 %v2394_v51  ;;  %1474 = vmatpush1.bf16.msra.mxu1 %v2395_v52  ;;  %v2488_v51 = vld [vmem:[%s2661_s19 + $0x32c] ss:$16 sps:$4 sm:$0xff]   ;;  %v2483_v52 = vld [vmem:[%s2661_s19 + $0x320] ss:$16 sps:$4 sm:$0xff]  }
  0x56   : > { %1369 = vmatprep.subr.bf16.mxu0 %v2396_v53  ;;  %1475 = vmatprep.subr.bf16.mxu1 %v2398_v54  ;;  %v2486_v53 = vld [vmem:[%s2661_s19 + $0x328] ss:$16 sps:$4 sm:$0xff]   ;;  %v2491_v54 = vld [vmem:[%s2661_s19 + $0x344] ss:$16 sps:$4 sm:$0xff]  }
  0x59   : > { %1370 = vmatpush1.bf16.msra.mxu0 %v2400_v55  ;;  %1476 = vmatpush1.bf16.msra.mxu1 %v2401_v56  ;;  %v2494_v55 = vld [vmem:[%s2661_s19 + $0x34c] ss:$16 sps:$4 sm:$0xff]   ;;  %v2489_v56 = vld [vmem:[%s2661_s19 + $0x340] ss:$16 sps:$4 sm:$0xff]  }
  0x5a   : > { %1371 = vmatprep.subr.bf16.mxu0 %v2402_v58  ;;  %1477 = vmatprep.subr.bf16.mxu1 %v2404_v59  ;;  %v2497_v58 = vld [vmem:[%s2661_s19 + $0x364] ss:$16 sps:$4 sm:$0xff]   ;;  %v2500_v59 = vld [vmem:[%s2661_s19 + $0x36c] ss:$16 sps:$4 sm:$0xff]  }
  0x5d   : > { %1372 = vmatpush1.bf16.msra.mxu0 %v2406_v60  ;;  %1478 = vmatpush1.bf16.msra.mxu1 %v2407_v61  ;;  %v2495_v60 = vld [vmem:[%s2661_s19 + $0x360] ss:$16 sps:$4 sm:$0xff]   ;;  %v2498_v61 = vld [vmem:[%s2661_s19 + $0x368] ss:$16 sps:$4 sm:$0xff]  }
  0x5e   : > { %1373 = vmatprep.subr.bf16.mxu0 %v2408_v62  ;;  %1479 = vmatprep.subr.bf16.mxu1 %v2410_v63  ;;  %v2503_v62 = vld [vmem:[%s2661_s19 + $0x384] ss:$16 sps:$4 sm:$0xff]   ;;  %v2506_v63 = vld [vmem:[%s2661_s19 + $0x38c] ss:$16 sps:$4 sm:$0xff]  }
  0x61   : > { %1374 = vmatpush1.bf16.msra.mxu0 %v2412_v0  ;;  %1480 = vmatpush1.bf16.msra.mxu1 %v2413_v1  ;;  %v2501_v0 = vld [vmem:[%s2661_s19 + $0x380] ss:$16 sps:$4 sm:$0xff]   ;;  %v2504_v1 = vld [vmem:[%s2661_s19 + $0x388] ss:$16 sps:$4 sm:$0xff]  }
  0x62   : > { %1375 = vmatprep.subr.bf16.mxu0 %v2414_v2  ;;  %1481 = vmatprep.subr.bf16.mxu1 %v2416_v3  ;;  %v2509_v2 = vld [vmem:[%s2661_s19 + $0x3a4] ss:$16 sps:$4 sm:$0xff]   ;;  %v2512_v3 = vld [vmem:[%s2661_s19 + $0x3ac] ss:$16 sps:$4 sm:$0xff]  }
  0x65   : > { %1376 = vmatpush1.bf16.msra.mxu0 %v2418_v4  ;;  %1482 = vmatpush1.bf16.msra.mxu1 %v2419_v5  ;;  %v2507_v4 = vld [vmem:[%s2661_s19 + $0x3a0] ss:$16 sps:$4 sm:$0xff]   ;;  %v2510_v5 = vld [vmem:[%s2661_s19 + $0x3a8] ss:$16 sps:$4 sm:$0xff]  }
  0x66   : > { %1377 = vmatprep.subr.bf16.mxu0 %v2420_v6  ;;  %1483 = vmatprep.subr.bf16.mxu1 %v2422_v7  ;;  %v2518_v6 = vld [vmem:[%s2661_s19 + $0x3c4] ss:$16 sps:$4 sm:$0xff]   ;;  %v2521_v7 = vld [vmem:[%s2661_s19 + $0x3cc] ss:$16 sps:$4 sm:$0xff]  }
  0x69   : > { %1378 = vmatpush1.bf16.msra.mxu0 %v2424_v8  ;;  %1484 = vmatpush1.bf16.msra.mxu1 %v2425_v9  ;;  %v2516_v8 = vld [vmem:[%s2661_s19 + $0x3c0] ss:$16 sps:$4 sm:$0xff]   ;;  %v2519_v9 = vld [vmem:[%s2661_s19 + $0x3c8] ss:$16 sps:$4 sm:$0xff]  }
  0x6a   : > { %1400 = vmatprep.subr.bf16.mxu0 %v2431_v10  ;;  %1506 = vmatprep.subr.bf16.mxu1 %v2434_v11  ;;  %v2524_v10 = vld [vmem:[%s2661_s19 + $0x3e4] ss:$16 sps:$4 sm:$0xff]   ;;  %v2527_v11 = vld [vmem:[%s2661_s19 + $0x3ec] ss:$16 sps:$4 sm:$0xff]  }
  0x6c   : > { %1380 = vmatmul.mubr.bf16.vlgmr.msra.gmra.mrb[0].mxu0 %v2426_v12  ;;  %1486 = vmatmul.mubr.bf16.vlgmr.msra.gmra.mrb[0].mxu1 %v2426_v12  ;;  %v2522_v12 = vld [vmem:[%s2661_s19 + $0x3e0] ss:$16 sps:$4 sm:$0xff]  }
  0x6d   : > { %1401 = vmatpush1.bf16.msra.mxu0 %v2429_v13  ;;  %1507 = vmatpush1.bf16.msra.mxu1 %v2432_v14  ;;  %v2525_v13 = vld [vmem:[%s2661_s19 + $0x3e8] ss:$16 sps:$4 sm:$0xff]  }
  0x6e   : > { %1402 = vmatprep.subr.bf16.mxu0 %v2437_v15  ;;  %1508 = vmatprep.subr.bf16.mxu1 %v2440_v16  ;;  %v2528_v14 = vld [vmem:[%s2663_s20 + $0x8] ss:$16 sps:$4 sm:$0xff]   ;;  %v2531_v15 = vld [vmem:[%s2663_s20 + $0x2c] ss:$16 sps:$4 sm:$0xff]  }
  0x6f   : > { %1389 = vmatprep.mubr.bf16.mxu0 %v2513_v34  ;;  %1495 = vmatprep.mubr.bf16.mxu1 %v2513_v34  ;;  %v2533_v16 = vld [vmem:[%s2663_s20 + $0x28] ss:$16 sps:$4 sm:$0xff]  }
  0x71   : > { %1403 = vmatpush1.bf16.msra.mxu0 %v2435_v17  ;;  %1509 = vmatpush1.bf16.msra.mxu1 %v2438_v18  ;;  %v515_v17 = vld [vmem:[#allocation2] sm:$0xff]  ;;  %v517_v18 = vld [vmem:[#allocation2 + $0x10] sm:$0xff] }
  0x72   : > { %1404 = vmatprep.subr.bf16.mxu0 %v2443_v19  ;;  %1510 = vmatprep.subr.bf16.mxu1 %v2446_v20  ;;  %v516_v19 = vld [vmem:[#allocation2 + $0x8] sm:$0xff]  ;;  %v518_v20 = vld [vmem:[#allocation2 + $0x18] sm:$0xff] }
  0x74   : > { %1390 = vmatmul.mubr.bf16.gmra.mrb[4].mxu0 %v2515_v36  ;;  %1496 = vmatmul.mubr.bf16.gmra.mrb[4].mxu1 %v2515_v36 }
  0x75   : > { %1405 = vmatpush1.bf16.msra.mxu0 %v2441_v21  ;;  %1511 = vmatpush1.bf16.msra.mxu1 %v2444_v22 }
  0x76   : > { %1406 = vmatprep.subr.bf16.mxu0 %v2449_v23  ;;  %1512 = vmatprep.subr.bf16.mxu1 %v2452_v24  ;;  %v519_v23 = vld [vmem:[#allocation2 + $0x20] sm:$0xff]  ;;  %v521_v24 = vld [vmem:[#allocation2 + $0x30] sm:$0xff] }
  0x77   : > { %1432 = vmatprep.mubr.bf16.mxu0 %v2530_v43  ;;  %1538 = vmatprep.mubr.bf16.mxu1 %v2530_v43  ;;  %v524_v43 = vld [vmem:[#allocation2 + $0x48] sm:$0xff] }
  0x79   : > { %1407 = vmatpush1.bf16.msra.mxu0 %v2447_v25  ;;  %1513 = vmatpush1.bf16.msra.mxu1 %v2450_v26 }
  0x7a   : > { %1408 = vmatprep.subr.bf16.mxu0 %v2455_v27  ;;  %1514 = vmatprep.subr.bf16.mxu1 %v2458_v28 }
  0x7d   : > { %1409 = vmatpush1.bf16.msra.mxu0 %v2453_v29  ;;  %1515 = vmatpush1.bf16.msra.mxu1 %v2456_v30  ;;  %v520_v29 = vld [vmem:[#allocation2 + $0x28] sm:$0xff]  ;;  %v522_v30 = vld [vmem:[#allocation2 + $0x38] sm:$0xff] }
  0x7e   : > { %1410 = vmatprep.subr.bf16.mxu0 %v2461_v31  ;;  %1516 = vmatprep.subr.bf16.mxu1 %v2464_v32 }
  0x81   : > { %1411 = vmatpush1.bf16.msra.mxu0 %v2459_v33  ;;  %1517 = vmatpush1.bf16.msra.mxu1 %v2462_v35 }
  0x82   : > { %1412 = vmatprep.subr.bf16.mxu0 %v2467_v37  ;;  %1518 = vmatprep.subr.bf16.mxu1 %v2470_v38 }
  0x85   : > { %1413 = vmatpush1.bf16.msra.mxu0 %v2465_v39  ;;  %1519 = vmatpush1.bf16.msra.mxu1 %v2468_v40 }
  0x86   : > { %1414 = vmatprep.subr.bf16.mxu0 %v2473_v41  ;;  %1520 = vmatprep.subr.bf16.mxu1 %v2476_v42  ;;  %v523_v41 = vld [vmem:[#allocation2 + $0x40] sm:$0xff]  ;;  %v525_v42 = vld [vmem:[#allocation2 + $0x50] sm:$0xff] }
  0x89   : > { %1415 = vmatpush1.bf16.msra.mxu0 %v2471_v44  ;;  %1521 = vmatpush1.bf16.msra.mxu1 %v2474_v45  ;;  %v526_v44 = vld [vmem:[#allocation2 + $0x58] sm:$0xff] }
  0x8a   : > { %1416 = vmatprep.subr.bf16.mxu0 %v2479_v46  ;;  %1522 = vmatprep.subr.bf16.mxu1 %v2482_v47  ;;  %v527_v47 = vld [vmem:[#allocation2 + $0x60] sm:$0xff] }
  0x8d   : > { %1417 = vmatpush1.bf16.msra.mxu0 %v2477_v48  ;;  %1523 = vmatpush1.bf16.msra.mxu1 %v2480_v49  ;;  %v529_v48 = vld [vmem:[#allocation2 + $0x70] sm:$0xff] }
  0x8e   : > { %1418 = vmatprep.subr.bf16.mxu0 %v2485_v50  ;;  %1524 = vmatprep.subr.bf16.mxu1 %v2488_v51 }
  0x91   : > { %1419 = vmatpush1.bf16.msra.mxu0 %v2483_v52  ;;  %1525 = vmatpush1.bf16.msra.mxu1 %v2486_v53  ;;  %v528_v53 = vld [vmem:[#allocation2 + $0x68] sm:$0xff] }
  0x92   : > { %1420 = vmatprep.subr.bf16.mxu0 %v2491_v54  ;;  %1526 = vmatprep.subr.bf16.mxu1 %v2494_v55  ;;  %v530_v54 = vld [vmem:[#allocation2 + $0x78] sm:$0xff] }
  0x95   : > { %1421 = vmatpush1.bf16.msra.mxu0 %v2489_v56  ;;  %1527 = vmatpush1.bf16.msra.mxu1 %v2492_v57 }
  0x96   : > { %1422 = vmatprep.subr.bf16.mxu0 %v2497_v58  ;;  %1528 = vmatprep.subr.bf16.mxu1 %v2500_v59 }
  0x99   : > { %1423 = vmatpush1.bf16.msra.mxu0 %v2495_v60  ;;  %1529 = vmatpush1.bf16.msra.mxu1 %v2498_v61 }
  0x9a   : > { %1424 = vmatprep.subr.bf16.mxu0 %v2503_v62  ;;  %1530 = vmatprep.subr.bf16.mxu1 %v2506_v63 }
  0x9d   : > { %1425 = vmatpush1.bf16.msra.mxu0 %v2501_v0  ;;  %1531 = vmatpush1.bf16.msra.mxu1 %v2504_v1  ;;  %v1613_v1 = vlaneseq (!%p2231_p11) }
  0x9e   : > { %1426 = vmatprep.subr.bf16.mxu0 %v2509_v2  ;;  %1532 = vmatprep.subr.bf16.mxu1 %v2512_v3  ;;  %v1611_v3 = vld [vmem:[%s3115_s2] sm:$0xf] (!%p2231_p11) }
  0x9f   : > { %v1614_v2 = vshrl.u32 (!%p2231_p11), %v1613_v1, 7 }
  0xa1   : > { %1427 = vmatpush1.bf16.msra.mxu0 %v2507_v4  ;;  %1533 = vmatpush1.bf16.msra.mxu1 %v2510_v5 }
  0xa2   : > { %1428 = vmatprep.subr.bf16.mxu0 %v2518_v6  ;;  %1534 = vmatprep.subr.bf16.mxu1 %v2521_v7  ;;  %v1615_v6 = vsub.s32 (!%p2231_p11), 0, %v1614_v2  ;;  %v1619_v7 = vsub.s32 (!%p2231_p11), 1, %v1614_v2 }
  0xa5   : > { %1429 = vmatpush1.bf16.msra.mxu0 %v2516_v8  ;;  %1535 = vmatpush1.bf16.msra.mxu1 %v2519_v9  ;;  %v1623_v8 = vsub.s32 (!%p2231_p11), 2, %v1614_v2  ;;  %v1627_v9 = vsub.s32 (!%p2231_p11), 3, %v1614_v2 }
  0xa6   : > { %1430 = vmatprep.subr.bf16.mxu0 %v2524_v10  ;;  %1536 = vmatprep.subr.bf16.mxu1 %v2527_v11  ;;  %v1649_v10 = vld [vmem:[%s3116_s3] sm:$0xff] (!%p2231_p11)  ;;  %v1650_v11 = vld [vmem:[%s3116_s3 + $0x8] sm:$0xff] (!%p2231_p11) }
  0xa9   : > { %1431 = vmatpush1.bf16.msra.mxu0 %v2522_v12  ;;  %1537 = vmatpush1.bf16.msra.mxu1 %v2525_v13 }
  0xac   : > { %1433 = vmatmul.mubr.bf16.vlgmr.msra.gmra.mrb[0].mxu0 %v2528_v14  ;;  %1539 = vmatmul.mubr.bf16.vlgmr.msra.gmra.mrb[0].mxu1 %v2528_v14  ;;  %v1651_v14 = vld [vmem:[%s3116_s3 + $0x10] sm:$0xff] (!%p2231_p11) }
  0xad   : > { %1442 = vmatprep.mubr.bf16.mxu0 %v2531_v15  ;;  %1548 = vmatprep.mubr.bf16.mxu1 %v2531_v15  ;;  %v2815_v15 = vrot.slane (!%p2231_p11), %v1611_v3, %v1615_v6  ;;  %v1658_v6 = vld [vmem:[%s3116_s3 + $0x48] sm:$0xff] (!%p2231_p11) }
  0xb4   : > { %1443 = vmatmul.mubr.bf16.gmra.mrb[4].mxu0 %v2533_v16  ;;  %1549 = vmatmul.mubr.bf16.gmra.mrb[4].mxu1 %v2533_v16  ;;  %v2817_v16 = vrot.slane (!%p2231_p11), %v1611_v3, %v1619_v7 }
 0x17f   : > { %v1434_v21 = vpop.f32.mrb[0].mxu0  ;;  %v1540_v22 = vpop.f32.mrb[0].mxu1 }
 0x180   : > { %v1559_v25 = vadd.f32 %v1434_v21, %v515_v17  ;;  %v1561_v26 = vadd.f32 %v1540_v22, %v517_v18  ;;  %v1436_v27 = vpop.f32.mrb[1].mxu0  ;;  %v1542_v28 = vpop.f32.mrb[1].mxu1  ;;  %v2819_v17 = vrot.slane (!%p2231_p11), %v1611_v3, %v1623_v8  ;;  %v2821_v18 = vrot.slane (!%p2231_p11), %v1611_v3, %v1627_v9  ;;  %v1681_v22 = vld [vmem:[%s3117_s4] sm:$0xff] (!%p2231_p11) }
 0x181   : > { %v1560_v31 = vadd.f32 %v1436_v27, %v516_v19  ;;  %v1562_v32 = vadd.f32 %v1542_v28, %v518_v20  ;;  %v1438_v33 = vpop.f32.mrb[2].mxu0  ;;  %v1544_v34 = vpop.f32.mrb[2].mxu1  ;;  %v1657_v3 = vld [vmem:[%s3116_s3 + $0x40] sm:$0xff] (!%p2231_p11) }
 0x182   : > { %1575 = vst [vmem:[#allocation2] sm:$0xff] %v1559_v25  ;;  %1577 = vst [vmem:[#allocation2 + $0x10] sm:$0xff] %v1561_v26  ;;  %v1563_v35 = vadd.f32 %v1438_v33, %v519_v23  ;;  %v1565_v36 = vadd.f32 %v1544_v34, %v521_v24  ;;  %v1440_v37 = vpop.f32.mrb[3].mxu0  ;;  %v1546_v38 = vpop.f32.mrb[3].mxu1  ;;  %v1682_v23 = vld [vmem:[%s3117_s4 + $0x8] sm:$0xff] (!%p2231_p11)  ;;  %v1652_v24 = vld [vmem:[%s3116_s3 + $0x18] sm:$0xff] (!%p2231_p11) }
 0x183   : > { %1576 = vst [vmem:[#allocation2 + $0x8] sm:$0xff] %v1560_v31  ;;  %1578 = vst [vmem:[#allocation2 + $0x18] sm:$0xff] %v1562_v32  ;;  %v1564_v39 = vadd.f32 %v1440_v37, %v520_v29  ;;  %v1566_v40 = vadd.f32 %v1546_v38, %v522_v30  ;;  %v1653_v25 = vld [vmem:[%s3116_s3 + $0x20] sm:$0xff] (!%p2231_p11)  ;;  %v1654_v31 = vld [vmem:[%s3116_s3 + $0x28] sm:$0xff] (!%p2231_p11) }
 0x184   : > { %1579 = vst [vmem:[#allocation2 + $0x20] sm:$0xff] %v1563_v35  ;;  %1581 = vst [vmem:[#allocation2 + $0x30] sm:$0xff] %v1565_v36  ;;  %v1655_v32 = vld [vmem:[%s3116_s3 + $0x30] sm:$0xff] (!%p2231_p11)  ;;  %v1656_v33 = vld [vmem:[%s3116_s3 + $0x38] sm:$0xff] (!%p2231_p11) }
 0x185   : > { %1580 = vst [vmem:[#allocation2 + $0x28] sm:$0xff] %v1564_v39  ;;  %1582 = vst [vmem:[#allocation2 + $0x38] sm:$0xff] %v1566_v40  ;;  %v1683_v34 = vld [vmem:[%s3117_s4 + $0x10] sm:$0xff] (!%p2231_p11)  ;;  %v1684_v35 = vld [vmem:[%s3117_s4 + $0x18] sm:$0xff] (!%p2231_p11) }
 0x186   : > { %v1685_v38 = vld [vmem:[%s3117_s4 + $0x20] sm:$0xff] (!%p2231_p11) }
 0x187   : > { %v1444_v45 = vpop.f32.mrb[4].mxu0  ;;  %v1550_v46 = vpop.f32.mrb[4].mxu1  ;;  %1594 = sbr.rel (%p2231_p11) target bundleno = 430 (0x1ae), region = 71 }
 0x188   : > { %v1567_v49 = vadd.f32 %v1444_v45, %v523_v41  ;;  %v1569_v50 = vadd.f32 %v1550_v46, %v525_v42  ;;  %v1446_v51 = vpop.f32.mrb[5].mxu0  ;;  %v1552_v52 = vpop.f32.mrb[5].mxu1  ;;  %v1686_v45 = vld [vmem:[%s3117_s4 + $0x28] sm:$0xff] (!%p2231_p11)  ;;  %v1687_v46 = vld [vmem:[%s3117_s4 + $0x30] sm:$0xff] (!%p2231_p11) }
 0x189   : > { %v1568_v55 = vadd.f32 %v1446_v51, %v524_v43  ;;  %v1570_v56 = vadd.f32 %v1552_v52, %v526_v44  ;;  %v1448_v57 = vpop.f32.mrb[6].mxu0  ;;  %v1554_v58 = vpop.f32.mrb[6].mxu1  ;;  %v1595_v4 = vld [vmem:[#allocation2] sm:$0xff] (!%p2231_p11)  ;;  %v1597_v12 = vld [vmem:[#allocation2 + $0x10] sm:$0xff] (!%p2231_p11) }
 0x18a   : > { %1583 = vst [vmem:[#allocation2 + $0x40] sm:$0xff] %v1567_v49  ;;  %1585 = vst [vmem:[#allocation2 + $0x50] sm:$0xff] %v1569_v50  ;;  %v1571_v59 = vadd.f32 %v1448_v57, %v527_v47  ;;  %v1573_v60 = vadd.f32 %v1554_v58, %v529_v48  ;;  %v1450_v61 = vpop.f32.mrb[7].mxu0  ;;  %v1556_v62 = vpop.f32.mrb[7].mxu1  ;;  %v1596_v5 = vld [vmem:[#allocation2 + $0x8] sm:$0xff] (!%p2231_p11)  ;;  %v1598_v13 = vld [vmem:[#allocation2 + $0x18] sm:$0xff] (!%p2231_p11)  ;;  %v1633_v27 = vadd.f32 (!%p2231_p11), %v2815_v15, %v1595_v4 }
 0x18b   : > { %1584 = vst [vmem:[#allocation2 + $0x48] sm:$0xff] %v1568_v55  ;;  %1586 = vst [vmem:[#allocation2 + $0x58] sm:$0xff] %v1570_v56  ;;  %v1572_v63 = vadd.f32 %v1450_v61, %v528_v53  ;;  %v1574_v0 = vadd.f32 %v1556_v62, %v530_v54  ;;  %v1599_v19 = vld [vmem:[#allocation2 + $0x20] sm:$0xff] (!%p2231_p11)  ;;  %v1601_v21 = vld [vmem:[#allocation2 + $0x30] sm:$0xff] (!%p2231_p11)  ;;  %v1634_v28 = vadd.f32 (!%p2231_p11), %v2817_v16, %v1596_v5  ;;  %v2575_v61 = vmov (!%p2231_p11), 0.0  }
 0x18c   : > { %1587 = vst [vmem:[#allocation2 + $0x60] sm:$0xff] %v1571_v59  ;;  %1589 = vst [vmem:[#allocation2 + $0x70] sm:$0xff] %v1573_v60  ;;  %v1600_v20 = vld [vmem:[#allocation2 + $0x28] sm:$0xff] (!%p2231_p11)  ;;  %v1602_v26 = vld [vmem:[#allocation2 + $0x38] sm:$0xff] (!%p2231_p11)  ;;  %v1635_v29 = vadd.f32 (!%p2231_p11), %v2819_v17, %v1597_v12  ;;  %v1636_v30 = vadd.f32 (!%p2231_p11), %v2821_v18, %v1598_v13  ;;  %v1637_v36 = vadd.f32 (!%p2231_p11), %v2815_v15, %v1599_v19 }
 0x18d   : > { %1588 = vst [vmem:[#allocation2 + $0x68] sm:$0xff] %v1572_v63  ;;  %1590 = vst [vmem:[#allocation2 + $0x78] sm:$0xff] %v1574_v0  ;;  %v1638_v37 = vadd.f32 (!%p2231_p11), %v2817_v16, %v1600_v20  ;;  %v1639_v39 = vadd.f32 (!%p2231_p11), %v2819_v17, %v1601_v21  ;;  %v1640_v40 = vadd.f32 (!%p2231_p11), %v2821_v18, %v1602_v26  ;;  %v1688_v47 = vld [vmem:[%s3117_s4 + $0x38] sm:$0xff] (!%p2231_p11)  ;;  %v1689_v12 = vld [vmem:[%s3117_s4 + $0x40] sm:$0xff] (!%p2231_p11) }
 0x18e   : > { %v1665_v41 = vadd.f32 %v1649_v10, %v1633_v27  ;;  %v1666_v42 = vadd.f32 %v1650_v11, %v1634_v28  ;;  %v1667_v43 = vadd.f32 %v1651_v14, %v1635_v29  ;;  %v1668_v44 = vadd.f32 %v1652_v24, %v1636_v30  ;;  %v1659_v24 = vld [vmem:[%s3116_s3 + $0x50] sm:$0xff] }
 0x18f   : > { %v1669_v48 = vadd.f32 %v1653_v25, %v1637_v36  ;;  %v1670_v49 = vadd.f32 %v1654_v31, %v1638_v37  ;;  %v1671_v50 = vadd.f32 %v1655_v32, %v1639_v39  ;;  %v1672_v51 = vadd.f32 %v1656_v33, %v1640_v40  ;;  %v1660_v25 = vld [vmem:[%s3116_s3 + $0x58] sm:$0xff]  ;;  %v1661_v31 = vld [vmem:[%s3116_s3 + $0x60] sm:$0xff]  ;;  %v1662_v32 = vld [vmem:[%s3116_s3 + $0x68] sm:$0xff] }
 0x190   : > { %v2870_v52 = vadd.f32 %v1681_v22, %v1665_v41  ;;  %v2872_v53 = vadd.f32 %v1682_v23, %v1666_v42  ;;  %v2874_v54 = vadd.f32 %v1683_v34, %v1667_v43  ;;  %v2876_v55 = vadd.f32 %v1684_v35, %v1668_v44  ;;  %v1690_v23 = vld [vmem:[%s3117_s4 + $0x48] sm:$0xff]  ;;  %v1663_v33 = vld [vmem:[%s3116_s3 + $0x70] sm:$0xff]  ;;  %v1692_v36 = vld [vmem:[%s3117_s4 + $0x58] sm:$0xff] }
 0x191   : > { %v2878_v56 = vadd.f32 %v1685_v38, %v1669_v48  ;;  %v2880_v57 = vadd.f32 %v1686_v45, %v1670_v49  ;;  %v2882_v58 = vadd.f32 %v1687_v46, %v1671_v50  ;;  %v2884_v59 = vadd.f32 %v1688_v47, %v1672_v51  ;;  %v1603_v60 = vld [vmem:[#allocation2 + $0x40] sm:$0xff]  ;;  %v1605_v7 = vld [vmem:[#allocation2 + $0x50] sm:$0xff]  ;;  %v1664_v40 = vld [vmem:[%s3116_s3 + $0x78] sm:$0xff] }
 0x192   : > { %vm1713_vm0 = vcmp.ge.f32.partialorder %v2870_v52, 1.0  ;;  %vm1714_vm1 = vcmp.ge.f32.partialorder %v2872_v53, 1.0  ;;  %vm1715_vm2 = vcmp.ge.f32.partialorder %v2874_v54, 1.0  ;;  %vm1716_vm3 = vcmp.ge.f32.partialorder %v2876_v55, 1.0  ;;  %v1604_v2 = vld [vmem:[#allocation2 + $0x48] sm:$0xff]  ;;  %v1606_v8 = vld [vmem:[#allocation2 + $0x58] sm:$0xff] }
 0x193   : > { %v2891_v62 = vsel %vm1713_vm0, 1.0, %v2575_v61  ;;  %v2894_v63 = vsel %vm1714_vm1, 1.0, %v2575_v61  ;;  %v2897_v0 = vsel %vm1715_vm2, 1.0, %v2575_v61  ;;  %v2900_v1 = vsel %vm1716_vm3, 1.0, %v2575_v61  ;;  %v1607_v9 = vld [vmem:[#allocation2 + $0x60] sm:$0xff]  ;;  %v1609_v14 = vld [vmem:[#allocation2 + $0x70] sm:$0xff] }
 0x194   : > { %v2264_v4 = vpack.c.bf16 %v2894_v63, %v2891_v62  ;;  %v2265_v5 = vpack.c.bf16 %v2900_v1, %v2897_v0  ;;  %vm1717_vm4 = vcmp.ge.f32.partialorder %v2878_v56, 1.0  ;;  %vm1718_vm5 = vcmp.ge.f32.partialorder %v2880_v57, 1.0  ;;  %v1608_v13 = vld [vmem:[#allocation2 + $0x68] sm:$0xff]  ;;  %v1610_v26 = vld [vmem:[#allocation2 + $0x78] sm:$0xff]  ;;  %v1691_v35 = vld [vmem:[%s3117_s4 + $0x50] sm:$0xff] }
 0x195   : > { %v2915_v10 = vsel %vm1717_vm4, 1.0, %v2575_v61  ;;  %v2918_v11 = vsel %vm1718_vm5, 1.0, %v2575_v61  ;;  %vm1719_vm6 = vcmp.ge.f32.partialorder %v2882_v58, 1.0  ;;  %vm1720_vm7 = vcmp.ge.f32.partialorder %v2884_v59, 1.0  ;;  %v1693_v44 = vld [vmem:[%s3117_s4 + $0x60] sm:$0xff] }
 0x196   : > { %1809 = vst [vmem:[%s3118_s5] sm:$0xff] %v2264_v4  ;;  %1810 = vst [vmem:[%s3118_s5 + $0x8] sm:$0xff] %v2265_v5  ;;  %v2266_v19 = vpack.c.bf16 %v2918_v11, %v2915_v10  ;;  %v2934_v20 = vsel %vm1719_vm6, 1.0, %v2575_v61  ;;  %v2937_v21 = vsel %vm1720_vm7, 1.0, %v2575_v61  ;;  %v1641_v22 = vadd.f32 %v2815_v15, %v1603_v60  ;;  %v1696_v5 = vld [vmem:[%s3117_s4 + $0x78] sm:$0xff] }
 0x197   : > { %v2267_v27 = vpack.c.bf16 %v2937_v21, %v2934_v20  ;;  %v1642_v28 = vadd.f32 %v2817_v16, %v1604_v2  ;;  %v1643_v29 = vadd.f32 %v2819_v17, %v1605_v7  ;;  %v1644_v30 = vadd.f32 %v2821_v18, %v1606_v8 }
 0x198   : > { %1811 = vst [vmem:[%s3118_s5 + $0x10] sm:$0xff] %v2266_v19  ;;  %v1673_v34 = vadd.f32 %v1657_v3, %v1641_v22  ;;  %v1645_v37 = vadd.f32 %v2815_v15, %v1607_v9  ;;  %v1646_v38 = vadd.f32 %v2817_v16, %v1608_v13  ;;  %v1647_v39 = vadd.f32 %v2819_v17, %v1609_v14  ;;  %v1694_v15 = vld [vmem:[%s3117_s4 + $0x68] sm:$0xff]  ;;  %v1695_v17 = vld [vmem:[%s3117_s4 + $0x70] sm:$0xff] }
 0x199   : > { %1812 = vst [vmem:[%s3118_s5 + $0x18] sm:$0xff] %v2267_v27  ;;  %v1674_v41 = vadd.f32 %v1658_v6, %v1642_v28  ;;  %v1675_v42 = vadd.f32 %v1659_v24, %v1643_v29  ;;  %v1676_v43 = vadd.f32 %v1660_v25, %v1644_v30  ;;  %v1648_v16 = vadd.f32 %v2821_v18, %v1610_v26 }
 0x19a   : > { %v2991_v45 = vadd.f32 %v1689_v12, %v1673_v34  ;;  %v1677_v46 = vadd.f32 %v1661_v31, %v1645_v37  ;;  %v1678_v47 = vadd.f32 %v1662_v32, %v1646_v38  ;;  %v1679_v48 = vadd.f32 %v1663_v33, %v1647_v39 }
 0x19b   : > { %v1706_v49 = vadd.f32 %v1690_v23, %v1674_v41  ;;  %v2993_v50 = vadd.f32 %v1691_v35, %v1675_v42  ;;  %v2995_v51 = vadd.f32 %v1692_v36, %v1676_v43  ;;  %v1680_v60 = vadd.f32 %v1664_v40, %v1648_v16 }
 0x19c   : > { %vm1721_vm8 = vcmp.ge.f32.partialorder %v2991_v45, 1.0  ;;  %v1709_v2 = vadd.f32 %v1693_v44, %v1677_v46  ;;  %v2998_v3 = vadd.f32 %v1694_v15, %v1678_v47  ;;  %v3000_v18 = vadd.f32 %v1695_v17, %v1679_v48 }
 0x19d   : > { %vm1722_vm9 = vcmp.ge.f32.partialorder %v1706_v49, 1.0  ;;  %v2240_v4 = vsel %vm1721_vm8, 1.0, %v2575_v61  ;;  %vm1723_vm10 = vcmp.ge.f32.partialorder %v2993_v50, 1.0  ;;  %vm1724_vm11 = vcmp.ge.f32.partialorder %v2995_v51, 1.0 }
 0x19e   : > { %v2241_v6 = vsel %vm1722_vm9, 1.0, %v2575_v61  ;;  %v2242_v7 = vsel %vm1723_vm10, 1.0, %v2575_v61  ;;  %v2243_v8 = vsel %vm1724_vm11, 1.0, %v2575_v61  ;;  %vm1725_vm12 = vcmp.ge.f32.partialorder %v1709_v2, 1.0 }
 0x19f   : > { %v2268_v9 = vpack.c.bf16 %v2241_v6, %v2240_v4  ;;  %v2269_v12 = vpack.c.bf16 %v2243_v8, %v2242_v7  ;;  %vm1726_vm13 = vcmp.ge.f32.partialorder %v2998_v3, 1.0  ;;  %v2244_v13 = vsel %vm1725_vm12, 1.0, %v2575_v61 }
 0x1a0   : > { %v2245_v14 = vsel %vm1726_vm13, 1.0, %v2575_v61  ;;  %v1712_v19 = vadd.f32 %v1696_v5, %v1680_v60  ;;  %vm1727_vm14 = vcmp.ge.f32.partialorder %v3000_v18, 1.0  ;;  %v1817_v22 = vsub.f32 1.0, %v2891_v62 }
 0x1a1   : > { %1813 = vst [vmem:[%s3118_s5 + $0x20] sm:$0xff] %v2268_v9  ;;  %1814 = vst [vmem:[%s3118_s5 + $0x28] sm:$0xff] %v2269_v12  ;;  %v2270_v23 = vpack.c.bf16 %v2245_v14, %v2244_v13  ;;  %v2246_v24 = vsel %vm1727_vm14, 1.0, %v2575_v61  ;;  %v1818_v25 = vsub.f32 1.0, %v2894_v63  ;;  %v1819_v26 = vsub.f32 1.0, %v2897_v0 }
 0x1a2   : > { %vm1728_vm15 = vcmp.ge.f32.partialorder %v1712_v19, 1.0  ;;  %v1833_v27 = vmul.f32 %v1817_v22, %v2870_v52  ;;  %v1820_v62 = vsub.f32 1.0, %v2900_v1  ;;  %v1821_v28 = vsub.f32 1.0, %v2915_v10 }
 0x1a3   : > { %1815 = vst [vmem:[%s3118_s5 + $0x30] sm:$0xff] %v2270_v23  ;;  %v2247_v29 = vsel %vm1728_vm15, 1.0, %v2575_v61  ;;  %v1834_v30 = vmul.f32 %v1818_v25, %v2872_v53  ;;  %v1835_v31 = vmul.f32 %v1819_v26, %v2874_v54  ;;  %v1822_v63 = vsub.f32 1.0, %v2918_v11 }
 0x1a4   : > { %v2271_v0 = vpack.c.bf16 %v2247_v29, %v2246_v24  ;;  %1849 = vst [vmem:[%s3119_s6] sm:$0xff] %v1833_v27  ;;  %v1836_v52 = vmul.f32 %v1820_v62, %v2876_v55  ;;  %v1837_v1 = vmul.f32 %v1821_v28, %v2878_v56  ;;  %v1823_v10 = vsub.f32 1.0, %v2934_v20 }
 0x1a5   : > { %1850 = vst [vmem:[%s3119_s6 + $0x8] sm:$0xff] %v1834_v30  ;;  %1851 = vst [vmem:[%s3119_s6 + $0x10] sm:$0xff] %v1835_v31  ;;  %v1838_v53 = vmul.f32 %v1822_v63, %v2880_v57  ;;  %v1824_v54 = vsub.f32 1.0, %v2937_v21  ;;  %v1825_v61 = vsub.f32 1.0, %v2240_v4  ;;  %v1826_v11 = vsub.f32 1.0, %v2241_v6 }
 0x1a6   : > { %1816 = vst [vmem:[%s3118_s5 + $0x38] sm:$0xff] %v2271_v0  ;;  %1852 = vst [vmem:[%s3119_s6 + $0x18] sm:$0xff] %v1836_v52  ;;  %v1839_v55 = vmul.f32 %v1823_v10, %v2882_v58  ;;  %v1827_v56 = vsub.f32 1.0, %v2242_v7  ;;  %v1828_v57 = vsub.f32 1.0, %v2243_v8  ;;  %v1829_v20 = vsub.f32 1.0, %v2244_v13 }
 0x1a7   : > { %1853 = vst [vmem:[%s3119_s6 + $0x20] sm:$0xff] %v1837_v1  ;;  %1854 = vst [vmem:[%s3119_s6 + $0x28] sm:$0xff] %v1838_v53  ;;  %v1840_v21 = vmul.f32 %v1824_v54, %v2884_v59  ;;  %v1841_v32 = vmul.f32 %v1825_v61, %v2991_v45  ;;  %v1842_v33 = vmul.f32 %v1826_v11, %v1706_v49  ;;  %v1830_v34 = vsub.f32 1.0, %v2245_v14 }
 0x1a8   : > { %1855 = vst [vmem:[%s3119_s6 + $0x30] sm:$0xff] %v1839_v55  ;;  %v1843_v35 = vmul.f32 %v1827_v56, %v2993_v50  ;;  %v1844_v58 = vmul.f32 %v1828_v57, %v2995_v51  ;;  %v1845_v36 = vmul.f32 %v1829_v20, %v1709_v2  ;;  %v1831_v37 = vsub.f32 1.0, %v2246_v24 }
 0x1a9   : > { %1856 = vst [vmem:[%s3119_s6 + $0x38] sm:$0xff] %v1840_v21  ;;  %1857 = vst [vmem:[%s3119_s6 + $0x40] sm:$0xff] %v1841_v32  ;;  %v1846_v59 = vmul.f32 %v1830_v34, %v2998_v3  ;;  %v1832_v38 = vsub.f32 1.0, %v2247_v29 }
 0x1aa   : > { %1858 = vst [vmem:[%s3119_s6 + $0x48] sm:$0xff] %v1842_v33  ;;  %1859 = vst [vmem:[%s3119_s6 + $0x50] sm:$0xff] %v1843_v35  ;;  %v1847_v39 = vmul.f32 %v1831_v37, %v3000_v18 }
 0x1ab   : > { %1860 = vst [vmem:[%s3119_s6 + $0x58] sm:$0xff] %v1844_v58  ;;  %1861 = vst [vmem:[%s3119_s6 + $0x60] sm:$0xff] %v1845_v36  ;;  %v1848_v40 = vmul.f32 %v1832_v38, %v1712_v19 }
 0x1ac   : > { %1862 = vst [vmem:[%s3119_s6 + $0x68] sm:$0xff] %v1846_v59  ;;  %1863 = vst [vmem:[%s3119_s6 + $0x70] sm:$0xff] %v1847_v39 }
 0x1ad   : > { %1864 = vst [vmem:[%s3119_s6 + $0x78] sm:$0xff] %v1848_v40 }
 0x1ae PF: > { %s17_s25 = sadd.s32 1, %s2572_s25   ;;  %s3120_s21 = smov %s2560_s22 }
 0x1af   : > { %p14_p12 = scmp.ge.s32.totalorder %s17_s25, 11   ;;  %s3121_s22 = smov %s2646_s29 }
 0x1b0   : > { %s3122_s23 = smov %s2568_s24  ;;  %s3123_s24 = smov %s3125_s26 }
 0x1b1   :  { %16 = sbr.rel (!%p14_p12) target bundleno = 3 (0x3), region = 130 }

// kernel: closed_call.91
= control target key start
LH: loop header
LB: loop body
LE: loop exit
PB: predicated region body
PF: predicated region fallthrough
CT: control target
= control target key end

     0   :  { %vm181_vm0 = vcmask 1041409   ;;  %s743_s1 = inlined_call_operand.vmem [shape: f32[512,128], index: 1, kind: input, shape index: {}]   ;;  %s744_s0 = inlined_call_operand.vmem [shape: bf16[2,16,512], index: 0, kind: input, shape index: {}]   ;;  %s745_s2 = inlined_call_operand.vmem [shape: f32[1,128], index: 2, kind: input, shape index: {}]   ;;  %s746_s3 = inlined_call_operand.vmem [shape: f32[2,128], index: 3, kind: output, shape index: {}]  }
   0x1   :  { %v118_v0 = vld [vmem:[%s743_s1 + $0x80] sm:$0xff]  ;;  %v119_v1 = vld [vmem:[%s743_s1 + $0x88] sm:$0xff]  ;;  %v120_v11 = vld [vmem:[%s743_s1 + $0x90] sm:$0xff] }
   0x2   :  { %v102_v2 = vld [vmem:[%s743_s1] sm:$0xff]  ;;  %v406_v3 = vpack.c.bf16 %v119_v1, %v118_v0  ;;  %v103_v4 = vld [vmem:[%s743_s1 + $0x8] sm:$0xff]  ;;  %v121_v13 = vld [vmem:[%s743_s1 + $0x98] sm:$0xff] }
   0x3   :  { %v150_v5 = vld [vmem:[%s743_s1 + $0x180] sm:$0xff]  ;;  %v151_v6 = vld [vmem:[%s743_s1 + $0x188] sm:$0xff]  ;;  %v408_v7 = vpack.c.bf16 %v103_v4, %v102_v2  ;;  %v104_v14 = vld [vmem:[%s743_s1 + $0x10] sm:$0xff]  ;;  %v410_v16 = vpack.c.bf16 %v121_v13, %v120_v11 }
   0x4   :  { %v438_v8 = vpack.c.bf16 %v151_v6, %v150_v5  ;;  %v134_v9 = vld [vmem:[%s743_s1 + $0x100] sm:$0xff]  ;;  %v135_v10 = vld [vmem:[%s743_s1 + $0x108] sm:$0xff]  ;;  %407 = vmatprep.subr.bf16.mxu0 %v406_v3  ;;  %v105_v15 = vld [vmem:[%s743_s1 + $0x18] sm:$0xff] }
   0x5   :  { %v440_v12 = vpack.c.bf16 %v135_v10, %v134_v9  ;;  %409 = vmatpush3.bf16.msra.mxu0 %v408_v7  ;;  %v412_v17 = vpack.c.bf16 %v105_v15, %v104_v14  ;;  %v152_v18 = vld [vmem:[%s743_s1 + $0x190] sm:$0xff]  ;;  %v153_v19 = vld [vmem:[%s743_s1 + $0x198] sm:$0xff]  ;;  %v122_v23 = vld [vmem:[%s743_s1 + $0xa0] sm:$0xff] }
   0x6   :  { %439 = vmatprep.subr.bf16.mxu1 %v438_v8  ;;  %v136_v20 = vld [vmem:[%s743_s1 + $0x110] sm:$0xff]  ;;  %v442_v21 = vpack.c.bf16 %v153_v19, %v152_v18  ;;  %v137_v22 = vld [vmem:[%s743_s1 + $0x118] sm:$0xff]  ;;  %v123_v24 = vld [vmem:[%s743_s1 + $0xa8] sm:$0xff]  ;;  %411 = vmatprep.subr.bf16.mxu0 %v410_v16 }
   0x7   :  { %441 = vmatpush3.bf16.msra.mxu1 %v440_v12  ;;  %v444_v25 = vpack.c.bf16 %v137_v22, %v136_v20  ;;  %v414_v26 = vpack.c.bf16 %v123_v24, %v122_v23  ;;  %v106_v27 = vld [vmem:[%s743_s1 + $0x20] sm:$0xff]  ;;  %v107_v28 = vld [vmem:[%s743_s1 + $0x28] sm:$0xff]  ;;  %v124_v35 = vld [vmem:[%s743_s1 + $0xb0] sm:$0xff] }
   0x8   :  { %v154_v29 = vld [vmem:[%s743_s1 + $0x1a0] sm:$0xff]  ;;  %443 = vmatprep.subr.bf16.mxu1 %v442_v21  ;;  %v155_v30 = vld [vmem:[%s743_s1 + $0x1a8] sm:$0xff]  ;;  %v416_v33 = vpack.c.bf16 %v107_v28, %v106_v27  ;;  %v125_v36 = vld [vmem:[%s743_s1 + $0xb8] sm:$0xff] }
   0x9   :  { %v138_v31 = vld [vmem:[%s743_s1 + $0x120] sm:$0xff]  ;;  %v139_v32 = vld [vmem:[%s743_s1 + $0x128] sm:$0xff]  ;;  %413 = vmatpush3.bf16.msra.mxu0 %v412_v17  ;;  %v446_v34 = vpack.c.bf16 %v155_v30, %v154_v29  ;;  %v108_v37 = vld [vmem:[%s743_s1 + $0x30] sm:$0xff]  ;;  %v418_v39 = vpack.c.bf16 %v125_v36, %v124_v35 }
   0xa   :  { %415 = vmatprep.subr.bf16.mxu0 %v414_v26  ;;  %v448_v38 = vpack.c.bf16 %v139_v32, %v138_v31  ;;  %v109_v40 = vld [vmem:[%s743_s1 + $0x38] sm:$0xff]  ;;  %v156_v41 = vld [vmem:[%s743_s1 + $0x1b0] sm:$0xff]  ;;  %v126_v46 = vld [vmem:[%s743_s1 + $0xc0] sm:$0xff] }
   0xb   :  { %445 = vmatpush3.bf16.msra.mxu1 %v444_v25  ;;  %v157_v42 = vld [vmem:[%s743_s1 + $0x1b8] sm:$0xff]  ;;  %v140_v44 = vld [vmem:[%s743_s1 + $0x130] sm:$0xff]  ;;  %v127_v47 = vld [vmem:[%s743_s1 + $0xc8] sm:$0xff]  ;;  %v420_v50 = vpack.c.bf16 %v109_v40, %v108_v37 }
   0xc   :  { %447 = vmatprep.subr.bf16.mxu1 %v446_v34  ;;  %v450_v43 = vpack.c.bf16 %v157_v42, %v156_v41  ;;  %v141_v45 = vld [vmem:[%s743_s1 + $0x138] sm:$0xff]  ;;  %v110_v48 = vld [vmem:[%s743_s1 + $0x40] sm:$0xff]  ;;  %v111_v49 = vld [vmem:[%s743_s1 + $0x48] sm:$0xff]  ;;  %v422_v55 = vpack.c.bf16 %v127_v47, %v126_v46 }
   0xd   :  { %417 = vmatpush3.bf16.msra.mxu0 %v416_v33  ;;  %v158_v51 = vld [vmem:[%s743_s1 + $0x1c0] sm:$0xff]  ;;  %v159_v52 = vld [vmem:[%s743_s1 + $0x1c8] sm:$0xff]  ;;  %v452_v54 = vpack.c.bf16 %v141_v45, %v140_v44  ;;  %v128_v57 = vld [vmem:[%s743_s1 + $0xd0] sm:$0xff]  ;;  %v424_v2 = vpack.c.bf16 %v111_v49, %v110_v48 }
   0xe   :  { %v142_v53 = vld [vmem:[%s743_s1 + $0x140] sm:$0xff]  ;;  %419 = vmatprep.subr.bf16.mxu0 %v418_v39  ;;  %v143_v56 = vld [vmem:[%s743_s1 + $0x148] sm:$0xff]  ;;  %v129_v58 = vld [vmem:[%s743_s1 + $0xd8] sm:$0xff]  ;;  %v454_v59 = vpack.c.bf16 %v159_v52, %v158_v51 }
   0xf   :  { %449 = vmatpush3.bf16.msra.mxu1 %v448_v38  ;;  %v112_v60 = vld [vmem:[%s743_s1 + $0x50] sm:$0xff]  ;;  %v113_v61 = vld [vmem:[%s743_s1 + $0x58] sm:$0xff]  ;;  %v130_v3 = vld [vmem:[%s743_s1 + $0xe0] sm:$0xff]  ;;  %v456_v6 = vpack.c.bf16 %v143_v56, %v142_v53  ;;  %v426_v7 = vpack.c.bf16 %v129_v58, %v128_v57 }
  0x10   :  { %451 = vmatprep.subr.bf16.mxu1 %v450_v43  ;;  %v160_v62 = vld [vmem:[%s743_s1 + $0x1d0] sm:$0xff]  ;;  %v161_v63 = vld [vmem:[%s743_s1 + $0x1d8] sm:$0xff]  ;;  %v131_v4 = vld [vmem:[%s743_s1 + $0xe8] sm:$0xff]  ;;  %v428_v15 = vpack.c.bf16 %v113_v61, %v112_v60 }
  0x11   :  { %v144_v0 = vld [vmem:[%s743_s1 + $0x150] sm:$0xff]  ;;  %v145_v1 = vld [vmem:[%s743_s1 + $0x158] sm:$0xff]  ;;  %421 = vmatpush3.bf16.msra.mxu0 %v420_v50  ;;  %v643_v5 = vld [vmem:[%s743_s1 + $0x60] sm:$0xff]  ;;  %v458_v11 = vpack.c.bf16 %v161_v63, %v160_v62  ;;  %v430_v20 = vpack.c.bf16 %v131_v4, %v130_v3 }
  0x12   :  { %423 = vmatprep.subr.bf16.mxu0 %v422_v55  ;;  %v648_v8 = vld [vmem:[%s743_s1 + $0x68] sm:$0xff]  ;;  %v162_v9 = vld [vmem:[%s743_s1 + $0x1e0] sm:$0xff]  ;;  %v669_v14 = vld [vmem:[%s743_s1 + $0xf0] sm:$0xff]  ;;  %v460_v16 = vpack.c.bf16 %v145_v1, %v144_v0 }
  0x13   :  { %453 = vmatpush3.bf16.msra.mxu1 %v452_v54  ;;  %v163_v10 = vld [vmem:[%s743_s1 + $0x1e8] sm:$0xff]  ;;  %v659_v12 = vld [vmem:[%s743_s1 + $0x160] sm:$0xff]  ;;  %v133_v17 = vld [vmem:[%s743_s1 + $0xf8] sm:$0xff]  ;;  %v432_v21 = vpack.c.bf16 %v648_v8, %v643_v5 }
  0x14   :  { %455 = vmatprep.subr.bf16.mxu1 %v454_v59  ;;  %v664_v13 = vld [vmem:[%s743_s1 + $0x168] sm:$0xff]  ;;  %v677_v18 = vld [vmem:[%s743_s1 + $0x70] sm:$0xff]  ;;  %v682_v19 = vld [vmem:[%s743_s1 + $0x78] sm:$0xff]  ;;  %v462_v22 = vpack.c.bf16 %v163_v10, %v162_v9  ;;  %v434_v27 = vpack.c.bf16 %v133_v17, %v669_v14 }
  0x15   :  { %425 = vmatpush3.bf16.msra.mxu0 %v424_v2  ;;  %v464_v23 = vpack.c.bf16 %v664_v13, %v659_v12  ;;  %v164_v24 = vld [vmem:[%s743_s1 + $0x1f0] sm:$0xff]  ;;  %v165_v25 = vld [vmem:[%s743_s1 + $0x1f8] sm:$0xff]  ;;  %v436_v28 = vpack.c.bf16 %v682_v19, %v677_v18  ;;  %v14_v31 = vld [vmem:[%s744_s0] sm:$0xff] }
  0x16   :  { %v697_v26 = vld [vmem:[%s743_s1 + $0x170] sm:$0xff]  ;;  %427 = vmatprep.subr.bf16.mxu0 %v426_v7  ;;  %v466_v29 = vpack.c.bf16 %v165_v25, %v164_v24  ;;  %v705_v30 = vld [vmem:[%s743_s1 + $0x178] sm:$0xff]  ;;  %v18_v34 = vld [vmem:[%s744_s0 + $0x20] sm:$0xff]  ;;  %v23_v36 = vunpack.c.h.bf16 %v14_v31  ;;  %v22_v38 = vunpack.c.l.bf16 %v14_v31 }
  0x17   :  { %457 = vmatpush3.bf16.msra.mxu1 %v456_v6  ;;  %v16_v32 = vld [vmem:[%s744_s0 + $0x10] sm:$0xff]  ;;  %v468_v33 = vpack.c.bf16 %v705_v30, %v697_v26  ;;  %v15_v39 = vld [vmem:[%s744_s0 + $0x8] sm:$0xff]  ;;  %v31_v40 = vunpack.c.h.bf16 %v18_v34  ;;  %v30_v43 = vunpack.c.l.bf16 %v18_v34  ;;  %v17_v44 = vld [vmem:[%s744_s0 + $0x18] sm:$0xff] }
  0x18   :  { %459 = vmatprep.subr.bf16.mxu1 %v458_v11  ;;  %v20_v35 = vld [vmem:[%s744_s0 + $0x30] sm:$0xff]  ;;  %v27_v37 = vunpack.c.h.bf16 %v16_v32  ;;  %v26_v42 = vunpack.c.l.bf16 %v16_v32  ;;  %v19_v45 = vld [vmem:[%s744_s0 + $0x28] sm:$0xff]  ;;  %v21_v46 = vld [vmem:[%s744_s0 + $0x38] sm:$0xff]  ;;  %v25_v49 = vunpack.c.h.bf16 %v15_v39  ;;  %v29_v50 = vunpack.c.h.bf16 %v17_v44 }
  0x19   :  { %v35_v41 = vunpack.c.h.bf16 %v20_v35  ;;  %429 = vmatpush3.bf16.msra.mxu0 %v428_v15  ;;  %v34_v48 = vunpack.c.l.bf16 %v20_v35  ;;  %v33_v53 = vunpack.c.h.bf16 %v19_v45  ;;  %v37_v54 = vunpack.c.h.bf16 %v21_v46 }
  0x1a   :  { %v45_v47 = vadd.f32 %v27_v37, %v23_v36  ;;  %431 = vmatprep.subr.bf16.mxu0 %v430_v20  ;;  %v38_v52 = vadd.f32 %v26_v42, %v22_v38  ;;  %v59_v57 = vadd.f32 %v29_v50, %v25_v49  ;;  %v24_v58 = vunpack.c.l.bf16 %v15_v39 }
  0x1b   :  { %461 = vmatpush3.bf16.msra.mxu1 %v460_v16  ;;  %v73_v51 = vadd.f32 %v35_v41, %v31_v40  ;;  %v66_v56 = vadd.f32 %v34_v48, %v30_v43  ;;  %v87_v61 = vadd.f32 %v37_v54, %v33_v53  ;;  %v28_v62 = vunpack.c.l.bf16 %v17_v44 }
  0x1c   :  { %463 = vmatprep.subr.bf16.mxu1 %v462_v22  ;;  %v46_v55 = vrot.slane %v45_v47, 4  ;;  %v39_v60 = vrot.slane %v38_v52, 4  ;;  %v60_v1 = vrot.slane %v59_v57, 4  ;;  %v32_v2 = vunpack.c.l.bf16 %v19_v45 }
  0x1d   :  { %v74_v59 = vrot.slane %v73_v51, 4  ;;  %433 = vmatpush3.bf16.msra.mxu0 %v432_v21  ;;  %v67_v0 = vrot.slane %v66_v56, 4  ;;  %v88_v5 = vrot.slane %v87_v61, 4  ;;  %v36_v6 = vunpack.c.l.bf16 %v21_v46 }
  0x1e   :  { %v47_v63 = vadd.f32 %v46_v55, %v45_v47  ;;  %435 = vmatprep.subr.bf16.mxu0 %v434_v27  ;;  %v40_v4 = vadd.f32 %v39_v60, %v38_v52  ;;  %v61_v9 = vadd.f32 %v60_v1, %v59_v57  ;;  %v52_v10 = vadd.f32 %v28_v62, %v24_v58  ;;  %v335_v62 = vld [vmem:[%s745_s2] ss:$0 sm:$0xff] }
  0x1f   :  { %465 = vmatpush3.bf16.msra.mxu1 %v464_v23  ;;  %v75_v3 = vadd.f32 %v74_v59, %v73_v51  ;;  %v68_v8 = vadd.f32 %v67_v0, %v66_v56  ;;  %v89_v13 = vadd.f32 %v88_v5, %v87_v61  ;;  %v80_v14 = vadd.f32 %v36_v6, %v32_v2 }
  0x20   :  { %467 = vmatprep.subr.bf16.mxu1 %v466_v29  ;;  %v48_v7 = vrot.slane %v47_v63, 2  ;;  %v41_v12 = vrot.slane %v40_v4, 2  ;;  %v62_v17 = vrot.slane %v61_v9, 2  ;;  %v53_v18 = vrot.slane %v52_v10, 4 }
  0x21   :  { %v76_v11 = vrot.slane %v75_v3, 2  ;;  %437 = vmatpush3.bf16.msra.mxu0 %v436_v28  ;;  %v69_v16 = vrot.slane %v68_v8, 2  ;;  %v90_v21 = vrot.slane %v89_v13, 2  ;;  %v81_v22 = vrot.slane %v80_v14, 4 }
  0x22   :  { %v49_v15 = vadd.f32 %v48_v7, %v47_v63  ;;  %v42_v20 = vadd.f32 %v41_v12, %v40_v4  ;;  %v63_v25 = vadd.f32 %v62_v17, %v61_v9  ;;  %v54_v26 = vadd.f32 %v53_v18, %v52_v10 }
  0x23   :  { %469 = vmatpush3.bf16.msra.mxu1 %v468_v33  ;;  %v77_v19 = vadd.f32 %v76_v11, %v75_v3  ;;  %v70_v24 = vadd.f32 %v69_v16, %v68_v8  ;;  %v91_v30 = vadd.f32 %v90_v21, %v89_v13  ;;  %v82_v31 = vadd.f32 %v81_v22, %v80_v14 }
  0x24   :  { %v50_v23 = vrot.slane %v49_v15, 1  ;;  %v43_v29 = vrot.slane %v42_v20, 1  ;;  %v64_v28 = vrot.slane %v63_v25, 1  ;;  %v55_v35 = vrot.slane %v54_v26, 2 }
  0x25   :  { %v78_v27 = vrot.slane %v77_v19, 1  ;;  %v71_v34 = vrot.slane %v70_v24, 1  ;;  %v92_v38 = vrot.slane %v91_v30, 1  ;;  %v83_v33 = vrot.slane %v82_v31, 2 }
  0x26   :  { %v51_v32 = vadd.f32 %v50_v23, %v49_v15  ;;  %v44_v37 = vadd.f32 %v43_v29, %v42_v20  ;;  %v65_v41 = vadd.f32 %v64_v28, %v63_v25  ;;  %v56_v42 = vadd.f32 %v55_v35, %v54_v26 }
  0x27   :  { %v79_v36 = vadd.f32 %v78_v27, %v77_v19  ;;  %v72_v40 = vadd.f32 %v71_v34, %v70_v24  ;;  %v93_v45 = vadd.f32 %v92_v38, %v91_v30  ;;  %v84_v46 = vadd.f32 %v83_v33, %v82_v31 }
  0x28   :  { %v95_v39 = vmul.f32 0.0625, %v51_v32  ;;  %v94_v44 = vmul.f32 0.0625, %v44_v37  ;;  %v97_v48 = vmul.f32 0.0625, %v65_v41  ;;  %v57_v49 = vrot.slane %v56_v42, 1 }
  0x29   :  { %v99_v43 = vmul.f32 0.0625, %v79_v36  ;;  %v98_v47 = vmul.f32 0.0625, %v72_v40  ;;  %v101_v51 = vmul.f32 0.0625, %v93_v45  ;;  %v85_v52 = vrot.slane %v84_v46, 1 }
  0x2a   :  { %v58_v54 = vadd.f32 %v57_v49, %v56_v42 }
  0x2b   :  { %v183_v50 = vsel %vm181_vm0, %v99_v43, %v95_v39  ;;  %v182_v53 = vsel %vm181_vm0, %v98_v47, %v94_v44  ;;  %v185_v55 = vsel %vm181_vm0, %v101_v51, %v97_v48  ;;  %v86_v56 = vadd.f32 %v85_v52, %v84_v46 }
  0x2c   :  { %254 = vmatprep.mubr.f32.mxu0 %v183_v50  ;;  %324 = vmatprep.mubr.f32.mxu1 %v185_v55  ;;  %v96_v57 = vmul.f32 0.0625, %v58_v54 }
  0x2d   :  { %255 = vmatmul.mubr.f32.vlgmr.msra.gmra.mrb[0].mxu0 %v182_v53  ;;  %v100_v58 = vmul.f32 0.0625, %v86_v56 }
  0x2f   :  { %v184_v59 = vsel %vm181_vm0, %v100_v58, %v96_v57 }
  0x30   :  { %325 = vmatmul.mubr.f32.vlgmr.msra.gmra.mrb[0].mxu1 %v184_v59 }
 0x100   :  { %v368_v60 = vpop.f32.mrb[0].mxu0 }
 0x101   :  { %v369_v61 = vpop.f32.mrb[1].mxu0 }
 0x102   :  { %v370_v63 = vadd.f32 %v369_v61, %v368_v60 }
 0x103   :  { %v403_v1 = vpop.f32.mrb[0].mxu1 }
 0x104   :  { %v257_v0 = vadd.f32 %v370_v63, %v335_v62  ;;  %v404_v2 = vpop.f32.mrb[1].mxu1 }
 0x105   :  { %v405_v3 = vadd.f32 %v404_v2, %v403_v1 }
 0x107   :  { %v327_v4 = vadd.f32 %v405_v3, %v257_v0 }
 0x109   :  { %330 = vst [vmem:[%s746_s3] sm:$0x3] %v327_v4 }

</bundles_post_ra>
